<compile_context>
chip_gen: v6e
topology: v6e:2x2x1
jax: 0.10.0
libtpu: 0.0.40
codegen_flags: <defaults>
</compile_context>

<pallas_src>
import jax
import jax.numpy as jnp
from jax.experimental import pallas as pl
from jax.experimental.pallas import tpu as pltpu

# --- configuration consistent with ASPP(in_channels=4, dilations=(6,12,18)) ---
CIN = 4
COUT = 256                       # hard-coded inside the ASPP module
DILATIONS = (6, 12, 18)
PAD = max(DILATIONS)             # single zero-pad large enough for every dilation
H = W = 16
N = 2
NUM_BRANCHES = len(DILATIONS) + 2            # 1x1 + 3 dilated + image pool
K_REAL = CIN * (1 + 9 * len(DILATIONS) + 1)  # 116 slab rows carrying data
KPAD = 128                                   # slab rows padded for alignment


def _aspp_kernel(slab_ref, wblk_ref, ball_ref, wproj_ref, bproj_ref, out_ref):
    """One batch element per grid step.

    slab_ref  : (1, KPAD, HW)        im2col + pooled-broadcast slab (channel-major)
    wblk_ref  : (5*COUT, KPAD)       block-diagonal branch weights (BN folded)
    ball_ref  : (5*COUT, 1)          per-branch folded biases
    wproj_ref : (COUT, 5*COUT)       projection 1x1 conv weight (transposed)
    bproj_ref : (COUT, 1)            projection bias
    out_ref   : (1, COUT, HW)        channel-major (natively NCHW) output
    """
    slab = slab_ref[0]                                       # (KPAD, HW)

    # All five branches in one block-diagonal matmul + bias + ReLU.
    h = jnp.dot(wblk_ref[...], slab,
                preferred_element_type=jnp.float32)          # (5*COUT, HW)
    h = jnp.maximum(h + ball_ref[...], 0.0)

    # Fused projection (1x1 conv over the channel concat) + bias + ReLU.
    y = jnp.dot(wproj_ref[...], h,
                preferred_element_type=jnp.float32)          # (COUT, HW)
    y = jnp.maximum(y + bproj_ref[...], 0.0)
    # TODO(synk): nn.Dropout(0.1) is identity in eval mode; training-mode
    # stochastic dropout is not implemented here.
    out_ref[0] = y.astype(out_ref.dtype)


@jax.jit
def aspp_forward(x_nchw, params):
    n, cin, h, w = x_nchw.shape
    assert (cin, h, w) == (CIN, H, W)
    hw = H * W
    x = x_nchw.astype(jnp.float32)

    # ---- im2col (once, in XLA): channel-major, lane-dense slab -------------
    xpad = jnp.pad(x, ((0, 0), (0, 0), (PAD, PAD), (PAD, PAD)))
    cols = [x.reshape(n, CIN, hw)]                           # 1x1 center tap
    for d in DILATIONS:
        for ky in range(3):
            for kx in range(3):
                rs = PAD + (ky - 1) * d
                cs = PAD + (kx - 1) * d
                cols.append(
                    xpad[:, :, rs:rs + H, cs:cs + W].reshape(n, CIN, hw))
    pooled = jnp.mean(x, axis=(2, 3), keepdims=True).reshape(n, CIN, 1)
    cols.append(jnp.broadcast_to(pooled, (n, CIN, hw)))      # image-pool branch
    slab = jnp.concatenate(cols, axis=1)                     # (n, K_REAL, hw)
    slab = jnp.pad(slab, ((0, 0), (0, KPAD - K_REAL), (0, 0)))

    # ---- fold all branch weights into one block-diagonal matrix ------------
    wblk = jnp.zeros((NUM_BRANCHES * COUT, KPAD), jnp.float32)
    wblk = wblk.at[0:COUT, 0:CIN].set(params['w1'].reshape(CIN, COUT).T)
    off = CIN
    for di in range(len(DILATIONS)):
        wdT = params['wd'][di].reshape(9 * CIN, COUT).T      # tap-major (COUT, 36)
        wblk = wblk.at[(di + 1) * COUT:(di + 2) * COUT,
                       off:off + 9 * CIN].set(wdT)
        off += 9 * CIN
    wblk = wblk.at[4 * COUT:5 * COUT, off:off + CIN].set(
        params['wp'].reshape(CIN, COUT).T)

    ball = jnp.concatenate(
        [params['b1']] + [params['bd'][i] for i in range(len(DILATIONS))]
        + [params['bp']]).reshape(NUM_BRANCHES * COUT, 1)
    wprojT = params['wproj'].reshape(NUM_BRANCHES * COUT, COUT).T  # (COUT, 1280)
    bprojT = params['bproj'].reshape(COUT, 1)

    out_flat = pl.pallas_call(
        _aspp_kernel,
        out_shape=jax.ShapeDtypeStruct((n, COUT, hw), jnp.float32),
        grid_spec=pltpu.PrefetchScalarGridSpec(
            num_scalar_prefetch=0,
            grid=(n,),
            in_specs=[
                pl.BlockSpec((1, KPAD, hw), lambda i: (i, 0, 0)),
                pl.BlockSpec((NUM_BRANCHES * COUT, KPAD), lambda i: (0, 0)),
                pl.BlockSpec((NUM_BRANCHES * COUT, 1), lambda i: (0, 0)),
                pl.BlockSpec((COUT, NUM_BRANCHES * COUT), lambda i: (0, 0)),
                pl.BlockSpec((COUT, 1), lambda i: (0, 0)),
            ],
            out_specs=pl.BlockSpec((1, COUT, hw), lambda i: (i, 0, 0)),
        ),
        compiler_params=pltpu.CompilerParams(
            dimension_semantics=("parallel",)),
    )(slab, wblk, ball, wprojT, bprojT)

    # channel-major kernel output -> NCHW is a free reshape (no transpose).
    return out_flat.reshape(n, COUT, H, W)


def init_params(key):
    ks = jax.random.split(key, 8)
    s = 0.1
    return {
        'w1':    jax.random.normal(ks[0], (1, 1, CIN, COUT), jnp.float32) * s,
        'b1':    jax.random.normal(ks[1], (COUT,), jnp.float32) * s,
        'wd':    jax.random.normal(ks[2], (len(DILATIONS), 3, 3, CIN, COUT),
                                   jnp.float32) * s,
        'bd':    jax.random.normal(ks[3], (len(DILATIONS), COUT), jnp.float32) * s,
        'wp':    jax.random.normal(ks[4], (1, 1, CIN, COUT), jnp.float32) * s,
        'bp':    jax.random.normal(ks[5], (COUT,), jnp.float32) * s,
        'wproj': jax.random.normal(ks[6], (1, 1, NUM_BRANCHES * COUT, COUT),
                                   jnp.float32) * s,
        'bproj': jax.random.normal(ks[7], (COUT,), jnp.float32) * s,
    }


def aspp_reference(x_nchw, p):
    """Pure-JAX reference (lax convs) for correctness checking."""
    x = jnp.transpose(x_nchw, (0, 2, 3, 1)).astype(jnp.float32)

    def block(inp, w_hwio, b, dilation=1, padding=0):
        y = jax.lax.conv_general_dilated(
            inp, w_hwio, window_strides=(1, 1),
            padding=[(padding, padding), (padding, padding)],
            rhs_dilation=(dilation, dilation),
            dimension_numbers=('NHWC', 'HWIO', 'NHWC'))
        return jnp.maximum(y + b, 0.0)

    outs = [block(x, p['w1'], p['b1'])]
    for di, d in enumerate(DILATIONS):
        outs.append(block(x, p['wd'][di], p['bd'][di], dilation=d, padding=d))
    pooled = jnp.mean(x, axis=(1, 2), keepdims=True)
    yp = block(pooled, p['wp'], p['bp'])
    outs.append(jnp.broadcast_to(yp, x.shape[:3] + (COUT,)))   # bilinear of 1x1
    y = block(jnp.concatenate(outs, axis=-1), p['wproj'], p['bproj'])
    return jnp.transpose(y, (0, 3, 1, 2))


if __name__ == "__main__":
    key = jax.random.PRNGKey(0)
    kx, kp = jax.random.split(key)
    x = jax.random.normal(kx, (N, CIN, H, W), jnp.float32)
    params = init_params(kp)

    out = aspp_forward(x, params)
    out = jax.block_until_ready(out)
    assert out.shape == (N, COUT, H, W), out.shape

    ref = aspp_reference(x, params)
    err = float(jnp.max(jnp.abs(out - ref)))
    assert err < 2e-3, f"max abs err {err}"
    print("KERNEL_OK")
</pallas_src>

<mosaic_0001>
module attributes {stable_mosaic.version = 11 : i64} {
  func.func @_aspp_kernel(%arg0: i32, %arg1: memref<1x128x256xf32, #tpu.memory_space<vmem>>, %arg2: memref<1280x128xf32, #tpu.memory_space<vmem>>, %arg3: memref<1280x1xf32, #tpu.memory_space<vmem>>, %arg4: memref<256x1280xf32, #tpu.memory_space<vmem>>, %arg5: memref<256x1xf32, #tpu.memory_space<vmem>>, %arg6: memref<1x256x256xf32, #tpu.memory_space<vmem>>) attributes {dimension_semantics = [#tpu.dimension_semantics<parallel>], iteration_bounds = array<i64: 2>, scalar_prefetch = 0 : i64, scratch_operands = 0 : i64, tpu.core_type = #tpu.core_type<tc>, window_params = [{transform_indices = @transform_0, window_bounds = array<i64: 1, 128, 256>}, {pipeline_mode = #tpu.pipeline_mode<synchronous>, transform_indices = @transform_1, window_bounds = array<i64: 1280, 128>}, {pipeline_mode = #tpu.pipeline_mode<synchronous>, transform_indices = @transform_2, window_bounds = array<i64: 1280, 1>}, {pipeline_mode = #tpu.pipeline_mode<synchronous>, transform_indices = @transform_3, window_bounds = array<i64: 256, 1280>}, {pipeline_mode = #tpu.pipeline_mode<synchronous>, transform_indices = @transform_4, window_bounds = array<i64: 256, 1>}, {transform_indices = @transform_5, window_bounds = array<i64: 1, 256, 256>}]} {
    %c0 = arith.constant 0 : index
    %c0_0 = arith.constant 0 : index
    %c0_1 = arith.constant 0 : index
    %0 = vector.load %arg1[%c0, %c0_0, %c0_1] : memref<1x128x256xf32, #tpu.memory_space<vmem>>, vector<1x128x256xf32>
    %1 = vector.shape_cast %0 : vector<1x128x256xf32> to vector<128x256xf32>
    %c0_2 = arith.constant 0 : index
    %c0_3 = arith.constant 0 : index
    %2 = vector.load %arg2[%c0_2, %c0_3] : memref<1280x128xf32, #tpu.memory_space<vmem>>, vector<1280x128xf32>
    %cst = arith.constant dense<0.000000e+00> : vector<1280x256xf32>
    %3 = tpu.matmul %2, %1, %cst {dimension_numbers = #tpu.dot_dimension_numbers<[1], [0], [0], [1], [0, 0, 1, 1], [], []>} : vector<1280x128xf32>, vector<128x256xf32>, vector<1280x256xf32> -> vector<1280x256xf32>
    %c0_4 = arith.constant 0 : index
    %c0_5 = arith.constant 0 : index
    %4 = vector.load %arg3[%c0_4, %c0_5] : memref<1280x1xf32, #tpu.memory_space<vmem>>, vector<1280x1xf32>
    %5 = vector.broadcast %4 : vector<1280x1xf32> to vector<1280x256xf32>
    %6 = arith.addf %3, %5 : vector<1280x256xf32>
    %cst_6 = arith.constant 0.000000e+00 : f32
    %7 = vector.broadcast %cst_6 : f32 to vector<1280x256xf32>
    %8 = arith.maximumf %6, %7 : vector<1280x256xf32>
    %c0_7 = arith.constant 0 : index
    %c0_8 = arith.constant 0 : index
    %9 = vector.load %arg4[%c0_7, %c0_8] : memref<256x1280xf32, #tpu.memory_space<vmem>>, vector<256x1280xf32>
    %cst_9 = arith.constant dense<0.000000e+00> : vector<256x256xf32>
    %10 = tpu.matmul %9, %8, %cst_9 {dimension_numbers = #tpu.dot_dimension_numbers<[1], [0], [0], [1], [0, 0, 1, 1], [], []>} : vector<256x1280xf32>, vector<1280x256xf32>, vector<256x256xf32> -> vector<256x256xf32>
    %c0_10 = arith.constant 0 : index
    %c0_11 = arith.constant 0 : index
    %11 = vector.load %arg5[%c0_10, %c0_11] : memref<256x1xf32, #tpu.memory_space<vmem>>, vector<256x1xf32>
    %12 = vector.broadcast %11 : vector<256x1xf32> to vector<256x256xf32>
    %13 = arith.addf %10, %12 : vector<256x256xf32>
    %cst_12 = arith.constant 0.000000e+00 : f32
    %14 = vector.broadcast %cst_12 : f32 to vector<256x256xf32>
    %15 = arith.maximumf %13, %14 : vector<256x256xf32>
    %c0_13 = arith.constant 0 : index
    %c0_14 = arith.constant 0 : index
    %c0_15 = arith.constant 0 : index
    %16 = vector.load %arg6[%c0_13, %c0_14, %c0_15] : memref<1x256x256xf32, #tpu.memory_space<vmem>>, vector<1x256x256xf32>
    %17 = vector.shape_cast %16 : vector<1x256x256xf32> to vector<256x256xf32>
    %18 = vector.shape_cast %15 : vector<256x256xf32> to vector<1x256x256xf32>
    tpu.vector_store %arg6[%c0_13, %c0_14, %c0_15], %18 {strides = array<i32>} : memref<1x256x256xf32, #tpu.memory_space<vmem>>, vector<1x256x256xf32>,
    return
  }
  func.func @transform_0(%arg0: i32) -> (i32, i32, i32) {
    %c0_i32 = arith.constant 0 : i32
    %c0_i32_0 = arith.constant 0 : i32
    %c0_i32_1 = arith.constant 0 : i32
    return %arg0, %c0_i32, %c0_i32_0 : i32, i32, i32
  }
  func.func @transform_1(%arg0: i32) -> (i32, i32) {
    %c0_i32 = arith.constant 0 : i32
    %c0_i32_0 = arith.constant 0 : i32
    %c0_i32_1 = arith.constant 0 : i32
    return %c0_i32, %c0_i32_0 : i32, i32
  }
  func.func @transform_2(%arg0: i32) -> (i32, i32) {
    %c0_i32 = arith.constant 0 : i32
    %c0_i32_0 = arith.constant 0 : i32
    %c0_i32_1 = arith.constant 0 : i32
    return %c0_i32, %c0_i32_0 : i32, i32
  }
  func.func @transform_3(%arg0: i32) -> (i32, i32) {
    %c0_i32 = arith.constant 0 : i32
    %c0_i32_0 = arith.constant 0 : i32
    %c0_i32_1 = arith.constant 0 : i32
    return %c0_i32, %c0_i32_0 : i32, i32
  }
  func.func @transform_4(%arg0: i32) -> (i32, i32) {
    %c0_i32 = arith.constant 0 : i32
    %c0_i32_0 = arith.constant 0 : i32
    %c0_i32_1 = arith.constant 0 : i32
    return %c0_i32, %c0_i32_0 : i32, i32
  }
  func.func @transform_5(%arg0: i32) -> (i32, i32, i32) {
    %c0_i32 = arith.constant 0 : i32
    %c0_i32_0 = arith.constant 0 : i32
    %c0_i32_1 = arith.constant 0 : i32
    return %arg0, %c0_i32, %c0_i32_0 : i32, i32, i32
  }
}

</mosaic_0001>

<bundles_post_ra>
// kernel: custom-call
= control target key start
LH: loop header
LB: loop body
LE: loop exit
PB: predicated region body
PF: predicated region fallthrough
CT: control target
= control target key end

     0   :  { %s6_s0 = inlined_call_operand.vmem [shape: f32[1280], index: 0, kind: output, shape index: {}]  }

// kernel: squeeze.8
= control target key start
LH: loop header
LB: loop body
LE: loop exit
PB: predicated region body
PF: predicated region fallthrough
CT: control target
= control target key end

     0   :  { %s329_s0 = inlined_call_operand.vmem [shape: f32[1,3,3,4,256], index: 0, kind: input, shape index: {}]   ;;  %s330_s1 = inlined_call_operand.vmem [shape: f32[36,256], index: 1, kind: output, shape index: {}]  }
   0x1   :  { %v177_v0 = vld [vmem:[%s329_s0 + $0x44] sm:$0xf]  ;;  %v178_v1 = vld [vmem:[%s329_s0 + $0x40] sm:$0xf]  ;;  %v179_v2 = vld [vmem:[%s329_s0 + $0x3c] sm:$0xf] }
   0x2   :  { %9 = vst [vmem:[#allocation0 + $0x88] sm:$0xf] %v177_v0  ;;  %14 = vst [vmem:[#allocation0 + $0x50] sm:$0xf] %v178_v1  ;;  %v180_v3 = vld [vmem:[%s329_s0 + $0x38] sm:$0xf] }
   0x3   :  { %19 = vst [vmem:[#allocation0 + $0x10] sm:$0xf] %v179_v2  ;;  %v181_v4 = vld [vmem:[%s329_s0 + $0x34] sm:$0xf]  ;;  %v182_v5 = vld [vmem:[%s329_s0 + $0x30] sm:$0xf] }
   0x4   :  { %24 = vst [vmem:[#allocation0 + $0x30] sm:$0xf] %v180_v3  ;;  %29 = vst [vmem:[#allocation0 + $0x68] sm:$0xf] %v181_v4  ;;  %v183_v6 = vld [vmem:[%s329_s0 + $0x2c] sm:$0xf] }
   0x5   :  { %34 = vst [vmem:[#allocation0 + $0x80] sm:$0xf] %v182_v5  ;;  %v184_v7 = vld [vmem:[%s329_s0 + $0x28] sm:$0xf]  ;;  %v185_v8 = vld [vmem:[%s329_s0 + $0x24] sm:$0xf] }
   0x6   :  { %39 = vst [vmem:[#allocation0 + $0x18] sm:$0xf] %v183_v6  ;;  %44 = vst [vmem:[#allocation0 + $0x8] sm:$0xf] %v184_v7  ;;  %v186_v9 = vld [vmem:[%s329_s0 + $0x20] sm:$0xf] }
   0x7   :  { %49 = vst [vmem:[#allocation0] sm:$0xf] %v185_v8  ;;  %v187_v10 = vld [vmem:[%s329_s0 + $0x1c] sm:$0xf]  ;;  %v188_v11 = vld [vmem:[%s329_s0 + $0x18] sm:$0xf] }
   0x8   :  { %54 = vst [vmem:[#allocation0 + $0x48] sm:$0xf] %v186_v9  ;;  %59 = vst [vmem:[#allocation0 + $0x38] sm:$0xf] %v187_v10  ;;  %v189_v12 = vld [vmem:[%s329_s0 + $0x14] sm:$0xf] }
   0x9   :  { %64 = vst [vmem:[#allocation0 + $0x60] sm:$0xf] %v188_v11  ;;  %v190_v13 = vld [vmem:[%s329_s0 + $0x10] sm:$0xf]  ;;  %v191_v14 = vld [vmem:[%s329_s0 + $0xc] sm:$0xf] }
   0xa   :  { %69 = vst [vmem:[#allocation0 + $0x78] sm:$0xf] %v189_v12  ;;  %74 = vst [vmem:[#allocation0 + $0x40] sm:$0xf] %v190_v13  ;;  %v192_v15 = vld [vmem:[%s329_s0 + $0x8] sm:$0xf] }
   0xb   :  { %79 = vst [vmem:[#allocation0 + $0x58] sm:$0xf] %v191_v14  ;;  %v193_v16 = vld [vmem:[%s329_s0 + $0x4] sm:$0xf]  ;;  %v89_v17 = vld [vmem:[%s329_s0] sm:$0xf] }
   0xc   :  { %84 = vst [vmem:[#allocation0 + $0x70] sm:$0xf] %v192_v15  ;;  %88 = vst [vmem:[#allocation0 + $0x20] sm:$0xf] %v193_v16  ;;  %v150_v18 = vld [vmem:[#allocation0 + $0x10] sm:$0xf]  }
   0xd   :  { %90 = vst [vmem:[#allocation0 + $0x28] sm:$0xf] %v89_v17  ;;  %v154_v19 = vld [vmem:[#allocation0 + $0x50] sm:$0xf]   ;;  %v158_v20 = vld [vmem:[#allocation0 + $0x88] sm:$0xf]  }
   0xe   :  { %v138_v21 = vld [vmem:[#allocation0 + $0x80] sm:$0xf]   ;;  %v142_v22 = vld [vmem:[#allocation0 + $0x68] sm:$0xf]   ;;  %v146_v23 = vld [vmem:[#allocation0 + $0x30] sm:$0xf]  }
   0xf   :  { %208 = vst [vmem:[%s330_s1 + $0x3c] sm:$0xf] %v150_v18   ;;  %209 = vst [vmem:[%s330_s1 + $0x40] sm:$0xf] %v154_v19   ;;  %v126_v24 = vld [vmem:[#allocation0] sm:$0xf]  }
  0x10   :  { %210 = vst [vmem:[%s330_s1 + $0x48] sm:$0xf] %v158_v20   ;;  %v130_v25 = vld [vmem:[#allocation0 + $0x8] sm:$0xf]   ;;  %v134_v26 = vld [vmem:[#allocation0 + $0x18] sm:$0xf]  }
  0x11   :  { %205 = vst [vmem:[%s330_s1 + $0x30] sm:$0xf] %v138_v21   ;;  %206 = vst [vmem:[%s330_s1 + $0x38] sm:$0xf] %v142_v22   ;;  %v114_v27 = vld [vmem:[#allocation0 + $0x60] sm:$0xf]  }
  0x12   :  { %207 = vst [vmem:[%s330_s1 + $0x34] sm:$0xf] %v146_v23   ;;  %v118_v28 = vld [vmem:[#allocation0 + $0x38] sm:$0xf]   ;;  %v122_v29 = vld [vmem:[#allocation0 + $0x48] sm:$0xf]  }
  0x13   :  { %202 = vst [vmem:[%s330_s1 + $0x28] sm:$0xf] %v126_v24   ;;  %203 = vst [vmem:[%s330_s1 + $0x24] sm:$0xf] %v130_v25   ;;  %v102_v30 = vld [vmem:[#allocation0 + $0x58] sm:$0xf]  }
  0x14   :  { %204 = vst [vmem:[%s330_s1 + $0x2c] sm:$0xf] %v134_v26   ;;  %v106_v31 = vld [vmem:[#allocation0 + $0x40] sm:$0xf]   ;;  %v110_v32 = vld [vmem:[#allocation0 + $0x78] sm:$0xf]  }
  0x15   :  { %199 = vst [vmem:[%s330_s1 + $0x14] sm:$0xf] %v114_v27   ;;  %200 = vst [vmem:[%s330_s1 + $0x1c] sm:$0xf] %v118_v28   ;;  %v91_v33 = vld [vmem:[#allocation0 + $0x28] sm:$0xf]  }
  0x16   :  { %201 = vst [vmem:[%s330_s1 + $0x20] sm:$0xf] %v122_v29   ;;  %v94_v34 = vld [vmem:[#allocation0 + $0x20] sm:$0xf]   ;;  %v98_v35 = vld [vmem:[#allocation0 + $0x70] sm:$0xf]  }
  0x17   :  { %196 = vst [vmem:[%s330_s1 + $0xc] sm:$0xf] %v102_v30   ;;  %197 = vst [vmem:[%s330_s1 + $0x10] sm:$0xf] %v106_v31  }
  0x18   :  { %198 = vst [vmem:[%s330_s1 + $0x18] sm:$0xf] %v110_v32   ;;  %92 = vst [vmem:[%s330_s1] sm:$0xf] %v91_v33  }
  0x19   :  { %194 = vst [vmem:[%s330_s1 + $0x8] sm:$0xf] %v94_v34   ;;  %195 = vst [vmem:[%s330_s1 + $0x4] sm:$0xf] %v98_v35  }

// kernel: aspp_forward.1
= control target key start
LH: loop header
LB: loop body
LE: loop exit
PB: predicated region body
PF: predicated region fallthrough
CT: control target
= control target key end

     0   :  { %s4831_s18 = smov 0   ;;  %s9290_s0 = inlined_call_operand.vmem [shape: f32[2,128,256], index: 0, kind: input, shape index: {}]   ;;  %s9291_s1 = inlined_call_operand.vmem [shape: f32[1280,128], index: 1, kind: input, shape index: {}]   ;;  %s9292_s2 = inlined_call_operand.vmem [shape: f32[1280,1], index: 2, kind: input, shape index: {}]   ;;  %s9293_s3 = inlined_call_operand.vmem [shape: f32[256,1280], index: 3, kind: input, shape index: {}]   ;;  %s9294_s4 = inlined_call_operand.vmem [shape: f32[256,1], index: 4, kind: input, shape index: {}]   ;;  %s9295_s5 = inlined_call_operand.vmem [shape: f32[2,256,256], index: 5, kind: output, shape index: {}]  }
   0x1 LB: > { %s4702_s19 = sadd.s32 4294967295, %s4797_s18   ;;  %p4706_p0 = scmp.ge.s32.totalorder %s4797_s18, 1  ;;  %s4797_s18 = sphi %s4831_s18, %s15_s18  }
   0x2   : > { %p187_p1 = scmp.lt.s32.totalorder %s4797_s18, 3 }
   0x4   : > { %p188_p2 = pnand %p4706_p0, %p187_p1 }
   0x6   : > { %191 = sbr.rel (%p188_p2) target bundleno = 1263 (0x4ef), region = 40 }
   0xb   : > { %v432_v0 = vld [vmem:[%s9292_s2 + $0x78] sm:$0xff]  ;;  %v430_v1 = vld [vmem:[%s9292_s2 + $0x68] sm:$0xff]  ;;  %p215_p3 = scmp.lt.s32.totalorder %s4702_s19, 1  ;;  %v4799_v2 = vmov 0   ;;  %v431_v3 = vld [vmem:[%s9292_s2 + $0x70] sm:$0xff]  ;;  %v9296_v5 = vmov 0.0  }
   0xc   : > { %4790 = vset.pattern.permute.xlu1 %v4799_v2  ;;  %4789 = vset.pattern.permute.xlu0 %v4799_v2  ;;  %v429_v4 = vld [vmem:[%s9292_s2 + $0x60] sm:$0xff]  ;;  %v428_v9 = vld [vmem:[%s9292_s2 + $0x58] sm:$0xff]  ;;  %v427_v10 = vld [vmem:[%s9292_s2 + $0x50] sm:$0xff] }
   0xd   : > { %654 = vperm.xlu0 %4789, %v432_v0   ;;  %644 = vperm.xlu1 %4790, %v430_v1   ;;  %s9897_s19 = smov (!%p215_p3, %s4702_s19), 1  ;;  %v426_v15 = vld [vmem:[%s9292_s2 + $0x48] sm:$0xff]  ;;  %v425_v16 = vld [vmem:[%s9292_s2 + $0x40] sm:$0xff]  ;;  %v424_v21 = vld [vmem:[%s9292_s2 + $0x38] sm:$0xff] }
   0xe   : > { %1441 = vmatprep.mubr.f32.mxu0 %v9296_v5  ;;  %s4713_s28 = sshll.u32 %s9897_s19, 8  ;;  %v423_v22 = vld [vmem:[%s9292_s2 + $0x30] sm:$0xff]  ;;  %v422_v27 = vld [vmem:[%s9292_s2 + $0x28] sm:$0xff]  ;;  %v421_v28 = vld [vmem:[%s9292_s2 + $0x20] sm:$0xff]  ;;  %s4714_s10 = sshll.u32 %s9897_s19, 9 }
   0xf   : > { %s4858_s6 = scalar_lea.vmem %s9290_s0, %s4713_s28  ;;  %v420_v33 = vld [vmem:[%s9292_s2 + $0x18] sm:$0xff]  ;;  %v419_v34 = vld [vmem:[%s9292_s2 + $0x10] sm:$0xff]  ;;  %v418_v39 = vld [vmem:[%s9292_s2 + $0x8] sm:$0xff]  ;;  %s9158_s13 = scalar_lea.vmem %s9295_s5, %s4714_s10 }
  0x10   : > { %v256_v6 = vld [vmem:[%s4858_s6 + $0xf8] sm:$0xff]  ;;  %v255_v7 = vld [vmem:[%s4858_s6 + $0xf0] sm:$0xff]  ;;  %v254_v8 = vld [vmem:[%s4858_s6 + $0xe8] sm:$0xff] }
  0x11   : > { %649 = vperm.xlu0 %4789, %v431_v3   ;;  %639 = vperm.xlu1 %4790, %v429_v4   ;;  %v253_v11 = vld [vmem:[%s4858_s6 + $0xe0] sm:$0xff]  ;;  %v252_v12 = vld [vmem:[%s4858_s6 + $0xd8] sm:$0xff]  ;;  %v251_v13 = vld [vmem:[%s4858_s6 + $0xd0] sm:$0xff] }
  0x12   : > { %1377 = vmatprep.subr.mxu0 %v256_v6  ;;  %v250_v14 = vld [vmem:[%s4858_s6 + $0xc8] sm:$0xff]  ;;  %v249_v17 = vld [vmem:[%s4858_s6 + $0xc0] sm:$0xff]  ;;  %v248_v18 = vld [vmem:[%s4858_s6 + $0xb8] sm:$0xff] }
  0x13   : > { %1378 = vmatpush1.msra.mxu0 %v255_v7  ;;  %v247_v19 = vld [vmem:[%s4858_s6 + $0xb0] sm:$0xff]  ;;  %v246_v20 = vld [vmem:[%s4858_s6 + $0xa8] sm:$0xff]  ;;  %v245_v23 = vld [vmem:[%s4858_s6 + $0xa0] sm:$0xff] }
  0x14   : > { %1379 = vmatprep.subr.mxu0 %v254_v8  ;;  %v244_v24 = vld [vmem:[%s4858_s6 + $0x98] sm:$0xff]  ;;  %v243_v25 = vld [vmem:[%s4858_s6 + $0x90] sm:$0xff]  ;;  %v242_v26 = vld [vmem:[%s4858_s6 + $0x88] sm:$0xff] }
  0x15   : > { %634 = vperm.xlu0 %4789, %v428_v9   ;;  %629 = vperm.xlu1 %4790, %v427_v10   ;;  %v241_v29 = vld [vmem:[%s4858_s6 + $0x80] sm:$0xff]  ;;  %v240_v30 = vld [vmem:[%s4858_s6 + $0x78] sm:$0xff]  ;;  %v239_v31 = vld [vmem:[%s4858_s6 + $0x70] sm:$0xff] }
  0x16   : > { %1380 = vmatpush1.msra.mxu0 %v253_v11  ;;  %v238_v32 = vld [vmem:[%s4858_s6 + $0x68] sm:$0xff]  ;;  %v237_v35 = vld [vmem:[%s4858_s6 + $0x60] sm:$0xff]  ;;  %v236_v36 = vld [vmem:[%s4858_s6 + $0x58] sm:$0xff] }
  0x17   : > { %1381 = vmatprep.subr.mxu0 %v252_v12  ;;  %v235_v37 = vld [vmem:[%s4858_s6 + $0x50] sm:$0xff]  ;;  %v234_v38 = vld [vmem:[%s4858_s6 + $0x48] sm:$0xff]  ;;  %v417_v40 = vld [vmem:[%s9292_s2] sm:$0xff] }
  0x18   : > { %1382 = vmatpush1.msra.mxu0 %v251_v13  ;;  %v233_v41 = vld [vmem:[%s4858_s6 + $0x40] sm:$0xff]  ;;  %v232_v42 = vld [vmem:[%s4858_s6 + $0x38] sm:$0xff]  ;;  %v231_v43 = vld [vmem:[%s4858_s6 + $0x30] sm:$0xff] }
  0x19   : > { %1383 = vmatprep.subr.mxu0 %v250_v14  ;;  %624 = vperm.xlu0 %4789, %v426_v15   ;;  %v230_v44 = vld [vmem:[%s4858_s6 + $0x28] sm:$0xff]  ;;  %v448_v45 = vld [vmem:[%s9292_s2 + $0xf8] sm:$0xff]  ;;  %v447_v46 = vld [vmem:[%s9292_s2 + $0xf0] sm:$0xff] }
  0x1a   : > { %619 = vperm.xlu1 %4790, %v425_v16   ;;  %1384 = vmatpush1.msra.mxu0 %v249_v17  ;;  %v229_v47 = vld [vmem:[%s4858_s6 + $0x20] sm:$0xff]  ;;  %v228_v48 = vld [vmem:[%s4858_s6 + $0x18] sm:$0xff]  ;;  %v227_v49 = vld [vmem:[%s4858_s6 + $0x10] sm:$0xff] }
  0x1b   : > { %1385 = vmatprep.subr.mxu0 %v248_v18  ;;  %v226_v50 = vld [vmem:[%s4858_s6 + $0x8] sm:$0xff]  ;;  %v445_v52 = vld [vmem:[%s9292_s2 + $0xe0] sm:$0xff]  ;;  %v444_v55 = vld [vmem:[%s9292_s2 + $0xd8] sm:$0xff] }
  0x1c   : > { %1386 = vmatpush1.msra.mxu0 %v247_v19  ;;  %v446_v51 = vld [vmem:[%s9292_s2 + $0xe8] sm:$0xff]  ;;  %v225_v53 = vld [vmem:[%s4858_s6] sm:$0xff]  ;;  %v443_v56 = vld [vmem:[%s9292_s2 + $0xd0] sm:$0xff] }
  0x1d   : > { %1387 = vmatprep.subr.mxu0 %v246_v20  ;;  %614 = vperm.xlu0 %4789, %v424_v21   ;;  %v257_v54 = vld [vmem:[%s9291_s1] sm:$0xff]  ;;  %v258_v57 = vld [vmem:[%s9291_s1 + $0x8] sm:$0xff]  ;;  %v259_v60 = vld [vmem:[%s9291_s1 + $0x10] sm:$0xff] }
  0x1e   : > { %609 = vperm.xlu1 %4790, %v423_v22   ;;  %1388 = vmatpush1.msra.mxu0 %v245_v23  ;;  %v442_v58 = vld [vmem:[%s9292_s2 + $0xc8] sm:$0xff]  ;;  %v441_v59 = vld [vmem:[%s9292_s2 + $0xc0] sm:$0xff]  ;;  %v440_v61 = vld [vmem:[%s9292_s2 + $0xb8] sm:$0xff] }
  0x1f   : > { %1389 = vmatprep.subr.mxu0 %v244_v24  ;;  %v439_v62 = vld [vmem:[%s9292_s2 + $0xb0] sm:$0xff]  ;;  %v260_v63 = vld [vmem:[%s9291_s1 + $0x18] sm:$0xff]  ;;  %v438_v0 = vld [vmem:[%s9292_s2 + $0xa8] sm:$0xff] }
  0x20   : > { %1390 = vmatpush1.msra.mxu0 %v243_v25  ;;  %v437_v1 = vld [vmem:[%s9292_s2 + $0xa0] sm:$0xff]  ;;  %v436_v3 = vld [vmem:[%s9292_s2 + $0x98] sm:$0xff]  ;;  %v435_v4 = vld [vmem:[%s9292_s2 + $0x90] sm:$0xff] }
  0x21   : > { %1391 = vmatprep.subr.mxu0 %v242_v26  ;;  %604 = vperm.xlu0 %4789, %v422_v27   ;;  %v261_v2 = vld [vmem:[%s9291_s1 + $0x20] sm:$0xff]  ;;  %v262_v6 = vld [vmem:[%s9291_s1 + $0x28] sm:$0xff]  ;;  %v263_v9 = vld [vmem:[%s9291_s1 + $0x30] sm:$0xff] }
  0x22   : > { %599 = vperm.xlu1 %4790, %v421_v28   ;;  %1392 = vmatpush1.msra.mxu0 %v241_v29  ;;  %v434_v7 = vld [vmem:[%s9292_s2 + $0x88] sm:$0xff]  ;;  %v433_v8 = vld [vmem:[%s9292_s2 + $0x80] sm:$0xff]  ;;  %v464_v10 = vld [vmem:[%s9292_s2 + $0x178] sm:$0xff] }
  0x23   : > { %1393 = vmatprep.subr.mxu0 %v240_v30  ;;  %v463_v11 = vld [vmem:[%s9292_s2 + $0x170] sm:$0xff]  ;;  %v264_v12 = vld [vmem:[%s9291_s1 + $0x38] sm:$0xff]  ;;  %v462_v13 = vld [vmem:[%s9292_s2 + $0x168] sm:$0xff] }
  0x24   : > { %1394 = vmatpush1.msra.mxu0 %v239_v31  ;;  %v461_v14 = vld [vmem:[%s9292_s2 + $0x160] sm:$0xff]  ;;  %v460_v16 = vld [vmem:[%s9292_s2 + $0x158] sm:$0xff]  ;;  %v459_v17 = vld [vmem:[%s9292_s2 + $0x150] sm:$0xff] }
  0x25   : > { %1395 = vmatprep.subr.mxu0 %v238_v32  ;;  %594 = vperm.xlu0 %4789, %v420_v33   ;;  %v265_v15 = vld [vmem:[%s9291_s1 + $0x40] sm:$0xff]  ;;  %v266_v18 = vld [vmem:[%s9291_s1 + $0x48] sm:$0xff]  ;;  %v267_v21 = vld [vmem:[%s9291_s1 + $0x50] sm:$0xff] }
  0x26   : > { %589 = vperm.xlu1 %4790, %v419_v34   ;;  %1396 = vmatpush1.msra.mxu0 %v237_v35  ;;  %v458_v19 = vld [vmem:[%s9292_s2 + $0x148] sm:$0xff]  ;;  %v457_v20 = vld [vmem:[%s9292_s2 + $0x140] sm:$0xff]  ;;  %v456_v22 = vld [vmem:[%s9292_s2 + $0x138] sm:$0xff] }
  0x27   : > { %1397 = vmatprep.subr.mxu0 %v236_v36  ;;  %v455_v23 = vld [vmem:[%s9292_s2 + $0x130] sm:$0xff]  ;;  %v268_v24 = vld [vmem:[%s9291_s1 + $0x58] sm:$0xff]  ;;  %v454_v25 = vld [vmem:[%s9292_s2 + $0x128] sm:$0xff] }
  0x28   : > { %1398 = vmatpush1.msra.mxu0 %v235_v37  ;;  %v453_v26 = vld [vmem:[%s9292_s2 + $0x120] sm:$0xff]  ;;  %v452_v28 = vld [vmem:[%s9292_s2 + $0x118] sm:$0xff]  ;;  %v451_v29 = vld [vmem:[%s9292_s2 + $0x110] sm:$0xff] }
  0x29   : > { %1399 = vmatprep.subr.mxu0 %v234_v38  ;;  %584 = vperm.xlu0 %4789, %v418_v39   ;;  %v269_v27 = vld [vmem:[%s9291_s1 + $0x60] sm:$0xff]  ;;  %v270_v30 = vld [vmem:[%s9291_s1 + $0x68] sm:$0xff]  ;;  %v271_v33 = vld [vmem:[%s9291_s1 + $0x70] sm:$0xff] }
  0x2a   : > { %579 = vperm.xlu1 %4790, %v417_v40   ;;  %1400 = vmatpush1.msra.mxu0 %v233_v41  ;;  %v450_v31 = vld [vmem:[%s9292_s2 + $0x108] sm:$0xff]  ;;  %v449_v32 = vld [vmem:[%s9292_s2 + $0x100] sm:$0xff]  ;;  %v480_v34 = vld [vmem:[%s9292_s2 + $0x1f8] sm:$0xff] }
  0x2b   : > { %1401 = vmatprep.subr.mxu0 %v232_v42  ;;  %v479_v35 = vld [vmem:[%s9292_s2 + $0x1f0] sm:$0xff]  ;;  %v272_v36 = vld [vmem:[%s9291_s1 + $0x78] sm:$0xff]  ;;  %v478_v37 = vld [vmem:[%s9292_s2 + $0x1e8] sm:$0xff] }
  0x2c   : > { %1402 = vmatpush1.msra.mxu0 %v231_v43  ;;  %v477_v38 = vld [vmem:[%s9292_s2 + $0x1e0] sm:$0xff]  ;;  %v476_v40 = vld [vmem:[%s9292_s2 + $0x1d8] sm:$0xff]  ;;  %v475_v41 = vld [vmem:[%s9292_s2 + $0x1d0] sm:$0xff] }
  0x2d   : > { %1403 = vmatprep.subr.mxu0 %v230_v44  ;;  %734 = vperm.xlu0 %4789, %v448_v45   ;;  %v273_v39 = vld [vmem:[%s9291_s1 + $0x80] sm:$0xff]  ;;  %v274_v42 = vld [vmem:[%s9291_s1 + $0x88] sm:$0xff]  ;;  %v275_v45 = vld [vmem:[%s9291_s1 + $0x90] sm:$0xff] }
  0x2e   : > { %729 = vperm.xlu1 %4790, %v447_v46   ;;  %1404 = vmatpush1.msra.mxu0 %v229_v47  ;;  %v474_v43 = vld [vmem:[%s9292_s2 + $0x1c8] sm:$0xff]  ;;  %v473_v44 = vld [vmem:[%s9292_s2 + $0x1c0] sm:$0xff]  ;;  %v472_v46 = vld [vmem:[%s9292_s2 + $0x1b8] sm:$0xff] }
  0x2f   : > { %1405 = vmatprep.subr.mxu0 %v228_v48  ;;  %v471_v47 = vld [vmem:[%s9292_s2 + $0x1b0] sm:$0xff]  ;;  %v276_v48 = vld [vmem:[%s9291_s1 + $0x98] sm:$0xff] }
  0x30   : > { %1406 = vmatpush1.msra.mxu0 %v227_v49  ;;  %v470_v49 = vld [vmem:[%s9292_s2 + $0x1a8] sm:$0xff] }
  0x31   : > { %1407 = vmatprep.subr.mxu0 %v226_v50  ;;  %724 = vperm.xlu0 %4789, %v446_v51   ;;  %v469_v50 = vld [vmem:[%s9292_s2 + $0x1a0] sm:$0xff] }
  0x32   : > { %719 = vperm.xlu1 %4790, %v445_v52   ;;  %1408 = vmatpush1.msra.mxu0 %v225_v53  ;;  %v277_v51 = vld [vmem:[%s9291_s1 + $0xa0] sm:$0xff]  ;;  %v468_v52 = vld [vmem:[%s9292_s2 + $0x198] sm:$0xff]  ;;  %v467_v53 = vld [vmem:[%s9292_s2 + $0x190] sm:$0xff] }
  0x33   : > { %1442 = vmatmul.mubr.f32.vlgmr.msra.gmra.mxu0 %v257_v54  ;;  %v278_v54 = vld [vmem:[%s9291_s1 + $0xa8] sm:$0xff] }
  0x34   : > { %1447 = vmatprep.mubr.f32.mxu0 %v9296_v5 }
  0x35   : > { %714 = vperm.xlu0 %4789, %v444_v55   ;;  %v466_v55 = vld [vmem:[%s9292_s2 + $0x188] sm:$0xff] }
  0x36   : > { %709 = vperm.xlu1 %4790, %v443_v56   ;;  %v465_v56 = vld [vmem:[%s9292_s2 + $0x180] sm:$0xff] }
  0x37   : > { %1448 = vmatmul.mubr.f32.gmra.mxu0 %v258_v57 }
  0x38   : > { %1453 = vmatprep.mubr.f32.mxu0 %v9296_v5 }
  0x39   : > { %704 = vperm.xlu0 %4789, %v442_v58  }
  0x3a   : > { %699 = vperm.xlu1 %4790, %v441_v59   ;;  %v279_v59 = vld [vmem:[%s9291_s1 + $0xb0] sm:$0xff] }
  0x3b   : > { %1454 = vmatmul.mubr.f32.gmra.mxu0 %v259_v60  ;;  %v496_v60 = vld [vmem:[%s9292_s2 + $0x278] sm:$0xff] }
  0x3c   : > { %1459 = vmatprep.mubr.f32.mxu0 %v9296_v5 }
  0x3d   : > { %694 = vperm.xlu0 %4789, %v440_v61   ;;  %v495_v61 = vld [vmem:[%s9292_s2 + $0x270] sm:$0xff] }
  0x3e   : > { %689 = vperm.xlu1 %4790, %v439_v62  }
  0x3f   : > { %1460 = vmatmul.mubr.f32.gmra.mxu0 %v260_v63  ;;  %v280_v63 = vld [vmem:[%s9291_s1 + $0xb8] sm:$0xff] }
  0x40   : > { %1465 = vmatprep.mubr.f32.mxu0 %v9296_v5 }
  0x41   : > { %684 = vperm.xlu0 %4789, %v438_v0  }
  0x42   : > { %679 = vperm.xlu1 %4790, %v437_v1   ;;  %v494_v1 = vld [vmem:[%s9292_s2 + $0x268] sm:$0xff] }
  0x43   : > { %1466 = vmatmul.mubr.f32.gmra.mxu0 %v261_v2  ;;  %v493_v2 = vld [vmem:[%s9292_s2 + $0x260] sm:$0xff] }
  0x44   : > { %1471 = vmatprep.mubr.f32.mxu0 %v9296_v5 }
  0x45   : > { %674 = vperm.xlu0 %4789, %v436_v3   ;;  %v281_v3 = vld [vmem:[%s9291_s1 + $0xc0] sm:$0xff] }
  0x46   : > { %669 = vperm.xlu1 %4790, %v435_v4  }
  0x47   : > { %1472 = vmatmul.mubr.f32.gmra.mxu0 %v262_v6  ;;  %v492_v6 = vld [vmem:[%s9292_s2 + $0x258] sm:$0xff] }
  0x48   : > { %1477 = vmatprep.mubr.f32.mxu0 %v9296_v5 }
  0x49   : > { %664 = vperm.xlu0 %4789, %v434_v7  }
  0x4a   : > { %659 = vperm.xlu1 %4790, %v433_v8   ;;  %v491_v8 = vld [vmem:[%s9292_s2 + $0x250] sm:$0xff] }
  0x4b   : > { %1478 = vmatmul.mubr.f32.gmra.mxu0 %v263_v9  ;;  %v282_v9 = vld [vmem:[%s9291_s1 + $0xc8] sm:$0xff] }
  0x4c   : > { %1483 = vmatprep.mubr.f32.mxu0 %v9296_v5 }
  0x4d   : > { %814 = vperm.xlu0 %4789, %v464_v10   ;;  %v490_v10 = vld [vmem:[%s9292_s2 + $0x248] sm:$0xff] }
  0x4e   : > { %809 = vperm.xlu1 %4790, %v463_v11   ;;  %v489_v11 = vld [vmem:[%s9292_s2 + $0x240] sm:$0xff] }
  0x4f   : > { %1484 = vmatmul.mubr.f32.gmra.mxu0 %v264_v12 }
  0x50   : > { %1489 = vmatprep.mubr.f32.mxu0 %v9296_v5 }
  0x51   : > { %804 = vperm.xlu0 %4789, %v462_v13   ;;  %v283_v13 = vld [vmem:[%s9291_s1 + $0xd0] sm:$0xff] }
  0x52   : > { %799 = vperm.xlu1 %4790, %v461_v14  }
  0x53   : > { %1490 = vmatmul.mubr.f32.gmra.mxu0 %v265_v15  ;;  %v488_v15 = vld [vmem:[%s9292_s2 + $0x238] sm:$0xff] }
  0x54   : > { %1495 = vmatprep.mubr.f32.mxu0 %v9296_v5 }
  0x55   : > { %794 = vperm.xlu0 %4789, %v460_v16   ;;  %v487_v16 = vld [vmem:[%s9292_s2 + $0x230] sm:$0xff] }
  0x56   : > { %789 = vperm.xlu1 %4790, %v459_v17   ;;  %v284_v17 = vld [vmem:[%s9291_s1 + $0xd8] sm:$0xff] }
  0x57   : > { %1496 = vmatmul.mubr.f32.gmra.mxu0 %v266_v18 }
  0x58   : > { %1501 = vmatprep.mubr.f32.mxu0 %v9296_v5 }
  0x59   : > { %784 = vperm.xlu0 %4789, %v458_v19   ;;  %v486_v19 = vld [vmem:[%s9292_s2 + $0x228] sm:$0xff] }
  0x5a   : > { %779 = vperm.xlu1 %4790, %v457_v20  }
  0x5b   : > { %1502 = vmatmul.mubr.f32.gmra.mxu0 %v267_v21  ;;  %v485_v21 = vld [vmem:[%s9292_s2 + $0x220] sm:$0xff] }
  0x5c   : > { %1507 = vmatprep.mubr.f32.mxu0 %v9296_v5 }
  0x5d   : > { %774 = vperm.xlu0 %4789, %v456_v22   ;;  %v285_v22 = vld [vmem:[%s9291_s1 + $0xe0] sm:$0xff] }
  0x5e   : > { %769 = vperm.xlu1 %4790, %v455_v23   ;;  %v484_v23 = vld [vmem:[%s9292_s2 + $0x218] sm:$0xff] }
  0x5f   : > { %1508 = vmatmul.mubr.f32.gmra.mxu0 %v268_v24  ;;  %v483_v24 = vld [vmem:[%s9292_s2 + $0x210] sm:$0xff] }
  0x60   : > { %1513 = vmatprep.mubr.f32.mxu0 %v9296_v5 }
  0x61   : > { %764 = vperm.xlu0 %4789, %v454_v25  }
  0x62   : > { %759 = vperm.xlu1 %4790, %v453_v26   ;;  %v286_v26 = vld [vmem:[%s9291_s1 + $0xe8] sm:$0xff] }
  0x63   : > { %1514 = vmatmul.mubr.f32.gmra.mxu0 %v269_v27 }
  0x64   : > { %1519 = vmatprep.mubr.f32.mxu0 %v9296_v5 }
  0x65   : > { %754 = vperm.xlu0 %4789, %v452_v28   ;;  %v482_v28 = vld [vmem:[%s9292_s2 + $0x208] sm:$0xff] }
  0x66   : > { %749 = vperm.xlu1 %4790, %v451_v29   ;;  %v481_v29 = vld [vmem:[%s9292_s2 + $0x200] sm:$0xff] }
  0x67   : > { %1520 = vmatmul.mubr.f32.gmra.mxu0 %v270_v30  ;;  %v287_v30 = vld [vmem:[%s9291_s1 + $0xf0] sm:$0xff] }
  0x68   : > { %1525 = vmatprep.mubr.f32.mxu0 %v9296_v5 }
  0x69   : > { %744 = vperm.xlu0 %4789, %v450_v31  }
  0x6a   : > { %739 = vperm.xlu1 %4790, %v449_v32   ;;  %v512_v32 = vld [vmem:[%s9292_s2 + $0x2f8] sm:$0xff] }
  0x6b   : > { %1526 = vmatmul.mubr.f32.gmra.mxu0 %v271_v33 }
  0x6c   : > { %1531 = vmatprep.mubr.f32.mxu0 %v9296_v5 }
  0x6d   : > { %894 = vperm.xlu0 %4789, %v480_v34   ;;  %v511_v34 = vld [vmem:[%s9292_s2 + $0x2f0] sm:$0xff] }
  0x6e   : > { %889 = vperm.xlu1 %4790, %v479_v35   ;;  %v288_v35 = vld [vmem:[%s9291_s1 + $0xf8] sm:$0xff] }
  0x6f   : > { %1532 = vmatmul.mubr.f32.gmra.mxu0 %v272_v36  ;;  %v510_v36 = vld [vmem:[%s9292_s2 + $0x2e8] sm:$0xff] }
  0x70   : > { %1537 = vmatprep.mubr.f32.mxu0 %v9296_v5 }
  0x71   : > { %884 = vperm.xlu0 %4789, %v478_v37   ;;  %v509_v37 = vld [vmem:[%s9292_s2 + $0x2e0] sm:$0xff] }
  0x72   : > { %879 = vperm.xlu1 %4790, %v477_v38  }
  0x73   : > { %1538 = vmatmul.mubr.f32.gmra.mxu0 %v273_v39  ;;  %v289_v39 = vld [vmem:[%s9291_s1 + $0x100] sm:$0xff] }
  0x74   : > { %1543 = vmatprep.mubr.f32.mxu0 %v9296_v5 }
  0x75   : > { %874 = vperm.xlu0 %4789, %v476_v40  }
  0x76   : > { %869 = vperm.xlu1 %4790, %v475_v41   ;;  %v508_v41 = vld [vmem:[%s9292_s2 + $0x2d8] sm:$0xff] }
  0x77   : > { %1544 = vmatmul.mubr.f32.gmra.mxu0 %v274_v42  ;;  %v507_v42 = vld [vmem:[%s9292_s2 + $0x2d0] sm:$0xff] }
  0x78   : > { %1549 = vmatprep.mubr.f32.mxu0 %v9296_v5 }
  0x79   : > { %864 = vperm.xlu0 %4789, %v474_v43   ;;  %v290_v43 = vld [vmem:[%s9291_s1 + $0x108] sm:$0xff] }
  0x7a   : > { %859 = vperm.xlu1 %4790, %v473_v44  }
  0x7b   : > { %1550 = vmatmul.mubr.f32.gmra.mxu0 %v275_v45  ;;  %v506_v45 = vld [vmem:[%s9292_s2 + $0x2c8] sm:$0xff] }
  0x7c   : > { %1555 = vmatprep.mubr.f32.mxu0 %v9296_v5 }
  0x7d   : > { %854 = vperm.xlu0 %4789, %v472_v46  }
  0x7e   : > { %849 = vperm.xlu1 %4790, %v471_v47   ;;  %v505_v47 = vld [vmem:[%s9292_s2 + $0x2c0] sm:$0xff] }
  0x7f   : > { %1556 = vmatmul.mubr.f32.gmra.mxu0 %v276_v48  ;;  %v291_v48 = vld [vmem:[%s9291_s1 + $0x110] sm:$0xff] }
  0x80   : > { %1561 = vmatprep.mubr.f32.mxu0 %v9296_v5 }
  0x81   : > { %844 = vperm.xlu0 %4789, %v470_v49   ;;  %v504_v49 = vld [vmem:[%s9292_s2 + $0x2b8] sm:$0xff] }
  0x82   : > { %839 = vperm.xlu1 %4790, %v469_v50   ;;  %v503_v50 = vld [vmem:[%s9292_s2 + $0x2b0] sm:$0xff] }
  0x83   : > { %1562 = vmatmul.mubr.f32.gmra.mxu0 %v277_v51 }
  0x84   : > { %1567 = vmatprep.mubr.f32.mxu0 %v9296_v5 }
  0x85   : > { %834 = vperm.xlu0 %4789, %v468_v52   ;;  %v292_v52 = vld [vmem:[%s9291_s1 + $0x118] sm:$0xff] }
  0x86   : > { %829 = vperm.xlu1 %4790, %v467_v53  }
  0x87   : > { %1568 = vmatmul.mubr.f32.gmra.mxu0 %v278_v54  ;;  %v502_v54 = vld [vmem:[%s9292_s2 + $0x2a8] sm:$0xff] }
  0x88   : > { %v5159_v57 = vpop.permute.xlu0 %654  ;;  %v5161_v58 = vpop.permute.xlu1 %644  ;;  %1573 = vmatprep.mubr.f32.mxu0 %v9296_v5 }
  0x89   : > { %824 = vperm.xlu0 %4789, %v466_v55   ;;  %v501_v55 = vld [vmem:[%s9292_s2 + $0x2a0] sm:$0xff] }
  0x8a   : > { %819 = vperm.xlu1 %4790, %v465_v56   ;;  %v293_v56 = vld [vmem:[%s9291_s1 + $0x120] sm:$0xff] }
  0x8b   : > { %1574 = vmatmul.mubr.f32.gmra.mxu0 %v279_v59 }
  0x8c   : > { %v5173_v62 = vpop.permute.xlu0 %649  ;;  %1579 = vmatprep.mubr.f32.mxu0 %v9296_v5  ;;  %v5179_v0 = vpop.permute.xlu1 %639 }
  0x8d   : > { %974 = vperm.xlu0 %4789, %v496_v60   ;;  %v500_v60 = vld [vmem:[%s9292_s2 + $0x298] sm:$0xff] }
  0x8e   : > { %969 = vperm.xlu1 %4790, %v495_v61  }
  0x8f   : > { %1580 = vmatmul.mubr.f32.gmra.mxu0 %v280_v63  ;;  %v499_v63 = vld [vmem:[%s9292_s2 + $0x290] sm:$0xff] }
  0x90   : > { %1585 = vmatprep.mubr.f32.mxu0 %v9296_v5  ;;  %v5191_v4 = vpop.permute.xlu0 %634  ;;  %v5196_v7 = vpop.permute.xlu1 %629 }
  0x91   : > { %964 = vperm.xlu0 %4789, %v494_v1   ;;  %v294_v1 = vld [vmem:[%s9291_s1 + $0x128] sm:$0xff] }
  0x92   : > { %959 = vperm.xlu1 %4790, %v493_v2   ;;  %v498_v2 = vld [vmem:[%s9292_s2 + $0x288] sm:$0xff] }
  0x93   : > { %1586 = vmatmul.mubr.f32.gmra.mxu0 %v281_v3  ;;  %v497_v3 = vld [vmem:[%s9292_s2 + $0x280] sm:$0xff] }
  0x94   : > { %1591 = vmatprep.mubr.f32.mxu0 %v9296_v5  ;;  %v5211_v12 = vpop.permute.xlu0 %624 }
  0x95   : > { %954 = vperm.xlu0 %4789, %v492_v6   ;;  %v5217_v14 = vpop.permute.xlu1 %619 }
  0x96   : > { %949 = vperm.xlu1 %4790, %v491_v8   ;;  %v295_v8 = vld [vmem:[%s9291_s1 + $0x130] sm:$0xff] }
  0x97   : > { %1592 = vmatmul.mubr.f32.gmra.mxu0 %v282_v9 }
  0x98   : > { %1597 = vmatprep.mubr.f32.mxu0 %v9296_v5  ;;  %v5229_v18 = vpop.permute.xlu0 %614 }
  0x99   : > { %944 = vperm.xlu0 %4789, %v490_v10   ;;  %v5234_v20 = vpop.permute.xlu1 %609  ;;  %v528_v10 = vld [vmem:[%s9292_s2 + $0x378] sm:$0xff] }
  0x9a   : > { %939 = vperm.xlu1 %4790, %v489_v11   ;;  %v527_v11 = vld [vmem:[%s9292_s2 + $0x370] sm:$0xff] }
  0x9b   : > { %1598 = vmatmul.mubr.f32.gmra.mxu0 %v283_v13  ;;  %v296_v13 = vld [vmem:[%s9291_s1 + $0x138] sm:$0xff] }
  0x9c   : > { %1603 = vmatprep.mubr.f32.mxu0 %v9296_v5  ;;  %v5249_v25 = vpop.permute.xlu0 %604 }
  0x9d   : > { %934 = vperm.xlu0 %4789, %v488_v15   ;;  %v5255_v27 = vpop.permute.xlu1 %599 }
  0x9e   : > { %929 = vperm.xlu1 %4790, %v487_v16   ;;  %v526_v16 = vld [vmem:[%s9292_s2 + $0x368] sm:$0xff] }
  0x9f   : > { %1604 = vmatmul.mubr.f32.gmra.mxu0 %v284_v17 }
  0xa0   : > { %1609 = vmatprep.mubr.f32.mxu0 %v9296_v5  ;;  %v5267_v31 = vpop.permute.xlu0 %594 }
  0xa1   : > { %924 = vperm.xlu0 %4789, %v486_v19   ;;  %v5272_v33 = vpop.permute.xlu1 %589  ;;  %v525_v19 = vld [vmem:[%s9292_s2 + $0x360] sm:$0xff] }
  0xa2   : > { %919 = vperm.xlu1 %4790, %v485_v21   ;;  %v297_v21 = vld [vmem:[%s9291_s1 + $0x140] sm:$0xff] }
  0xa3   : > { %1610 = vmatmul.mubr.f32.gmra.mxu0 %v285_v22  ;;  %v524_v22 = vld [vmem:[%s9292_s2 + $0x358] sm:$0xff] }
  0xa4   : > { %1615 = vmatprep.mubr.f32.mxu0 %v9296_v5  ;;  %v5287_v38 = vpop.permute.xlu0 %584 }
  0xa5   : > { %914 = vperm.xlu0 %4789, %v484_v23   ;;  %v5293_v40 = vpop.permute.xlu1 %579  ;;  %v523_v23 = vld [vmem:[%s9292_s2 + $0x350] sm:$0xff] }
  0xa6   : > { %909 = vperm.xlu1 %4790, %v483_v24  }
  0xa7   : > { %1616 = vmatmul.mubr.f32.gmra.mxu0 %v286_v26  ;;  %v298_v26 = vld [vmem:[%s9291_s1 + $0x148] sm:$0xff] }
  0xa8   : > { %1621 = vmatprep.mubr.f32.mxu0 %v9296_v5  ;;  %v5305_v44 = vpop.permute.xlu0 %734 }
  0xa9   : > { %904 = vperm.xlu0 %4789, %v482_v28   ;;  %v5310_v46 = vpop.permute.xlu1 %729 }
  0xaa   : > { %899 = vperm.xlu1 %4790, %v481_v29   ;;  %v522_v29 = vld [vmem:[%s9292_s2 + $0x348] sm:$0xff] }
  0xab   : > { %1622 = vmatmul.mubr.f32.gmra.mxu0 %v287_v30  ;;  %v521_v30 = vld [vmem:[%s9292_s2 + $0x340] sm:$0xff] }
  0xac   : > { %1627 = vmatprep.mubr.f32.mxu0 %v9296_v5  ;;  %v5325_v51 = vpop.permute.xlu0 %724 }
  0xad   : > { %1054 = vperm.xlu0 %4789, %v512_v32   ;;  %v5331_v53 = vpop.permute.xlu1 %719  ;;  %v299_v32 = vld [vmem:[%s9291_s1 + $0x150] sm:$0xff] }
  0xae   : > { %1049 = vperm.xlu1 %4790, %v511_v34  }
  0xaf   : > { %1628 = vmatmul.mubr.f32.gmra.mxu0 %v288_v35  ;;  %v520_v35 = vld [vmem:[%s9292_s2 + $0x338] sm:$0xff] }
  0xb0   : > { %1633 = vmatprep.mubr.f32.mxu0 %v9296_v5  ;;  %v5343_v59 = vpop.permute.xlu0 %714 }
  0xb1   : > { %1044 = vperm.xlu0 %4789, %v510_v36   ;;  %v5348_v61 = vpop.permute.xlu1 %709 }
  0xb2   : > { %1039 = vperm.xlu1 %4790, %v509_v37   ;;  %9411 = vst [vmem:[#allocation2_spill] sm:$0xff] %v5348_v61  ;;  %v519_v37 = vld [vmem:[%s9292_s2 + $0x330] sm:$0xff] }
  0xb3   : > { %1634 = vmatmul.mubr.f32.gmra.mxu0 %v289_v39  ;;  %v300_v39 = vld [vmem:[%s9291_s1 + $0x158] sm:$0xff] }
  0xb4   : > { %1639 = vmatprep.mubr.f32.mxu0 %v9296_v5  ;;  %v5363_v6 = vpop.permute.xlu0 %704 }
  0xb5   : > { %1034 = vperm.xlu0 %4789, %v508_v41   ;;  %9412 = vst [vmem:[#allocation3_spill] sm:$0xff] %v5363_v6  ;;  %v5369_v9 = vpop.permute.xlu1 %699  ;;  %v518_v41 = vld [vmem:[%s9292_s2 + $0x328] sm:$0xff]  ;;  %v571_v6 = vld [vmem:[%s9292_s2 + $0x4d0] sm:$0xff] }
  0xb6   : > { %1029 = vperm.xlu1 %4790, %v507_v42   ;;  %9413 = vst [vmem:[#allocation4_spill] sm:$0xff] %v5369_v9  ;;  %v517_v42 = vld [vmem:[%s9292_s2 + $0x320] sm:$0xff] }
  0xb7   : > { %1640 = vmatmul.mubr.f32.gmra.mxu0 %v290_v43 }
  0xb8   : > { %1645 = vmatprep.mubr.f32.mxu0 %v9296_v5  ;;  %v5381_v15 = vpop.permute.xlu0 %694 }
  0xb9   : > { %1024 = vperm.xlu0 %4789, %v506_v45   ;;  %9414 = vst [vmem:[#allocation5_spill] sm:$0xff] %v5381_v15  ;;  %v5386_v17 = vpop.permute.xlu1 %689  ;;  %v301_v45 = vld [vmem:[%s9291_s1 + $0x160] sm:$0xff] }
  0xba   : > { %1019 = vperm.xlu1 %4790, %v505_v47   ;;  %9415 = vst [vmem:[#allocation6_spill] sm:$0xff] %v5386_v17  ;;  %v573_v17 = vld [vmem:[%s9292_s2 + $0x4e0] sm:$0xff] }
  0xbb   : > { %1646 = vmatmul.mubr.f32.gmra.mxu0 %v291_v48  ;;  %v516_v48 = vld [vmem:[%s9292_s2 + $0x318] sm:$0xff] }
  0xbc   : > { %1651 = vmatprep.mubr.f32.mxu0 %v9296_v5  ;;  %v5401_v24 = vpop.permute.xlu0 %684 }
  0xbd   : > { %1014 = vperm.xlu0 %4789, %v504_v49   ;;  %9416 = vst [vmem:[#allocation7_spill] sm:$0xff] %v5401_v24  ;;  %v5407_v28 = vpop.permute.xlu1 %679  ;;  %v515_v49 = vld [vmem:[%s9292_s2 + $0x310] sm:$0xff] }
  0xbe   : > { %1009 = vperm.xlu1 %4790, %v503_v50   ;;  %9417 = vst [vmem:[#allocation8_spill] sm:$0xff] %v5407_v28  ;;  %v302_v50 = vld [vmem:[%s9291_s1 + $0x168] sm:$0xff]  ;;  %v575_v28 = vld [vmem:[%s9292_s2 + $0x4f0] sm:$0xff] }
  0xbf   : > { %1652 = vmatmul.mubr.f32.gmra.mxu0 %v292_v52 }
  0xc0   : > { %1657 = vmatprep.mubr.f32.mxu0 %v9296_v5  ;;  %v5419_v34 = vpop.permute.xlu0 %674 }
  0xc1   : > { %1004 = vperm.xlu0 %4789, %v502_v54   ;;  %9418 = vst [vmem:[#allocation9_spill] sm:$0xff] %v5419_v34  ;;  %v5424_v36 = vpop.permute.xlu1 %669  ;;  %v514_v54 = vld [vmem:[%s9292_s2 + $0x308] sm:$0xff]  ;;  %v576_v34 = vld [vmem:[%s9292_s2 + $0x4f8] sm:$0xff] }
  0xc2   : > { %999 = vperm.xlu1 %4790, %v501_v55   ;;  %9419 = vst [vmem:[#allocation10_spill] sm:$0xff] %v5424_v36  ;;  %v319_v36 = vld [vmem:[%s9291_s1 + $0x1f0] sm:$0xff] }
  0xc3   : > { %1658 = vmatmul.mubr.f32.gmra.mxu0 %v293_v56  ;;  %v513_v56 = vld [vmem:[%s9292_s2 + $0x300] sm:$0xff] }
  0xc4   : > { %1663 = vmatprep.mubr.f32.mxu0 %v9296_v5  ;;  %v5439_v43 = vpop.permute.xlu0 %664 }
  0xc5   : > { %994 = vperm.xlu0 %4789, %v500_v60   ;;  %9420 = vst [vmem:[#allocation11_spill] sm:$0xff] %v5439_v43  ;;  %v5445_v47 = vpop.permute.xlu1 %659  ;;  %v303_v60 = vld [vmem:[%s9291_s1 + $0x170] sm:$0xff] }
  0xc6   : > { %989 = vperm.xlu1 %4790, %v499_v63   ;;  %9421 = vst [vmem:[#allocation12_spill] sm:$0xff] %v5445_v47  ;;  %v544_v63 = vld [vmem:[%s9292_s2 + $0x3f8] sm:$0xff]  ;;  %v547_v47 = vld [vmem:[%s9292_s2 + $0x410] sm:$0xff] }
  0xc7   : > { %1664 = vmatmul.mubr.f32.gmra.mxu0 %v294_v1  ;;  %v543_v1 = vld [vmem:[%s9292_s2 + $0x3f0] sm:$0xff] }
  0xc8   : > { %1669 = vmatprep.mubr.f32.mxu0 %v9296_v5  ;;  %v5457_v52 = vpop.permute.xlu0 %814 }
  0xc9   : > { %984 = vperm.xlu0 %4789, %v498_v2   ;;  %9422 = vst [vmem:[#allocation13_spill] sm:$0xff] %v5457_v52  ;;  %v5462_v55 = vpop.permute.xlu1 %809 }
  0xca   : > { %979 = vperm.xlu1 %4790, %v497_v3   ;;  %9423 = vst [vmem:[#allocation14_spill] sm:$0xff] %v5462_v55  ;;  %v304_v3 = vld [vmem:[%s9291_s1 + $0x178] sm:$0xff] }
  0xcb   : > { %1670 = vmatmul.mubr.f32.gmra.mxu0 %v295_v8 }
  0xcc   : > { %1675 = vmatprep.mubr.f32.mxu0 %v9296_v5  ;;  %v5477_v2 = vpop.permute.xlu0 %804 }
  0xcd   : > { %1134 = vperm.xlu0 %4789, %v528_v10   ;;  %9424 = vst [vmem:[#allocation15_spill] sm:$0xff] %v5477_v2  ;;  %v5483_v8 = vpop.permute.xlu1 %799  ;;  %v542_v10 = vld [vmem:[%s9292_s2 + $0x3e8] sm:$0xff] }
  0xce   : > { %1129 = vperm.xlu1 %4790, %v527_v11   ;;  %9425 = vst [vmem:[#allocation16_spill] sm:$0xff] %v5483_v8  ;;  %v541_v11 = vld [vmem:[%s9292_s2 + $0x3e0] sm:$0xff] }
  0xcf   : > { %1676 = vmatmul.mubr.f32.gmra.mxu0 %v296_v13  ;;  %v305_v13 = vld [vmem:[%s9291_s1 + $0x180] sm:$0xff] }
  0xd0   : > { %1681 = vmatprep.mubr.f32.mxu0 %v9296_v5 }
  0xd1   : > { %1124 = vperm.xlu0 %4789, %v526_v16   ;;  %v5495_v16 = vpop.permute.xlu0 %794 }
  0xd2   : > { %1119 = vperm.xlu1 %4790, %v525_v19   ;;  %9426 = vst [vmem:[#allocation17_spill] sm:$0xff] %v5495_v16  ;;  %v540_v19 = vld [vmem:[%s9292_s2 + $0x3d8] sm:$0xff] }
  0xd3   : > { %1682 = vmatmul.mubr.f32.gmra.mxu0 %v297_v21  ;;  %v5500_v21 = vpop.permute.xlu1 %789 }
  0xd4   : > { %1687 = vmatprep.mubr.f32.mxu0 %v9296_v5  ;;  %9427 = vst [vmem:[#allocation18_spill] sm:$0xff] %v5500_v21  ;;  %v553_v21 = vld [vmem:[%s9292_s2 + $0x440] sm:$0xff] }
  0xd5   : > { %1114 = vperm.xlu0 %4789, %v524_v22  }
  0xd6   : > { %1109 = vperm.xlu1 %4790, %v523_v23   ;;  %v539_v23 = vld [vmem:[%s9292_s2 + $0x3d0] sm:$0xff] }
  0xd7   : > { %1688 = vmatmul.mubr.f32.gmra.mxu0 %v298_v26  ;;  %v306_v26 = vld [vmem:[%s9291_s1 + $0x188] sm:$0xff] }
  0xd8   : > { %1693 = vmatprep.mubr.f32.mxu0 %v9296_v5 }
  0xd9   : > { %1104 = vperm.xlu0 %4789, %v522_v29  }
  0xda   : > { %1099 = vperm.xlu1 %4790, %v521_v30   ;;  %v538_v30 = vld [vmem:[%s9292_s2 + $0x3c8] sm:$0xff] }
  0xdb   : > { %1694 = vmatmul.mubr.f32.gmra.mxu0 %v299_v32 }
  0xdc   : > { %1699 = vmatprep.mubr.f32.mxu0 %v9296_v5 }
  0xdd   : > { %1094 = vperm.xlu0 %4789, %v520_v35   ;;  %v537_v35 = vld [vmem:[%s9292_s2 + $0x3c0] sm:$0xff] }
  0xde   : > { %1089 = vperm.xlu1 %4790, %v519_v37   ;;  %v5521_v37 = vpop.permute.xlu0 %784 }
  0xdf   : > { %1700 = vmatmul.mubr.f32.gmra.mxu0 %v300_v39  ;;  %9428 = vst [vmem:[#allocation19_spill] sm:$0xff] %v5521_v37  ;;  %v307_v39 = vld [vmem:[%s9291_s1 + $0x190] sm:$0xff] }
  0xe0   : > { %1705 = vmatprep.mubr.f32.mxu0 %v9296_v5 }
  0xe1   : > { %1084 = vperm.xlu0 %4789, %v518_v41   ;;  %v5527_v41 = vpop.permute.xlu1 %779 }
  0xe2   : > { %1079 = vperm.xlu1 %4790, %v517_v42   ;;  %9429 = vst [vmem:[#allocation20_spill] sm:$0xff] %v5527_v41 }
  0xe3   : > { %1706 = vmatmul.mubr.f32.gmra.mxu0 %v301_v45  ;;  %v536_v45 = vld [vmem:[%s9292_s2 + $0x3b8] sm:$0xff] }
  0xe4   : > { %1711 = vmatprep.mubr.f32.mxu0 %v9296_v5 }
  0xe5   : > { %1074 = vperm.xlu0 %4789, %v516_v48  }
  0xe6   : > { %1069 = vperm.xlu1 %4790, %v515_v49   ;;  %v535_v49 = vld [vmem:[%s9292_s2 + $0x3b0] sm:$0xff] }
  0xe7   : > { %1712 = vmatmul.mubr.f32.gmra.mxu0 %v302_v50  ;;  %v308_v50 = vld [vmem:[%s9291_s1 + $0x198] sm:$0xff] }
  0xe8   : > { %1717 = vmatprep.mubr.f32.mxu0 %v9296_v5 }
  0xe9   : > { %1064 = vperm.xlu0 %4789, %v514_v54  }
  0xea   : > { %1059 = vperm.xlu1 %4790, %v513_v56   ;;  %v5545_v56 = vpop.permute.xlu0 %774 }
  0xeb   : > { %1718 = vmatmul.mubr.f32.gmra.mxu0 %v303_v60  ;;  %9430 = vst [vmem:[#allocation21_spill] sm:$0xff] %v5545_v56  ;;  %v534_v60 = vld [vmem:[%s9292_s2 + $0x3a8] sm:$0xff] }
  0xec   : > { %1723 = vmatprep.mubr.f32.mxu0 %v9296_v5 }
  0xed   : > { %1214 = vperm.xlu0 %4789, %v544_v63   ;;  %v5550_v63 = vpop.permute.xlu1 %769 }
  0xee   : > { %1209 = vperm.xlu1 %4790, %v543_v1   ;;  %9431 = vst [vmem:[#allocation22_spill] sm:$0xff] %v5550_v63 }
  0xef   : > { %1724 = vmatmul.mubr.f32.gmra.mxu0 %v304_v3  ;;  %v533_v3 = vld [vmem:[%s9292_s2 + $0x3a0] sm:$0xff] }
  0xf0   : > { %1729 = vmatprep.mubr.f32.mxu0 %v9296_v5 }
  0xf1   : > { %1204 = vperm.xlu0 %4789, %v542_v10   ;;  %v309_v10 = vld [vmem:[%s9291_s1 + $0x1a0] sm:$0xff] }
  0xf2   : > { %1199 = vperm.xlu1 %4790, %v541_v11  }
  0xf3   : > { %v5502_v22 = vpop.f32.mrf.mxu0  ;;  %1730 = vmatmul.mubr.f32.gmra.mxu0 %v305_v13  ;;  %v532_v13 = vld [vmem:[%s9292_s2 + $0x398] sm:$0xff] }
  0xf4   : > { %1735 = vmatprep.mubr.f32.mxu0 %v9296_v5 }
  0xf5   : > { %v5511_v29 = vpop.f32.mrf.mxu0  ;;  %1194 = vperm.xlu0 %4789, %v540_v19  }
  0xf6   : > { %1189 = vperm.xlu1 %4790, %v539_v23   ;;  %v531_v23 = vld [vmem:[%s9292_s2 + $0x390] sm:$0xff] }
  0xf7   : > { %v5516_v32 = vpop.f32.mrf.mxu0  ;;  %1736 = vmatmul.mubr.f32.gmra.mxu0 %v306_v26  ;;  %v5571_v26 = vpop.permute.xlu0 %764 }
  0xf8   : > { %1741 = vmatprep.mubr.f32.mxu0 %v9296_v5  ;;  %9432 = vst [vmem:[#allocation23_spill] sm:$0xff] %v5571_v26 }
  0xf9   : > { %v5529_v42 = vpop.f32.mrf.mxu0  ;;  %1184 = vperm.xlu0 %4789, %v538_v30   ;;  %v310_v30 = vld [vmem:[%s9291_s1 + $0x1a8] sm:$0xff] }
  0xfa   : > { %1179 = vperm.xlu1 %4790, %v537_v35   ;;  %v5577_v35 = vpop.permute.xlu1 %759 }
  0xfb   : > { %v5534_v48 = vpop.f32.mrf.mxu0  ;;  %1742 = vmatmul.mubr.f32.gmra.mxu0 %v307_v39  ;;  %9433 = vst [vmem:[#allocation24_spill] sm:$0xff] %v5577_v35  ;;  %v9436_v35 = vmov 0.0  }
  0xfc   : > { %1747 = vmatprep.mubr.f32.mxu0 %v9296_v5 }
  0xfd   : > { %v5543_v54 = vpop.f32.mrf.mxu0  ;;  %1174 = vperm.xlu0 %4789, %v536_v45   ;;  %v530_v45 = vld [vmem:[%s9292_s2 + $0x388] sm:$0xff] }
  0xfe   : > { %1169 = vperm.xlu1 %4790, %v535_v49  }
  0xff   : > { %v5552_v1 = vpop.f32.mrf.mxu0  ;;  %1748 = vmatmul.mubr.f32.gmra.mxu0 %v308_v50  ;;  %v529_v50 = vld [vmem:[%s9292_s2 + $0x380] sm:$0xff] }
 0x100   : > { %1753 = vmatprep.mubr.f32.mxu0 %v9296_v5 }
 0x101   : > { %v5561_v11 = vpop.f32.mrf.mxu0  ;;  %1164 = vperm.xlu0 %4789, %v534_v60   ;;  %v311_v60 = vld [vmem:[%s9291_s1 + $0x1b0] sm:$0xff] }
 0x102   : > { %1159 = vperm.xlu1 %4790, %v533_v3  }
 0x103   : > { %v5566_v19 = vpop.f32.mrf.mxu0  ;;  %1754 = vmatmul.mubr.f32.gmra.mxu0 %v309_v10  ;;  %v5595_v10 = vpop.permute.xlu0 %754 }
 0x104   : > { %1759 = vmatprep.mubr.f32.mxu0 %v9296_v5  ;;  %9434 = vst [vmem:[#allocation25_spill] sm:$0xff] %v5595_v10 }
 0x105   : > { %v5579_v39 = vpop.f32.mrf.mxu0  ;;  %1154 = vperm.xlu0 %4789, %v532_v13   ;;  %v560_v13 = vld [vmem:[%s9292_s2 + $0x478] sm:$0xff] }
 0x106   : > { %1149 = vperm.xlu1 %4790, %v531_v23   ;;  %v5600_v23 = vpop.permute.xlu1 %749 }
 0x107   : > { %v5584_v49 = vpop.f32.mrf.mxu0  ;;  %1760 = vmatmul.mubr.f32.gmra.mxu0 %v310_v30  ;;  %9435 = vst [vmem:[#allocation26_spill] sm:$0xff] %v5600_v23  ;;  %v558_v23 = vld [vmem:[%s9292_s2 + $0x468] sm:$0xff]  ;;  %v5621_v26 = vpop.permute.xlu0 %744 }
 0x108   : > { %1765 = vmatprep.mubr.f32.mxu0 %v9296_v5  ;;  %v559_v5 = vld [vmem:[%s9292_s2 + $0x470] sm:$0xff]  ;;  %9437 = vst [vmem:[#allocation27_spill] sm:$0xff] %v5621_v26 }
 0x109   : > { %v5593_v3 = vpop.f32.mrf.mxu0  ;;  %1144 = vperm.xlu0 %4789, %v530_v45   ;;  %v312_v45 = vld [vmem:[%s9291_s1 + $0x1b8] sm:$0xff]  ;;  %v555_v26 = vld [vmem:[%s9292_s2 + $0x450] sm:$0xff] }
 0x10a   : > { %1139 = vperm.xlu1 %4790, %v529_v50  }
 0x10b   : > { %v5602_v30 = vpop.f32.mrf.mxu0  ;;  %1766 = vmatmul.mubr.f32.gmra.mxu0 %v311_v60  ;;  %v557_v60 = vld [vmem:[%s9292_s2 + $0x460] sm:$0xff] }
 0x10c   : > { %1771 = vmatprep.mubr.f32.mxu0 %v9436_v35 }
 0x10d   : > { %v5611_v50 = vpop.f32.mrf.mxu0  ;;  %1294 = vperm.xlu0 %4789, %v560_v13   ;;  %v313_v13 = vld [vmem:[%s9291_s1 + $0x1c0] sm:$0xff] }
 0x10e   : > { %1289 = vperm.xlu1 %4790, %v559_v5   ;;  %v5627_v5 = vpop.permute.xlu1 %739 }
 0x10f   : > { %v5616_v10 = vpop.f32.mrf.mxu0  ;;  %1772 = vmatmul.mubr.f32.gmra.mxu0 %v312_v45  ;;  %9438 = vst [vmem:[#allocation28_spill] sm:$0xff] %v5627_v5  ;;  %v556_v45 = vld [vmem:[%s9292_s2 + $0x458] sm:$0xff]  ;;  %v314_v5 = vld [vmem:[%s9291_s1 + $0x1c8] sm:$0xff] }
 0x110   : > { %1777 = vmatprep.mubr.f32.mxu0 %v9436_v35 }
 0x111   : > { %v5629_v63 = vpop.f32.mrf.mxu0  ;;  %1284 = vperm.xlu0 %4789, %v558_v23   ;;  %v5645_v23 = vpop.permute.xlu0 %894 }
 0x112   : > { %1279 = vperm.xlu1 %4790, %v557_v60   ;;  %9439 = vst [vmem:[#allocation29_spill] sm:$0xff] %v5645_v23  ;;  %v554_v60 = vld [vmem:[%s9292_s2 + $0x448] sm:$0xff] }
 0x113   : > { %v5634_v56 = vpop.f32.mrf.mxu0  ;;  %1778 = vmatmul.mubr.f32.gmra.mxu0 %v313_v13  ;;  %v5650_v13 = vpop.permute.xlu1 %889 }
 0x114   : > { %1783 = vmatprep.mubr.f32.mxu0 %v9436_v35  ;;  %9440 = vst [vmem:[#allocation30_spill] sm:$0xff] %v5650_v13  ;;  %v552_v13 = vld [vmem:[%s9292_s2 + $0x438] sm:$0xff] }
 0x115   : > { %v5643_v41 = vpop.f32.mrf.mxu0  ;;  %1274 = vperm.xlu0 %4789, %v556_v45   ;;  %v315_v45 = vld [vmem:[%s9291_s1 + $0x1d0] sm:$0xff]  ;;  %v5671_v16 = vpop.permute.xlu0 %884 }
 0x116   : > { %1269 = vperm.xlu1 %4790, %v555_v26   ;;  %9441 = vst [vmem:[#allocation31_spill] sm:$0xff] %v5671_v16  ;;  %v549_v16 = vld [vmem:[%s9292_s2 + $0x420] sm:$0xff] }
 0x117   : > { %v5652_v37 = vpop.f32.mrf.mxu0  ;;  %1784 = vmatmul.mubr.f32.gmra.mxu0 %v314_v5  ;;  %v551_v5 = vld [vmem:[%s9292_s2 + $0x430] sm:$0xff] }
 0x118   : > { %1789 = vmatprep.mubr.f32.mxu0 %v9436_v35 }
 0x119   : > { %v5661_v26 = vpop.f32.mrf.mxu0  ;;  %1264 = vperm.xlu0 %4789, %v554_v60   ;;  %v316_v60 = vld [vmem:[%s9291_s1 + $0x1d8] sm:$0xff] }
 0x11a   : > { %1259 = vperm.xlu1 %4790, %v553_v21   ;;  %v5677_v21 = vpop.permute.xlu1 %879 }
 0x11b   : > { %v5666_v23 = vpop.f32.mrf.mxu0  ;;  %1790 = vmatmul.mubr.f32.gmra.mxu0 %v315_v45  ;;  %9442 = vst [vmem:[#allocation32_spill] sm:$0xff] %v5677_v21  ;;  %v550_v45 = vld [vmem:[%s9292_s2 + $0x428] sm:$0xff]  ;;  %v317_v21 = vld [vmem:[%s9291_s1 + $0x1e0] sm:$0xff] }
 0x11c   : > { %1795 = vmatprep.mubr.f32.mxu0 %v9436_v35 }
 0x11d   : > { %v5679_v8 = vpop.f32.mrf.mxu0  ;;  %1254 = vperm.xlu0 %4789, %v552_v13   ;;  %v5695_v13 = vpop.permute.xlu0 %874 }
 0x11e   : > { %1249 = vperm.xlu1 %4790, %v551_v5   ;;  %9443 = vst [vmem:[#allocation33_spill] sm:$0xff] %v5695_v13  ;;  %v548_v5 = vld [vmem:[%s9292_s2 + $0x418] sm:$0xff] }
 0x11f   : > { %v5684_v2 = vpop.f32.mrf.mxu0  ;;  %1796 = vmatmul.mubr.f32.gmra.mxu0 %v316_v60  ;;  %v5700_v60 = vpop.permute.xlu1 %869 }
 0x120   : > { %1801 = vmatprep.mubr.f32.mxu0 %v9436_v35  ;;  %9444 = vst [vmem:[#allocation34_spill] sm:$0xff] %v5700_v60  ;;  %v546_v60 = vld [vmem:[%s9292_s2 + $0x408] sm:$0xff] }
 0x121   : > { %v5693_v55 = vpop.f32.mrf.mxu0  ;;  %1244 = vperm.xlu0 %4789, %v550_v45   ;;  %v318_v45 = vld [vmem:[%s9291_s1 + $0x1e8] sm:$0xff]  ;;  %v5719_v43 = vpop.permute.xlu0 %864 }
 0x122   : > { %1239 = vperm.xlu1 %4790, %v549_v16   ;;  %9445 = vst [vmem:[#allocation35_spill] sm:$0xff] %v5719_v43 }
 0x123   : > { %v5702_v52 = vpop.f32.mrf.mxu0  ;;  %1802 = vmatmul.mubr.f32.gmra.mxu0 %v317_v21  ;;  %v545_v21 = vld [vmem:[%s9292_s2 + $0x400] sm:$0xff] }
 0x124   : > { %1807 = vmatprep.mubr.f32.mxu0 %v9436_v35 }
 0x125   : > { %v5711_v16 = vpop.f32.mrf.mxu0  ;;  %1234 = vperm.xlu0 %4789, %v548_v5   ;;  %v5725_v5 = vpop.permute.xlu1 %859 }
 0x126   : > { %1229 = vperm.xlu1 %4790, %v547_v47   ;;  %9446 = vst [vmem:[#allocation36_spill] sm:$0xff] %v5725_v5 }
 0x127   : > { %v1521_v13 = vpop.f32.mrf.mxu0  ;;  %1808 = vmatmul.mubr.f32.gmra.mxu0 %v318_v45  ;;  %v2763_v45 = vld [vmem:[%s9293_s3 + $0x148] sm:$0xff] }
 0x128   : > { %1813 = vmatprep.mubr.f32.mxu0 %v9436_v35  ;;  %3322 = vmatprep.mubr.f32.mxu1 %v2763_v45  ;;  %v574_v45 = vld [vmem:[%s9292_s2 + $0x4e8] sm:$0xff] }
 0x129   : > { %v1523_v47 = vpop.f32.mrf.mxu0  ;;  %1224 = vperm.xlu0 %4789, %v546_v60   ;;  %v320_v60 = vld [vmem:[%s9291_s1 + $0x1f8] sm:$0xff] }
 0x12a   : > { %1219 = vperm.xlu1 %4790, %v545_v21   ;;  %v5740_v21 = vpop.permute.xlu0 %854 }
 0x12b   : > { %v1527_v43 = vpop.f32.mrf.mxu0  ;;  %1814 = vmatmul.mubr.f32.gmra.mxu0 %v319_v36  ;;  %9447 = vst [vmem:[#allocation37_spill] sm:$0xff] %v5740_v21  ;;  %v5745_v36 = vpop.permute.xlu1 %849 }
 0x12c   : > { %1819 = vmatprep.mubr.f32.mxu0 %v9436_v35  ;;  %9448 = vst [vmem:[#allocation38_spill] sm:$0xff] %v5745_v36 }
 0x12d   : > { %v1529_v5 = vpop.f32.mrf.mxu0  ;;  %1374 = vperm.xlu0 %4789, %v576_v34   ;;  %v321_v34 = vld [vmem:[%s9291_s1 + $0x200] sm:$0xff] }
 0x12e   : > { %1369 = vperm.xlu1 %4790, %v575_v28   ;;  %v1530_v36 = vadd.f32 %v1529_v5, %v5173_v62  ;;  %v5765_v61 = vpop.permute.xlu0 %844 }
 0x12f   : > { %v1533_v24 = vpop.f32.mrf.mxu0  ;;  %1820 = vmatmul.mubr.f32.gmra.mxu0 %v320_v60  ;;  %v572_v60 = vld [vmem:[%s9292_s2 + $0x4d8] sm:$0xff]  ;;  %9449 = vst [vmem:[#allocation39_spill] sm:$0xff] %v5765_v61 }
 0x130   : > { %1825 = vmatprep.mubr.f32.mxu0 %v9436_v35  ;;  %v1534_v28 = vadd.f32 %v1533_v24, %v5159_v57  ;;  %v1528_v24 = vadd.f32 %v1527_v43, %v5173_v62  ;;  %v2431_v61 = vmax.f32 %v1530_v36, 0.0 }
 0x131   : > { %v1535_v21 = vpop.f32.mrf.mxu0  ;;  %1364 = vperm.xlu0 %4789, %v574_v45  }
 0x132   : > { %v1536_v15 = vadd.f32 %v1535_v21, %v5159_v57  ;;  %1359 = vperm.xlu1 %4790, %v573_v17   ;;  %v322_v57 = vld [vmem:[%s9291_s1 + $0x208] sm:$0xff]  ;;  %v5772_v17 = vpop.permute.xlu1 %839  ;;  %v1524_v21 = vadd.f32 %v1523_v47, %v5161_v58  ;;  %v2430_v43 = vmax.f32 %v1528_v24, 0.0  ;;  %v569_v47 = vld [vmem:[%s9292_s2 + $0x4c0] sm:$0xff] }
 0x133   : > { %v5760_v9 = vpop.f32.mrf.mxu0  ;;  %1826 = vmatmul.mubr.f32.gmra.mxu0 %v321_v34  ;;  %9450 = vst [vmem:[#allocation40_spill] sm:$0xff] %v5772_v17  ;;  %v2432_v34 = vmax.f32 %v1534_v28, 0.0  ;;  %v570_v17 = vld [vmem:[%s9292_s2 + $0x4c8] sm:$0xff]  ;;  %v5790_v28 = vpop.permute.xlu0 %834 }
 0x134   : > { %v2433_v45 = vmax.f32 %v1536_v15, 0.0  ;;  %1831 = vmatprep.mubr.f32.mxu0 %v9436_v35  ;;  %v1522_v15 = vadd.f32 %v1521_v13, %v5161_v58  ;;  %v1516_v58 = vadd.f32 %v5702_v52, %v5179_v0  ;;  %v2429_v13 = vmax.f32 %v1524_v21, 0.0 }
 0x135   : > { %v5774_v5 = vpop.f32.mrf.mxu0  ;;  %1354 = vperm.xlu0 %4789, %v572_v60   ;;  %v323_v60 = vld [vmem:[%s9291_s1 + $0x210] sm:$0xff] }
 0x136   : > { %1349 = vperm.xlu1 %4790, %v571_v6   ;;  %3234 = vmatprep.subr.mxu0 %v2433_v45  ;;  %v1518_v6 = vadd.f32 %v5711_v16, %v5179_v0  ;;  %v5797_v24 = vpop.permute.xlu1 %829  ;;  %v2426_v21 = vmax.f32 %v1516_v58, 0.0  ;;  %v1500_v58 = vadd.f32 %v5661_v26, %v5211_v12  ;;  %v565_v26 = vld [vmem:[%s9292_s2 + $0x4a0] sm:$0xff] }
 0x137   : > { %4715 = vmatprep.subr.mxu1 %v2433_v45  ;;  %v5777_v62 = vpop.f32.mrf.mxu0  ;;  %1832 = vmatmul.mubr.f32.gmra.mxu0 %v322_v57  ;;  %v2428_v45 = vmax.f32 %v1522_v15, 0.0  ;;  %v1510_v57 = vadd.f32 %v5684_v2, %v5191_v4 }
 0x138   : > { %3235 = vmatpush1.msra.mxu0 %v2432_v34  ;;  %4747 = vmatpush1.msra.mxu1 %v2432_v34  ;;  %v2427_v0 = vmax.f32 %v1518_v6, 0.0  ;;  %v1506_v34 = vadd.f32 %v5679_v8, %v5196_v7 }
 0x139   : > { %3236 = vmatprep.subr.mxu0 %v2431_v61  ;;  %4716 = vmatprep.subr.mxu1 %v2431_v61  ;;  %v5788_v36 = vpop.f32.mrf.mxu0  ;;  %v1512_v61 = vadd.f32 %v5693_v55, %v5191_v4  ;;  %v567_v55 = vld [vmem:[%s9292_s2 + $0x4b0] sm:$0xff]  ;;  %v1504_v4 = vadd.f32 %v5666_v23, %v5196_v7 }
 0x13a   : > { %3237 = vmatpush1.msra.mxu0 %v2430_v43  ;;  %4748 = vmatpush1.msra.mxu1 %v2430_v43  ;;  %v5818_v43 = vpop.permute.xlu0 %824  ;;  %v5825_v6 = vpop.permute.xlu1 %819  ;;  %v2423_v7 = vmax.f32 %v1506_v34, 0.0  ;;  %v1488_v34 = vadd.f32 %v5629_v63, %v5229_v18  ;;  %v563_v63 = vld [vmem:[%s9292_s2 + $0x490] sm:$0xff] }
 0x13b   : > { %1344 = vperm.xlu0 %4789, %v570_v17   ;;  %1339 = vperm.xlu1 %4790, %v569_v47   ;;  %v5799_v16 = vpop.f32.mrf.mxu0  ;;  %v568_v17 = vld [vmem:[%s9292_s2 + $0x4b8] sm:$0xff]  ;;  %v2425_v2 = vmax.f32 %v1512_v61, 0.0  ;;  %v2422_v61 = vmax.f32 %v1504_v4, 0.0 }
 0x13c   : > { %1837 = vmatprep.mubr.f32.mxu0 %v9436_v35  ;;  %3238 = vmatprep.subr.mxu0 %v2429_v13  ;;  %v324_v47 = vld [vmem:[%s9291_s1 + $0x218] sm:$0xff] }
 0x13d   : > { %4717 = vmatprep.subr.mxu1 %v2429_v13  ;;  %1838 = vmatmul.mubr.f32.gmra.mxu0 %v323_v60  ;;  %v5804_v52 = vpop.f32.mrf.mxu0  ;;  %v2424_v13 = vmax.f32 %v1510_v57, 0.0  ;;  %v1498_v60 = vadd.f32 %v5652_v37, %v5211_v12  ;;  %v1492_v12 = vadd.f32 %v5634_v56, %v5217_v14  ;;  %v2421_v37 = vmax.f32 %v1500_v58, 0.0  ;;  %v564_v58 = vld [vmem:[%s9292_s2 + $0x498] sm:$0xff] }
 0x13e   : > { %3239 = vmatpush1.msra.mxu0 %v2428_v45  ;;  %4749 = vmatpush1.msra.mxu1 %v2428_v45  ;;  %v566_v45 = vld [vmem:[%s9292_s2 + $0x4a8] sm:$0xff] }
 0x13f   : > { %3240 = vmatprep.subr.mxu0 %v2427_v0  ;;  %4718 = vmatprep.subr.mxu1 %v2427_v0  ;;  %v5816_v15 = vpop.f32.mrf.mxu0  ;;  %v1494_v0 = vadd.f32 %v5643_v41, %v5217_v14  ;;  %v2420_v4 = vmax.f32 %v1498_v60, 0.0  ;;  %v2417_v60 = vmax.f32 %v1488_v34, 0.0  ;;  %v1470_v34 = vadd.f32 %v5579_v39, %v5255_v27 }
 0x140   : > { %3241 = vmatpush1.msra.mxu0 %v2426_v21  ;;  %4750 = vmatpush1.msra.mxu1 %v2426_v21  ;;  %v5846_v21 = vpop.permute.xlu0 %974 }
 0x141   : > { %1334 = vperm.xlu0 %4789, %v568_v17   ;;  %1329 = vperm.xlu1 %4790, %v567_v55   ;;  %v5827_v8 = vpop.f32.mrf.mxu0  ;;  %v325_v17 = vld [vmem:[%s9291_s1 + $0x220] sm:$0xff]  ;;  %v5853_v55 = vpop.permute.xlu1 %969  ;;  %v2419_v14 = vmax.f32 %v1494_v0, 0.0 }
 0x142   : > { %1843 = vmatprep.mubr.f32.mxu0 %v9436_v35  ;;  %3242 = vmatprep.subr.mxu0 %v2425_v2 }
 0x143   : > { %4719 = vmatprep.subr.mxu1 %v2425_v2  ;;  %1844 = vmatmul.mubr.f32.gmra.mxu0 %v324_v47  ;;  %v5832_v23 = vpop.f32.mrf.mxu0  ;;  %v1486_v2 = vadd.f32 %v5616_v10, %v5229_v18  ;;  %v2418_v47 = vmax.f32 %v1492_v12, 0.0  ;;  %v1480_v18 = vadd.f32 %v5602_v30, %v5234_v20  ;;  %v1474_v12 = vadd.f32 %v5584_v49, %v5249_v25 }
 0x144   : > { %3243 = vmatpush1.msra.mxu0 %v2424_v13  ;;  %4751 = vmatpush1.msra.mxu1 %v2424_v13  ;;  %v1482_v13 = vadd.f32 %v5611_v50, %v5234_v20  ;;  %v5876_v10 = vpop.permute.xlu0 %964 }
 0x145   : > { %3244 = vmatprep.subr.mxu0 %v2423_v7  ;;  %4720 = vmatprep.subr.mxu1 %v2423_v7  ;;  %v5844_v57 = vpop.f32.mrf.mxu0  ;;  %v2416_v0 = vmax.f32 %v1486_v2, 0.0  ;;  %v327_v2 = vld [vmem:[%s9291_s1 + $0x230] sm:$0xff] }
 0x146   : > { %3245 = vmatpush1.msra.mxu0 %v2422_v61  ;;  %4752 = vmatpush1.msra.mxu1 %v2422_v61  ;;  %v326_v61 = vld [vmem:[%s9291_s1 + $0x228] sm:$0xff]  ;;  %v2415_v20 = vmax.f32 %v1482_v13, 0.0  ;;  %v1462_v13 = vadd.f32 %v5552_v1, %v5267_v31 }
 0x147   : > { %1324 = vperm.xlu0 %4789, %v566_v45   ;;  %1319 = vperm.xlu1 %4790, %v565_v26   ;;  %v5855_v41 = vpop.f32.mrf.mxu0  ;;  %v5881_v45 = vpop.permute.xlu1 %959  ;;  %v1476_v26 = vadd.f32 %v5593_v3, %v5249_v25  ;;  %v561_v3 = vld [vmem:[%s9292_s2 + $0x480] sm:$0xff]  ;;  %v1468_v25 = vadd.f32 %v5566_v19, %v5255_v27  ;;  %v2411_v27 = vmax.f32 %v1470_v34, 0.0 }
 0x148   : > { %1849 = vmatprep.mubr.f32.mxu0 %v9436_v35  ;;  %3246 = vmatprep.subr.mxu0 %v2421_v37 }
 0x149   : > { %4721 = vmatprep.subr.mxu1 %v2421_v37  ;;  %1850 = vmatmul.mubr.f32.gmra.mxu0 %v325_v17  ;;  %v5860_v56 = vpop.f32.mrf.mxu0  ;;  %v2414_v37 = vmax.f32 %v1480_v18, 0.0  ;;  %v562_v17 = vld [vmem:[%s9292_s2 + $0x488] sm:$0xff]  ;;  %v2413_v49 = vmax.f32 %v1476_v26, 0.0  ;;  %v2410_v18 = vmax.f32 %v1468_v25, 0.0  ;;  %v3044_v25 = vld [vmem:[%s9294_s4 + $0x10] sm:$0xff] }
 0x14a   : > { %3247 = vmatpush1.msra.mxu0 %v2420_v4  ;;  %4753 = vmatpush1.msra.mxu1 %v2420_v4 }
 0x14b   : > { %3248 = vmatprep.subr.mxu0 %v2419_v14  ;;  %4722 = vmatprep.subr.mxu1 %v2419_v14  ;;  %v5872_v7 = vpop.f32.mrf.mxu0  ;;  %v5904_v14 = vpop.permute.xlu0 %954 }
 0x14c   : > { %3249 = vmatpush1.msra.mxu0 %v2418_v47  ;;  %4754 = vmatpush1.msra.mxu1 %v2418_v47  ;;  %v5909_v47 = vpop.permute.xlu1 %949 }
 0x14d   : > { %1314 = vperm.xlu0 %4789, %v564_v58   ;;  %1309 = vperm.xlu1 %4790, %v563_v63   ;;  %v5883_v50 = vpop.f32.mrf.mxu0  ;;  %v1464_v58 = vadd.f32 %v5561_v11, %v5267_v31  ;;  %v2412_v63 = vmax.f32 %v1474_v12, 0.0  ;;  %v3043_v11 = vld [vmem:[%s9294_s4 + $0x8] sm:$0xff]  ;;  %v1456_v31 = vadd.f32 %v5534_v48, %v5272_v33 }
 0x14e   : > { %1855 = vmatprep.mubr.f32.mxu0 %v9436_v35  ;;  %3250 = vmatprep.subr.mxu0 %v2417_v60 }
 0x14f   : > { %4723 = vmatprep.subr.mxu1 %v2417_v60  ;;  %1856 = vmatmul.mubr.f32.gmra.mxu0 %v326_v61  ;;  %v5888_v30 = vpop.f32.mrf.mxu0  ;;  %v3042_v60 = vld [vmem:[%s9294_s4] sm:$0xff]  ;;  %v1458_v61 = vadd.f32 %v5543_v54, %v5272_v33  ;;  %v2409_v1 = vmax.f32 %v1464_v58, 0.0  ;;  %v2406_v34 = vmax.f32 %v1456_v31, 0.0 }
 0x150   : > { %3251 = vmatpush1.msra.mxu0 %v2416_v0  ;;  %4755 = vmatpush1.msra.mxu1 %v2416_v0  ;;  %v5932_v0 = vpop.permute.xlu0 %944  ;;  %v5937_v12 = vpop.permute.xlu1 %939 }
 0x151   : > { %3252 = vmatprep.subr.mxu0 %v2415_v20  ;;  %4724 = vmatprep.subr.mxu1 %v2415_v20  ;;  %v5900_v4 = vpop.f32.mrf.mxu0  ;;  %v328_v20 = vld [vmem:[%s9291_s1 + $0x238] sm:$0xff]  ;;  %v2407_v33 = vmax.f32 %v1458_v61, 0.0 }
 0x152   : > { %3253 = vmatpush1.msra.mxu0 %v2414_v37  ;;  %4756 = vmatpush1.msra.mxu1 %v2414_v37  ;;  %v1452_v37 = vadd.f32 %v5529_v42, %v5287_v38  ;;  %v3045_v42 = vld [vmem:[%s9294_s4 + $0x18] sm:$0xff] }
 0x153   : > { %1304 = vperm.xlu0 %4789, %v562_v17   ;;  %1299 = vperm.xlu1 %4790, %v561_v3   ;;  %v5911_v39 = vpop.f32.mrf.mxu0  ;;  %v2408_v17 = vmax.f32 %v1462_v13, 0.0  ;;  %v1450_v3 = vadd.f32 %v5516_v32, %v5287_v38  ;;  %v1444_v38 = vadd.f32 %v5502_v22, %v5293_v40 }
 0x154   : > { %1861 = vmatprep.mubr.f32.mxu0 %v9436_v35  ;;  %3254 = vmatprep.subr.mxu0 %v2413_v49  ;;  %v2405_v32 = vmax.f32 %v1452_v37, 0.0  ;;  %v5960_v58 = vpop.permute.xlu0 %934 }
 0x155   : > { %4725 = vmatprep.subr.mxu1 %v2413_v49  ;;  %1862 = vmatmul.mubr.f32.gmra.mxu0 %v327_v2  ;;  %v5916_v19 = vpop.f32.mrf.mxu0  ;;  %v1446_v49 = vadd.f32 %v5511_v29, %v5293_v40  ;;  %v2404_v13 = vmax.f32 %v1450_v3, 0.0 }
 0x156   : > { %3255 = vmatpush1.msra.mxu0 %v2412_v63  ;;  %4757 = vmatpush1.msra.mxu1 %v2412_v63  ;;  %v329_v63 = vld [vmem:[%s9291_s1 + $0x240] sm:$0xff] }
 0x157   : > { %3256 = vmatprep.subr.mxu0 %v2411_v27  ;;  %4726 = vmatprep.subr.mxu1 %v2411_v27  ;;  %v5928_v26 = vpop.f32.mrf.mxu0  ;;  %v5965_v27 = vpop.permute.xlu1 %929  ;;  %v2403_v40 = vmax.f32 %v1446_v49, 0.0  ;;  %v3050_v49 = vld [vmem:[%s9294_s4 + $0x40] sm:$0xff] }
 0x158   : > { %3257 = vmatpush1.msra.mxu0 %v2410_v18  ;;  %4758 = vmatpush1.msra.mxu1 %v2410_v18  ;;  %v2402_v18 = vmax.f32 %v1444_v38, 0.0  ;;  %v5980_v31 = vpop.permute.xlu0 %924  ;;  %v3051_v38 = vld [vmem:[%s9294_s4 + $0x48] sm:$0xff] }
 0x159   : > { %3076 = vperm.xlu0 %4789, %v3042_v60   ;;  %3081 = vperm.xlu1 %4790, %v3043_v11   ;;  %v5939_v54 = vpop.f32.mrf.mxu0  ;;  %v3046_v60 = vld [vmem:[%s9294_s4 + $0x20] sm:$0xff]  ;;  %v3047_v11 = vld [vmem:[%s9294_s4 + $0x28] sm:$0xff] }
 0x15a   : > { %1867 = vmatprep.mubr.f32.mxu0 %v9436_v35  ;;  %3258 = vmatprep.subr.mxu0 %v2409_v1 }
 0x15b   : > { %4727 = vmatprep.subr.mxu1 %v2409_v1  ;;  %1868 = vmatmul.mubr.f32.gmra.mxu0 %v328_v20  ;;  %v5944_v48 = vpop.f32.mrf.mxu0  ;;  %v330_v1 = vld [vmem:[%s9291_s1 + $0x248] sm:$0xff]  ;;  %v5985_v20 = vpop.permute.xlu1 %919 }
 0x15c   : > { %3259 = vmatpush1.msra.mxu0 %v2408_v17  ;;  %4759 = vmatpush1.msra.mxu1 %v2408_v17  ;;  %9451 = vst [vmem:[#allocation41_spill] sm:$0xff] %v5985_v20  ;;  %v3048_v17 = vld [vmem:[%s9294_s4 + $0x30] sm:$0xff] }
 0x15d   : > { %3260 = vmatprep.subr.mxu0 %v2407_v33  ;;  %4728 = vmatprep.subr.mxu1 %v2407_v33  ;;  %v5956_v2 = vpop.f32.mrf.mxu0  ;;  %v3049_v33 = vld [vmem:[%s9294_s4 + $0x38] sm:$0xff] }
 0x15e   : > { %3261 = vmatpush1.msra.mxu0 %v2406_v34  ;;  %4760 = vmatpush1.msra.mxu1 %v2406_v34  ;;  %v331_v34 = vld [vmem:[%s9291_s1 + $0x250] sm:$0xff] }
 0x15f   : > { %3086 = vperm.xlu0 %4789, %v3044_v25   ;;  %3091 = vperm.xlu1 %4790, %v3045_v42   ;;  %v5967_v29 = vpop.f32.mrf.mxu0  ;;  %v6000_v42 = vpop.permute.xlu0 %914 }
 0x160   : > { %1873 = vmatprep.mubr.f32.mxu0 %v9436_v35  ;;  %3262 = vmatprep.subr.mxu0 %v2405_v32  ;;  %9452 = vst [vmem:[#allocation42_spill] sm:$0xff] %v6000_v42 }
 0x161   : > { %4729 = vmatprep.subr.mxu1 %v2405_v32  ;;  %1874 = vmatmul.mubr.f32.gmra.mxu0 %v329_v63  ;;  %v5970_v22 = vpop.f32.mrf.mxu0  ;;  %v6008_v32 = vpop.permute.xlu1 %909 }
 0x162   : > { %3263 = vmatpush1.msra.mxu0 %v2404_v13  ;;  %4761 = vmatpush1.msra.mxu1 %v2404_v13  ;;  %9453 = vst [vmem:[#allocation43_spill] sm:$0xff] %v6008_v32  ;;  %v332_v13 = vld [vmem:[%s9291_s1 + $0x258] sm:$0xff] }
 0x163   : > { %3264 = vmatprep.subr.mxu0 %v2403_v40  ;;  %4730 = vmatprep.subr.mxu1 %v2403_v40  ;;  %v5978_v61 = vpop.f32.mrf.mxu0 }
 0x164   : > { %3265 = vmatpush1.msra.mxu0 %v2402_v18  ;;  %4762 = vmatpush1.msra.mxu1 %v2402_v18  ;;  %v3052_v18 = vld [vmem:[%s9294_s4 + $0x50] sm:$0xff] }
 0x165   : > { %3096 = vperm.xlu0 %4789, %v3046_v60   ;;  %3101 = vperm.xlu1 %4790, %v3047_v11   ;;  %v5987_v37 = vpop.f32.mrf.mxu0  ;;  %v3053_v60 = vld [vmem:[%s9294_s4 + $0x58] sm:$0xff] }
 0x166   : > { %1879 = vmatprep.mubr.f32.mxu0 %v9436_v35 }
 0x167   : > { %1880 = vmatmul.mubr.f32.gmra.mxu0 %v330_v1  ;;  %v1617_v3 = vpop.f32.mrf.mxu0  ;;  %v6020_v1 = vpop.permute.xlu0 %904 }
 0x168   : > { %1885 = vmatprep.mubr.f32.mxu0 %v9436_v35  ;;  %9454 = vst [vmem:[#allocation44_spill] sm:$0xff] %v6020_v1 }
 0x169   : > { %3106 = vperm.xlu0 %4789, %v3048_v17   ;;  %3111 = vperm.xlu1 %4790, %v3049_v33   ;;  %v1619_v25 = vpop.f32.mrf.mxu0  ;;  %v333_v17 = vld [vmem:[%s9291_s1 + $0x260] sm:$0xff]  ;;  %v6026_v33 = vpop.permute.xlu1 %899 }
 0x16a   : > { %9455 = vst [vmem:[#allocation45_spill] sm:$0xff] %v6026_v33 }
 0x16b   : > { %1886 = vmatmul.mubr.f32.gmra.mxu0 %v331_v34  ;;  %v1623_v63 = vpop.f32.mrf.mxu0 }
 0x16c   : > { %1891 = vmatprep.mubr.f32.mxu0 %v9436_v35  ;;  %v1624_v33 = vadd.f32 %v1623_v63, %v5310_v46  ;;  %v335_v63 = vld [vmem:[%s9291_s1 + $0x270] sm:$0xff] }
 0x16d   : > { %3116 = vperm.xlu0 %4789, %v3050_v49   ;;  %3121 = vperm.xlu1 %4790, %v3051_v38   ;;  %v1625_v40 = vpop.f32.mrf.mxu0  ;;  %v3054_v38 = vld [vmem:[%s9294_s4 + $0x60] sm:$0xff] }
 0x16f   : > { %1892 = vmatmul.mubr.f32.gmra.mxu0 %v332_v13  ;;  %v1629_v11 = vpop.f32.mrf.mxu0  ;;  %v3055_v13 = vld [vmem:[%s9294_s4 + $0x68] sm:$0xff] }
 0x170   : > { %1897 = vmatprep.mubr.f32.mxu0 %v9436_v35  ;;  %v1630_v34 = vadd.f32 %v1629_v11, %v5305_v44 }
 0x171   : > { %3126 = vperm.xlu0 %4789, %v3052_v18   ;;  %3131 = vperm.xlu1 %4790, %v3053_v60   ;;  %v1631_v49 = vpop.f32.mrf.mxu0  ;;  %v334_v18 = vld [vmem:[%s9291_s1 + $0x268] sm:$0xff]  ;;  %v1626_v60 = vadd.f32 %v1625_v40, %v5310_v46  ;;  %v6054_v40 = vpop.permute.xlu1 %1049  ;;  %v1620_v46 = vadd.f32 %v1619_v25, %v5325_v51 }
 0x172   : > { %v1632_v1 = vadd.f32 %v1631_v49, %v5305_v44  ;;  %v2464_v42 = vmax.f32 %v1630_v34, 0.0  ;;  %v6046_v44 = vpop.permute.xlu0 %1054  ;;  %v3057_v49 = vld [vmem:[%s9294_s4 + $0x78] sm:$0xff]  ;;  %v3059_v25 = vld [vmem:[%s9294_s4 + $0x88] sm:$0xff] }
 0x173   : > { %1898 = vmatmul.mubr.f32.gmra.mxu0 %v333_v17  ;;  %v6036_v32 = vpop.f32.mrf.mxu0  ;;  %v3056_v17 = vld [vmem:[%s9294_s4 + $0x70] sm:$0xff]  ;;  %v2463_v34 = vmax.f32 %v1626_v60, 0.0  ;;  %v336_v60 = vld [vmem:[%s9291_s1 + $0x278] sm:$0xff] }
 0x174   : > { %1903 = vmatprep.mubr.f32.mxu0 %v9436_v35  ;;  %v2465_v11 = vmax.f32 %v1632_v1, 0.0 }
 0x175   : > { %3136 = vperm.xlu0 %4789, %v3054_v38   ;;  %3141 = vperm.xlu1 %4790, %v3055_v13   ;;  %v6044_v20 = vpop.f32.mrf.mxu0  ;;  %v1618_v38 = vadd.f32 %v1617_v3, %v5325_v51  ;;  %v2462_v13 = vmax.f32 %v1624_v33, 0.0  ;;  %v1614_v3 = vadd.f32 %v5987_v37, %v5331_v53  ;;  %v2461_v33 = vmax.f32 %v1620_v46, 0.0  ;;  %v3060_v37 = vld [vmem:[%s9294_s4 + $0x90] sm:$0xff]  ;;  %v3061_v46 = vld [vmem:[%s9294_s4 + $0x98] sm:$0xff] }
 0x176   : > { %3266 = vmatprep.subr.mxu0 %v2465_v11  ;;  %4731 = vmatprep.subr.mxu1 %v2465_v11  ;;  %v6074_v51 = vpop.permute.xlu0 %1044 }
 0x177   : > { %1904 = vmatmul.mubr.f32.gmra.mxu0 %v334_v18  ;;  %v6056_v1 = vpop.f32.mrf.mxu0  ;;  %4763 = vmatpush2.msra.mxu1 %v2464_v42  ;;  %v3058_v18 = vld [vmem:[%s9294_s4 + $0x80] sm:$0xff]  ;;  %9456 = vst [vmem:[#allocation46_spill] sm:$0xff] %v6074_v51 }
 0x178   : > { %1909 = vmatprep.mubr.f32.mxu0 %v9436_v35  ;;  %3267 = vmatpush2.msra.mxu0 %v2464_v42 }
 0x179   : > { %3146 = vperm.xlu0 %4789, %v3056_v17   ;;  %3151 = vperm.xlu1 %4790, %v3057_v49   ;;  %v6064_v11 = vpop.f32.mrf.mxu0  ;;  %v6082_v17 = vpop.permute.xlu1 %1039  ;;  %v1612_v49 = vadd.f32 %v5978_v61, %v5331_v53  ;;  %v1608_v53 = vadd.f32 %v5970_v22, %v5343_v59  ;;  %v2459_v61 = vmax.f32 %v1614_v3, 0.0  ;;  %v3062_v22 = vld [vmem:[%s9294_s4 + $0xa0] sm:$0xff]  ;;  %v3063_v3 = vld [vmem:[%s9294_s4 + $0xa8] sm:$0xff] }
 0x17a   : > { %3268 = vmatprep.subr.mxu0 %v2463_v34  ;;  %4732 = vmatprep.subr.mxu1 %v2463_v34  ;;  %9457 = vst [vmem:[#allocation47_spill] sm:$0xff] %v6082_v17 }
 0x17b   : > { %1910 = vmatmul.mubr.f32.gmra.mxu0 %v335_v63  ;;  %4764 = vmatpush2.msra.mxu1 %v2462_v13  ;;  %v6072_v42 = vpop.f32.mrf.mxu0  ;;  %v2460_v63 = vmax.f32 %v1618_v38, 0.0  ;;  %v337_v38 = vld [vmem:[%s9291_s1 + $0x280] sm:$0xff] }
 0x17c   : > { %1915 = vmatprep.mubr.f32.mxu0 %v9436_v35  ;;  %3269 = vmatpush2.msra.mxu0 %v2462_v13 }
 0x17d   : > { %3156 = vperm.xlu0 %4789, %v3058_v18   ;;  %3161 = vperm.xlu1 %4790, %v3059_v25   ;;  %v6086_v34 = vpop.f32.mrf.mxu0  ;;  %v1606_v18 = vadd.f32 %v5967_v29, %v5343_v59  ;;  %v2458_v25 = vmax.f32 %v1612_v49, 0.0  ;;  %v9460_v29 = vld [vmem:[#allocation2_spill] sm:$0xff] }
 0x17e   : > { %3270 = vmatprep.subr.mxu0 %v2461_v33  ;;  %4733 = vmatprep.subr.mxu1 %v2461_v33  ;;  %v1602_v49 = vadd.f32 %v5956_v2, %v9460_v29  ;;  %v3064_v2 = vld [vmem:[%s9294_s4 + $0xb0] sm:$0xff] }
 0x17f   : > { %1916 = vmatmul.mubr.f32.gmra.mxu0 %v336_v60  ;;  %4765 = vmatpush2.msra.mxu1 %v2460_v63  ;;  %v6094_v13 = vpop.f32.mrf.mxu0  ;;  %v6106_v60 = vpop.permute.xlu0 %1034 }
 0x180   : > { %1921 = vmatprep.mubr.f32.mxu0 %v9436_v35  ;;  %3271 = vmatpush2.msra.mxu0 %v2460_v63  ;;  %9458 = vst [vmem:[#allocation48_spill] sm:$0xff] %v6106_v60  ;;  %v6114_v63 = vpop.permute.xlu1 %1029  ;;  %v2456_v60 = vmax.f32 %v1606_v18, 0.0  ;;  %v9462_v18 = vld [vmem:[#allocation3_spill] sm:$0xff] }
 0x181   : > { %3166 = vperm.xlu0 %4789, %v3060_v37   ;;  %3171 = vperm.xlu1 %4790, %v3061_v46   ;;  %v6104_v33 = vpop.f32.mrf.mxu0  ;;  %9459 = vst [vmem:[#allocation49_spill] sm:$0xff] %v6114_v63  ;;  %v2457_v37 = vmax.f32 %v1608_v53, 0.0  ;;  %v338_v46 = vld [vmem:[%s9291_s1 + $0x288] sm:$0xff]  ;;  %v3065_v53 = vld [vmem:[%s9294_s4 + $0xb8] sm:$0xff] }
 0x182   : > { %3272 = vmatprep.subr.mxu0 %v2459_v61  ;;  %4734 = vmatprep.subr.mxu1 %v2459_v61  ;;  %v1600_v61 = vadd.f32 %v5944_v48, %v9460_v29  ;;  %v339_v29 = vld [vmem:[%s9291_s1 + $0x290] sm:$0xff] }
 0x183   : > { %1922 = vmatmul.mubr.f32.gmra.mxu0 %v337_v38  ;;  %4766 = vmatpush2.msra.mxu1 %v2458_v25  ;;  %v6116_v59 = vpop.f32.mrf.mxu0  ;;  %v6136_v48 = vpop.permute.xlu0 %1024 }
 0x184   : > { %1927 = vmatprep.mubr.f32.mxu0 %v9436_v35  ;;  %3273 = vmatpush2.msra.mxu0 %v2458_v25  ;;  %9461 = vst [vmem:[#allocation2_spill] sm:$0xff] %v6136_v48  ;;  %v6144_v63 = vpop.permute.xlu1 %1019 }
 0x185   : > { %3176 = vperm.xlu0 %4789, %v3062_v22   ;;  %3181 = vperm.xlu1 %4790, %v3063_v3   ;;  %v6126_v38 = vpop.f32.mrf.mxu0  ;;  %v1596_v22 = vadd.f32 %v5939_v54, %v9462_v18  ;;  %v2455_v3 = vmax.f32 %v1602_v49, 0.0  ;;  %9463 = vst [vmem:[#allocation3_spill] sm:$0xff] %v6144_v63  ;;  %v3066_v54 = vld [vmem:[%s9294_s4 + $0xc0] sm:$0xff]  ;;  %v3067_v49 = vld [vmem:[%s9294_s4 + $0xc8] sm:$0xff] }
 0x186   : > { %3274 = vmatprep.subr.mxu0 %v2457_v37  ;;  %4735 = vmatprep.subr.mxu1 %v2457_v37  ;;  %v1594_v37 = vadd.f32 %v5928_v26, %v9462_v18  ;;  %v9464_v26 = vld [vmem:[#allocation4_spill] sm:$0xff] }
 0x187   : > { %1928 = vmatmul.mubr.f32.gmra.mxu0 %v338_v46  ;;  %4767 = vmatpush2.msra.mxu1 %v2456_v60  ;;  %v6134_v25 = vpop.f32.mrf.mxu0  ;;  %v2454_v46 = vmax.f32 %v1600_v61, 0.0  ;;  %v1590_v61 = vadd.f32 %v5916_v19, %v9464_v26  ;;  %v1588_v18 = vadd.f32 %v5911_v39, %v9464_v26  ;;  %v3068_v19 = vld [vmem:[%s9294_s4 + $0xd0] sm:$0xff]  ;;  %v341_v26 = vld [vmem:[%s9291_s1 + $0x2a0] sm:$0xff] }
 0x188   : > { %1933 = vmatprep.mubr.f32.mxu0 %v9436_v35  ;;  %3275 = vmatpush2.msra.mxu0 %v2456_v60  ;;  %v2452_v63 = vmax.f32 %v1594_v37, 0.0  ;;  %v9467_v37 = vld [vmem:[#allocation5_spill] sm:$0xff] }
 0x189   : > { %3186 = vperm.xlu0 %4789, %v3064_v2   ;;  %3191 = vperm.xlu1 %4790, %v3065_v53   ;;  %v6148_v48 = vpop.f32.mrf.mxu0  ;;  %v2453_v2 = vmax.f32 %v1596_v22, 0.0  ;;  %v340_v53 = vld [vmem:[%s9291_s1 + $0x298] sm:$0xff] }
 0x18a   : > { %3276 = vmatprep.subr.mxu0 %v2455_v3  ;;  %4736 = vmatprep.subr.mxu1 %v2455_v3  ;;  %v3069_v22 = vld [vmem:[%s9294_s4 + $0xd8] sm:$0xff] }
 0x18b   : > { %1934 = vmatmul.mubr.f32.gmra.mxu0 %v339_v29  ;;  %4768 = vmatpush2.msra.mxu1 %v2454_v46  ;;  %v6156_v60 = vpop.f32.mrf.mxu0  ;;  %v6168_v29 = vpop.permute.xlu0 %1014 }
 0x18c   : > { %1939 = vmatprep.mubr.f32.mxu0 %v9436_v35  ;;  %3277 = vmatpush2.msra.mxu0 %v2454_v46  ;;  %9465 = vst [vmem:[#allocation4_spill] sm:$0xff] %v6168_v29  ;;  %v6176_v46 = vpop.permute.xlu1 %1009  ;;  %v2450_v29 = vmax.f32 %v1588_v18, 0.0 }
 0x18d   : > { %3196 = vperm.xlu0 %4789, %v3066_v54   ;;  %3201 = vperm.xlu1 %4790, %v3067_v49   ;;  %v6166_v3 = vpop.f32.mrf.mxu0  ;;  %9466 = vst [vmem:[#allocation50_spill] sm:$0xff] %v6176_v46  ;;  %v1584_v54 = vadd.f32 %v5900_v4, %v9467_v37  ;;  %v2451_v49 = vmax.f32 %v1590_v61, 0.0  ;;  %v9468_v46 = vld [vmem:[#allocation6_spill] sm:$0xff] }
 0x18e   : > { %3278 = vmatprep.subr.mxu0 %v2453_v2  ;;  %4737 = vmatprep.subr.mxu1 %v2453_v2  ;;  %v1582_v2 = vadd.f32 %v5888_v30, %v9467_v37  ;;  %v1578_v17 = vadd.f32 %v5883_v50, %v9468_v46  ;;  %v3070_v4 = vld [vmem:[%s9294_s4 + $0xe0] sm:$0xff]  ;;  %v1576_v30 = vadd.f32 %v5872_v7, %v9468_v46  ;;  %v9471_v46 = vld [vmem:[#allocation7_spill] sm:$0xff] }
 0x18f   : > { %1940 = vmatmul.mubr.f32.gmra.mxu0 %v340_v53  ;;  %4769 = vmatpush2.msra.mxu1 %v2452_v63  ;;  %v6178_v39 = vpop.f32.mrf.mxu0  ;;  %v6202_v18 = vpop.permute.xlu0 %1004  ;;  %v2449_v50 = vmax.f32 %v1584_v54, 0.0 }
 0x190   : > { %1945 = vmatprep.mubr.f32.mxu0 %v9436_v35  ;;  %3279 = vmatpush2.msra.mxu0 %v2452_v63  ;;  %v3071_v63 = vld [vmem:[%s9294_s4 + $0xe8] sm:$0xff]  ;;  %9469 = vst [vmem:[#allocation5_spill] sm:$0xff] %v6202_v18  ;;  %v2448_v37 = vmax.f32 %v1582_v2, 0.0  ;;  %v2446_v54 = vmax.f32 %v1576_v30, 0.0  ;;  %v3072_v2 = vld [vmem:[%s9294_s4 + $0xf0] sm:$0xff] }
 0x191   : > { %3206 = vperm.xlu0 %4789, %v3068_v19   ;;  %3211 = vperm.xlu1 %4790, %v3069_v22   ;;  %v6188_v53 = vpop.f32.mrf.mxu0  ;;  %v342_v19 = vld [vmem:[%s9291_s1 + $0x2a8] sm:$0xff]  ;;  %v6208_v22 = vpop.permute.xlu1 %999 }
 0x192   : > { %3280 = vmatprep.subr.mxu0 %v2451_v49  ;;  %4738 = vmatprep.subr.mxu1 %v2451_v49  ;;  %9470 = vst [vmem:[#allocation6_spill] sm:$0xff] %v6208_v22  ;;  %v1572_v49 = vadd.f32 %v5860_v56, %v9471_v46  ;;  %v3073_v56 = vld [vmem:[%s9294_s4 + $0xf8] sm:$0xff] }
 0x193   : > { %1946 = vmatmul.mubr.f32.gmra.mxu0 %v341_v26  ;;  %4770 = vmatpush2.msra.mxu1 %v2450_v29  ;;  %v6200_v61 = vpop.f32.mrf.mxu0  ;;  %v2447_v26 = vmax.f32 %v1578_v17, 0.0  ;;  %v6230_v30 = vpop.permute.xlu0 %994 }
 0x194   : > { %3281 = vmatpush2.msra.mxu0 %v2450_v29  ;;  %1951 = vmatprep.mubr.f32.mxu0 %v9436_v35  ;;  %v1570_v29 = vadd.f32 %v5855_v41, %v9471_v46  ;;  %9473 = vst [vmem:[#allocation7_spill] sm:$0xff] %v6230_v30  ;;  %v9482_v30 = vld [vmem:[#allocation16_spill] sm:$0xff] }
 0x195   : > { %3216 = vperm.xlu0 %4789, %v3070_v4   ;;  %3221 = vperm.xlu1 %4790, %v3071_v63   ;;  %v6210_v7 = vpop.f32.mrf.mxu0  ;;  %v9472_v63 = vld [vmem:[#allocation8_spill] sm:$0xff] }
 0x196   : > { %3282 = vmatprep.subr.mxu0 %v2449_v50  ;;  %4739 = vmatprep.subr.mxu1 %v2449_v50  ;;  %v1566_v22 = vadd.f32 %v5844_v57, %v9472_v63  ;;  %v1564_v41 = vadd.f32 %v5832_v23, %v9472_v63  ;;  %v2445_v50 = vmax.f32 %v1572_v49, 0.0  ;;  %v343_v57 = vld [vmem:[%s9291_s1 + $0x2b0] sm:$0xff]  ;;  %v2444_v18 = vmax.f32 %v1570_v29, 0.0 }
 0x197   : > { %1952 = vmatmul.mubr.f32.gmra.mxu0 %v342_v19  ;;  %4771 = vmatpush2.msra.mxu1 %v2448_v37  ;;  %v6219_v4 = vpop.f32.mrf.mxu0  ;;  %v6235_v19 = vpop.permute.xlu1 %989 }
 0x198   : > { %3283 = vmatpush2.msra.mxu0 %v2448_v37  ;;  %4740 = vmatprep.subr.mxu1 %v2447_v26  ;;  %9474 = vst [vmem:[#allocation8_spill] sm:$0xff] %v6235_v19  ;;  %v9475_v37 = vld [vmem:[#allocation9_spill] sm:$0xff]  ;;  %v2442_v63 = vmax.f32 %v1564_v41, 0.0 }
 0x199   : > { %3284 = vmatprep.subr.mxu0 %v2447_v26  ;;  %4772 = vmatpush2.msra.mxu1 %v2446_v54  ;;  %v6228_v17 = vpop.f32.mrf.mxu0  ;;  %v1560_v46 = vadd.f32 %v5827_v8, %v9475_v37  ;;  %v1558_v49 = vadd.f32 %v5816_v15, %v9475_v37  ;;  %v2443_v26 = vmax.f32 %v1566_v22, 0.0  ;;  %v344_v15 = vld [vmem:[%s9291_s1 + $0x2b8] sm:$0xff] }
 0x19a   : > { %3285 = vmatpush2.msra.mxu0 %v2446_v54  ;;  %3226 = vperm.xlu0 %4789, %v3072_v2   ;;  %v9476_v54 = vld [vmem:[#allocation10_spill] sm:$0xff] }
 0x19b   : > { %3231 = vperm.xlu1 %4790, %v3073_v56   ;;  %1957 = vmatprep.mubr.f32.mxu0 %v9436_v35  ;;  %v6240_v23 = vpop.f32.mrf.mxu0  ;;  %v1554_v2 = vadd.f32 %v5804_v52, %v9476_v54  ;;  %v1552_v8 = vadd.f32 %v5799_v16, %v9476_v54  ;;  %v2441_v29 = vmax.f32 %v1560_v46, 0.0  ;;  %v9477_v52 = vld [vmem:[#allocation11_spill] sm:$0xff]  ;;  %v2440_v41 = vmax.f32 %v1558_v49, 0.0 }
 0x19c   : > { %3286 = vmatprep.subr.mxu0 %v2445_v50  ;;  %4741 = vmatprep.subr.mxu1 %v2445_v50  ;;  %v1548_v56 = vadd.f32 %v5788_v36, %v9477_v52  ;;  %v1546_v16 = vadd.f32 %v5777_v62, %v9477_v52  ;;  %v345_v62 = vld [vmem:[%s9291_s1 + $0x2c0] sm:$0xff] }
 0x19d   : > { %1958 = vmatmul.mubr.f32.gmra.mxu0 %v343_v57  ;;  %4773 = vmatpush2.msra.mxu1 %v2444_v18  ;;  %v6246_v19 = vpop.f32.mrf.mxu0  ;;  %v9478_v57 = vld [vmem:[#allocation12_spill] sm:$0xff]  ;;  %v2438_v46 = vmax.f32 %v1552_v8, 0.0  ;;  %v2762_v8 = vld [vmem:[%s9293_s3 + $0x140] sm:$0xff] }
 0x19e   : > { %3287 = vmatpush2.msra.mxu0 %v2444_v18  ;;  %4742 = vmatprep.subr.mxu1 %v2443_v26  ;;  %v2439_v18 = vmax.f32 %v1554_v2, 0.0  ;;  %v1542_v37 = vadd.f32 %v5774_v5, %v9478_v57  ;;  %v1540_v36 = vadd.f32 %v5760_v9, %v9478_v57  ;;  %v2436_v54 = vmax.f32 %v1546_v16, 0.0  ;;  %v347_v16 = vld [vmem:[%s9291_s1 + $0x2d0] sm:$0xff] }
 0x19f   : > { %3288 = vmatprep.subr.mxu0 %v2443_v26  ;;  %4774 = vmatpush2.msra.mxu1 %v2442_v63  ;;  %v6253_v22 = vpop.f32.mrf.mxu0  ;;  %v2437_v26 = vmax.f32 %v1548_v56, 0.0 }
 0x1a0   : > { %3289 = vmatpush2.msra.mxu0 %v2442_v63  ;;  %1963 = vmatprep.mubr.f32.mxu0 %v9436_v35  ;;  %v2435_v2 = vmax.f32 %v1542_v37, 0.0  ;;  %v2434_v9 = vmax.f32 %v1540_v36, 0.0  ;;  %v348_v36 = vld [vmem:[%s9291_s1 + $0x2d8] sm:$0xff] }
 0x1a1   : > { %3290 = vmatprep.subr.mxu0 %v2441_v29  ;;  %4743 = vmatprep.subr.mxu1 %v2441_v29  ;;  %v6260_v50 = vpop.f32.mrf.mxu0  ;;  %v346_v29 = vld [vmem:[%s9291_s1 + $0x2c8] sm:$0xff] }
 0x1a2   : > { %1964 = vmatmul.mubr.f32.gmra.mxu0 %v344_v15  ;;  %4775 = vmatpush2.msra.mxu1 %v2440_v41  ;;  %v2773_v15 = vld [vmem:[%s9293_s3 + $0x198] sm:$0xff] }
 0x1a3   : > { %3291 = vmatpush2.msra.mxu0 %v2440_v41  ;;  %4744 = vmatprep.subr.mxu1 %v2439_v18  ;;  %v6266_v49 = vpop.f32.mrf.mxu0  ;;  %v2772_v41 = vld [vmem:[%s9293_s3 + $0x190] sm:$0xff] }
 0x1a4   : > { %3292 = vmatprep.subr.mxu0 %v2439_v18  ;;  %4776 = vmatpush2.msra.mxu1 %v2438_v46  ;;  %v2783_v18 = vld [vmem:[%s9293_s3 + $0x1e8] sm:$0xff] }
 0x1a5   : > { %3293 = vmatpush2.msra.mxu0 %v2438_v46  ;;  %1969 = vmatprep.mubr.f32.mxu0 %v9436_v35  ;;  %v6272_v5 = vpop.f32.mrf.mxu0  ;;  %v2782_v46 = vld [vmem:[%s9293_s3 + $0x1e0] sm:$0xff] }
 0x1a6   : > { %3294 = vmatprep.subr.mxu0 %v2437_v26  ;;  %4745 = vmatprep.subr.mxu1 %v2437_v26  ;;  %v2793_v26 = vld [vmem:[%s9293_s3 + $0x238] sm:$0xff]  ;;  %v1710_v51 = vadd.f32 %v6272_v5, %v9482_v30  ;;  %v1708_v5 = vadd.f32 %v6266_v49, %v9482_v30 }
 0x1a7   : > { %1970 = vmatmul.mubr.f32.gmra.mxu0 %v345_v62  ;;  %4777 = vmatpush2.msra.mxu1 %v2436_v54  ;;  %v1713_v63 = vpop.f32.mrf.mxu0  ;;  %v352_v30 = vld [vmem:[%s9291_s1 + $0x2f8] sm:$0xff] }
 0x1a8   : > { %3295 = vmatpush2.msra.mxu0 %v2436_v54  ;;  %4746 = vmatprep.subr.mxu1 %v2435_v2  ;;  %v9479_v54 = vld [vmem:[#allocation13_spill] sm:$0xff] }
 0x1a9   : > { %3296 = vmatprep.subr.mxu0 %v2435_v2  ;;  %4778 = vmatpush2.msra.mxu1 %v2434_v9  ;;  %v1715_v52 = vpop.f32.mrf.mxu0  ;;  %v2833_v49 = vld [vmem:[%s9293_s3 + $0x378] sm:$0xff] }
 0x1aa   : > { %3297 = vmatpush2.msra.mxu0 %v2434_v9  ;;  %1975 = vmatprep.mubr.f32.mxu0 %v9436_v35 }
 0x1ab   : > { %3323 = vmatmul.mubr.f32.vlgmr.msra.gmra.mxu1 %v2762_v8  ;;  %1976 = vmatmul.mubr.f32.gmra.mxu0 %v346_v29  ;;  %v1719_v56 = vpop.f32.mrf.mxu0  ;;  %v2792_v29 = vld [vmem:[%s9293_s3 + $0x230] sm:$0xff] }
 0x1ac   : > { %3328 = vmatprep.mubr.f32.mxu1 %v2773_v15  ;;  %1981 = vmatprep.mubr.f32.mxu0 %v9436_v35  ;;  %v349_v15 = vld [vmem:[%s9291_s1 + $0x2e0] sm:$0xff] }
 0x1ad   : > { %v1721_v57 = vpop.f32.mrf.mxu0 }
 0x1af   : > { %3329 = vmatmul.mubr.f32.gmra.mxu1 %v2772_v41  ;;  %1982 = vmatmul.mubr.f32.gmra.mxu0 %v347_v16  ;;  %v1725_v37 = vpop.f32.mrf.mxu0  ;;  %v9480_v41 = vld [vmem:[#allocation14_spill] sm:$0xff] }
 0x1b0   : > { %3334 = vmatprep.mubr.f32.mxu1 %v2783_v18  ;;  %1987 = vmatprep.mubr.f32.mxu0 %v9436_v35  ;;  %v1726_v9 = vadd.f32 %v1725_v37, %v9479_v54  ;;  %v1722_v16 = vadd.f32 %v1721_v57, %v9480_v41  ;;  %v2803_v37 = vld [vmem:[%s9293_s3 + $0x288] sm:$0xff]  ;;  %v2802_v57 = vld [vmem:[%s9293_s3 + $0x280] sm:$0xff] }
 0x1b1   : > { %v1727_v62 = vpop.f32.mrf.mxu0 }
 0x1b2   : > { %v1728_v2 = vadd.f32 %v1727_v62, %v9479_v54  ;;  %v350_v54 = vld [vmem:[%s9291_s1 + $0x2e8] sm:$0xff] }
 0x1b3   : > { %3335 = vmatmul.mubr.f32.gmra.mxu1 %v2782_v46  ;;  %1988 = vmatmul.mubr.f32.gmra.mxu0 %v348_v36  ;;  %v6306_v8 = vpop.f32.mrf.mxu0  ;;  %v1720_v36 = vadd.f32 %v1719_v56, %v9480_v41  ;;  %v2813_v56 = vld [vmem:[%s9293_s3 + $0x2d8] sm:$0xff] }
 0x1b4   : > { %3340 = vmatprep.mubr.f32.mxu1 %v2793_v26  ;;  %1993 = vmatprep.mubr.f32.mxu0 %v9436_v35  ;;  %v2497_v18 = vmax.f32 %v1728_v2, 0.0  ;;  %v2496_v26 = vmax.f32 %v1726_v9, 0.0  ;;  %v9481_v2 = vld [vmem:[#allocation15_spill] sm:$0xff] }
 0x1b5   : > { %v6319_v46 = vpop.f32.mrf.mxu0  ;;  %v2494_v41 = vmax.f32 %v1720_v36, 0.0 }
 0x1b6   : > { %3491 = vmatprep.subr.mxu1 %v2497_v18  ;;  %v1716_v18 = vadd.f32 %v1715_v52, %v9481_v2 }
 0x1b7   : > { %3341 = vmatmul.mubr.f32.gmra.mxu1 %v2792_v29  ;;  %1994 = vmatmul.mubr.f32.gmra.mxu0 %v349_v15  ;;  %v6322_v62 = vpop.f32.mrf.mxu0  ;;  %v2495_v29 = vmax.f32 %v1722_v16, 0.0  ;;  %v1714_v15 = vadd.f32 %v1713_v63, %v9481_v2  ;;  %v2812_v16 = vld [vmem:[%s9293_s3 + $0x2d0] sm:$0xff]  ;;  %v2823_v63 = vld [vmem:[%s9293_s3 + $0x328] sm:$0xff]  ;;  %v9483_v2 = vld [vmem:[#allocation17_spill] sm:$0xff] }
 0x1b8   : > { %3346 = vmatprep.mubr.f32.mxu1 %v2803_v37  ;;  %1999 = vmatprep.mubr.f32.mxu0 %v9436_v35  ;;  %v2493_v52 = vmax.f32 %v1716_v18, 0.0  ;;  %v1704_v18 = vadd.f32 %v6260_v50, %v9483_v2  ;;  %v2490_v50 = vmax.f32 %v1708_v5, 0.0  ;;  %v2843_v5 = vld [vmem:[%s9293_s3 + $0x3c8] sm:$0xff] }
 0x1b9   : > { %3492 = vmatpush1.msra.mxu1 %v2496_v26  ;;  %v6335_v9 = vpop.f32.mrf.mxu0  ;;  %v351_v26 = vld [vmem:[%s9291_s1 + $0x2f0] sm:$0xff] }
 0x1ba   : > { %3493 = vmatprep.subr.mxu1 %v2495_v29  ;;  %v2491_v29 = vmax.f32 %v1710_v51, 0.0  ;;  %v1702_v51 = vadd.f32 %v6253_v22, %v9483_v2  ;;  %v353_v22 = vld [vmem:[%s9291_s1 + $0x300] sm:$0xff] }
 0x1bb   : > { %3347 = vmatmul.mubr.f32.gmra.mxu1 %v2802_v57  ;;  %2000 = vmatmul.mubr.f32.gmra.mxu0 %v350_v54  ;;  %v6338_v37 = vpop.f32.mrf.mxu0  ;;  %v2492_v57 = vmax.f32 %v1714_v15, 0.0 }
 0x1bc   : > { %3352 = vmatprep.mubr.f32.mxu1 %v2813_v56  ;;  %2005 = vmatprep.mubr.f32.mxu0 %v9436_v35  ;;  %v2822_v56 = vld [vmem:[%s9293_s3 + $0x320] sm:$0xff]  ;;  %v2488_v2 = vmax.f32 %v1702_v51, 0.0  ;;  %v2853_v51 = vld [vmem:[%s9293_s3 + $0x418] sm:$0xff] }
 0x1bd   : > { %3494 = vmatpush1.msra.mxu1 %v2494_v41  ;;  %v6352_v36 = vpop.f32.mrf.mxu0 }
 0x1be   : > { %3495 = vmatprep.subr.mxu1 %v2493_v52  ;;  %v9484_v52 = vld [vmem:[#allocation18_spill] sm:$0xff] }
 0x1bf   : > { %3353 = vmatmul.mubr.f32.gmra.mxu1 %v2812_v16  ;;  %2006 = vmatmul.mubr.f32.gmra.mxu0 %v351_v26  ;;  %v6356_v54 = vpop.f32.mrf.mxu0  ;;  %v1698_v16 = vadd.f32 %v6246_v19, %v9484_v52  ;;  %v2489_v26 = vmax.f32 %v1704_v18, 0.0  ;;  %v1696_v19 = vadd.f32 %v6240_v23, %v9484_v52  ;;  %v354_v23 = vld [vmem:[%s9291_s1 + $0x308] sm:$0xff] }
 0x1c0   : > { %3358 = vmatprep.mubr.f32.mxu1 %v2823_v63  ;;  %2011 = vmatprep.mubr.f32.mxu0 %v9436_v35  ;;  %v2832_v63 = vld [vmem:[%s9293_s3 + $0x370] sm:$0xff] }
 0x1c1   : > { %3496 = vmatpush1.msra.mxu1 %v2492_v57  ;;  %v6370_v15 = vpop.f32.mrf.mxu0  ;;  %v2486_v52 = vmax.f32 %v1696_v19, 0.0  ;;  %v2863_v19 = vld [vmem:[%s9293_s3 + $0x468] sm:$0xff] }
 0x1c2   : > { %3497 = vmatprep.subr.mxu1 %v2491_v29  ;;  %v9485_v29 = vld [vmem:[#allocation19_spill] sm:$0xff] }
 0x1c3   : > { %3359 = vmatmul.mubr.f32.gmra.mxu1 %v2822_v56  ;;  %2012 = vmatmul.mubr.f32.gmra.mxu0 %v352_v30  ;;  %v6374_v41 = vpop.f32.mrf.mxu0  ;;  %v1692_v56 = vadd.f32 %v6228_v17, %v9485_v29  ;;  %v2487_v30 = vmax.f32 %v1698_v16, 0.0  ;;  %v1690_v17 = vadd.f32 %v6219_v4, %v9485_v29  ;;  %v355_v4 = vld [vmem:[%s9291_s1 + $0x310] sm:$0xff] }
 0x1c4   : > { %3364 = vmatprep.mubr.f32.mxu1 %v2833_v49  ;;  %2017 = vmatprep.mubr.f32.mxu0 %v9436_v35  ;;  %v2842_v49 = vld [vmem:[%s9293_s3 + $0x3c0] sm:$0xff] }
 0x1c5   : > { %3498 = vmatpush1.msra.mxu1 %v2490_v50  ;;  %v6388_v57 = vpop.f32.mrf.mxu0  ;;  %v2484_v29 = vmax.f32 %v1690_v17, 0.0  ;;  %v2873_v17 = vld [vmem:[%s9293_s3 + $0x4b8] sm:$0xff] }
 0x1c6   : > { %3499 = vmatprep.subr.mxu1 %v2489_v26  ;;  %v9486_v26 = vld [vmem:[#allocation20_spill] sm:$0xff] }
 0x1c7   : > { %3365 = vmatmul.mubr.f32.gmra.mxu1 %v2832_v63  ;;  %2018 = vmatmul.mubr.f32.gmra.mxu0 %v353_v22  ;;  %v6392_v18 = vpop.f32.mrf.mxu0  ;;  %v1686_v63 = vadd.f32 %v6210_v7, %v9486_v26  ;;  %v2485_v22 = vmax.f32 %v1692_v56, 0.0  ;;  %v1684_v7 = vadd.f32 %v6200_v61, %v9486_v26  ;;  %v356_v61 = vld [vmem:[%s9291_s1 + $0x318] sm:$0xff] }
 0x1c8   : > { %3370 = vmatprep.mubr.f32.mxu1 %v2843_v5  ;;  %2023 = vmatprep.mubr.f32.mxu0 %v9436_v35  ;;  %v2852_v5 = vld [vmem:[%s9293_s3 + $0x410] sm:$0xff] }
 0x1c9   : > { %3500 = vmatpush1.msra.mxu1 %v2488_v2  ;;  %v6406_v50 = vpop.f32.mrf.mxu0  ;;  %v2482_v26 = vmax.f32 %v1684_v7, 0.0  ;;  %v2883_v7 = vld [vmem:[%s9293_s3 + $0x508] sm:$0xff] }
 0x1ca   : > { %3501 = vmatprep.subr.mxu1 %v2487_v30  ;;  %v9487_v30 = vld [vmem:[#allocation21_spill] sm:$0xff] }
 0x1cb   : > { %3371 = vmatmul.mubr.f32.gmra.mxu1 %v2842_v49  ;;  %2024 = vmatmul.mubr.f32.gmra.mxu0 %v354_v23  ;;  %v6410_v16 = vpop.f32.mrf.mxu0  ;;  %v1680_v49 = vadd.f32 %v6188_v53, %v9487_v30  ;;  %v2483_v23 = vmax.f32 %v1686_v63, 0.0  ;;  %v1678_v53 = vadd.f32 %v6178_v39, %v9487_v30  ;;  %v357_v39 = vld [vmem:[%s9291_s1 + $0x320] sm:$0xff]  ;;  %v9489_v30 = vld [vmem:[#allocation23_spill] sm:$0xff] }
 0x1cc   : > { %3376 = vmatprep.mubr.f32.mxu1 %v2853_v51  ;;  %2029 = vmatprep.mubr.f32.mxu0 %v9436_v35  ;;  %v2862_v51 = vld [vmem:[%s9293_s3 + $0x460] sm:$0xff] }
 0x1cd   : > { %3502 = vmatpush1.msra.mxu1 %v2486_v52  ;;  %v6424_v2 = vpop.f32.mrf.mxu0 }
 0x1ce   : > { %3503 = vmatprep.subr.mxu1 %v2485_v22  ;;  %v9488_v22 = vld [vmem:[#allocation22_spill] sm:$0xff] }
 0x1cf   : > { %3377 = vmatmul.mubr.f32.gmra.mxu1 %v2852_v5  ;;  %2030 = vmatmul.mubr.f32.gmra.mxu0 %v355_v4  ;;  %v6428_v56 = vpop.f32.mrf.mxu0  ;;  %v1674_v5 = vadd.f32 %v6166_v3, %v9488_v22  ;;  %v2481_v4 = vmax.f32 %v1680_v49, 0.0  ;;  %v1672_v3 = vadd.f32 %v6156_v60, %v9488_v22  ;;  %v1668_v49 = vadd.f32 %v6148_v48, %v9489_v30  ;;  %v2882_v60 = vld [vmem:[%s9293_s3 + $0x500] sm:$0xff]  ;;  %v358_v48 = vld [vmem:[%s9291_s1 + $0x328] sm:$0xff] }
 0x1d0   : > { %3382 = vmatprep.mubr.f32.mxu1 %v2863_v19  ;;  %2035 = vmatprep.mubr.f32.mxu0 %v9436_v35  ;;  %v2872_v19 = vld [vmem:[%s9293_s3 + $0x4b0] sm:$0xff] }
 0x1d1   : > { %3504 = vmatpush1.msra.mxu1 %v2484_v29  ;;  %v6442_v52 = vpop.f32.mrf.mxu0 }
 0x1d2   : > { %3505 = vmatprep.subr.mxu1 %v2483_v23  ;;  %v2480_v23 = vmax.f32 %v1678_v53, 0.0  ;;  %v2893_v53 = vld [vmem:[%s9293_s3 + $0x558] sm:$0xff] }
 0x1d3   : > { %3383 = vmatmul.mubr.f32.gmra.mxu1 %v2862_v51  ;;  %2036 = vmatmul.mubr.f32.gmra.mxu0 %v356_v61  ;;  %v6446_v63 = vpop.f32.mrf.mxu0  ;;  %v1666_v61 = vadd.f32 %v6134_v25, %v9489_v30  ;;  %v9490_v25 = vld [vmem:[#allocation24_spill] sm:$0xff] }
 0x1d4   : > { %3388 = vmatprep.mubr.f32.mxu1 %v2873_v17  ;;  %2041 = vmatprep.mubr.f32.mxu0 %v9436_v35  ;;  %v2479_v17 = vmax.f32 %v1674_v5, 0.0  ;;  %v1662_v22 = vadd.f32 %v6126_v38, %v9490_v25  ;;  %v2478_v5 = vmax.f32 %v1672_v3, 0.0  ;;  %v2892_v38 = vld [vmem:[%s9293_s3 + $0x550] sm:$0xff] }
 0x1d5   : > { %3506 = vmatpush1.msra.mxu1 %v2482_v26  ;;  %v6460_v29 = vpop.f32.mrf.mxu0  ;;  %v359_v3 = vld [vmem:[%s9291_s1 + $0x330] sm:$0xff] }
 0x1d6   : > { %3507 = vmatprep.subr.mxu1 %v2481_v4  ;;  %v1660_v4 = vadd.f32 %v6116_v59, %v9490_v25  ;;  %v2903_v59 = vld [vmem:[%s9293_s3 + $0x5a8] sm:$0xff] }
 0x1d7   : > { %3389 = vmatmul.mubr.f32.gmra.mxu1 %v2872_v19  ;;  %2042 = vmatmul.mubr.f32.gmra.mxu0 %v357_v39  ;;  %v6466_v51 = vpop.f32.mrf.mxu0  ;;  %v2477_v19 = vmax.f32 %v1668_v49, 0.0 }
 0x1d8   : > { %3394 = vmatprep.mubr.f32.mxu1 %v2883_v7  ;;  %2047 = vmatprep.mubr.f32.mxu0 %v9436_v35  ;;  %v9491_v7 = vld [vmem:[#allocation25_spill] sm:$0xff] }
 0x1d9   : > { %3508 = vmatpush1.msra.mxu1 %v2480_v23  ;;  %v6480_v26 = vpop.f32.mrf.mxu0  ;;  %v1656_v30 = vadd.f32 %v6104_v33, %v9491_v7  ;;  %v2476_v23 = vmax.f32 %v1666_v61, 0.0  ;;  %v1654_v33 = vadd.f32 %v6094_v13, %v9491_v7  ;;  %v2475_v61 = vmax.f32 %v1662_v22, 0.0  ;;  %v2902_v13 = vld [vmem:[%s9293_s3 + $0x5a0] sm:$0xff]  ;;  %v360_v22 = vld [vmem:[%s9291_s1 + $0x338] sm:$0xff] }
 0x1da   : > { %3509 = vmatprep.subr.mxu1 %v2479_v17  ;;  %v9492_v17 = vld [vmem:[#allocation26_spill] sm:$0xff] }
 0x1db   : > { %3395 = vmatmul.mubr.f32.gmra.mxu1 %v2882_v60  ;;  %2048 = vmatmul.mubr.f32.gmra.mxu0 %v358_v48  ;;  %v6486_v39 = vpop.f32.mrf.mxu0  ;;  %v1650_v60 = vadd.f32 %v6086_v34, %v9492_v17  ;;  %v2474_v48 = vmax.f32 %v1660_v4, 0.0  ;;  %v1648_v25 = vadd.f32 %v6072_v42, %v9492_v17  ;;  %v9493_v34 = vld [vmem:[#allocation27_spill] sm:$0xff]  ;;  %v2913_v42 = vld [vmem:[%s9293_s3 + $0x5f8] sm:$0xff] }
 0x1dc   : > { %3400 = vmatprep.mubr.f32.mxu1 %v2893_v53  ;;  %3510 = vmatpush1.msra.mxu1 %v2478_v5  ;;  %v2473_v5 = vmax.f32 %v1656_v30, 0.0  ;;  %v1644_v4 = vadd.f32 %v6064_v11, %v9493_v34  ;;  %v1642_v7 = vadd.f32 %v6056_v1, %v9493_v34  ;;  %v2472_v30 = vmax.f32 %v1654_v33, 0.0  ;;  %v2912_v1 = vld [vmem:[%s9293_s3 + $0x5f0] sm:$0xff]  ;;  %v2933_v34 = vld [vmem:[%s9293_s3 + $0x698] sm:$0xff] }
 0x1dd   : > { %2053 = vmatprep.mubr.f32.mxu0 %v9436_v35  ;;  %3511 = vmatprep.subr.mxu1 %v2477_v19  ;;  %v6500_v49 = vpop.f32.mrf.mxu0 }
 0x1de   : > { %3512 = vmatpush1.msra.mxu1 %v2476_v23  ;;  %v9494_v23 = vld [vmem:[#allocation28_spill] sm:$0xff]  ;;  %v2469_v33 = vmax.f32 %v1644_v4, 0.0 }
 0x1df   : > { %3401 = vmatmul.mubr.f32.gmra.mxu1 %v2892_v38  ;;  %2054 = vmatmul.mubr.f32.gmra.mxu0 %v359_v3  ;;  %v6506_v53 = vpop.f32.mrf.mxu0  ;;  %v1638_v38 = vadd.f32 %v6044_v20, %v9494_v23  ;;  %v2471_v3 = vmax.f32 %v1650_v60, 0.0  ;;  %v361_v20 = vld [vmem:[%s9291_s1 + $0x340] sm:$0xff]  ;;  %v2468_v60 = vmax.f32 %v1642_v7, 0.0  ;;  %v2932_v7 = vld [vmem:[%s9293_s3 + $0x690] sm:$0xff] }
 0x1e0   : > { %3513 = vmatprep.subr.mxu1 %v2475_v61  ;;  %3406 = vmatprep.mubr.f32.mxu1 %v2903_v59  ;;  %v1636_v59 = vadd.f32 %v6036_v32, %v9494_v23  ;;  %v2470_v61 = vmax.f32 %v1648_v25, 0.0  ;;  %v2923_v32 = vld [vmem:[%s9293_s3 + $0x648] sm:$0xff] }
 0x1e1   : > { %3514 = vmatpush1.msra.mxu1 %v2474_v48  ;;  %2059 = vmatprep.mubr.f32.mxu0 %v9436_v35  ;;  %v6522_v19 = vpop.f32.mrf.mxu0  ;;  %v2467_v48 = vmax.f32 %v1638_v38, 0.0  ;;  %v2943_v23 = vld [vmem:[%s9293_s3 + $0x6e8] sm:$0xff] }
 0x1e2   : > { %3515 = vmatprep.subr.mxu1 %v2473_v5  ;;  %v2466_v5 = vmax.f32 %v1636_v59, 0.0  ;;  %v2942_v59 = vld [vmem:[%s9293_s3 + $0x6e0] sm:$0xff] }
 0x1e3   : > { %3407 = vmatmul.mubr.f32.gmra.mxu1 %v2902_v13  ;;  %2060 = vmatmul.mubr.f32.gmra.mxu0 %v360_v22  ;;  %v6528_v11 = vpop.f32.mrf.mxu0  ;;  %v2922_v13 = vld [vmem:[%s9293_s3 + $0x640] sm:$0xff]  ;;  %v362_v22 = vld [vmem:[%s9291_s1 + $0x348] sm:$0xff] }
 0x1e4   : > { %3516 = vmatpush1.msra.mxu1 %v2472_v30  ;;  %3412 = vmatprep.mubr.f32.mxu1 %v2913_v42  ;;  %v363_v30 = vld [vmem:[%s9291_s1 + $0x350] sm:$0xff] }
 0x1e5   : > { %3517 = vmatprep.subr.mxu1 %v2471_v3  ;;  %2065 = vmatprep.mubr.f32.mxu0 %v9436_v35  ;;  %v6539_v17 = vpop.f32.mrf.mxu0 }
 0x1e6   : > { %3518 = vmatpush1.msra.mxu1 %v2470_v61  ;;  %v364_v61 = vld [vmem:[%s9291_s1 + $0x358] sm:$0xff] }
 0x1e7   : > { %3413 = vmatmul.mubr.f32.gmra.mxu1 %v2912_v1  ;;  %3519 = vmatprep.subr.mxu1 %v2469_v33  ;;  %v1809_v25 = vpop.f32.mrf.mxu0  ;;  %v2953_v1 = vld [vmem:[%s9293_s3 + $0x738] sm:$0xff] }
 0x1e8   : > { %2066 = vmatmul.mubr.f32.gmra.mxu0 %v361_v20  ;;  %3520 = vmatpush1.msra.mxu1 %v2468_v60  ;;  %v9495_v20 = vld [vmem:[#allocation29_spill] sm:$0xff] }
 0x1e9   : > { %3521 = vmatprep.subr.mxu1 %v2467_v48  ;;  %3418 = vmatprep.mubr.f32.mxu1 %v2923_v32  ;;  %v1811_v4 = vpop.f32.mrf.mxu0 }
 0x1ea   : > { %3522 = vmatpush1.msra.mxu1 %v2466_v5  ;;  %2071 = vmatprep.mubr.f32.mxu0 %v9436_v35  ;;  %v2952_v5 = vld [vmem:[%s9293_s3 + $0x730] sm:$0xff] }
 0x1eb   : > { %3419 = vmatmul.mubr.f32.gmra.mxu1 %v2922_v13  ;;  %v1815_v42 = vpop.f32.mrf.mxu0  ;;  %v9496_v13 = vld [vmem:[#allocation30_spill] sm:$0xff] }
 0x1ec   : > { %2072 = vmatmul.mubr.f32.gmra.mxu0 %v362_v22  ;;  %3424 = vmatprep.mubr.f32.mxu1 %v2933_v34 }
 0x1ed   : > { %2077 = vmatprep.mubr.f32.mxu0 %v9436_v35  ;;  %v1817_v38 = vpop.f32.mrf.mxu0 }
 0x1ee   : > { %v1818_v22 = vadd.f32 %v1817_v38, %v9496_v13  ;;  %v2962_v38 = vld [vmem:[%s9293_s3 + $0x780] sm:$0xff] }
 0x1ef   : > { %3425 = vmatmul.mubr.f32.gmra.mxu1 %v2932_v7  ;;  %v1821_v3 = vpop.f32.mrf.mxu0  ;;  %v365_v7 = vld [vmem:[%s9291_s1 + $0x360] sm:$0xff] }
 0x1f0   : > { %2078 = vmatmul.mubr.f32.gmra.mxu0 %v363_v30  ;;  %3430 = vmatprep.mubr.f32.mxu1 %v2943_v23  ;;  %v1822_v32 = vadd.f32 %v1821_v3, %v9495_v20  ;;  %v2963_v30 = vld [vmem:[%s9293_s3 + $0x788] sm:$0xff]  ;;  %v1816_v3 = vadd.f32 %v1815_v42, %v9496_v13  ;;  %v2973_v42 = vld [vmem:[%s9293_s3 + $0x7d8] sm:$0xff] }
 0x1f1   : > { %2083 = vmatprep.mubr.f32.mxu0 %v9436_v35  ;;  %v1823_v33 = vpop.f32.mrf.mxu0 }
 0x1f2   : > { %v1824_v60 = vadd.f32 %v1823_v33, %v9495_v20  ;;  %v2527_v20 = vmax.f32 %v1818_v22, 0.0  ;;  %v2526_v13 = vmax.f32 %v1816_v3, 0.0 }
 0x1f3   : > { %3431 = vmatmul.mubr.f32.gmra.mxu1 %v2942_v59  ;;  %v6576_v48 = vpop.f32.mrf.mxu0  ;;  %v2528_v59 = vmax.f32 %v1822_v32, 0.0 }
 0x1f4   : > { %2084 = vmatmul.mubr.f32.gmra.mxu0 %v364_v61  ;;  %3436 = vmatprep.mubr.f32.mxu1 %v2953_v1  ;;  %v2529_v34 = vmax.f32 %v1824_v60, 0.0  ;;  %v9497_v1 = vld [vmem:[#allocation31_spill] sm:$0xff] }
 0x1f5   : > { %2089 = vmatprep.mubr.f32.mxu0 %v9436_v35  ;;  %v6589_v23 = vpop.f32.mrf.mxu0  ;;  %v1812_v33 = vadd.f32 %v1811_v4, %v9497_v1  ;;  %v366_v60 = vld [vmem:[%s9291_s1 + $0x368] sm:$0xff]  ;;  %v9498_v4 = vld [vmem:[#allocation32_spill] sm:$0xff] }
 0x1f6   : > { %3523 = vmatprep.subr.mxu1 %v2529_v34  ;;  %v1806_v22 = vadd.f32 %v6539_v17, %v9498_v4  ;;  %v1804_v17 = vadd.f32 %v6528_v11, %v9498_v4  ;;  %v368_v11 = vld [vmem:[%s9291_s1 + $0x378] sm:$0xff]  ;;  %v9500_v4 = vld [vmem:[#allocation34_spill] sm:$0xff] }
 0x1f7   : > { %3437 = vmatmul.mubr.f32.gmra.mxu1 %v2952_v5  ;;  %v6592_v61 = vpop.f32.mrf.mxu0  ;;  %v1810_v5 = vadd.f32 %v1809_v25, %v9497_v1  ;;  %v2525_v34 = vmax.f32 %v1812_v33, 0.0  ;;  %v2983_v25 = vld [vmem:[%s9293_s3 + $0x828] sm:$0xff]  ;;  %v9499_v1 = vld [vmem:[#allocation33_spill] sm:$0xff] }
 0x1f8   : > { %2090 = vmatmul.mubr.f32.gmra.mxu0 %v365_v7  ;;  %3442 = vmatprep.mubr.f32.mxu1 %v2963_v30  ;;  %v2972_v7 = vld [vmem:[%s9293_s3 + $0x7d0] sm:$0xff]  ;;  %v1800_v33 = vadd.f32 %v6522_v19, %v9499_v1  ;;  %v1798_v19 = vadd.f32 %v6506_v53, %v9499_v1  ;;  %v369_v53 = vld [vmem:[%s9291_s1 + $0x380] sm:$0xff] }
 0x1f9   : > { %2095 = vmatprep.mubr.f32.mxu0 %v9436_v35  ;;  %3524 = vmatpush2.msra.mxu1 %v2528_v59  ;;  %v6605_v32 = vpop.f32.mrf.mxu0  ;;  %v367_v30 = vld [vmem:[%s9291_s1 + $0x370] sm:$0xff]  ;;  %v2524_v59 = vmax.f32 %v1810_v5, 0.0  ;;  %v2522_v5 = vmax.f32 %v1804_v17, 0.0 }
 0x1fa   : > { %3525 = vmatprep.subr.mxu1 %v2527_v20  ;;  %v2523_v20 = vmax.f32 %v1806_v22, 0.0  ;;  %v1794_v22 = vadd.f32 %v6500_v49, %v9500_v4  ;;  %v1792_v49 = vadd.f32 %v6486_v39, %v9500_v4  ;;  %v2520_v17 = vmax.f32 %v1798_v19, 0.0  ;;  %v3013_v39 = vld [vmem:[%s9293_s3 + $0x918] sm:$0xff] }
 0x1fb   : > { %3443 = vmatmul.mubr.f32.gmra.mxu1 %v2962_v38 }
 0x1fc   : > { %2096 = vmatmul.mubr.f32.gmra.mxu0 %v366_v60  ;;  %3448 = vmatprep.mubr.f32.mxu1 %v2973_v42  ;;  %v2982_v60 = vld [vmem:[%s9293_s3 + $0x820] sm:$0xff]  ;;  %v2993_v42 = vld [vmem:[%s9293_s3 + $0x878] sm:$0xff] }
 0x1fd   : > { %2101 = vmatprep.mubr.f32.mxu0 %v9436_v35  ;;  %3526 = vmatpush2.msra.mxu1 %v2526_v13  ;;  %v6620_v3 = vpop.f32.mrf.mxu0 }
 0x1fe   : > { %3527 = vmatprep.subr.mxu1 %v2525_v34  ;;  %v2521_v34 = vmax.f32 %v1800_v33, 0.0  ;;  %v2519_v33 = vmax.f32 %v1794_v22, 0.0 }
 0x1ff   : > { %3449 = vmatmul.mubr.f32.gmra.mxu1 %v2972_v7  ;;  %v6624_v38 = vpop.f32.mrf.mxu0  ;;  %v2992_v7 = vld [vmem:[%s9293_s3 + $0x870] sm:$0xff] }
 0x200   : > { %2102 = vmatmul.mubr.f32.gmra.mxu0 %v367_v30  ;;  %3454 = vmatprep.mubr.f32.mxu1 %v2983_v25  ;;  %v3003_v30 = vld [vmem:[%s9293_s3 + $0x8c8] sm:$0xff] }
 0x201   : > { %2107 = vmatprep.mubr.f32.mxu0 %v9436_v35  ;;  %3528 = vmatpush2.msra.mxu1 %v2524_v59  ;;  %v9501_v59 = vld [vmem:[#allocation35_spill] sm:$0xff] }
 0x202   : > { %3529 = vmatprep.subr.mxu1 %v2523_v20  ;;  %v1788_v1 = vadd.f32 %v6480_v26, %v9501_v59  ;;  %v3002_v20 = vld [vmem:[%s9293_s3 + $0x8c0] sm:$0xff]  ;;  %v1786_v26 = vadd.f32 %v6466_v51, %v9501_v59  ;;  %v371_v51 = vld [vmem:[%s9291_s1 + $0x390] sm:$0xff] }
 0x203   : > { %3455 = vmatmul.mubr.f32.gmra.mxu1 %v2982_v60  ;;  %v6640_v13 = vpop.f32.mrf.mxu0  ;;  %v370_v60 = vld [vmem:[%s9291_s1 + $0x388] sm:$0xff] }
 0x204   : > { %2108 = vmatmul.mubr.f32.gmra.mxu0 %v368_v11  ;;  %3460 = vmatprep.mubr.f32.mxu1 %v2993_v42  ;;  %v2518_v42 = vmax.f32 %v1792_v49, 0.0  ;;  %v2517_v22 = vmax.f32 %v1788_v1, 0.0  ;;  %v9503_v49 = vld [vmem:[#allocation37_spill] sm:$0xff]  ;;  %v3022_v1 = vld [vmem:[%s9293_s3 + $0x960] sm:$0xff] }
 0x205   : > { %2113 = vmatprep.mubr.f32.mxu0 %v9436_v35  ;;  %3530 = vmatpush2.msra.mxu1 %v2522_v5  ;;  %v6654_v25 = vpop.f32.mrf.mxu0  ;;  %v9502_v5 = vld [vmem:[#allocation36_spill] sm:$0xff] }
 0x206   : > { %3531 = vmatprep.subr.mxu1 %v2521_v34  ;;  %v1782_v4 = vadd.f32 %v6460_v29, %v9502_v5  ;;  %v3012_v34 = vld [vmem:[%s9293_s3 + $0x910] sm:$0xff]  ;;  %v1780_v29 = vadd.f32 %v6446_v63, %v9502_v5  ;;  %v372_v63 = vld [vmem:[%s9291_s1 + $0x398] sm:$0xff] }
 0x207   : > { %3461 = vmatmul.mubr.f32.gmra.mxu1 %v2992_v7  ;;  %v3023_v7 = vld [vmem:[%s9293_s3 + $0x968] sm:$0xff] }
 0x208   : > { %2114 = vmatmul.mubr.f32.gmra.mxu0 %v369_v53  ;;  %3466 = vmatprep.mubr.f32.mxu1 %v3003_v30  ;;  %v2516_v53 = vmax.f32 %v1786_v26, 0.0  ;;  %v2515_v59 = vmax.f32 %v1782_v4, 0.0  ;;  %v2514_v26 = vmax.f32 %v1780_v29, 0.0  ;;  %v3032_v4 = vld [vmem:[%s9293_s3 + $0x9b0] sm:$0xff] }
 0x209   : > { %2119 = vmatprep.mubr.f32.mxu0 %v9436_v35  ;;  %3532 = vmatpush2.msra.mxu1 %v2520_v17  ;;  %v6670_v11 = vpop.f32.mrf.mxu0  ;;  %v1776_v17 = vadd.f32 %v6442_v52, %v9503_v49  ;;  %v1774_v52 = vadd.f32 %v6428_v56, %v9503_v49  ;;  %v2725_v49 = vld [vmem:[%s9293_s3 + $0x18] sm:$0xff] }
 0x20a   : > { %3533 = vmatprep.subr.mxu1 %v2519_v33  ;;  %v3033_v33 = vld [vmem:[%s9293_s3 + $0x9b8] sm:$0xff] }
 0x20b   : > { %3467 = vmatmul.mubr.f32.gmra.mxu1 %v3002_v20  ;;  %v6674_v19 = vpop.f32.mrf.mxu0  ;;  %v2513_v5 = vmax.f32 %v1776_v17, 0.0 }
 0x20c   : > { %2120 = vmatmul.mubr.f32.gmra.mxu0 %v370_v60  ;;  %3472 = vmatprep.mubr.f32.mxu1 %v3013_v39  ;;  %v9504_v60 = vld [vmem:[#allocation38_spill] sm:$0xff] }
 0x20d   : > { %2125 = vmatprep.mubr.f32.mxu0 %v9436_v35  ;;  %3534 = vmatpush2.msra.mxu1 %v2518_v42  ;;  %v1770_v39 = vadd.f32 %v6424_v2, %v9504_v60  ;;  %v1768_v42 = vadd.f32 %v6410_v16, %v9504_v60  ;;  %v373_v2 = vld [vmem:[%s9291_s1 + $0x3a0] sm:$0xff]  ;;  %v1744_v60 = vadd.f32 %v6338_v37, %v5797_v24 }
 0x20e   : > { %3535 = vmatprep.subr.mxu1 %v2517_v22  ;;  %v9505_v22 = vld [vmem:[#allocation39_spill] sm:$0xff]  ;;  %v1734_v37 = vadd.f32 %v6319_v46, %v5825_v6 }
 0x20f   : > { %3473 = vmatmul.mubr.f32.gmra.mxu1 %v3012_v34  ;;  %v6690_v30 = vpop.f32.mrf.mxu0  ;;  %v1764_v34 = vadd.f32 %v6406_v50, %v9505_v22  ;;  %v1762_v16 = vadd.f32 %v6392_v18, %v9505_v22  ;;  %v1752_v18 = vadd.f32 %v6370_v15, %v5790_v28 }
 0x210   : > { %2126 = vmatmul.mubr.f32.gmra.mxu0 %v371_v51  ;;  %3478 = vmatprep.mubr.f32.mxu1 %v3023_v7  ;;  %v2512_v51 = vmax.f32 %v1774_v52, 0.0  ;;  %v9506_v7 = vld [vmem:[#allocation40_spill] sm:$0xff] }
 0x211   : > { %2131 = vmatprep.mubr.f32.mxu0 %v9436_v35  ;;  %3536 = vmatpush2.msra.mxu1 %v2516_v53  ;;  %v6704_v20 = vpop.f32.mrf.mxu0  ;;  %v1758_v29 = vadd.f32 %v6388_v57, %v9506_v7  ;;  %v2511_v53 = vmax.f32 %v1770_v39, 0.0  ;;  %v1756_v17 = vadd.f32 %v6374_v41, %v9506_v7  ;;  %v374_v57 = vld [vmem:[%s9291_s1 + $0x3a8] sm:$0xff]  ;;  %v1746_v41 = vadd.f32 %v6352_v36, %v5797_v24  ;;  %v375_v36 = vld [vmem:[%s9291_s1 + $0x3b0] sm:$0xff] }
 0x212   : > { %3537 = vmatprep.subr.mxu1 %v2515_v59  ;;  %v2510_v59 = vmax.f32 %v1768_v42, 0.0  ;;  %v1738_v42 = vadd.f32 %v6322_v62, %v5818_v43  ;;  %v2735_v7 = vld [vmem:[%s9293_s3 + $0x68] sm:$0xff] }
 0x213   : > { %3479 = vmatmul.mubr.f32.gmra.mxu1 %v3022_v1  ;;  %v2509_v1 = vmax.f32 %v1764_v34, 0.0  ;;  %v2507_v52 = vmax.f32 %v1758_v29, 0.0  ;;  %v2506_v39 = vmax.f32 %v1756_v17, 0.0  ;;  %v6768_v34 = vpop.permute.xlu0 %984  ;;  %v6782_v29 = vpop.permute.xlu1 %979  ;;  %v2734_v17 = vld [vmem:[%s9293_s3 + $0x60] sm:$0xff] }
 0x214   : > { %2132 = vmatmul.mubr.f32.gmra.mxu0 %v372_v63  ;;  %3484 = vmatprep.mubr.f32.mxu1 %v3033_v33  ;;  %v1750_v63 = vadd.f32 %v6356_v54, %v5790_v28  ;;  %v2508_v33 = vmax.f32 %v1762_v16, 0.0  ;;  %v2505_v28 = vmax.f32 %v1752_v18, 0.0  ;;  %v2500_v46 = vmax.f32 %v1738_v42, 0.0  ;;  %v2724_v16 = vld [vmem:[%s9293_s3 + $0x10] sm:$0xff] }
 0x215   : > { %2137 = vmatprep.mubr.f32.mxu0 %v9436_v35  ;;  %3538 = vmatpush2.msra.mxu1 %v2514_v26  ;;  %v6721_v56 = vpop.f32.mrf.mxu0  ;;  %v1740_v26 = vadd.f32 %v6335_v9, %v5818_v43  ;;  %v1732_v9 = vadd.f32 %v6306_v8, %v5825_v6  ;;  %v376_v43 = vld [vmem:[%s9291_s1 + $0x3b8] sm:$0xff] }
 0x216   : > { %3539 = vmatprep.subr.mxu1 %v2513_v5  ;;  %v2504_v24 = vmax.f32 %v1750_v63, 0.0  ;;  %v2503_v5 = vmax.f32 %v1746_v41, 0.0  ;;  %v379_v41 = vld [vmem:[%s9291_s1 + $0x3d0] sm:$0xff] }
 0x217   : > { %3485 = vmatmul.mubr.f32.gmra.mxu1 %v3032_v4  ;;  %v6727_v50 = vpop.f32.mrf.mxu0  ;;  %v2502_v4 = vmax.f32 %v1744_v60, 0.0  ;;  %v2501_v22 = vmax.f32 %v1740_v26, 0.0  ;;  %v2498_v8 = vmax.f32 %v1732_v9, 0.0  ;;  %v6802_v63 = vpop.permute.xlu1 %1129  ;;  %v2755_v60 = vld [vmem:[%s9293_s3 + $0x108] sm:$0xff] }
 0x218   : > { %2138 = vmatmul.mubr.f32.gmra.mxu0 %v373_v2  ;;  %3540 = vmatpush2.msra.mxu1 %v2512_v51  ;;  %v2499_v2 = vmax.f32 %v1734_v37, 0.0  ;;  %v377_v51 = vld [vmem:[%s9291_s1 + $0x3c0] sm:$0xff] }
 0x219   : > { %2143 = vmatprep.mubr.f32.mxu0 %v9436_v35  ;;  %3541 = vmatprep.subr.mxu1 %v2511_v53 }
 0x21a   : > { %3542 = vmatpush2.msra.mxu1 %v2510_v59  ;;  %3555 = vmatprep.mubr.f32.mxu1 %v2725_v49  ;;  %v6786_v49 = vpop.permute.xlu0 %1134  ;;  %v378_v59 = vld [vmem:[%s9291_s1 + $0x3c8] sm:$0xff] }
 0x21b   : > { %3543 = vmatprep.subr.mxu1 %v2509_v1  ;;  %v6744_v15 = vpop.f32.mrf.mxu0  ;;  %v2745_v1 = vld [vmem:[%s9293_s3 + $0xb8] sm:$0xff]  ;;  %v6832_v37 = vpop.permute.xlu1 %1119 }
 0x21c   : > { %2144 = vmatmul.mubr.f32.gmra.mxu0 %v374_v57  ;;  %3544 = vmatpush2.msra.mxu1 %v2508_v33  ;;  %v2744_v33 = vld [vmem:[%s9293_s3 + $0xb0] sm:$0xff] }
 0x21d   : > { %2149 = vmatprep.mubr.f32.mxu0 %v9436_v35  ;;  %3545 = vmatprep.subr.mxu1 %v2507_v52  ;;  %v6754_v54 = vpop.f32.mrf.mxu0 }
 0x21e   : > { %3546 = vmatpush2.msra.mxu1 %v2506_v39  ;;  %v6816_v39 = vpop.permute.xlu0 %1124 }
 0x21f   : > { %3547 = vmatprep.subr.mxu1 %v2505_v28  ;;  %v2754_v28 = vld [vmem:[%s9293_s3 + $0x100] sm:$0xff] }
 0x220   : > { %2150 = vmatmul.mubr.f32.gmra.mxu0 %v375_v36  ;;  %3548 = vmatpush2.msra.mxu1 %v2504_v24  ;;  %v380_v36 = vld [vmem:[%s9291_s1 + $0x3d8] sm:$0xff] }
 0x221   : > { %2155 = vmatprep.mubr.f32.mxu0 %v9436_v35  ;;  %3549 = vmatprep.subr.mxu1 %v2503_v5  ;;  %v6766_v62 = vpop.f32.mrf.mxu0  ;;  %v2765_v24 = vld [vmem:[%s9293_s3 + $0x158] sm:$0xff] }
 0x222   : > { %3550 = vmatpush2.msra.mxu1 %v2502_v4  ;;  %v6836_v9 = vpop.permute.xlu0 %1114  ;;  %v2764_v4 = vld [vmem:[%s9293_s3 + $0x150] sm:$0xff] }
 0x223   : > { %3551 = vmatprep.subr.mxu1 %v2501_v22  ;;  %v6770_v6 = vpop.f32.mrf.mxu0  ;;  %v381_v22 = vld [vmem:[%s9291_s1 + $0x3e0] sm:$0xff] }
 0x224   : > { %2156 = vmatmul.mubr.f32.gmra.mxu0 %v376_v43  ;;  %3552 = vmatpush2.msra.mxu1 %v2500_v46  ;;  %v2775_v46 = vld [vmem:[%s9293_s3 + $0x1a8] sm:$0xff] }
 0x225   : > { %2161 = vmatprep.mubr.f32.mxu0 %v9436_v35  ;;  %3553 = vmatprep.subr.mxu1 %v2499_v2 }
 0x226   : > { %3554 = vmatpush2.msra.mxu1 %v2498_v8  ;;  %v6848_v8 = vpop.permute.xlu1 %1109 }
 0x227   : > { %3556 = vmatmul.mubr.f32.vlgmr.msra.gmra.mxu1 %v2724_v16  ;;  %v6784_v53 = vpop.f32.mrf.mxu0  ;;  %9507 = vst [vmem:[#allocation9_spill] sm:$0xff] %v6848_v8  ;;  %v2774_v16 = vld [vmem:[%s9293_s3 + $0x1a0] sm:$0xff]  ;;  %v2804_v8 = vld [vmem:[%s9293_s3 + $0x290] sm:$0xff] }
 0x228   : > { %2162 = vmatmul.mubr.f32.gmra.mxu0 %v377_v51  ;;  %3561 = vmatprep.mubr.f32.mxu1 %v2735_v7  ;;  %v382_v51 = vld [vmem:[%s9291_s1 + $0x3e8] sm:$0xff] }
 0x229   : > { %2167 = vmatprep.mubr.f32.mxu0 %v9436_v35  ;;  %v6795_v18 = vpop.f32.mrf.mxu0 }
 0x22b   : > { %3562 = vmatmul.mubr.f32.gmra.mxu1 %v2734_v17  ;;  %v6800_v57 = vpop.f32.mrf.mxu0  ;;  %v2785_v17 = vld [vmem:[%s9293_s3 + $0x1f8] sm:$0xff] }
 0x22c   : > { %2168 = vmatmul.mubr.f32.gmra.mxu0 %v378_v59  ;;  %3567 = vmatprep.mubr.f32.mxu1 %v2745_v1  ;;  %v6860_v59 = vpop.permute.xlu0 %1104 }
 0x22d   : > { %2173 = vmatprep.mubr.f32.mxu0 %v9436_v35  ;;  %v6811_v52 = vpop.f32.mrf.mxu0  ;;  %9508 = vst [vmem:[#allocation10_spill] sm:$0xff] %v6860_v59 }
 0x22f   : > { %3568 = vmatmul.mubr.f32.gmra.mxu1 %v2744_v33  ;;  %v6818_v26 = vpop.f32.mrf.mxu0  ;;  %v2784_v33 = vld [vmem:[%s9293_s3 + $0x1f0] sm:$0xff] }
 0x230   : > { %2174 = vmatmul.mubr.f32.gmra.mxu0 %v379_v41  ;;  %3573 = vmatprep.mubr.f32.mxu1 %v2755_v60  ;;  %v383_v41 = vld [vmem:[%s9291_s1 + $0x3f0] sm:$0xff] }
 0x231   : > { %2179 = vmatprep.mubr.f32.mxu0 %v9436_v35  ;;  %v6827_v42 = vpop.f32.mrf.mxu0 }
 0x233   : > { %3574 = vmatmul.mubr.f32.gmra.mxu1 %v2754_v28  ;;  %v6834_v5 = vpop.f32.mrf.mxu0  ;;  %v2795_v28 = vld [vmem:[%s9293_s3 + $0x248] sm:$0xff] }
 0x234   : > { %2180 = vmatmul.mubr.f32.gmra.mxu0 %v380_v36  ;;  %3579 = vmatprep.mubr.f32.mxu1 %v2765_v24  ;;  %v6872_v36 = vpop.permute.xlu1 %1099 }
 0x235   : > { %2185 = vmatprep.mubr.f32.mxu0 %v9436_v35  ;;  %v1901_v43 = vpop.f32.mrf.mxu0  ;;  %9509 = vst [vmem:[#allocation11_spill] sm:$0xff] %v6872_v36 }
 0x237   : > { %3580 = vmatmul.mubr.f32.gmra.mxu1 %v2764_v4  ;;  %v1905_v2 = vpop.f32.mrf.mxu0  ;;  %v6874_v4 = vpop.permute.xlu0 %1094 }
 0x238   : > { %2186 = vmatmul.mubr.f32.gmra.mxu0 %v381_v22  ;;  %3585 = vmatprep.mubr.f32.mxu1 %v2775_v46  ;;  %9510 = vst [vmem:[#allocation12_spill] sm:$0xff] %v6874_v4  ;;  %v2794_v22 = vld [vmem:[%s9293_s3 + $0x240] sm:$0xff]  ;;  %v384_v46 = vld [vmem:[%s9291_s1 + $0x3f8] sm:$0xff]  ;;  %v6891_v4 = vpop.permute.xlu1 %1089 }
 0x239   : > { %2191 = vmatprep.mubr.f32.mxu0 %v9436_v35  ;;  %v1907_v7 = vpop.f32.mrf.mxu0  ;;  %9511 = vst [vmem:[#allocation13_spill] sm:$0xff] %v6891_v4 }
 0x23b   : > { %3586 = vmatmul.mubr.f32.gmra.mxu1 %v2774_v16  ;;  %v1911_v1 = vpop.f32.mrf.mxu0 }
 0x23c   : > { %2192 = vmatmul.mubr.f32.gmra.mxu0 %v382_v51  ;;  %3591 = vmatprep.mubr.f32.mxu1 %v2785_v17  ;;  %v2805_v51 = vld [vmem:[%s9293_s3 + $0x298] sm:$0xff]  ;;  %v1912_v36 = vadd.f32 %v1911_v1, %v5853_v55 }
 0x23d   : > { %2197 = vmatprep.mubr.f32.mxu0 %v9436_v35  ;;  %v1913_v60 = vpop.f32.mrf.mxu0 }
 0x23e   : > { %v2558_v4 = vmax.f32 %v1912_v36, 0.0 }
 0x23f   : > { %3592 = vmatmul.mubr.f32.gmra.mxu1 %v2784_v33  ;;  %v1917_v24 = vpop.f32.mrf.mxu0 }
 0x240   : > { %2198 = vmatmul.mubr.f32.gmra.mxu0 %v383_v41  ;;  %3597 = vmatprep.mubr.f32.mxu1 %v2795_v28  ;;  %v1918_v17 = vadd.f32 %v1917_v24, %v5846_v21  ;;  %v1914_v41 = vadd.f32 %v1913_v60, %v5853_v55  ;;  %v1908_v24 = vadd.f32 %v1907_v7, %v5876_v10  ;;  %v2815_v7 = vld [vmem:[%s9293_s3 + $0x2e8] sm:$0xff] }
 0x241   : > { %2203 = vmatprep.mubr.f32.mxu0 %v9436_v35  ;;  %v1919_v16 = vpop.f32.mrf.mxu0  ;;  %v1906_v55 = vadd.f32 %v1905_v2, %v5876_v10  ;;  %v2814_v10 = vld [vmem:[%s9293_s3 + $0x2e0] sm:$0xff] }
 0x242   : > { %v1920_v33 = vadd.f32 %v1919_v16, %v5846_v21  ;;  %v385_v21 = vld [vmem:[%s9291_s1 + $0x400] sm:$0xff]  ;;  %v2560_v1 = vmax.f32 %v1918_v17, 0.0  ;;  %v2559_v16 = vmax.f32 %v1914_v41, 0.0  ;;  %v2557_v2 = vmax.f32 %v1908_v24, 0.0  ;;  %v2825_v24 = vld [vmem:[%s9293_s3 + $0x338] sm:$0xff] }
 0x243   : > { %3598 = vmatmul.mubr.f32.gmra.mxu1 %v2794_v22  ;;  %v6889_v28 = vpop.f32.mrf.mxu0  ;;  %v6904_v22 = vpop.permute.xlu0 %1084  ;;  %v2556_v36 = vmax.f32 %v1906_v55, 0.0 }
 0x244   : > { %2204 = vmatmul.mubr.f32.gmra.mxu0 %v384_v46  ;;  %v2561_v59 = vmax.f32 %v1920_v33, 0.0  ;;  %3603 = vmatprep.mubr.f32.mxu1 %v2805_v51  ;;  %v1902_v46 = vadd.f32 %v1901_v43, %v5881_v45  ;;  %v1900_v33 = vadd.f32 %v6834_v5, %v5881_v45  ;;  %v1896_v43 = vadd.f32 %v6827_v42, %v5904_v14  ;;  %v6926_v45 = vpop.permute.xlu1 %1079 }
 0x245   : > { %2209 = vmatprep.mubr.f32.mxu0 %v9436_v35  ;;  %v6902_v60 = vpop.f32.mrf.mxu0  ;;  %v1894_v5 = vadd.f32 %v6818_v26, %v5904_v14  ;;  %v1890_v42 = vadd.f32 %v6811_v52, %v5909_v47  ;;  %v1888_v14 = vadd.f32 %v6800_v57, %v5909_v47  ;;  %v2824_v52 = vld [vmem:[%s9293_s3 + $0x330] sm:$0xff]  ;;  %v1882_v47 = vadd.f32 %v6784_v53, %v5932_v0 }
 0x246   : > { %3748 = vmatprep.subr.mxu1 %v2561_v59  ;;  %v2555_v17 = vmax.f32 %v1902_v46, 0.0  ;;  %v2554_v26 = vmax.f32 %v1900_v33, 0.0  ;;  %v2553_v55 = vmax.f32 %v1896_v43, 0.0  ;;  %v2835_v33 = vld [vmem:[%s9293_s3 + $0x388] sm:$0xff]  ;;  %v1872_v43 = vadd.f32 %v6754_v54, %v5960_v58 }
 0x247   : > { %3604 = vmatmul.mubr.f32.gmra.mxu1 %v2804_v8  ;;  %v6908_v51 = vpop.f32.mrf.mxu0  ;;  %v386_v8 = vld [vmem:[%s9291_s1 + $0x408] sm:$0xff]  ;;  %v2552_v57 = vmax.f32 %v1894_v5, 0.0  ;;  %v2550_v53 = vmax.f32 %v1888_v14, 0.0  ;;  %v1866_v54 = vadd.f32 %v6727_v50, %v5965_v27  ;;  %v1864_v14 = vadd.f32 %v6721_v56, %v5965_v27 }
 0x248   : > { %2210 = vmatmul.mubr.f32.gmra.mxu0 %v385_v21  ;;  %3749 = vmatpush1.msra.mxu1 %v2560_v1  ;;  %v6937_v21 = vpop.permute.xlu0 %1074  ;;  %v387_v1 = vld [vmem:[%s9291_s1 + $0x410] sm:$0xff]  ;;  %v1860_v50 = vadd.f32 %v6704_v20, %v5980_v31  ;;  %v1858_v56 = vadd.f32 %v6690_v30, %v5980_v31 }
 0x249   : > { %2215 = vmatprep.mubr.f32.mxu0 %v9436_v35  ;;  %3750 = vmatprep.subr.mxu1 %v2559_v16  ;;  %v6924_v59 = vpop.f32.mrf.mxu0  ;;  %v1878_v16 = vadd.f32 %v6770_v6, %v5937_v12  ;;  %v2834_v6 = vld [vmem:[%s9293_s3 + $0x380] sm:$0xff]  ;;  %v2542_v30 = vmax.f32 %v1864_v14, 0.0 }
 0x24a   : > { %3609 = vmatprep.mubr.f32.mxu1 %v2815_v7  ;;  %3751 = vmatpush1.msra.mxu1 %v2558_v4  ;;  %v1884_v4 = vadd.f32 %v6795_v18, %v5932_v0  ;;  %v2551_v18 = vmax.f32 %v1890_v42, 0.0  ;;  %v1876_v0 = vadd.f32 %v6766_v62, %v5937_v12  ;;  %v1870_v62 = vadd.f32 %v6744_v15, %v5960_v58  ;;  %v2844_v58 = vld [vmem:[%s9293_s3 + $0x3d0] sm:$0xff] }
 0x24b   : > { %3610 = vmatmul.mubr.f32.gmra.mxu1 %v2814_v10  ;;  %3752 = vmatprep.subr.mxu1 %v2557_v2  ;;  %v6932_v41 = vpop.f32.mrf.mxu0  ;;  %v6961_v10 = vpop.permute.xlu1 %1069  ;;  %v2547_v42 = vmax.f32 %v1878_v16, 0.0  ;;  %v2545_v15 = vmax.f32 %v1872_v43, 0.0  ;;  %v2855_v16 = vld [vmem:[%s9293_s3 + $0x428] sm:$0xff] }
 0x24c   : > { %2216 = vmatmul.mubr.f32.gmra.mxu0 %v386_v8  ;;  %3753 = vmatpush1.msra.mxu1 %v2556_v36  ;;  %v2549_v2 = vmax.f32 %v1884_v4, 0.0  ;;  %v388_v8 = vld [vmem:[%s9291_s1 + $0x418] sm:$0xff]  ;;  %v6976_v12 = vpop.permute.xlu0 %1064  ;;  %v2548_v36 = vmax.f32 %v1882_v47, 0.0  ;;  %v2543_v47 = vmax.f32 %v1866_v54, 0.0 }
 0x24d   : > { %2221 = vmatprep.mubr.f32.mxu0 %v9436_v35  ;;  %3754 = vmatprep.subr.mxu1 %v2555_v17  ;;  %v6950_v46 = vpop.f32.mrf.mxu0 }
 0x24e   : > { %3615 = vmatprep.mubr.f32.mxu1 %v2825_v24  ;;  %3755 = vmatpush1.msra.mxu1 %v2554_v26  ;;  %v2845_v24 = vld [vmem:[%s9293_s3 + $0x3d8] sm:$0xff]  ;;  %v2546_v26 = vmax.f32 %v1876_v0, 0.0 }
 0x24f   : > { %3616 = vmatmul.mubr.f32.gmra.mxu1 %v2824_v52  ;;  %3756 = vmatprep.subr.mxu1 %v2553_v55  ;;  %v6956_v7 = vpop.f32.mrf.mxu0  ;;  %v389_v52 = vld [vmem:[%s9291_s1 + $0x420] sm:$0xff]  ;;  %v7000_v27 = vpop.permute.xlu1 %1059  ;;  %v2544_v55 = vmax.f32 %v1870_v62, 0.0 }
 0x250   : > { %2222 = vmatmul.mubr.f32.gmra.mxu0 %v387_v1  ;;  %3757 = vmatpush1.msra.mxu1 %v2552_v57  ;;  %v9512_v1 = vld [vmem:[#allocation41_spill] sm:$0xff] }
 0x251   : > { %2227 = vmatprep.mubr.f32.mxu0 %v9436_v35  ;;  %3758 = vmatprep.subr.mxu1 %v2551_v18  ;;  %v6974_v5 = vpop.f32.mrf.mxu0  ;;  %v1854_v20 = vadd.f32 %v6674_v19, %v9512_v1  ;;  %v7011_v18 = vpop.permute.xlu0 %1214  ;;  %v1852_v31 = vadd.f32 %v6670_v11, %v9512_v1  ;;  %v2854_v19 = vld [vmem:[%s9293_s3 + $0x420] sm:$0xff] }
 0x252   : > { %3621 = vmatprep.mubr.f32.mxu1 %v2835_v33  ;;  %3759 = vmatpush1.msra.mxu1 %v2550_v53  ;;  %9513 = vst [vmem:[#allocation14_spill] sm:$0xff] %v7011_v18  ;;  %v9514_v33 = vld [vmem:[#allocation42_spill] sm:$0xff]  ;;  %v2541_v53 = vmax.f32 %v1860_v50, 0.0  ;;  %v391_v50 = vld [vmem:[%s9291_s1 + $0x430] sm:$0xff] }
 0x253   : > { %3622 = vmatmul.mubr.f32.gmra.mxu1 %v2834_v6  ;;  %3760 = vmatprep.subr.mxu1 %v2549_v2  ;;  %v6982_v17 = vpop.f32.mrf.mxu0  ;;  %v1848_v0 = vadd.f32 %v6654_v25, %v9514_v33  ;;  %v390_v6 = vld [vmem:[%s9291_s1 + $0x428] sm:$0xff]  ;;  %v1846_v11 = vadd.f32 %v6640_v13, %v9514_v33  ;;  %v2540_v2 = vmax.f32 %v1858_v56, 0.0  ;;  %v2539_v25 = vmax.f32 %v1854_v20, 0.0  ;;  %v7033_v54 = vpop.permute.xlu1 %1209  ;;  %v2864_v13 = vld [vmem:[%s9293_s3 + $0x470] sm:$0xff]  ;;  %v9519_v56 = vld [vmem:[#allocation45_spill] sm:$0xff] }
 0x254   : > { %2228 = vmatmul.mubr.f32.gmra.mxu0 %v388_v8  ;;  %3761 = vmatpush1.msra.mxu1 %v2548_v36  ;;  %v9515_v8 = vld [vmem:[#allocation43_spill] sm:$0xff]  ;;  %v2865_v36 = vld [vmem:[%s9293_s3 + $0x478] sm:$0xff]  ;;  %9516 = vst [vmem:[#allocation15_spill] sm:$0xff] %v7033_v54 }
 0x255   : > { %2233 = vmatprep.mubr.f32.mxu0 %v9436_v35  ;;  %3762 = vmatprep.subr.mxu1 %v2547_v42  ;;  %v6998_v4 = vpop.f32.mrf.mxu0  ;;  %v1842_v62 = vadd.f32 %v6624_v38, %v9515_v8  ;;  %v1840_v42 = vadd.f32 %v6620_v3, %v9515_v8  ;;  %v9517_v38 = vld [vmem:[#allocation44_spill] sm:$0xff]  ;;  %v7048_v3 = vpop.permute.xlu0 %1204  ;;  %v2875_v20 = vld [vmem:[%s9293_s3 + $0x4c8] sm:$0xff]  ;;  %v393_v8 = vld [vmem:[%s9291_s1 + $0x440] sm:$0xff] }
 0x256   : > { %3627 = vmatprep.mubr.f32.mxu1 %v2845_v24  ;;  %3763 = vmatpush1.msra.mxu1 %v2546_v26  ;;  %v2538_v24 = vmax.f32 %v1852_v31, 0.0  ;;  %v1836_v14 = vadd.f32 %v6605_v32, %v9517_v38  ;;  %v2537_v26 = vmax.f32 %v1848_v0, 0.0  ;;  %9518 = vst [vmem:[#allocation16_spill] sm:$0xff] %v7048_v3  ;;  %v1830_v32 = vadd.f32 %v6589_v23, %v9519_v56  ;;  %v392_v31 = vld [vmem:[%s9291_s1 + $0x438] sm:$0xff] }
 0x257   : > { %3628 = vmatmul.mubr.f32.gmra.mxu1 %v2844_v58  ;;  %3764 = vmatprep.subr.mxu1 %v2545_v15  ;;  %v7006_v57 = vpop.f32.mrf.mxu0  ;;  %v1834_v15 = vadd.f32 %v6592_v61, %v9517_v38  ;;  %v2874_v61 = vld [vmem:[%s9293_s3 + $0x4c0] sm:$0xff]  ;;  %v2885_v0 = vld [vmem:[%s9293_s3 + $0x518] sm:$0xff] }
 0x258   : > { %2234 = vmatmul.mubr.f32.gmra.mxu0 %v389_v52  ;;  %3765 = vmatpush1.msra.mxu1 %v2544_v55  ;;  %v2536_v52 = vmax.f32 %v1846_v11, 0.0  ;;  %v2535_v55 = vmax.f32 %v1842_v62, 0.0  ;;  %v2533_v23 = vmax.f32 %v1836_v14, 0.0  ;;  %v2895_v62 = vld [vmem:[%s9293_s3 + $0x568] sm:$0xff]  ;;  %v2905_v38 = vld [vmem:[%s9293_s3 + $0x5b8] sm:$0xff] }
 0x259   : > { %2239 = vmatprep.mubr.f32.mxu0 %v9436_v35  ;;  %3766 = vmatprep.subr.mxu1 %v2543_v47  ;;  %v7024_v43 = vpop.f32.mrf.mxu0  ;;  %v1828_v47 = vadd.f32 %v6576_v48, %v9519_v56  ;;  %v2531_v48 = vmax.f32 %v1830_v32, 0.0  ;;  %v395_v32 = vld [vmem:[%s9291_s1 + $0x450] sm:$0xff]  ;;  %v400_v54 = vld [vmem:[%s9291_s1 + $0x478] sm:$0xff] }
 0x25a   : > { %3633 = vmatprep.mubr.f32.mxu1 %v2855_v16  ;;  %3767 = vmatpush1.msra.mxu1 %v2542_v30  ;;  %v2534_v16 = vmax.f32 %v1840_v42, 0.0  ;;  %v7068_v30 = vpop.permute.xlu1 %1199  ;;  %v2894_v42 = vld [vmem:[%s9293_s3 + $0x560] sm:$0xff] }
 0x25b   : > { %3634 = vmatmul.mubr.f32.gmra.mxu1 %v2854_v19  ;;  %3768 = vmatprep.subr.mxu1 %v2541_v53  ;;  %9520 = vst [vmem:[#allocation17_spill] sm:$0xff] %v7068_v30  ;;  %v2532_v19 = vmax.f32 %v1834_v15, 0.0  ;;  %v7075_v53 = vpop.permute.xlu0 %1194  ;;  %v2904_v15 = vld [vmem:[%s9293_s3 + $0x5b0] sm:$0xff]  ;;  %v2954_v30 = vld [vmem:[%s9293_s3 + $0x740] sm:$0xff] }
 0x25c   : > { %2240 = vmatmul.mubr.f32.gmra.mxu0 %v390_v6  ;;  %3769 = vmatpush1.msra.mxu1 %v2540_v2  ;;  %9521 = vst [vmem:[#allocation18_spill] sm:$0xff] %v7075_v53  ;;  %v2530_v6 = vmax.f32 %v1828_v47, 0.0  ;;  %v2884_v2 = vld [vmem:[%s9293_s3 + $0x510] sm:$0xff] }
 0x25d   : > { %2245 = vmatprep.mubr.f32.mxu0 %v9436_v35  ;;  %v7043_v58 = vpop.f32.mrf.mxu0  ;;  %3770 = vmatprep.subr.mxu1 %v2539_v25 }
 0x25e   : > { %3639 = vmatprep.mubr.f32.mxu1 %v2865_v36  ;;  %3771 = vmatpush1.msra.mxu1 %v2538_v24  ;;  %v7091_v36 = vpop.permute.xlu1 %1189 }
 0x25f   : > { %v7054_v1 = vpop.f32.mrf.mxu0  ;;  %3640 = vmatmul.mubr.f32.gmra.mxu1 %v2864_v13  ;;  %3772 = vmatprep.subr.mxu1 %v2537_v26  ;;  %9522 = vst [vmem:[#allocation19_spill] sm:$0xff] %v7091_v36  ;;  %v394_v13 = vld [vmem:[%s9291_s1 + $0x448] sm:$0xff]  ;;  %v7105_v14 = vpop.permute.xlu0 %1184 }
 0x260   : > { %2246 = vmatmul.mubr.f32.gmra.mxu0 %v391_v50  ;;  %3773 = vmatpush1.msra.mxu1 %v2536_v52  ;;  %9523 = vst [vmem:[#allocation20_spill] sm:$0xff] %v7105_v14  ;;  %v2944_v14 = vld [vmem:[%s9293_s3 + $0x6f0] sm:$0xff] }
 0x261   : > { %2251 = vmatprep.mubr.f32.mxu0 %v9436_v35  ;;  %3774 = vmatprep.subr.mxu1 %v2535_v55  ;;  %v2915_v55 = vld [vmem:[%s9293_s3 + $0x608] sm:$0xff] }
 0x262   : > { %v7070_v33 = vpop.f32.mrf.mxu0  ;;  %3645 = vmatprep.mubr.f32.mxu1 %v2875_v20  ;;  %3775 = vmatpush1.msra.mxu1 %v2534_v16  ;;  %v7125_v20 = vpop.permute.xlu1 %1179 }
 0x263   : > { %3646 = vmatmul.mubr.f32.gmra.mxu1 %v2874_v61  ;;  %3776 = vmatprep.subr.mxu1 %v2533_v23  ;;  %9524 = vst [vmem:[#allocation21_spill] sm:$0xff] %v7125_v20  ;;  %v7131_v61 = vpop.permute.xlu0 %1174  ;;  %v2914_v23 = vld [vmem:[%s9293_s3 + $0x600] sm:$0xff] }
 0x264   : > { %2252 = vmatmul.mubr.f32.gmra.mxu0 %v392_v31  ;;  %v7077_v11 = vpop.f32.mrf.mxu0  ;;  %3777 = vmatpush1.msra.mxu1 %v2532_v19  ;;  %9526 = vst [vmem:[#allocation23_spill] sm:$0xff] %v7131_v61  ;;  %v2945_v61 = vld [vmem:[%s9293_s3 + $0x6f8] sm:$0xff] }
 0x265   : > { %2257 = vmatprep.mubr.f32.mxu0 %v9436_v35  ;;  %3778 = vmatprep.subr.mxu1 %v2531_v48  ;;  %v396_v48 = vld [vmem:[%s9291_s1 + $0x458] sm:$0xff] }
 0x266   : > { %3651 = vmatprep.mubr.f32.mxu1 %v2885_v0  ;;  %3779 = vmatpush1.msra.mxu1 %v2530_v6  ;;  %v2925_v0 = vld [vmem:[%s9293_s3 + $0x658] sm:$0xff] }
 0x267   : > { %v7089_v25 = vpop.f32.mrf.mxu0  ;;  %3652 = vmatmul.mubr.f32.gmra.mxu1 %v2884_v2 }
 0x268   : > { %2258 = vmatmul.mubr.f32.gmra.mxu0 %v393_v8  ;;  %3657 = vmatprep.mubr.f32.mxu1 %v2895_v62  ;;  %v7151_v8 = vpop.permute.xlu1 %1169  ;;  %v2924_v62 = vld [vmem:[%s9293_s3 + $0x650] sm:$0xff] }
 0x269   : > { %v7096_v24 = vpop.f32.mrf.mxu0  ;;  %2263 = vmatprep.mubr.f32.mxu0 %v9436_v35  ;;  %9529 = vst [vmem:[#allocation26_spill] sm:$0xff] %v7151_v8 }
 0x26b   : > { %v7107_v26 = vpop.f32.mrf.mxu1  ;;  %v7109_v50 = vpop.f32.mrf.mxu0  ;;  %3658 = vmatmul.mubr.f32.gmra.mxu1 %v2894_v42 }
 0x26c   : > { %2264 = vmatmul.mubr.f32.gmra.mxu0 %v394_v13  ;;  %3663 = vmatprep.mubr.f32.mxu1 %v2905_v38  ;;  %v397_v38 = vld [vmem:[%s9291_s1 + $0x460] sm:$0xff] }
 0x26d   : > { %v7114_v52 = vpop.f32.mrf.mxu1  ;;  %v7116_v56 = vpop.f32.mrf.mxu0  ;;  %2269 = vmatprep.mubr.f32.mxu0 %v9436_v35 }
 0x26f   : > { %v7127_v47 = vpop.f32.mrf.mxu1  ;;  %v7129_v16 = vpop.f32.mrf.mxu0  ;;  %3664 = vmatmul.mubr.f32.gmra.mxu1 %v2904_v15  ;;  %v2935_v15 = vld [vmem:[%s9293_s3 + $0x6a8] sm:$0xff] }
 0x270   : > { %9525 = vst [vmem:[#allocation22_spill] sm:$0xff] %v7127_v47  ;;  %2270 = vmatmul.mubr.f32.gmra.mxu0 %v395_v32  ;;  %3669 = vmatprep.mubr.f32.mxu1 %v2915_v55  ;;  %v7167_v32 = vpop.permute.xlu0 %1164 }
 0x271   : > { %v7136_v31 = vpop.f32.mrf.mxu1  ;;  %v7138_v19 = vpop.f32.mrf.mxu0  ;;  %2275 = vmatprep.mubr.f32.mxu0 %v9436_v35  ;;  %9531 = vst [vmem:[#allocation28_spill] sm:$0xff] %v7167_v32  ;;  %v398_v32 = vld [vmem:[%s9291_s1 + $0x468] sm:$0xff] }
 0x272   : > { %9527 = vst [vmem:[#allocation24_spill] sm:$0xff] %v7136_v31 }
 0x273   : > { %v7147_v6 = vpop.f32.mrf.mxu1  ;;  %v7149_v2 = vpop.f32.mrf.mxu0  ;;  %3670 = vmatmul.mubr.f32.gmra.mxu1 %v2914_v23 }
 0x274   : > { %9528 = vst [vmem:[#allocation25_spill] sm:$0xff] %v7147_v6  ;;  %2276 = vmatmul.mubr.f32.gmra.mxu0 %v396_v48  ;;  %3675 = vmatprep.mubr.f32.mxu1 %v2925_v0  ;;  %v2934_v48 = vld [vmem:[%s9293_s3 + $0x6a0] sm:$0xff]  ;;  %v7189_v20 = vpop.permute.xlu0 %1154 }
 0x275   : > { %v7156_v42 = vpop.f32.mrf.mxu1  ;;  %v7158_v13 = vpop.f32.mrf.mxu0  ;;  %2281 = vmatprep.mubr.f32.mxu0 %v9436_v35  ;;  %9536 = vst [vmem:[#allocation33_spill] sm:$0xff] %v7189_v20 }
 0x276   : > { %9530 = vst [vmem:[#allocation27_spill] sm:$0xff] %v7156_v42  ;;  %v9546_v42 = vld [vmem:[#allocation46_spill] sm:$0xff] }
 0x277   : > { %v7169_v55 = vpop.f32.mrf.mxu1  ;;  %v7171_v23 = vpop.f32.mrf.mxu0  ;;  %3676 = vmatmul.mubr.f32.gmra.mxu1 %v2924_v62 }
 0x278   : > { %9532 = vst [vmem:[#allocation29_spill] sm:$0xff] %v7169_v55  ;;  %2282 = vmatmul.mubr.f32.gmra.mxu0 %v397_v38  ;;  %3681 = vmatprep.mubr.f32.mxu1 %v2935_v15  ;;  %v7185_v62 = vpop.permute.xlu1 %1159 }
 0x279   : > { %v7176_v0 = vpop.f32.mrf.mxu1  ;;  %v1997_v8 = vpop.f32.mrf.mxu0  ;;  %2287 = vmatprep.mubr.f32.mxu0 %v9436_v35  ;;  %9534 = vst [vmem:[#allocation31_spill] sm:$0xff] %v7185_v62  ;;  %v399_v62 = vld [vmem:[%s9291_s1 + $0x470] sm:$0xff] }
 0x27a   : > { %9533 = vst [vmem:[#allocation30_spill] sm:$0xff] %v7176_v0 }
 0x27b   : > { %v7187_v38 = vpop.f32.mrf.mxu1  ;;  %v2001_v15 = vpop.f32.mrf.mxu0  ;;  %3682 = vmatmul.mubr.f32.gmra.mxu1 %v2934_v48  ;;  %v2955_v48 = vld [vmem:[%s9293_s3 + $0x748] sm:$0xff] }
 0x27c   : > { %9535 = vst [vmem:[#allocation32_spill] sm:$0xff] %v7187_v38  ;;  %2288 = vmatmul.mubr.f32.gmra.mxu0 %v398_v32  ;;  %3687 = vmatprep.mubr.f32.mxu1 %v2945_v61  ;;  %v7205_v32 = vpop.permute.xlu1 %1149 }
 0x27d   : > { %v7194_v36 = vpop.f32.mrf.mxu1  ;;  %v2003_v53 = vpop.f32.mrf.mxu0  ;;  %2293 = vmatprep.mubr.f32.mxu0 %v9436_v35  ;;  %9539 = vst [vmem:[#allocation36_spill] sm:$0xff] %v7205_v32 }
 0x27e   : > { %9537 = vst [vmem:[#allocation34_spill] sm:$0xff] %v7194_v36  ;;  %v7219_v32 = vpop.permute.xlu0 %1144  ;;  %v2004_v6 = vadd.f32 %v2003_v53, %v9546_v42 }
 0x27f   : > { %v7203_v20 = vpop.f32.mrf.mxu1  ;;  %v2007_v61 = vpop.f32.mrf.mxu0  ;;  %3688 = vmatmul.mubr.f32.gmra.mxu1 %v2944_v14  ;;  %v2965_v14 = vld [vmem:[%s9293_s3 + $0x798] sm:$0xff]  ;;  %9541 = vst [vmem:[#allocation38_spill] sm:$0xff] %v7219_v32  ;;  %v401_v32 = vld [vmem:[%s9291_s1 + $0x480] sm:$0xff] }
 0x280   : > { %9538 = vst [vmem:[#allocation35_spill] sm:$0xff] %v7203_v20  ;;  %2294 = vmatmul.mubr.f32.gmra.mxu0 %v399_v62  ;;  %3693 = vmatprep.mubr.f32.mxu1 %v2955_v48 }
 0x281   : > { %v7210_v3 = vpop.f32.mrf.mxu1  ;;  %v2009_v36 = vpop.f32.mrf.mxu0  ;;  %2299 = vmatprep.mubr.f32.mxu0 %v9436_v35 }
 0x282   : > { %9540 = vst [vmem:[#allocation37_spill] sm:$0xff] %v7210_v3  ;;  %v2964_v3 = vld [vmem:[%s9293_s3 + $0x790] sm:$0xff]  ;;  %v7245_v55 = vpop.permute.xlu0 %1294 }
 0x283   : > { %v7221_v62 = vpop.f32.mrf.mxu1  ;;  %v2013_v48 = vpop.f32.mrf.mxu0  ;;  %3694 = vmatmul.mubr.f32.gmra.mxu1 %v2954_v30  ;;  %9545 = vst [vmem:[#allocation42_spill] sm:$0xff] %v7245_v55  ;;  %v9552_v55 = vld [vmem:[#allocation2_spill] sm:$0xff] }
 0x284   : > { %9542 = vst [vmem:[#allocation39_spill] sm:$0xff] %v7221_v62  ;;  %2300 = vmatmul.mubr.f32.gmra.mxu0 %v400_v54  ;;  %3699 = vmatprep.mubr.f32.mxu1 %v2965_v14  ;;  %v2014_v20 = vadd.f32 %v2013_v48, %v6046_v44  ;;  %v2975_v54 = vld [vmem:[%s9293_s3 + $0x7e8] sm:$0xff]  ;;  %v7236_v30 = vpop.permute.xlu1 %1139  ;;  %v2010_v14 = vadd.f32 %v2009_v36, %v6054_v40 }
 0x285   : > { %v7227_v18 = vpop.f32.mrf.mxu1  ;;  %v2015_v38 = vpop.f32.mrf.mxu0  ;;  %2305 = vmatprep.mubr.f32.mxu0 %v9436_v35  ;;  %9544 = vst [vmem:[#allocation41_spill] sm:$0xff] %v7236_v30  ;;  %v2008_v48 = vadd.f32 %v2007_v61, %v6054_v40  ;;  %v2002_v30 = vadd.f32 %v2001_v15, %v9546_v42  ;;  %v402_v40 = vld [vmem:[%s9291_s1 + $0x488] sm:$0xff]  ;;  %v2974_v15 = vld [vmem:[%s9293_s3 + $0x7e0] sm:$0xff] }
 0x286   : > { %9543 = vst [vmem:[#allocation40_spill] sm:$0xff] %v7227_v18  ;;  %v2016_v62 = vadd.f32 %v2015_v38, %v6046_v44  ;;  %v2592_v47 = vmax.f32 %v2014_v20, 0.0  ;;  %v2591_v61 = vmax.f32 %v2010_v14, 0.0  ;;  %v2589_v14 = vmax.f32 %v2004_v6, 0.0  ;;  %v403_v6 = vld [vmem:[%s9291_s1 + $0x490] sm:$0xff] }
 0x287   : > { %v7241_v18 = vpop.f32.mrf.mxu1  ;;  %v7243_v0 = vpop.f32.mrf.mxu0  ;;  %3700 = vmatmul.mubr.f32.gmra.mxu1 %v2964_v3  ;;  %v9547_v3 = vld [vmem:[#allocation47_spill] sm:$0xff] }
 0x288   : > { %v2593_v31 = vmax.f32 %v2016_v62, 0.0  ;;  %2306 = vmatmul.mubr.f32.gmra.mxu0 %v401_v32  ;;  %3705 = vmatprep.mubr.f32.mxu1 %v2975_v54  ;;  %v1998_v38 = vadd.f32 %v1997_v8, %v9547_v3  ;;  %v1996_v53 = vadd.f32 %v7171_v23, %v9547_v3  ;;  %v2590_v32 = vmax.f32 %v2008_v48, 0.0  ;;  %v7267_v62 = vpop.permute.xlu1 %1289  ;;  %v9549_v54 = vld [vmem:[#allocation48_spill] sm:$0xff] }
 0x289   : > { %v7249_v36 = vpop.f32.mrf.mxu1  ;;  %v7251_v44 = vpop.f32.mrf.mxu0  ;;  %2311 = vmatprep.mubr.f32.mxu0 %v9436_v35  ;;  %9548 = vst [vmem:[#allocation43_spill] sm:$0xff] %v7267_v62  ;;  %v1992_v8 = vadd.f32 %v7158_v13, %v9549_v54  ;;  %v1990_v23 = vadd.f32 %v7149_v2, %v9549_v54 }
 0x28a   : > { %3780 = vmatprep.subr.mxu1 %v2593_v31  ;;  %v2985_v31 = vld [vmem:[%s9293_s3 + $0x838] sm:$0xff]  ;;  %v7284_v13 = vpop.permute.xlu0 %1284  ;;  %v2587_v62 = vmax.f32 %v1998_v38, 0.0 }
 0x28b   : > { %v7260_v42 = vpop.f32.mrf.mxu1  ;;  %v7262_v20 = vpop.f32.mrf.mxu0  ;;  %3781 = vmatpush2.msra.mxu1 %v2592_v47  ;;  %v2588_v47 = vmax.f32 %v2002_v30, 0.0  ;;  %9550 = vst [vmem:[#allocation44_spill] sm:$0xff] %v7284_v13  ;;  %v2586_v30 = vmax.f32 %v1996_v53, 0.0  ;;  %v2984_v13 = vld [vmem:[%s9293_s3 + $0x830] sm:$0xff]  ;;  %v2585_v38 = vmax.f32 %v1992_v8, 0.0  ;;  %v1978_v53 = vadd.f32 %v7109_v50, %v9552_v55  ;;  %v9554_v8 = vld [vmem:[#allocation3_spill] sm:$0xff] }
 0x28c   : > { %2312 = vmatmul.mubr.f32.gmra.mxu0 %v402_v40  ;;  %3782 = vmatprep.subr.mxu1 %v2591_v61  ;;  %v9551_v40 = vld [vmem:[#allocation49_spill] sm:$0xff]  ;;  %v1972_v50 = vadd.f32 %v7089_v25, %v9554_v8 }
 0x28d   : > { %v7276_v48 = vpop.f32.mrf.mxu1  ;;  %v7278_v3 = vpop.f32.mrf.mxu0  ;;  %3783 = vmatpush2.msra.mxu1 %v2590_v32  ;;  %2317 = vmatprep.mubr.f32.mxu0 %v9436_v35  ;;  %v1986_v61 = vadd.f32 %v7138_v19, %v9551_v40  ;;  %v1984_v2 = vadd.f32 %v7129_v16, %v9551_v40  ;;  %v1980_v19 = vadd.f32 %v7116_v56, %v9552_v55  ;;  %v2995_v16 = vld [vmem:[%s9293_s3 + $0x888] sm:$0xff]  ;;  %v404_v56 = vld [vmem:[%s9291_s1 + $0x498] sm:$0xff] }
 0x28e   : > { %3706 = vmatmul.mubr.f32.gmra.mxu1 %v2974_v15  ;;  %3784 = vmatprep.subr.mxu1 %v2589_v14  ;;  %v2584_v15 = vmax.f32 %v1990_v23, 0.0  ;;  %v3005_v25 = vld [vmem:[%s9293_s3 + $0x8d8] sm:$0xff] }
 0x28f   : > { %v7290_v54 = vpop.f32.mrf.mxu1  ;;  %v7292_v32 = vpop.f32.mrf.mxu0  ;;  %3785 = vmatpush2.msra.mxu1 %v2588_v47  ;;  %3711 = vmatprep.mubr.f32.mxu1 %v2985_v31  ;;  %v1974_v47 = vadd.f32 %v7096_v24, %v9554_v8  ;;  %v2582_v55 = vmax.f32 %v1984_v2, 0.0  ;;  %v9556_v24 = vld [vmem:[#allocation4_spill] sm:$0xff] }
 0x290   : > { %2318 = vmatmul.mubr.f32.gmra.mxu0 %v403_v6  ;;  %3786 = vmatprep.subr.mxu1 %v2587_v62  ;;  %v7312_v62 = vpop.permute.xlu1 %1279  ;;  %v2583_v6 = vmax.f32 %v1986_v61, 0.0  ;;  %v2581_v61 = vmax.f32 %v1980_v19, 0.0  ;;  %v1966_v2 = vadd.f32 %v7070_v33, %v9556_v24  ;;  %v9557_v19 = vld [vmem:[#allocation50_spill] sm:$0xff] }
 0x291   : > { %v7304_v14 = vpop.f32.mrf.mxu1  ;;  %v7306_v31 = vpop.f32.mrf.mxu0  ;;  %3787 = vmatpush2.msra.mxu1 %v2586_v30  ;;  %2323 = vmatprep.mubr.f32.mxu0 %v9436_v35  ;;  %9553 = vst [vmem:[#allocation45_spill] sm:$0xff] %v7312_v62  ;;  %v2994_v30 = vld [vmem:[%s9293_s3 + $0x880] sm:$0xff]  ;;  %v2579_v8 = vmax.f32 %v1974_v47, 0.0  ;;  %v1960_v33 = vadd.f32 %v7043_v58, %v9557_v19  ;;  %v3015_v58 = vld [vmem:[%s9293_s3 + $0x928] sm:$0xff] }
 0x292   : > { %3712 = vmatmul.mubr.f32.gmra.mxu1 %v2984_v13  ;;  %3788 = vmatprep.subr.mxu1 %v2585_v38  ;;  %v7325_v62 = vpop.permute.xlu0 %1274  ;;  %v1968_v13 = vadd.f32 %v7077_v11, %v9556_v24  ;;  %v2580_v38 = vmax.f32 %v1978_v53, 0.0  ;;  %v405_v11 = vld [vmem:[%s9291_s1 + $0x4a0] sm:$0xff]  ;;  %v2578_v53 = vmax.f32 %v1972_v50, 0.0 }
 0x293   : > { %v7318_v23 = vpop.f32.mrf.mxu1  ;;  %v7320_v40 = vpop.f32.mrf.mxu0  ;;  %3789 = vmatpush2.msra.mxu1 %v2584_v15  ;;  %3717 = vmatprep.mubr.f32.mxu1 %v2995_v16  ;;  %9555 = vst [vmem:[#allocation46_spill] sm:$0xff] %v7325_v62 }
 0x294   : > { %2324 = vmatmul.mubr.f32.gmra.mxu0 %v404_v56  ;;  %3790 = vmatprep.subr.mxu1 %v2583_v6  ;;  %v1962_v56 = vadd.f32 %v7054_v1, %v9557_v19  ;;  %v7353_v62 = vpop.permute.xlu1 %1269  ;;  %v9560_v1 = vld [vmem:[#allocation5_spill] sm:$0xff] }
 0x295   : > { %v7334_v16 = vpop.f32.mrf.mxu1  ;;  %v7336_v15 = vpop.f32.mrf.mxu0  ;;  %3791 = vmatpush2.msra.mxu1 %v2582_v55  ;;  %2329 = vmatprep.mubr.f32.mxu0 %v9436_v35  ;;  %v3004_v55 = vld [vmem:[%s9293_s3 + $0x8d0] sm:$0xff]  ;;  %9559 = vst [vmem:[#allocation48_spill] sm:$0xff] %v7353_v62  ;;  %v1956_v47 = vadd.f32 %v7024_v43, %v9560_v1  ;;  %v1954_v50 = vadd.f32 %v7006_v57, %v9560_v1  ;;  %v406_v43 = vld [vmem:[%s9291_s1 + $0x4a8] sm:$0xff] }
 0x296   : > { %3718 = vmatmul.mubr.f32.gmra.mxu1 %v2994_v30  ;;  %3792 = vmatprep.subr.mxu1 %v2581_v61  ;;  %v2577_v30 = vmax.f32 %v1968_v13, 0.0  ;;  %v2576_v61 = vmax.f32 %v1966_v2, 0.0  ;;  %v7370_v13 = vpop.permute.xlu0 %1264  ;;  %v2574_v2 = vmax.f32 %v1960_v33, 0.0  ;;  %v9565_v62 = vld [vmem:[#allocation7_spill] sm:$0xff] }
 0x297   : > { %v7346_v6 = vpop.f32.mrf.mxu1  ;;  %v7348_v24 = vpop.f32.mrf.mxu0  ;;  %3793 = vmatpush2.msra.mxu1 %v2580_v38  ;;  %3723 = vmatprep.mubr.f32.mxu1 %v3005_v25  ;;  %9562 = vst [vmem:[#allocation2_spill] sm:$0xff] %v7370_v13  ;;  %v3014_v13 = vld [vmem:[%s9293_s3 + $0x920] sm:$0xff]  ;;  %v1942_v33 = vadd.f32 %v6956_v7, %v9565_v62 }
 0x298   : > { %9558 = vst [vmem:[#allocation47_spill] sm:$0xff] %v7346_v6  ;;  %2330 = vmatmul.mubr.f32.gmra.mxu0 %v405_v11  ;;  %3794 = vmatprep.subr.mxu1 %v2579_v8  ;;  %v9563_v11 = vld [vmem:[#allocation6_spill] sm:$0xff]  ;;  %v2575_v8 = vmax.f32 %v1962_v56, 0.0  ;;  %v2573_v56 = vmax.f32 %v1956_v47, 0.0  ;;  %v7398_v47 = vpop.permute.xlu1 %1259 }
 0x299   : > { %v7362_v25 = vpop.f32.mrf.mxu1  ;;  %v7364_v38 = vpop.f32.mrf.mxu0  ;;  %3795 = vmatpush2.msra.mxu1 %v2578_v53  ;;  %2335 = vmatprep.mubr.f32.mxu0 %v9436_v35  ;;  %v1950_v19 = vadd.f32 %v6998_v4, %v9563_v11  ;;  %v1948_v57 = vadd.f32 %v6982_v17, %v9563_v11  ;;  %v1944_v4 = vadd.f32 %v6974_v5, %v9565_v62  ;;  %v3025_v17 = vld [vmem:[%s9293_s3 + $0x978] sm:$0xff]  ;;  %v407_v5 = vld [vmem:[%s9291_s1 + $0x4b0] sm:$0xff] }
 0x29a   : > { %9561 = vst [vmem:[#allocation49_spill] sm:$0xff] %v7362_v25  ;;  %3724 = vmatmul.mubr.f32.gmra.mxu1 %v3004_v55  ;;  %3796 = vmatprep.subr.mxu1 %v2577_v30  ;;  %v2572_v55 = vmax.f32 %v1954_v50, 0.0  ;;  %9567 = vst [vmem:[#allocation50_spill] sm:$0xff] %v7398_v47  ;;  %v7411_v47 = vpop.permute.xlu0 %1254 }
 0x29b   : > { %v7376_v1 = vpop.f32.mrf.mxu1  ;;  %v7378_v53 = vpop.f32.mrf.mxu0  ;;  %3797 = vmatpush2.msra.mxu1 %v2576_v61  ;;  %3729 = vmatprep.mubr.f32.mxu1 %v3015_v58  ;;  %v9568_v61 = vld [vmem:[#allocation8_spill] sm:$0xff]  ;;  %v2571_v11 = vmax.f32 %v1950_v19, 0.0  ;;  %v2570_v62 = vmax.f32 %v1948_v57, 0.0  ;;  %9570 = vst [vmem:[#allocation6_spill] sm:$0xff] %v7411_v47  ;;  %v1930_v19 = vadd.f32 %v6908_v51, %v6768_v34  ;;  %v2568_v57 = vmax.f32 %v1942_v33, 0.0 }
 0x29c   : > { %9564 = vst [vmem:[#allocation3_spill] sm:$0xff] %v7376_v1  ;;  %2336 = vmatmul.mubr.f32.gmra.mxu0 %v406_v43  ;;  %3798 = vmatprep.subr.mxu1 %v2575_v8  ;;  %v1938_v43 = vadd.f32 %v6950_v46, %v9568_v61  ;;  %v1936_v7 = vadd.f32 %v6932_v41, %v9568_v61  ;;  %v3035_v41 = vld [vmem:[%s9293_s3 + $0x9c8] sm:$0xff]  ;;  %v3034_v61 = vld [vmem:[%s9293_s3 + $0x9c0] sm:$0xff] }
 0x29d   : > { %v7390_v30 = vpop.f32.mrf.mxu1  ;;  %v7392_v58 = vpop.f32.mrf.mxu0  ;;  %3799 = vmatpush2.msra.mxu1 %v2574_v2  ;;  %2341 = vmatprep.mubr.f32.mxu0 %v9436_v35  ;;  %v3024_v2 = vld [vmem:[%s9293_s3 + $0x970] sm:$0xff]  ;;  %v1932_v46 = vadd.f32 %v6924_v59, %v6768_v34  ;;  %v408_v59 = vld [vmem:[%s9291_s1 + $0x4b8] sm:$0xff]  ;;  %v1924_v34 = vadd.f32 %v6889_v28, %v6782_v29  ;;  %v2564_v28 = vmax.f32 %v1930_v19, 0.0  ;;  %v2726_v19 = vld [vmem:[%s9293_s3 + $0x20] sm:$0xff] }
 0x29e   : > { %9566 = vst [vmem:[#allocation4_spill] sm:$0xff] %v7390_v30  ;;  %3730 = vmatmul.mubr.f32.gmra.mxu1 %v3014_v13  ;;  %3800 = vmatprep.subr.mxu1 %v2573_v56  ;;  %v2569_v13 = vmax.f32 %v1944_v4, 0.0  ;;  %v1926_v4 = vadd.f32 %v6902_v60, %v6782_v29  ;;  %v2566_v51 = vmax.f32 %v1936_v7, 0.0  ;;  %v2727_v29 = vld [vmem:[%s9293_s3 + $0x28] sm:$0xff] }
 0x29f   : > { %v7404_v50 = vpop.f32.mrf.mxu1  ;;  %v7406_v8 = vpop.f32.mrf.mxu0  ;;  %3801 = vmatpush2.msra.mxu1 %v2572_v55  ;;  %3735 = vmatprep.mubr.f32.mxu1 %v3025_v17  ;;  %v2567_v55 = vmax.f32 %v1938_v43, 0.0  ;;  %v2565_v60 = vmax.f32 %v1932_v46, 0.0 }
 0x2a0   : > { %9569 = vst [vmem:[#allocation5_spill] sm:$0xff] %v7404_v50  ;;  %2342 = vmatmul.mubr.f32.gmra.mxu0 %v407_v5  ;;  %3802 = vmatprep.subr.mxu1 %v2571_v11  ;;  %v7439_v11 = vpop.permute.xlu1 %1249  ;;  %v7452_v46 = vpop.permute.xlu0 %1244  ;;  %v2807_v50 = vld [vmem:[%s9293_s3 + $0x2a8] sm:$0xff] }
 0x2a1   : > { %v7420_v56 = vpop.f32.mrf.mxu1  ;;  %v7422_v17 = vpop.f32.mrf.mxu0  ;;  %3803 = vmatpush2.msra.mxu1 %v2570_v62  ;;  %2347 = vmatprep.mubr.f32.mxu0 %v9436_v35  ;;  %9573 = vst [vmem:[#allocation51_spill] sm:$0xff] %v7439_v11  ;;  %v409_v62 = vld [vmem:[%s9291_s1 + $0x4c0] sm:$0xff]  ;;  %9575 = vst [vmem:[#allocation53_spill] sm:$0xff] %v7452_v46 }
 0x2a2   : > { %9571 = vst [vmem:[#allocation7_spill] sm:$0xff] %v7420_v56  ;;  %3736 = vmatmul.mubr.f32.gmra.mxu1 %v3024_v2  ;;  %3804 = vmatprep.subr.mxu1 %v2569_v13  ;;  %v2563_v2 = vmax.f32 %v1926_v4, 0.0  ;;  %v2562_v13 = vmax.f32 %v1924_v34, 0.0 }
 0x2a3   : > { %v7432_v33 = vpop.f32.mrf.mxu1  ;;  %v7434_v5 = vpop.f32.mrf.mxu0  ;;  %3805 = vmatpush2.msra.mxu1 %v2568_v57  ;;  %3741 = vmatprep.mubr.f32.mxu1 %v3035_v41 }
 0x2a4   : > { %9572 = vst [vmem:[#allocation8_spill] sm:$0xff] %v7432_v33  ;;  %2348 = vmatmul.mubr.f32.gmra.mxu0 %v408_v59  ;;  %3806 = vmatprep.subr.mxu1 %v2567_v55  ;;  %v2737_v59 = vld [vmem:[%s9293_s3 + $0x78] sm:$0xff]  ;;  %v410_v55 = vld [vmem:[%s9291_s1 + $0x4c8] sm:$0xff] }
 0x2a5   : > { %v7444_v43 = vpop.f32.mrf.mxu1  ;;  %v7446_v7 = vpop.f32.mrf.mxu0  ;;  %3807 = vmatpush2.msra.mxu1 %v2566_v51  ;;  %2353 = vmatprep.mubr.f32.mxu0 %v9436_v35 }
 0x2a6   : > { %9574 = vst [vmem:[#allocation52_spill] sm:$0xff] %v7444_v43  ;;  %3742 = vmatmul.mubr.f32.gmra.mxu1 %v3034_v61  ;;  %3808 = vmatprep.subr.mxu1 %v2565_v60  ;;  %v7472_v51 = vpop.permute.xlu1 %1239  ;;  %v2736_v60 = vld [vmem:[%s9293_s3 + $0x70] sm:$0xff] }
 0x2a7   : > { %v7454_v41 = vpop.f32.mrf.mxu1  ;;  %3809 = vmatpush2.msra.mxu1 %v2564_v28  ;;  %3812 = vmatprep.mubr.f32.mxu1 %v2727_v29  ;;  %9578 = vst [vmem:[#allocation56_spill] sm:$0xff] %v7472_v51  ;;  %v2747_v28 = vld [vmem:[%s9293_s3 + $0xc8] sm:$0xff] }
 0x2a8   : > { %9576 = vst [vmem:[#allocation54_spill] sm:$0xff] %v7454_v41  ;;  %v7459_v57 = vpop.f32.mrf.mxu0  ;;  %2354 = vmatmul.mubr.f32.gmra.mxu0 %v409_v62  ;;  %3810 = vmatprep.subr.mxu1 %v2563_v2  ;;  %v7484_v62 = vpop.permute.xlu0 %1234 }
 0x2a9   : > { %v7464_v4 = vpop.f32.mrf.mxu1  ;;  %3811 = vmatpush2.msra.mxu1 %v2562_v13  ;;  %2359 = vmatprep.mubr.f32.mxu0 %v9436_v35  ;;  %9580 = vst [vmem:[#allocation58_spill] sm:$0xff] %v7484_v62  ;;  %v411_v13 = vld [vmem:[%s9291_s1 + $0x4d0] sm:$0xff]  ;;  %v2757_v62 = vld [vmem:[%s9293_s3 + $0x118] sm:$0xff] }
 0x2aa   : > { %9577 = vst [vmem:[#allocation55_spill] sm:$0xff] %v7464_v4  ;;  %v7470_v34 = vpop.f32.mrf.mxu0  ;;  %3813 = vmatmul.mubr.f32.vlgmr.msra.gmra.mxu1 %v2726_v19  ;;  %v7504_v46 = vpop.permute.xlu1 %1229 }
 0x2ab   : > { %v7474_v61 = vpop.f32.mrf.mxu1  ;;  %3818 = vmatprep.mubr.f32.mxu1 %v2737_v59  ;;  %9583 = vst [vmem:[#allocation61_spill] sm:$0xff] %v7504_v46  ;;  %v2756_v46 = vld [vmem:[%s9293_s3 + $0x110] sm:$0xff] }
 0x2ac   : > { %9579 = vst [vmem:[#allocation57_spill] sm:$0xff] %v7474_v61  ;;  %v7479_v29 = vpop.f32.mrf.mxu0  ;;  %2360 = vmatmul.mubr.f32.gmra.mxu0 %v410_v55  ;;  %v2746_v55 = vld [vmem:[%s9293_s3 + $0xc0] sm:$0xff]  ;;  %v7514_v47 = vpop.permute.xlu0 %1224 }
 0x2ad   : > { %v7486_v2 = vpop.f32.mrf.mxu1  ;;  %2365 = vmatprep.mubr.f32.mxu0 %v9436_v35  ;;  %9585 = vst [vmem:[#allocation63_spill] sm:$0xff] %v7514_v47 }
 0x2ae   : > { %9581 = vst [vmem:[#allocation59_spill] sm:$0xff] %v7486_v2  ;;  %v7492_v19 = vpop.f32.mrf.mxu0  ;;  %3819 = vmatmul.mubr.f32.gmra.mxu1 %v2736_v60  ;;  %v412_v60 = vld [vmem:[%s9291_s1 + $0x4d8] sm:$0xff]  ;;  %v7534_v47 = vpop.permute.xlu1 %1219 }
 0x2af   : > { %v7494_v59 = vpop.f32.mrf.mxu1  ;;  %3824 = vmatprep.mubr.f32.mxu1 %v2747_v28  ;;  %9588 = vst [vmem:[#allocation66_spill] sm:$0xff] %v7534_v47 }
 0x2b0   : > { %9582 = vst [vmem:[#allocation60_spill] sm:$0xff] %v7494_v59  ;;  %v7499_v51 = vpop.f32.mrf.mxu0  ;;  %2366 = vmatmul.mubr.f32.gmra.mxu0 %v411_v13  ;;  %v7546_v4 = vpop.permute.xlu0 %1374 }
 0x2b1   : > { %v7506_v11 = vpop.f32.mrf.mxu1  ;;  %2371 = vmatprep.mubr.f32.mxu0 %v9436_v35  ;;  %9590 = vst [vmem:[#allocation68_spill] sm:$0xff] %v7546_v4  ;;  %v2787_v4 = vld [vmem:[%s9293_s3 + $0x208] sm:$0xff] }
 0x2b2   : > { %9584 = vst [vmem:[#allocation62_spill] sm:$0xff] %v7506_v11  ;;  %v7512_v28 = vpop.f32.mrf.mxu0  ;;  %3825 = vmatmul.mubr.f32.gmra.mxu1 %v2746_v55  ;;  %v2767_v11 = vld [vmem:[%s9293_s3 + $0x168] sm:$0xff]  ;;  %v413_v55 = vld [vmem:[%s9291_s1 + $0x4e0] sm:$0xff] }
 0x2b3   : > { %v7516_v13 = vpop.f32.mrf.mxu1  ;;  %3830 = vmatprep.mubr.f32.mxu1 %v2757_v62 }
 0x2b4   : > { %9586 = vst [vmem:[#allocation64_spill] sm:$0xff] %v7516_v13  ;;  %v7521_v59 = vpop.f32.mrf.mxu0  ;;  %2372 = vmatmul.mubr.f32.gmra.mxu0 %v412_v60  ;;  %v2766_v60 = vld [vmem:[%s9293_s3 + $0x160] sm:$0xff] }
 0x2b5   : > { %v7526_v2 = vpop.f32.mrf.mxu1  ;;  %2377 = vmatprep.mubr.f32.mxu0 %v9436_v35 }
 0x2b6   : > { %9587 = vst [vmem:[#allocation65_spill] sm:$0xff] %v7526_v2  ;;  %v7532_v62 = vpop.f32.mrf.mxu0  ;;  %3831 = vmatmul.mubr.f32.gmra.mxu1 %v2756_v46  ;;  %v2777_v2 = vld [vmem:[%s9293_s3 + $0x1b8] sm:$0xff] }
 0x2b7   : > { %v7536_v13 = vpop.f32.mrf.mxu1  ;;  %3836 = vmatprep.mubr.f32.mxu1 %v2767_v11  ;;  %v414_v11 = vld [vmem:[%s9291_s1 + $0x4e8] sm:$0xff] }
 0x2b8   : > { %9589 = vst [vmem:[#allocation67_spill] sm:$0xff] %v7536_v13  ;;  %v7541_v61 = vpop.f32.mrf.mxu0  ;;  %2378 = vmatmul.mubr.f32.gmra.mxu0 %v413_v55  ;;  %v2776_v55 = vld [vmem:[%s9293_s3 + $0x1b0] sm:$0xff] }
 0x2b9   : > { %v7548_v41 = vpop.f32.mrf.mxu1  ;;  %2383 = vmatprep.mubr.f32.mxu0 %v9436_v35 }
 0x2ba   : > { %9591 = vst [vmem:[#allocation69_spill] sm:$0xff] %v7548_v41  ;;  %v7554_v46 = vpop.f32.mrf.mxu0  ;;  %3837 = vmatmul.mubr.f32.gmra.mxu1 %v2766_v60  ;;  %v7564_v41 = vpop.permute.xlu1 %1369 }
 0x2bb   : > { %v7556_v47 = vpop.f32.mrf.mxu1  ;;  %3842 = vmatprep.mubr.f32.mxu1 %v2777_v2  ;;  %9593 = vst [vmem:[#allocation71_spill] sm:$0xff] %v7564_v41  ;;  %v415_v2 = vld [vmem:[%s9291_s1 + $0x4f0] sm:$0xff] }
 0x2bc   : > { %9592 = vst [vmem:[#allocation70_spill] sm:$0xff] %v7556_v47  ;;  %v2097_v13 = vpop.f32.mrf.mxu0  ;;  %2384 = vmatmul.mubr.f32.gmra.mxu0 %v414_v11  ;;  %v7572_v47 = vpop.permute.xlu0 %1364  ;;  %v2786_v11 = vld [vmem:[%s9293_s3 + $0x200] sm:$0xff] }
 0x2bd   : > { %v7566_v43 = vpop.f32.mrf.mxu1  ;;  %2389 = vmatprep.mubr.f32.mxu0 %v9436_v35  ;;  %9595 = vst [vmem:[#allocation73_spill] sm:$0xff] %v7572_v47 }
 0x2be   : > { %9594 = vst [vmem:[#allocation72_spill] sm:$0xff] %v7566_v43  ;;  %v2099_v60 = vpop.f32.mrf.mxu0  ;;  %3843 = vmatmul.mubr.f32.gmra.mxu1 %v2776_v55  ;;  %v2797_v43 = vld [vmem:[%s9293_s3 + $0x258] sm:$0xff] }
 0x2bf   : > { %v7574_v33 = vpop.f32.mrf.mxu1  ;;  %3848 = vmatprep.mubr.f32.mxu1 %v2787_v4  ;;  %v416_v55 = vld [vmem:[%s9291_s1 + $0x4f8] sm:$0xff]  ;;  %v2723_v4 = vld [vmem:[%s9293_s3 + $0x8] sm:$0xff] }
 0x2c0   : > { %9596 = vst [vmem:[#allocation74_spill] sm:$0xff] %v7574_v33  ;;  %v2103_v41 = vpop.f32.mrf.mxu0  ;;  %2390 = vmatmul.mubr.f32.gmra.mxu0 %v415_v2  ;;  %v7591_v33 = vpop.permute.xlu1 %1359 }
 0x2c1   : > { %v7582_v56 = vpop.f32.mrf.mxu1  ;;  %2395 = vmatprep.mubr.f32.mxu0 %v9436_v35  ;;  %9598 = vst [vmem:[#allocation76_spill] sm:$0xff] %v7591_v33  ;;  %v2722_v33 = vld [vmem:[%s9293_s3] sm:$0xff] }
 0x2c2   : > { %9597 = vst [vmem:[#allocation75_spill] sm:$0xff] %v7582_v56  ;;  %v2105_v47 = vpop.f32.mrf.mxu0  ;;  %3849 = vmatmul.mubr.f32.gmra.mxu1 %v2786_v11  ;;  %v2796_v56 = vld [vmem:[%s9293_s3 + $0x250] sm:$0xff]  ;;  %v7601_v11 = vpop.permute.xlu0 %1354 }
 0x2c3   : > { %v7593_v2 = vpop.f32.mrf.mxu1  ;;  %3854 = vmatprep.mubr.f32.mxu1 %v2797_v43  ;;  %9600 = vst [vmem:[#allocation78_spill] sm:$0xff] %v7601_v11  ;;  %v2106_v1 = vadd.f32 %v2105_v47, %v6802_v63 }
 0x2c4   : > { %9599 = vst [vmem:[#allocation77_spill] sm:$0xff] %v7593_v2  ;;  %v2109_v35 = vpop.f32.mrf.mxu0  ;;  %2396 = vmatmul.mubr.f32.gmra.mxu0 %v416_v55  ;;  %v2733_v55 = vld [vmem:[%s9293_s3 + $0x58] sm:$0xff]  ;;  %v7625_v6 = vpop.permute.xlu1 %1349 }
 0x2c5   : > { %v7603_v30 = vpop.f32.mrf.mxu1  ;;  %3298 = vmatprep.mubr.f32.mxu0 %v2723_v4  ;;  %v2110_v43 = vadd.f32 %v2109_v35, %v6786_v49  ;;  %v2806_v4 = vld [vmem:[%s9293_s3 + $0x2a0] sm:$0xff]  ;;  %9603 = vst [vmem:[#allocation81_spill] sm:$0xff] %v7625_v6  ;;  %v2743_v6 = vld [vmem:[%s9293_s3 + $0xa8] sm:$0xff] }
 0x2c6   : > { %9601 = vst [vmem:[#allocation79_spill] sm:$0xff] %v7603_v30  ;;  %v2111_v2 = vpop.f32.mrf.mxu0  ;;  %3855 = vmatmul.mubr.f32.gmra.mxu1 %v2796_v56  ;;  %v2104_v30 = vadd.f32 %v2103_v41, %v6802_v63  ;;  %v2817_v56 = vld [vmem:[%s9293_s3 + $0x2f8] sm:$0xff]  ;;  %v2098_v63 = vadd.f32 %v2097_v13, %v6816_v39 }
 0x2c7   : > { %v2112_v25 = vadd.f32 %v2111_v2, %v6786_v49  ;;  %v7614_v11 = vpop.f32.mrf.mxu1  ;;  %3860 = vmatprep.mubr.f32.mxu1 %v2807_v50  ;;  %v2100_v49 = vadd.f32 %v2099_v60, %v6816_v39  ;;  %v2732_v50 = vld [vmem:[%s9293_s3 + $0x50] sm:$0xff]  ;;  %v2624_v41 = vmax.f32 %v2110_v43, 0.0  ;;  %v2623_v60 = vmax.f32 %v2106_v1, 0.0 }
 0x2c8   : > { %9602 = vst [vmem:[#allocation80_spill] sm:$0xff] %v7614_v11  ;;  %v7620_v35 = vpop.f32.mrf.mxu0  ;;  %3299 = vmatmul.mubr.f32.vlgmr.msra.gmra.mxu0 %v2722_v33  ;;  %v7639_v11 = vpop.permute.xlu0 %1344  ;;  %v2092_v39 = vadd.f32 %v7541_v61, %v6832_v37  ;;  %v2622_v13 = vmax.f32 %v2104_v30, 0.0  ;;  %v2086_v30 = vadd.f32 %v7521_v59, %v6836_v9  ;;  %v2620_v61 = vmax.f32 %v2098_v63, 0.0 }
 0x2c9   : > { %v2625_v47 = vmax.f32 %v2112_v25, 0.0  ;;  %v7628_v2 = vpop.f32.mrf.mxu1  ;;  %3304 = vmatprep.mubr.f32.mxu0 %v2733_v55  ;;  %9604 = vst [vmem:[#allocation82_spill] sm:$0xff] %v7639_v11  ;;  %v2094_v25 = vadd.f32 %v7554_v46, %v6832_v37  ;;  %v2088_v46 = vadd.f32 %v7532_v62, %v6836_v9  ;;  %v2621_v1 = vmax.f32 %v2100_v49, 0.0  ;;  %v2742_v37 = vld [vmem:[%s9293_s3 + $0xa0] sm:$0xff]  ;;  %v2827_v62 = vld [vmem:[%s9293_s3 + $0x348] sm:$0xff]  ;;  %v7666_v49 = vpop.permute.xlu1 %1339  ;;  %v2753_v9 = vld [vmem:[%s9293_s3 + $0xf8] sm:$0xff] }
 0x2ca   : > { %v7634_v33 = vpop.f32.mrf.mxu0  ;;  %3861 = vmatmul.mubr.f32.gmra.mxu1 %v2806_v4  ;;  %v2816_v4 = vld [vmem:[%s9293_s3 + $0x2f0] sm:$0xff]  ;;  %9605 = vst [vmem:[#allocation83_spill] sm:$0xff] %v7666_v49  ;;  %v2618_v63 = vmax.f32 %v2092_v39, 0.0 }
 0x2cb   : > { %v7643_v55 = vpop.f32.mrf.mxu1  ;;  %4005 = vmatprep.subr.mxu1 %v2625_v47  ;;  %3866 = vmatprep.mubr.f32.mxu1 %v2817_v56  ;;  %v9606_v47 = vld [vmem:[#allocation9_spill] sm:$0xff] }
 0x2cc   : > { %v7647_v43 = vpop.f32.mrf.mxu0  ;;  %3305 = vmatmul.mubr.f32.gmra.mxu0 %v2732_v50  ;;  %4006 = vmatpush1.msra.mxu1 %v2624_v41  ;;  %v2619_v50 = vmax.f32 %v2094_v25, 0.0  ;;  %v2080_v59 = vadd.f32 %v7499_v51, %v9606_v47  ;;  %v9608_v25 = vld [vmem:[#allocation10_spill] sm:$0xff]  ;;  %v2752_v51 = vld [vmem:[%s9293_s3 + $0xf0] sm:$0xff] }
 0x2cd   : > { %v7654_v11 = vpop.f32.mrf.mxu1  ;;  %4007 = vmatprep.subr.mxu1 %v2623_v60  ;;  %3310 = vmatprep.mubr.f32.mxu0 %v2743_v6  ;;  %v2082_v6 = vadd.f32 %v7512_v28, %v9606_v47  ;;  %v2826_v60 = vld [vmem:[%s9293_s3 + $0x340] sm:$0xff]  ;;  %v7680_v28 = vpop.permute.xlu0 %1334  ;;  %v2074_v39 = vadd.f32 %v7479_v29, %v9608_v25 }
 0x2ce   : > { %v7661_v56 = vpop.f32.mrf.mxu0  ;;  %4008 = vmatpush1.msra.mxu1 %v2622_v13  ;;  %9607 = vst [vmem:[#allocation9_spill] sm:$0xff] %v7680_v28  ;;  %v2076_v13 = vadd.f32 %v7492_v19, %v9608_v25  ;;  %v2837_v19 = vld [vmem:[%s9293_s3 + $0x398] sm:$0xff]  ;;  %v2614_v28 = vmax.f32 %v2080_v59, 0.0 }
 0x2cf   : > { %3867 = vmatmul.mubr.f32.gmra.mxu1 %v2816_v4  ;;  %4009 = vmatprep.subr.mxu1 %v2621_v1  ;;  %v2617_v4 = vmax.f32 %v2088_v46, 0.0  ;;  %v7684_v1 = vpop.f32.mrf.mxu1  ;;  %v9609_v46 = vld [vmem:[#allocation11_spill] sm:$0xff]  ;;  %v2612_v25 = vmax.f32 %v2074_v39, 0.0 }
 0x2d0   : > { %v7675_v41 = vpop.f32.mrf.mxu0  ;;  %3311 = vmatmul.mubr.f32.gmra.mxu0 %v2742_v37  ;;  %4010 = vmatpush1.msra.mxu1 %v2620_v61  ;;  %v2616_v37 = vmax.f32 %v2086_v30, 0.0  ;;  %v2070_v47 = vadd.f32 %v7470_v34, %v9609_v46  ;;  %v2836_v30 = vld [vmem:[%s9293_s3 + $0x390] sm:$0xff] }
 0x2d1   : > { %4011 = vmatprep.subr.mxu1 %v2619_v50  ;;  %3872 = vmatprep.mubr.f32.mxu1 %v2827_v62  ;;  %v2615_v62 = vmax.f32 %v2082_v6, 0.0  ;;  %v2068_v50 = vadd.f32 %v7459_v57, %v9609_v46  ;;  %v2613_v6 = vmax.f32 %v2076_v13, 0.0  ;;  %v2847_v57 = vld [vmem:[%s9293_s3 + $0x3e8] sm:$0xff] }
 0x2d2   : > { %v7691_v61 = vpop.f32.mrf.mxu0  ;;  %4012 = vmatpush1.msra.mxu1 %v2618_v63  ;;  %3316 = vmatprep.mubr.f32.mxu0 %v2753_v9  ;;  %v7705_v9 = vpop.permute.xlu1 %1329  ;;  %v9611_v63 = vld [vmem:[#allocation12_spill] sm:$0xff]  ;;  %v2611_v13 = vmax.f32 %v2070_v47, 0.0  ;;  %v2050_v47 = vadd.f32 %v7378_v53, %v6904_v22 }
 0x2d3   : > { %3873 = vmatmul.mubr.f32.gmra.mxu1 %v2826_v60  ;;  %4013 = vmatprep.subr.mxu1 %v2617_v4  ;;  %9610 = vst [vmem:[#allocation10_spill] sm:$0xff] %v7705_v9  ;;  %v2064_v34 = vadd.f32 %v7446_v7, %v9611_v63  ;;  %v7709_v60 = vpop.f32.mrf.mxu1  ;;  %v2062_v59 = vadd.f32 %v7434_v5, %v9611_v63  ;;  %v2610_v46 = vmax.f32 %v2068_v50, 0.0  ;;  %v2846_v5 = vld [vmem:[%s9293_s3 + $0x3e0] sm:$0xff] }
 0x2d4   : > { %v7700_v29 = vpop.f32.mrf.mxu0  ;;  %3317 = vmatmul.mubr.f32.gmra.mxu0 %v2752_v51  ;;  %4014 = vmatpush1.msra.mxu1 %v2616_v37  ;;  %9612 = vst [vmem:[#allocation11_spill] sm:$0xff] %v7709_v60  ;;  %v7718_v51 = vpop.permute.xlu0 %1324  ;;  %v9614_v37 = vld [vmem:[#allocation13_spill] sm:$0xff] }
 0x2d5   : > { %4015 = vmatprep.subr.mxu1 %v2615_v62  ;;  %3878 = vmatprep.mubr.f32.mxu1 %v2837_v19  ;;  %9613 = vst [vmem:[#allocation12_spill] sm:$0xff] %v7718_v51  ;;  %v2058_v7 = vadd.f32 %v7422_v17, %v9614_v37  ;;  %v2056_v19 = vadd.f32 %v7406_v8, %v9614_v37  ;;  %v2609_v39 = vmax.f32 %v2064_v34, 0.0  ;;  %v7731_v17 = vpop.f32.mrf.mxu1  ;;  %v2857_v8 = vld [vmem:[%s9293_s3 + $0x438] sm:$0xff]  ;;  %v2608_v50 = vmax.f32 %v2062_v59, 0.0  ;;  %v2946_v51 = vld [vmem:[%s9293_s3 + $0x700] sm:$0xff] }
 0x2d6   : > { %v7716_v4 = vpop.f32.mrf.mxu0  ;;  %4016 = vmatpush1.msra.mxu1 %v2614_v28  ;;  %v2052_v28 = vadd.f32 %v7392_v58, %v6904_v22  ;;  %9615 = vst [vmem:[#allocation13_spill] sm:$0xff] %v7731_v17  ;;  %v7740_v63 = vpop.permute.xlu1 %1319  ;;  %v2046_v58 = vadd.f32 %v7364_v38, %v6926_v45  ;;  %v2856_v22 = vld [vmem:[%s9293_s3 + $0x430] sm:$0xff]  ;;  %v2040_v38 = vadd.f32 %v7336_v15, %v6937_v21 }
 0x2d7   : > { %3879 = vmatmul.mubr.f32.gmra.mxu1 %v2836_v30  ;;  %4017 = vmatprep.subr.mxu1 %v2613_v6  ;;  %9616 = vst [vmem:[#allocation84_spill] sm:$0xff] %v7740_v63  ;;  %v2607_v34 = vmax.f32 %v2058_v7, 0.0  ;;  %v2044_v6 = vadd.f32 %v7348_v24, %v6926_v45  ;;  %v7755_v37 = vpop.f32.mrf.mxu1  ;;  %v2867_v45 = vld [vmem:[%s9293_s3 + $0x488] sm:$0xff]  ;;  %v2038_v24 = vadd.f32 %v7320_v40, %v6937_v21  ;;  %v2604_v7 = vmax.f32 %v2050_v47, 0.0  ;;  %v2866_v21 = vld [vmem:[%s9293_s3 + $0x480] sm:$0xff] }
 0x2d8   : > { %v7724_v62 = vpop.f32.mrf.mxu0  ;;  %4018 = vmatpush1.msra.mxu1 %v2612_v25  ;;  %3884 = vmatprep.mubr.f32.mxu1 %v2847_v57  ;;  %v2606_v57 = vmax.f32 %v2056_v19, 0.0  ;;  %v7751_v53 = vpop.permute.xlu0 %1314  ;;  %v2605_v59 = vmax.f32 %v2052_v28, 0.0  ;;  %9618 = vst [vmem:[#allocation86_spill] sm:$0xff] %v7755_v37  ;;  %v2034_v19 = vadd.f32 %v7306_v31, %v6961_v10  ;;  %v2032_v15 = vadd.f32 %v7292_v32, %v6961_v10  ;;  %v2877_v10 = vld [vmem:[%s9293_s3 + $0x4d8] sm:$0xff] }
 0x2d9   : > { %4019 = vmatprep.subr.mxu1 %v2611_v13  ;;  %9617 = vst [vmem:[#allocation85_spill] sm:$0xff] %v7751_v53  ;;  %v2028_v31 = vadd.f32 %v7278_v3, %v6976_v12  ;;  %v2026_v32 = vadd.f32 %v7262_v20, %v6976_v12  ;;  %v2600_v47 = vmax.f32 %v2038_v24, 0.0  ;;  %v2022_v3 = vadd.f32 %v7251_v44, %v7000_v27  ;;  %v2876_v12 = vld [vmem:[%s9293_s3 + $0x4d0] sm:$0xff]  ;;  %v2887_v44 = vld [vmem:[%s9293_s3 + $0x528] sm:$0xff] }
 0x2da   : > { %v7738_v30 = vpop.f32.mrf.mxu0  ;;  %4020 = vmatpush1.msra.mxu1 %v2610_v46  ;;  %v2603_v46 = vmax.f32 %v2046_v58, 0.0  ;;  %v7773_v40 = vpop.permute.xlu1 %1309 }
 0x2db   : > { %3885 = vmatmul.mubr.f32.gmra.mxu1 %v2846_v5  ;;  %4021 = vmatprep.subr.mxu1 %v2609_v39  ;;  %v2602_v5 = vmax.f32 %v2044_v6, 0.0  ;;  %9619 = vst [vmem:[#allocation87_spill] sm:$0xff] %v7773_v40  ;;  %v2601_v39 = vmax.f32 %v2040_v38, 0.0  ;;  %v2020_v6 = vadd.f32 %v7243_v0, %v7000_v27  ;;  %v2597_v20 = vmax.f32 %v2028_v31, 0.0 }
 0x2dc   : > { %v7746_v25 = vpop.f32.mrf.mxu0  ;;  %4022 = vmatpush1.msra.mxu1 %v2608_v50  ;;  %3890 = vmatprep.mubr.f32.mxu1 %v2857_v8  ;;  %v7777_v8 = vpop.f32.mrf.mxu1  ;;  %v2595_v0 = vmax.f32 %v2022_v3, 0.0 }
 0x2dd   : > { %4023 = vmatprep.subr.mxu1 %v2607_v34  ;;  %9620 = vst [vmem:[#allocation88_spill] sm:$0xff] %v7777_v8  ;;  %v7786_v58 = vpop.permute.xlu0 %1304  ;;  %v2599_v34 = vmax.f32 %v2034_v19, 0.0 }
 0x2de   : > { %v7762_v13 = vpop.f32.mrf.mxu0  ;;  %4024 = vmatpush1.msra.mxu1 %v2606_v57  ;;  %9621 = vst [vmem:[#allocation89_spill] sm:$0xff] %v7786_v58  ;;  %v2598_v57 = vmax.f32 %v2032_v15, 0.0  ;;  %v7797_v38 = vpop.f32.mrf.mxu1  ;;  %v2936_v58 = vld [vmem:[%s9293_s3 + $0x6b0] sm:$0xff] }
 0x2df   : > { %3891 = vmatmul.mubr.f32.gmra.mxu1 %v2856_v22  ;;  %4025 = vmatprep.subr.mxu1 %v2605_v59  ;;  %9622 = vst [vmem:[#allocation90_spill] sm:$0xff] %v7797_v38  ;;  %v2596_v59 = vmax.f32 %v2026_v32, 0.0  ;;  %v7804_v27 = vpop.permute.xlu1 %1299  ;;  %v2896_v32 = vld [vmem:[%s9293_s3 + $0x570] sm:$0xff] }
 0x2e0   : > { %v7768_v28 = vpop.f32.mrf.mxu0  ;;  %4026 = vmatpush1.msra.mxu1 %v2604_v7  ;;  %3896 = vmatprep.mubr.f32.mxu1 %v2867_v45  ;;  %9623 = vst [vmem:[#allocation91_spill] sm:$0xff] %v7804_v27  ;;  %v2594_v7 = vmax.f32 %v2020_v6, 0.0 }
 0x2e1   : > { %4027 = vmatprep.subr.mxu1 %v2603_v46  ;;  %v2886_v46 = vld [vmem:[%s9293_s3 + $0x520] sm:$0xff]  ;;  %v7813_v15 = vpop.permute.xlu0 %3076 }
 0x2e2   : > { %v7784_v50 = vpop.f32.mrf.mxu0  ;;  %4028 = vmatpush1.msra.mxu1 %v2602_v5  ;;  %9625 = vst [vmem:[#allocation93_spill] sm:$0xff] %v7813_v15 }
 0x2e3   : > { %3897 = vmatmul.mubr.f32.gmra.mxu1 %v2866_v21  ;;  %4029 = vmatprep.subr.mxu1 %v2601_v39  ;;  %v2897_v21 = vld [vmem:[%s9293_s3 + $0x578] sm:$0xff] }
 0x2e4   : > { %v7792_v22 = vpop.f32.mrf.mxu0  ;;  %4030 = vmatpush1.msra.mxu1 %v2600_v47  ;;  %3902 = vmatprep.mubr.f32.mxu1 %v2877_v10  ;;  %v7829_v47 = vpop.permute.xlu1 %3081 }
 0x2e5   : > { %4031 = vmatprep.subr.mxu1 %v2599_v34  ;;  %9628 = vst [vmem:[#allocation96_spill] sm:$0xff] %v7829_v47  ;;  %v2907_v34 = vld [vmem:[%s9293_s3 + $0x5c8] sm:$0xff] }
 0x2e6   : > { %v7802_v45 = vpop.f32.mrf.mxu0  ;;  %4032 = vmatpush1.msra.mxu1 %v2598_v57  ;;  %v7838_v57 = vpop.permute.xlu0 %3086 }
 0x2e7   : > { %3903 = vmatmul.mubr.f32.gmra.mxu1 %v2876_v12  ;;  %4033 = vmatprep.subr.mxu1 %v2597_v20  ;;  %v7806_v24 = vpop.f32.mrf.mxu1  ;;  %9630 = vst [vmem:[#allocation98_spill] sm:$0xff] %v7838_v57 }
 0x2e8   : > { %9624 = vst [vmem:[#allocation92_spill] sm:$0xff] %v7806_v24  ;;  %v7808_v19 = vpop.f32.mrf.mxu0  ;;  %4034 = vmatpush1.msra.mxu1 %v2596_v59  ;;  %3908 = vmatprep.mubr.f32.mxu1 %v2887_v44  ;;  %v2906_v44 = vld [vmem:[%s9293_s3 + $0x5c0] sm:$0xff] }
 0x2e9   : > { %4035 = vmatprep.subr.mxu1 %v2595_v0  ;;  %v7815_v5 = vpop.f32.mrf.mxu1  ;;  %v2917_v0 = vld [vmem:[%s9293_s3 + $0x618] sm:$0xff]  ;;  %v9637_v24 = vld [vmem:[#allocation22_spill] sm:$0xff] }
 0x2ea   : > { %9626 = vst [vmem:[#allocation94_spill] sm:$0xff] %v7815_v5  ;;  %v7820_v31 = vpop.f32.mrf.mxu0  ;;  %4036 = vmatpush1.msra.mxu1 %v2594_v7 }
 0x2eb   : > { %3909 = vmatmul.mubr.f32.gmra.mxu1 %v2886_v46  ;;  %v7822_v39 = vpop.f32.mrf.mxu1  ;;  %v7854_v46 = vpop.permute.xlu1 %3091 }
 0x2ec   : > { %9627 = vst [vmem:[#allocation95_spill] sm:$0xff] %v7822_v39  ;;  %v7824_v10 = vpop.f32.mrf.mxu0  ;;  %3914 = vmatprep.mubr.f32.mxu1 %v2897_v21  ;;  %9633 = vst [vmem:[#allocation101_spill] sm:$0xff] %v7854_v46 }
 0x2ed   : > { %v7831_v3 = vpop.f32.mrf.mxu1 }
 0x2ee   : > { %9629 = vst [vmem:[#allocation97_spill] sm:$0xff] %v7831_v3  ;;  %v7836_v6 = vpop.f32.mrf.mxu0  ;;  %v2927_v3 = vld [vmem:[%s9293_s3 + $0x668] sm:$0xff] }
 0x2ef   : > { %3915 = vmatmul.mubr.f32.gmra.mxu1 %v2896_v32  ;;  %v7840_v12 = vpop.f32.mrf.mxu1  ;;  %v3102_v5 = vpop.permute.xlu1 %3101 }
 0x2f0   : > { %9631 = vst [vmem:[#allocation99_spill] sm:$0xff] %v7840_v12  ;;  %v7842_v20 = vpop.f32.mrf.mxu0  ;;  %3920 = vmatprep.mubr.f32.mxu1 %v2907_v34  ;;  %v2916_v34 = vld [vmem:[%s9293_s3 + $0x610] sm:$0xff]  ;;  %v3097_v12 = vpop.permute.xlu0 %3096 }
 0x2f1   : > { %v7847_v59 = vpop.f32.mrf.mxu1  ;;  %v3325_v57 = vadd.f32 %v7107_v26, %v3097_v12  ;;  %v2937_v26 = vld [vmem:[%s9293_s3 + $0x6b8] sm:$0xff] }
 0x2f2   : > { %9632 = vst [vmem:[#allocation100_spill] sm:$0xff] %v7847_v59  ;;  %v7852_v7 = vpop.f32.mrf.mxu0 }
 0x2f3   : > { %3921 = vmatmul.mubr.f32.gmra.mxu1 %v2906_v44  ;;  %v7856_v21 = vpop.f32.mrf.mxu1  ;;  %v3112_v9 = vpop.permute.xlu1 %3111 }
 0x2f4   : > { %9634 = vst [vmem:[#allocation102_spill] sm:$0xff] %v7856_v21  ;;  %v7858_v32 = vpop.f32.mrf.mxu0  ;;  %3926 = vmatprep.mubr.f32.mxu1 %v2917_v0  ;;  %v3327_v21 = vadd.f32 %v7114_v52, %v3097_v12  ;;  %v3107_v40 = vpop.permute.xlu0 %3106 }
 0x2f5   : > { %v7863_v59 = vpop.f32.mrf.mxu1 }
 0x2f6   : > { %9635 = vst [vmem:[#allocation103_spill] sm:$0xff] %v7863_v59  ;;  %v7869_v46 = vpop.f32.mrf.mxu0  ;;  %v2926_v59 = vld [vmem:[%s9293_s3 + $0x660] sm:$0xff] }
 0x2f7   : > { %3927 = vmatmul.mubr.f32.gmra.mxu1 %v2916_v34  ;;  %v3581_v44 = vpop.f32.mrf.mxu1  ;;  %v3331_v34 = vadd.f32 %v9637_v24, %v3102_v5  ;;  %v2947_v24 = vld [vmem:[%s9293_s3 + $0x708] sm:$0xff] }
 0x2f8   : > { %v7872_v0 = vpop.f32.mrf.mxu0  ;;  %3932 = vmatprep.mubr.f32.mxu1 %v2927_v3  ;;  %v7874_v39 = vadd.f32 %v3581_v44, %v3325_v57  ;;  %v9639_v3 = vld [vmem:[#allocation24_spill] sm:$0xff] }
 0x2f9   : > { %v3583_v47 = vpop.f32.mrf.mxu1  ;;  %v3333_v57 = vadd.f32 %v9639_v3, %v3102_v5 }
 0x2fa   : > { %9636 = vst [vmem:[#allocation104_spill] sm:$0xff] %v7874_v39  ;;  %v2189_v15 = vpop.f32.mrf.mxu0  ;;  %v7883_v27 = vadd.f32 %v3583_v47, %v3327_v21  ;;  %v9641_v47 = vld [vmem:[#allocation25_spill] sm:$0xff] }
 0x2fb   : > { %3933 = vmatmul.mubr.f32.gmra.mxu1 %v2926_v59  ;;  %v3587_v52 = vpop.f32.mrf.mxu1  ;;  %v3337_v21 = vadd.f32 %v9641_v47, %v3107_v40  ;;  %v2957_v47 = vld [vmem:[%s9293_s3 + $0x758] sm:$0xff] }
 0x2fc   : > { %9638 = vst [vmem:[#allocation22_spill] sm:$0xff] %v7883_v27  ;;  %v2193_v12 = vpop.f32.mrf.mxu0  ;;  %3938 = vmatprep.mubr.f32.mxu1 %v2937_v26  ;;  %v7886_v44 = vadd.f32 %v3587_v52, %v3331_v34  ;;  %v9643_v26 = vld [vmem:[#allocation27_spill] sm:$0xff] }
 0x2fd   : > { %v3589_v53 = vpop.f32.mrf.mxu1  ;;  %v3339_v34 = vadd.f32 %v9643_v26, %v3107_v40 }
 0x2fe   : > { %9640 = vst [vmem:[#allocation24_spill] sm:$0xff] %v7886_v44  ;;  %v2195_v59 = vpop.f32.mrf.mxu0  ;;  %v7895_v63 = vadd.f32 %v3589_v53, %v3333_v57  ;;  %v9645_v53 = vld [vmem:[#allocation29_spill] sm:$0xff]  ;;  %v3117_v44 = vpop.permute.xlu0 %3116 }
 0x2ff   : > { %3939 = vmatmul.mubr.f32.gmra.mxu1 %v2936_v58  ;;  %v3593_v5 = vpop.f32.mrf.mxu1  ;;  %v3343_v57 = vadd.f32 %v9645_v53, %v3112_v9  ;;  %v2967_v53 = vld [vmem:[%s9293_s3 + $0x7a8] sm:$0xff] }
 0x300   : > { %9642 = vst [vmem:[#allocation25_spill] sm:$0xff] %v7895_v63  ;;  %v2199_v52 = vpop.f32.mrf.mxu0  ;;  %3944 = vmatprep.mubr.f32.mxu1 %v2947_v24  ;;  %v7898_v3 = vadd.f32 %v3593_v5, %v3337_v21  ;;  %v9647_v24 = vld [vmem:[#allocation30_spill] sm:$0xff] }
 0x301   : > { %v3595_v49 = vpop.f32.mrf.mxu1  ;;  %v3345_v21 = vadd.f32 %v9647_v24, %v3112_v9 }
 0x302   : > { %9644 = vst [vmem:[#allocation27_spill] sm:$0xff] %v7898_v3  ;;  %v2201_v58 = vpop.f32.mrf.mxu0  ;;  %v7907_v63 = vadd.f32 %v3595_v49, %v3339_v34  ;;  %v2956_v3 = vld [vmem:[%s9293_s3 + $0x750] sm:$0xff] }
 0x303   : > { %3945 = vmatmul.mubr.f32.gmra.mxu1 %v2946_v51  ;;  %v3599_v40 = vpop.f32.mrf.mxu1  ;;  %v9649_v49 = vld [vmem:[#allocation32_spill] sm:$0xff]  ;;  %v9650_v51 = vld [vmem:[#allocation14_spill] sm:$0xff] }
 0x304   : > { %9646 = vst [vmem:[#allocation29_spill] sm:$0xff] %v7907_v63  ;;  %v2205_v5 = vpop.f32.mrf.mxu0  ;;  %3950 = vmatprep.mubr.f32.mxu1 %v2957_v47  ;;  %v7910_v26 = vadd.f32 %v3599_v40, %v3343_v57  ;;  %v3349_v34 = vadd.f32 %v9649_v49, %v3117_v44  ;;  %v9652_v47 = vld [vmem:[#allocation15_spill] sm:$0xff] }
 0x305   : > { %v3601_v27 = vpop.f32.mrf.mxu1  ;;  %v2206_v63 = vadd.f32 %v2205_v5, %v9650_v51  ;;  %v2202_v57 = vadd.f32 %v2201_v58, %v9652_v47  ;;  %v2200_v8 = vadd.f32 %v2199_v52, %v9652_v47  ;;  %v9656_v5 = vld [vmem:[#allocation16_spill] sm:$0xff]  ;;  %v9658_v47 = vld [vmem:[#allocation17_spill] sm:$0xff] }
 0x306   : > { %9648 = vst [vmem:[#allocation30_spill] sm:$0xff] %v7910_v26  ;;  %v2207_v39 = vpop.f32.mrf.mxu0  ;;  %v7920_v9 = vadd.f32 %v3601_v27, %v3345_v21  ;;  %v9653_v26 = vld [vmem:[#allocation34_spill] sm:$0xff]  ;;  %v3122_v21 = vpop.permute.xlu1 %3121  ;;  %v2196_v58 = vadd.f32 %v2195_v59, %v9656_v5 }
 0x307   : > { %v2208_v40 = vadd.f32 %v2207_v39, %v9650_v51  ;;  %3951 = vmatmul.mubr.f32.gmra.mxu1 %v2956_v3  ;;  %v3605_v24 = vpop.f32.mrf.mxu1  ;;  %v3351_v38 = vadd.f32 %v9653_v26, %v3117_v44  ;;  %v2966_v27 = vld [vmem:[%s9293_s3 + $0x7a0] sm:$0xff]  ;;  %v2977_v44 = vld [vmem:[%s9293_s3 + $0x7f8] sm:$0xff]  ;;  %v9657_v3 = vld [vmem:[#allocation35_spill] sm:$0xff]  ;;  %v2194_v26 = vadd.f32 %v2193_v12, %v9656_v5  ;;  %v2654_v60 = vmax.f32 %v2200_v8, 0.0 }
 0x308   : > { %9651 = vst [vmem:[#allocation32_spill] sm:$0xff] %v7920_v9  ;;  %v7926_v37 = vpop.f32.mrf.mxu0  ;;  %3956 = vmatprep.mubr.f32.mxu1 %v2967_v53  ;;  %v7928_v17 = vadd.f32 %v3605_v24, %v3349_v34  ;;  %v3355_v52 = vadd.f32 %v9657_v3, %v3122_v21  ;;  %v2656_v53 = vmax.f32 %v2206_v63, 0.0  ;;  %v2190_v24 = vadd.f32 %v2189_v15, %v9658_v47  ;;  %v3127_v15 = vpop.permute.xlu0 %3126  ;;  %v9660_v12 = vld [vmem:[#allocation18_spill] sm:$0xff]  ;;  %v2987_v8 = vld [vmem:[%s9293_s3 + $0x848] sm:$0xff] }
 0x309   : > { %9654 = vst [vmem:[#allocation14_spill] sm:$0xff] %v7926_v37  ;;  %v2657_v49 = vmax.f32 %v2208_v40, 0.0  ;;  %v3607_v39 = vpop.f32.mrf.mxu1  ;;  %v9659_v40 = vld [vmem:[#allocation37_spill] sm:$0xff]  ;;  %v2188_v37 = vadd.f32 %v7872_v0, %v9658_v47  ;;  %v9661_v0 = vld [vmem:[#allocation39_spill] sm:$0xff]  ;;  %v9663_v47 = vld [vmem:[#allocation40_spill] sm:$0xff] }
 0x30a   : > { %9655 = vst [vmem:[#allocation15_spill] sm:$0xff] %v7928_v17  ;;  %v7939_v34 = vpop.f32.mrf.mxu0  ;;  %v7941_v51 = vadd.f32 %v3607_v39, %v3351_v38  ;;  %v2655_v17 = vmax.f32 %v2202_v57, 0.0  ;;  %v3357_v9 = vadd.f32 %v9659_v40, %v3122_v21  ;;  %v2976_v38 = vld [vmem:[%s9293_s3 + $0x7f0] sm:$0xff]  ;;  %v2184_v57 = vadd.f32 %v7869_v46, %v9660_v12 }
 0x30b   : > { %3957 = vmatmul.mubr.f32.gmra.mxu1 %v2966_v27  ;;  %4037 = vmatprep.subr.mxu1 %v2657_v49  ;;  %v3611_v59 = vpop.f32.mrf.mxu1  ;;  %v2653_v27 = vmax.f32 %v2196_v58, 0.0  ;;  %v3361_v5 = vadd.f32 %v9661_v0, %v3127_v15  ;;  %v2182_v49 = vadd.f32 %v7858_v32, %v9660_v12  ;;  %v2652_v39 = vmax.f32 %v2194_v26, 0.0  ;;  %v9664_v26 = vld [vmem:[#allocation20_spill] sm:$0xff] }
 0x30c   : > { %v7947_v3 = vpop.f32.mrf.mxu0  ;;  %4038 = vmatpush2.msra.mxu1 %v2656_v53  ;;  %3962 = vmatprep.mubr.f32.mxu1 %v2977_v44  ;;  %v7949_v63 = vadd.f32 %v3611_v59, %v3355_v52  ;;  %v9662_v53 = vld [vmem:[#allocation19_spill] sm:$0xff]  ;;  %v3363_v59 = vadd.f32 %v9663_v47, %v3127_v15  ;;  %v2650_v0 = vmax.f32 %v2188_v37, 0.0  ;;  %v2997_v37 = vld [vmem:[%s9293_s3 + $0x898] sm:$0xff]  ;;  %v2170_v12 = vadd.f32 %v7824_v10, %v9664_v26 }
 0x30d   : > { %4039 = vmatprep.subr.mxu1 %v2655_v17  ;;  %v3613_v21 = vpop.f32.mrf.mxu1  ;;  %v2178_v46 = vadd.f32 %v7852_v7, %v9662_v53  ;;  %v2651_v17 = vmax.f32 %v2190_v24, 0.0  ;;  %v2176_v40 = vadd.f32 %v7842_v20, %v9662_v53  ;;  %v2986_v7 = vld [vmem:[%s9293_s3 + $0x840] sm:$0xff]  ;;  %v2172_v24 = vadd.f32 %v7836_v6, %v9664_v26 }
 0x30e   : > { %v7962_v44 = vpop.f32.mrf.mxu0  ;;  %4040 = vmatpush2.msra.mxu1 %v2654_v60  ;;  %v7964_v52 = vadd.f32 %v3613_v21, %v3357_v9  ;;  %v3132_v9 = vpop.permute.xlu1 %3131 }
 0x30f   : > { %3963 = vmatmul.mubr.f32.gmra.mxu1 %v2976_v38  ;;  %4041 = vmatprep.subr.mxu1 %v2653_v27  ;;  %v3617_v58 = vpop.f32.mrf.mxu1  ;;  %v2649_v38 = vmax.f32 %v2184_v57, 0.0  ;;  %v3367_v20 = vadd.f32 %v7241_v18, %v3132_v9  ;;  %v2648_v27 = vmax.f32 %v2182_v49, 0.0  ;;  %v2647_v57 = vmax.f32 %v2178_v46, 0.0  ;;  %v3137_v46 = vpop.permute.xlu0 %3136 }
 0x310   : > { %v7971_v32 = vpop.f32.mrf.mxu0  ;;  %4042 = vmatpush2.msra.mxu1 %v2652_v39  ;;  %3968 = vmatprep.mubr.f32.mxu1 %v2987_v8  ;;  %v7973_v60 = vadd.f32 %v3617_v58, %v3361_v5  ;;  %v9665_v5 = vld [vmem:[#allocation21_spill] sm:$0xff]  ;;  %v3369_v53 = vadd.f32 %v7249_v36, %v3132_v9  ;;  %v9666_v58 = vld [vmem:[#allocation23_spill] sm:$0xff] }
 0x311   : > { %4043 = vmatprep.subr.mxu1 %v2651_v17  ;;  %v3619_v15 = vpop.f32.mrf.mxu1  ;;  %v2166_v6 = vadd.f32 %v7820_v31, %v9665_v5  ;;  %v2164_v18 = vadd.f32 %v7808_v19, %v9665_v5  ;;  %v2646_v17 = vmax.f32 %v2176_v40, 0.0  ;;  %v2996_v31 = vld [vmem:[%s9293_s3 + $0x890] sm:$0xff]  ;;  %v2160_v47 = vadd.f32 %v7802_v45, %v9666_v58  ;;  %v3007_v19 = vld [vmem:[%s9293_s3 + $0x8e8] sm:$0xff] }
 0x312   : > { %v7986_v21 = vpop.f32.mrf.mxu0  ;;  %4044 = vmatpush2.msra.mxu1 %v2650_v0  ;;  %v7988_v8 = vadd.f32 %v3619_v15, %v3363_v59  ;;  %v2645_v59 = vmax.f32 %v2172_v24, 0.0  ;;  %v3373_v40 = vadd.f32 %v7260_v42, %v3137_v46  ;;  %v2158_v0 = vadd.f32 %v7792_v22, %v9666_v58  ;;  %v9668_v5 = vld [vmem:[#allocation28_spill] sm:$0xff] }
 0x313   : > { %3969 = vmatmul.mubr.f32.gmra.mxu1 %v2986_v7  ;;  %4045 = vmatprep.subr.mxu1 %v2649_v38  ;;  %v3623_v39 = vpop.f32.mrf.mxu1  ;;  %v2644_v7 = vmax.f32 %v2170_v12, 0.0  ;;  %v9667_v38 = vld [vmem:[#allocation26_spill] sm:$0xff]  ;;  %v2643_v24 = vmax.f32 %v2166_v6, 0.0  ;;  %v2148_v6 = vadd.f32 %v7762_v13, %v9668_v5 }
 0x314   : > { %v7995_v10 = vpop.f32.mrf.mxu0  ;;  %4046 = vmatpush2.msra.mxu1 %v2648_v27  ;;  %3974 = vmatprep.mubr.f32.mxu1 %v2997_v37  ;;  %v7997_v49 = vadd.f32 %v3623_v39, %v3367_v20  ;;  %v2154_v45 = vadd.f32 %v7784_v50, %v9667_v38  ;;  %v3375_v37 = vadd.f32 %v7276_v48, %v3137_v46  ;;  %v2642_v20 = vmax.f32 %v2164_v18, 0.0  ;;  %v3006_v50 = vld [vmem:[%s9293_s3 + $0x8e0] sm:$0xff]  ;;  %v3142_v27 = vpop.permute.xlu1 %3141  ;;  %v9669_v46 = vld [vmem:[#allocation31_spill] sm:$0xff] }
 0x315   : > { %4047 = vmatprep.subr.mxu1 %v2647_v57  ;;  %v3625_v36 = vpop.f32.mrf.mxu1  ;;  %v2152_v42 = vadd.f32 %v7768_v28, %v9667_v38  ;;  %v2641_v57 = vmax.f32 %v2160_v47, 0.0  ;;  %v3017_v28 = vld [vmem:[%s9293_s3 + $0x938] sm:$0xff]  ;;  %v3379_v39 = vadd.f32 %v7290_v54, %v3142_v27  ;;  %v2640_v18 = vmax.f32 %v2158_v0, 0.0 }
 0x316   : > { %v8010_v9 = vpop.f32.mrf.mxu0  ;;  %4048 = vmatpush2.msra.mxu1 %v2646_v17  ;;  %v8012_v26 = vadd.f32 %v3625_v36, %v3369_v53  ;;  %v2146_v53 = vadd.f32 %v7746_v25, %v9668_v5  ;;  %v2142_v13 = vadd.f32 %v7738_v30, %v9669_v46  ;;  %v2639_v58 = vmax.f32 %v2154_v45, 0.0  ;;  %v3016_v30 = vld [vmem:[%s9293_s3 + $0x930] sm:$0xff]  ;;  %v9670_v0 = vld [vmem:[#allocation33_spill] sm:$0xff] }
 0x317   : > { %3975 = vmatmul.mubr.f32.gmra.mxu1 %v2996_v31  ;;  %4049 = vmatprep.subr.mxu1 %v2645_v59  ;;  %v3629_v15 = vpop.f32.mrf.mxu1  ;;  %v3381_v59 = vadd.f32 %v7304_v14, %v3142_v27  ;;  %v2140_v54 = vadd.f32 %v7724_v62, %v9669_v46  ;;  %v2638_v36 = vmax.f32 %v2152_v42, 0.0  ;;  %v2637_v38 = vmax.f32 %v2148_v6, 0.0  ;;  %v3027_v62 = vld [vmem:[%s9293_s3 + $0x988] sm:$0xff] }
 0x318   : > { %v8019_v22 = vpop.f32.mrf.mxu0  ;;  %4050 = vmatpush2.msra.mxu1 %v2644_v7  ;;  %3980 = vmatprep.mubr.f32.mxu1 %v3007_v19  ;;  %v8021_v12 = vadd.f32 %v3629_v15, %v3373_v40  ;;  %v3147_v40 = vpop.permute.xlu0 %3146  ;;  %v2136_v7 = vadd.f32 %v7716_v4, %v9670_v0  ;;  %v2636_v15 = vmax.f32 %v2146_v53, 0.0 }
 0x319   : > { %4051 = vmatprep.subr.mxu1 %v2643_v24  ;;  %v3631_v48 = vpop.f32.mrf.mxu1  ;;  %v3385_v45 = vadd.f32 %v7318_v23, %v3147_v40  ;;  %v2134_v24 = vadd.f32 %v7700_v29, %v9670_v0  ;;  %v3387_v5 = vadd.f32 %v7334_v16, %v3147_v40  ;;  %v2634_v6 = vmax.f32 %v2140_v54, 0.0  ;;  %v9677_v54 = vld [vmem:[#allocation41_spill] sm:$0xff] }
 0x31a   : > { %v8034_v17 = vpop.f32.mrf.mxu0  ;;  %4052 = vmatpush2.msra.mxu1 %v2642_v20  ;;  %v8036_v31 = vadd.f32 %v3631_v48, %v3375_v37  ;;  %v9672_v20 = vld [vmem:[#allocation36_spill] sm:$0xff]  ;;  %v3152_v48 = vpop.permute.xlu1 %3151  ;;  %v2633_v53 = vmax.f32 %v2136_v7, 0.0  ;;  %v9678_v40 = vld [vmem:[#allocation49_spill] sm:$0xff]  ;;  %v2116_v7 = vadd.f32 %v7620_v35, %v9677_v54  ;;  %v9680_v35 = vld [vmem:[#allocation3_spill] sm:$0xff] }
 0x31b   : > { %3981 = vmatmul.mubr.f32.gmra.mxu1 %v3006_v50  ;;  %4053 = vmatprep.subr.mxu1 %v2641_v57  ;;  %v3635_v47 = vpop.f32.mrf.mxu1  ;;  %v2130_v4 = vadd.f32 %v7691_v61, %v9672_v20  ;;  %v2635_v50 = vmax.f32 %v2142_v13, 0.0  ;;  %v2128_v23 = vadd.f32 %v7675_v41, %v9672_v20  ;;  %v3026_v61 = vld [vmem:[%s9293_s3 + $0x980] sm:$0xff]  ;;  %v3037_v41 = vld [vmem:[%s9293_s3 + $0x9d8] sm:$0xff]  ;;  %v3393_v0 = vadd.f32 %v9678_v40, %v3152_v48 }
 0x31c   : > { %v8043_v25 = vpop.f32.mrf.mxu0  ;;  %4054 = vmatpush2.msra.mxu1 %v2640_v18  ;;  %3986 = vmatprep.mubr.f32.mxu1 %v3017_v28  ;;  %v8045_v19 = vadd.f32 %v3635_v47, %v3379_v39  ;;  %v9674_v28 = vld [vmem:[#allocation38_spill] sm:$0xff]  ;;  %v9675_v18 = vld [vmem:[#allocation47_spill] sm:$0xff] }
 0x31d   : > { %4055 = vmatprep.subr.mxu1 %v2639_v58  ;;  %v3637_v14 = vpop.f32.mrf.mxu1  ;;  %v2124_v39 = vadd.f32 %v7661_v56, %v9674_v28  ;;  %v3391_v46 = vadd.f32 %v9675_v18, %v3152_v48  ;;  %v2122_v13 = vadd.f32 %v7647_v43, %v9674_v28  ;;  %v2632_v58 = vmax.f32 %v2134_v24, 0.0  ;;  %v2739_v18 = vld [vmem:[%s9293_s3 + $0x88] sm:$0xff] }
 0x31e   : > { %v8058_v37 = vpop.f32.mrf.mxu0  ;;  %4056 = vmatpush2.msra.mxu1 %v2638_v36  ;;  %v8060_v42 = vadd.f32 %v3637_v14, %v3381_v59  ;;  %v2118_v56 = vadd.f32 %v7634_v33, %v9677_v54  ;;  %v2631_v36 = vmax.f32 %v2130_v4, 0.0  ;;  %v3036_v33 = vld [vmem:[%s9293_s3 + $0x9d0] sm:$0xff]  ;;  %v2626_v48 = vmax.f32 %v2116_v7, 0.0  ;;  %v2738_v7 = vld [vmem:[%s9293_s3 + $0x80] sm:$0xff] }
 0x31f   : > { %3987 = vmatmul.mubr.f32.gmra.mxu1 %v3016_v30  ;;  %4057 = vmatprep.subr.mxu1 %v2637_v38  ;;  %v3641_v27 = vpop.f32.mrf.mxu1  ;;  %v2630_v38 = vmax.f32 %v2128_v23, 0.0  ;;  %v2628_v4 = vmax.f32 %v2122_v13, 0.0 }
 0x320   : > { %9671 = vst [vmem:[#allocation34_spill] sm:$0xff] %v8060_v42  ;;  %v8067_v29 = vpop.f32.mrf.mxu0  ;;  %4058 = vmatpush2.msra.mxu1 %v2636_v15  ;;  %3992 = vmatprep.mubr.f32.mxu1 %v3027_v62  ;;  %v8069_v57 = vadd.f32 %v3641_v27, %v3385_v45  ;;  %v3157_v62 = vpop.permute.xlu0 %3156  ;;  %v2629_v45 = vmax.f32 %v2124_v39, 0.0  ;;  %v2729_v15 = vld [vmem:[%s9293_s3 + $0x38] sm:$0xff] }
 0x321   : > { %4059 = vmatprep.subr.mxu1 %v2635_v50  ;;  %v3643_v16 = vpop.f32.mrf.mxu1  ;;  %v3397_v20 = vadd.f32 %v9680_v35, %v3157_v62 }
 0x322   : > { %9673 = vst [vmem:[#allocation16_spill] sm:$0xff] %v8069_v57  ;;  %v8082_v47 = vpop.f32.mrf.mxu0  ;;  %4060 = vmatpush2.msra.mxu1 %v2634_v6  ;;  %v8084_v59 = vadd.f32 %v3643_v16, %v3387_v5  ;;  %v2627_v5 = vmax.f32 %v2118_v56, 0.0  ;;  %v9682_v6 = vld [vmem:[#allocation4_spill] sm:$0xff]  ;;  %v3162_v16 = vpop.permute.xlu1 %3161 }
 0x323   : > { %3993 = vmatmul.mubr.f32.gmra.mxu1 %v3026_v61  ;;  %4061 = vmatprep.subr.mxu1 %v2633_v53  ;;  %v3647_v30 = vpop.f32.mrf.mxu1  ;;  %v3399_v61 = vadd.f32 %v9682_v6, %v3157_v62  ;;  %v2728_v53 = vld [vmem:[%s9293_s3 + $0x30] sm:$0xff]  ;;  %v2749_v62 = vld [vmem:[%s9293_s3 + $0xd8] sm:$0xff] }
 0x324   : > { %9676 = vst [vmem:[#allocation35_spill] sm:$0xff] %v8084_v59  ;;  %v8091_v43 = vpop.f32.mrf.mxu0  ;;  %4062 = vmatpush2.msra.mxu1 %v2632_v58  ;;  %3998 = vmatprep.mubr.f32.mxu1 %v3037_v41  ;;  %v8093_v14 = vadd.f32 %v3647_v30, %v3391_v46  ;;  %v9684_v46 = vld [vmem:[#allocation5_spill] sm:$0xff] }
 0x325   : > { %4063 = vmatprep.subr.mxu1 %v2631_v36  ;;  %v3649_v24 = vpop.f32.mrf.mxu1  ;;  %v3403_v13 = vadd.f32 %v9684_v46, %v3162_v16  ;;  %v9686_v36 = vld [vmem:[#allocation7_spill] sm:$0xff] }
 0x326   : > { %9679 = vst [vmem:[#allocation17_spill] sm:$0xff] %v8093_v14  ;;  %v8102_v50 = vpop.f32.mrf.mxu0  ;;  %4064 = vmatpush2.msra.mxu1 %v2630_v38  ;;  %v8104_v27 = vadd.f32 %v3649_v24, %v3393_v0  ;;  %v3405_v30 = vadd.f32 %v9686_v36, %v3162_v16  ;;  %v3167_v38 = vpop.permute.xlu0 %3166  ;;  %v2759_v16 = vld [vmem:[%s9293_s3 + $0x128] sm:$0xff] }
 0x327   : > { %3999 = vmatmul.mubr.f32.gmra.mxu1 %v3036_v33  ;;  %4065 = vmatprep.subr.mxu1 %v2629_v45  ;;  %v3653_v23 = vpop.f32.mrf.mxu1  ;;  %v9688_v45 = vld [vmem:[#allocation8_spill] sm:$0xff]  ;;  %v9694_v36 = vld [vmem:[#allocation55_spill] sm:$0xff] }
 0x328   : > { %9681 = vst [vmem:[#allocation37_spill] sm:$0xff] %v8104_v27  ;;  %v8107_v28 = vpop.f32.mrf.mxu0  ;;  %4066 = vmatpush2.msra.mxu1 %v2628_v4  ;;  %4069 = vmatprep.mubr.f32.mxu1 %v2729_v15  ;;  %v8109_v39 = vadd.f32 %v3653_v23, %v3397_v20  ;;  %v3409_v24 = vadd.f32 %v9688_v45, %v3167_v38  ;;  %v9690_v4 = vld [vmem:[#allocation52_spill] sm:$0xff] }
 0x329   : > { %4067 = vmatprep.subr.mxu1 %v2627_v5  ;;  %v3655_v41 = vpop.f32.mrf.mxu1  ;;  %v3411_v5 = vadd.f32 %v9690_v4, %v3167_v38 }
 0x32a   : > { %9683 = vst [vmem:[#allocation18_spill] sm:$0xff] %v8109_v39  ;;  %v8118_v58 = vpop.f32.mrf.mxu0  ;;  %4068 = vmatpush2.msra.mxu1 %v2626_v48  ;;  %v8120_v54 = vadd.f32 %v3655_v41, %v3399_v61  ;;  %v2748_v61 = vld [vmem:[%s9293_s3 + $0xd0] sm:$0xff]  ;;  %v3172_v48 = vpop.permute.xlu1 %3171  ;;  %v9692_v41 = vld [vmem:[#allocation54_spill] sm:$0xff] }
 0x32b   : > { %4070 = vmatmul.mubr.f32.vlgmr.msra.gmra.mxu1 %v2728_v53  ;;  %v3659_v56 = vpop.f32.mrf.mxu1 }
 0x32c   : > { %9685 = vst [vmem:[#allocation39_spill] sm:$0xff] %v8120_v54  ;;  %v8123_v40 = vpop.f32.mrf.mxu0  ;;  %4075 = vmatprep.mubr.f32.mxu1 %v2739_v18  ;;  %v8125_v0 = vadd.f32 %v3659_v56, %v3403_v13  ;;  %v3415_v18 = vadd.f32 %v9692_v41, %v3172_v48 }
 0x32d   : > { %v3661_v33 = vpop.f32.mrf.mxu1 }
 0x32e   : > { %9687 = vst [vmem:[#allocation19_spill] sm:$0xff] %v8125_v0  ;;  %v8134_v15 = vpop.f32.mrf.mxu0  ;;  %v8136_v35 = vadd.f32 %v3661_v33, %v3405_v30  ;;  %v3417_v30 = vadd.f32 %v9694_v36, %v3172_v48  ;;  %v2758_v33 = vld [vmem:[%s9293_s3 + $0x120] sm:$0xff]  ;;  %v3182_v36 = vpop.permute.xlu1 %3181 }
 0x32f   : > { %4076 = vmatmul.mubr.f32.gmra.mxu1 %v2738_v7  ;;  %v3665_v20 = vpop.f32.mrf.mxu1 }
 0x330   : > { %9689 = vst [vmem:[#allocation40_spill] sm:$0xff] %v8136_v35  ;;  %v8139_v23 = vpop.f32.mrf.mxu0  ;;  %4081 = vmatprep.mubr.f32.mxu1 %v2749_v62  ;;  %v8141_v6 = vadd.f32 %v3665_v20, %v3409_v24  ;;  %v3177_v62 = vpop.permute.xlu0 %3176  ;;  %v2769_v24 = vld [vmem:[%s9293_s3 + $0x178] sm:$0xff] }
 0x331   : > { %v3667_v53 = vpop.f32.mrf.mxu1  ;;  %v9696_v20 = vld [vmem:[#allocation57_spill] sm:$0xff] }
 0x332   : > { %9691 = vst [vmem:[#allocation20_spill] sm:$0xff] %v8141_v6  ;;  %v8150_v46 = vpop.f32.mrf.mxu0  ;;  %v8152_v13 = vadd.f32 %v3667_v53, %v3411_v5  ;;  %v3421_v4 = vadd.f32 %v9696_v20, %v3177_v62  ;;  %v9698_v53 = vld [vmem:[#allocation59_spill] sm:$0xff]  ;;  %v3192_v35 = vpop.permute.xlu1 %3191 }
 0x333   : > { %4082 = vmatmul.mubr.f32.gmra.mxu1 %v2748_v61  ;;  %v3671_v56 = vpop.f32.mrf.mxu1 }
 0x334   : > { %9693 = vst [vmem:[#allocation21_spill] sm:$0xff] %v8152_v13  ;;  %v8155_v7 = vpop.f32.mrf.mxu0  ;;  %4087 = vmatprep.mubr.f32.mxu1 %v2759_v16  ;;  %v8157_v38 = vadd.f32 %v3671_v56, %v3415_v18  ;;  %v3423_v16 = vadd.f32 %v9698_v53, %v3177_v62  ;;  %v2768_v56 = vld [vmem:[%s9293_s3 + $0x170] sm:$0xff]  ;;  %v3187_v13 = vpop.permute.xlu0 %3186 }
 0x335   : > { %v3673_v45 = vpop.f32.mrf.mxu1 }
 0x336   : > { %9695 = vst [vmem:[#allocation23_spill] sm:$0xff] %v8157_v38  ;;  %v8166_v5 = vpop.f32.mrf.mxu0  ;;  %v8168_v61 = vadd.f32 %v3673_v45, %v3417_v30  ;;  %v2779_v30 = vld [vmem:[%s9293_s3 + $0x1c8] sm:$0xff]  ;;  %v9700_v45 = vld [vmem:[#allocation60_spill] sm:$0xff] }
 0x337   : > { %4088 = vmatmul.mubr.f32.gmra.mxu1 %v2758_v33  ;;  %v3677_v48 = vpop.f32.mrf.mxu1  ;;  %v3427_v33 = vadd.f32 %v9700_v45, %v3182_v36  ;;  %v2789_v45 = vld [vmem:[%s9293_s3 + $0x218] sm:$0xff] }
 0x338   : > { %9697 = vst [vmem:[#allocation26_spill] sm:$0xff] %v8168_v61  ;;  %v8171_v41 = vpop.f32.mrf.mxu0  ;;  %4093 = vmatprep.mubr.f32.mxu1 %v2769_v24  ;;  %v8173_v18 = vadd.f32 %v3677_v48, %v3421_v4  ;;  %v9702_v24 = vld [vmem:[#allocation62_spill] sm:$0xff]  ;;  %v3197_v54 = vpop.permute.xlu0 %3196 }
 0x339   : > { %v3679_v38 = vpop.f32.mrf.mxu1  ;;  %v3429_v4 = vadd.f32 %v9702_v24, %v3182_v36 }
 0x33a   : > { %9699 = vst [vmem:[#allocation28_spill] sm:$0xff] %v8173_v18  ;;  %v2285_v20 = vpop.f32.mrf.mxu0  ;;  %v8182_v61 = vadd.f32 %v3679_v38, %v3423_v16  ;;  %v2778_v18 = vld [vmem:[%s9293_s3 + $0x1c0] sm:$0xff]  ;;  %v9704_v38 = vld [vmem:[#allocation64_spill] sm:$0xff] }
 0x33b   : > { %4094 = vmatmul.mubr.f32.gmra.mxu1 %v2768_v56  ;;  %v3683_v62 = vpop.f32.mrf.mxu1  ;;  %v3433_v16 = vadd.f32 %v9704_v38, %v3187_v13  ;;  %v2799_v38 = vld [vmem:[%s9293_s3 + $0x268] sm:$0xff] }
 0x33c   : > { %9701 = vst [vmem:[#allocation31_spill] sm:$0xff] %v8182_v61  ;;  %v2289_v48 = vpop.f32.mrf.mxu0  ;;  %4099 = vmatprep.mubr.f32.mxu1 %v2779_v30  ;;  %v8185_v53 = vadd.f32 %v3683_v62, %v3427_v33  ;;  %v9706_v30 = vld [vmem:[#allocation65_spill] sm:$0xff] }
 0x33d   : > { %v3685_v6 = vpop.f32.mrf.mxu1  ;;  %v3435_v33 = vadd.f32 %v9706_v30, %v3187_v13 }
 0x33e   : > { %9703 = vst [vmem:[#allocation33_spill] sm:$0xff] %v8185_v53  ;;  %v2291_v56 = vpop.f32.mrf.mxu0  ;;  %v8194_v61 = vadd.f32 %v3685_v6, %v3429_v4  ;;  %v2788_v53 = vld [vmem:[%s9293_s3 + $0x210] sm:$0xff]  ;;  %v9708_v6 = vld [vmem:[#allocation67_spill] sm:$0xff] }
 0x33f   : > { %4100 = vmatmul.mubr.f32.gmra.mxu1 %v2778_v18  ;;  %v3689_v36 = vpop.f32.mrf.mxu1  ;;  %v3439_v4 = vadd.f32 %v9708_v6, %v3192_v35  ;;  %v2809_v6 = vld [vmem:[%s9293_s3 + $0x2b8] sm:$0xff] }
 0x340   : > { %9705 = vst [vmem:[#allocation36_spill] sm:$0xff] %v8194_v61  ;;  %v2295_v62 = vpop.f32.mrf.mxu0  ;;  %4105 = vmatprep.mubr.f32.mxu1 %v2789_v45  ;;  %v8197_v24 = vadd.f32 %v3689_v36, %v3433_v16  ;;  %v9710_v45 = vld [vmem:[#allocation69_spill] sm:$0xff] }
 0x341   : > { %v3691_v0 = vpop.f32.mrf.mxu1  ;;  %v3441_v16 = vadd.f32 %v9710_v45, %v3192_v35 }
 0x342   : > { %9707 = vst [vmem:[#allocation38_spill] sm:$0xff] %v8197_v24  ;;  %v2297_v18 = vpop.f32.mrf.mxu0  ;;  %v8206_v61 = vadd.f32 %v3691_v0, %v3435_v33  ;;  %v2798_v24 = vld [vmem:[%s9293_s3 + $0x260] sm:$0xff] }
 0x343   : > { %4106 = vmatmul.mubr.f32.gmra.mxu1 %v2788_v53  ;;  %v3695_v13 = vpop.f32.mrf.mxu1  ;;  %v9712_v0 = vld [vmem:[#allocation70_spill] sm:$0xff] }
 0x344   : > { %9709 = vst [vmem:[#allocation47_spill] sm:$0xff] %v8206_v61  ;;  %v2301_v36 = vpop.f32.mrf.mxu0  ;;  %4111 = vmatprep.mubr.f32.mxu1 %v2799_v38  ;;  %v8209_v30 = vadd.f32 %v3695_v13, %v3439_v4  ;;  %v3445_v33 = vadd.f32 %v9712_v0, %v3197_v54  ;;  %v9713_v53 = vld [vmem:[#allocation42_spill] sm:$0xff]  ;;  %v9714_v38 = vld [vmem:[#allocation43_spill] sm:$0xff] }
 0x345   : > { %v3697_v39 = vpop.f32.mrf.mxu1  ;;  %v2302_v61 = vadd.f32 %v2301_v36, %v9713_v53  ;;  %v2298_v4 = vadd.f32 %v2297_v18, %v9714_v38  ;;  %v2296_v59 = vadd.f32 %v2295_v62, %v9714_v38  ;;  %v3202_v38 = vpop.permute.xlu1 %3201 }
 0x346   : > { %9711 = vst [vmem:[#allocation41_spill] sm:$0xff] %v8209_v30  ;;  %v2303_v27 = vpop.f32.mrf.mxu0  ;;  %v8219_v35 = vadd.f32 %v3697_v39, %v3441_v16  ;;  %v9715_v30 = vld [vmem:[#allocation72_spill] sm:$0xff] }
 0x347   : > { %v2304_v13 = vadd.f32 %v2303_v27, %v9713_v53  ;;  %4112 = vmatmul.mubr.f32.gmra.mxu1 %v2798_v24  ;;  %v3701_v45 = vpop.f32.mrf.mxu1  ;;  %v3447_v14 = vadd.f32 %v9715_v30, %v3197_v54  ;;  %v2808_v39 = vld [vmem:[%s9293_s3 + $0x2b0] sm:$0xff]  ;;  %v2819_v27 = vld [vmem:[%s9293_s3 + $0x308] sm:$0xff]  ;;  %v2688_v62 = vmax.f32 %v2302_v61, 0.0  ;;  %v2687_v53 = vmax.f32 %v2298_v4, 0.0  ;;  %v2818_v61 = vld [vmem:[%s9293_s3 + $0x300] sm:$0xff] }
 0x348   : > { %v8225_v57 = vpop.f32.mrf.mxu0  ;;  %4117 = vmatprep.mubr.f32.mxu1 %v2809_v6  ;;  %v8227_v42 = vadd.f32 %v3701_v45, %v3445_v33  ;;  %v9716_v16 = vld [vmem:[#allocation44_spill] sm:$0xff]  ;;  %v9718_v6 = vld [vmem:[#allocation45_spill] sm:$0xff] }
 0x349   : > { %v2292_v36 = vadd.f32 %v2291_v56, %v9716_v16  ;;  %v2689_v18 = vmax.f32 %v2304_v13, 0.0  ;;  %v3703_v0 = vpop.f32.mrf.mxu1  ;;  %v2290_v54 = vadd.f32 %v2289_v48, %v9716_v16  ;;  %v2286_v33 = vadd.f32 %v2285_v20, %v9718_v6  ;;  %v9720_v16 = vld [vmem:[#allocation46_spill] sm:$0xff] }
 0x34a   : > { %v8237_v24 = vpop.f32.mrf.mxu0  ;;  %v8239_v30 = vadd.f32 %v3703_v0, %v3447_v14  ;;  %v2284_v56 = vadd.f32 %v8171_v41, %v9718_v6  ;;  %v2686_v13 = vmax.f32 %v2296_v59, 0.0  ;;  %v9719_v14 = vld [vmem:[#allocation74_spill] sm:$0xff]  ;;  %v2280_v20 = vadd.f32 %v8166_v5, %v9720_v16  ;;  %v2829_v41 = vld [vmem:[%s9293_s3 + $0x358] sm:$0xff] }
 0x34b   : > { %4118 = vmatmul.mubr.f32.gmra.mxu1 %v2808_v39  ;;  %4262 = vmatprep.subr.mxu1 %v2689_v18  ;;  %v3451_v48 = vadd.f32 %v9719_v14, %v3202_v38  ;;  %v2685_v4 = vmax.f32 %v2292_v36, 0.0  ;;  %v2278_v59 = vadd.f32 %v8155_v7, %v9720_v16  ;;  %v2684_v39 = vmax.f32 %v2290_v54, 0.0  ;;  %v9722_v14 = vld [vmem:[#allocation48_spill] sm:$0xff]  ;;  %v9723_v16 = vld [vmem:[#allocation77_spill] sm:$0xff] }
 0x34c   : > { %9717 = vst [vmem:[#allocation49_spill] sm:$0xff] %v8239_v30  ;;  %v8244_v45 = vpop.f32.mrf.mxu0  ;;  %4263 = vmatpush1.msra.mxu1 %v2688_v62  ;;  %4123 = vmatprep.mubr.f32.mxu1 %v2819_v27  ;;  %v3207_v27 = vpop.permute.xlu0 %3206  ;;  %v9721_v62 = vld [vmem:[#allocation75_spill] sm:$0xff]  ;;  %v2274_v5 = vadd.f32 %v8150_v46, %v9722_v14  ;;  %v2683_v36 = vmax.f32 %v2286_v33, 0.0  ;;  %v2272_v30 = vadd.f32 %v8139_v23, %v9722_v14  ;;  %v2682_v7 = vmax.f32 %v2284_v56, 0.0  ;;  %v9724_v33 = vld [vmem:[#allocation2_spill] sm:$0xff] }
 0x34d   : > { %4264 = vmatprep.subr.mxu1 %v2687_v53  ;;  %v3453_v6 = vadd.f32 %v9721_v62, %v3202_v38  ;;  %v2828_v38 = vld [vmem:[%s9293_s3 + $0x350] sm:$0xff]  ;;  %v3457_v46 = vadd.f32 %v9723_v16, %v3207_v27  ;;  %v2839_v23 = vld [vmem:[%s9293_s3 + $0x3a8] sm:$0xff]  ;;  %v2266_v56 = vadd.f32 %v8123_v40, %v9724_v33  ;;  %v3212_v62 = vpop.permute.xlu1 %3211 }
 0x34e   : > { %v8257_v18 = vpop.f32.mrf.mxu0  ;;  %4265 = vmatpush1.msra.mxu1 %v2686_v13  ;;  %v3707_v0 = vpop.f32.mrf.mxu1  ;;  %v9725_v14 = vld [vmem:[#allocation79_spill] sm:$0xff]  ;;  %v2678_v40 = vmax.f32 %v2272_v30, 0.0 }
 0x34f   : > { %v8262_v53 = vadd.f32 %v3707_v0, %v3451_v48  ;;  %4124 = vmatmul.mubr.f32.gmra.mxu1 %v2818_v61  ;;  %4266 = vmatprep.subr.mxu1 %v2685_v4  ;;  %v2268_v48 = vadd.f32 %v8134_v15, %v9724_v33  ;;  %v2681_v61 = vmax.f32 %v2280_v20, 0.0  ;;  %v3459_v16 = vadd.f32 %v9725_v14, %v3207_v27  ;;  %v9726_v15 = vld [vmem:[#allocation50_spill] sm:$0xff]  ;;  %v9727_v33 = vld [vmem:[#allocation80_spill] sm:$0xff] }
 0x350   : > { %v8266_v54 = vpop.f32.mrf.mxu0  ;;  %4267 = vmatpush1.msra.mxu1 %v2684_v39  ;;  %v3709_v13 = vpop.f32.mrf.mxu1  ;;  %4129 = vmatprep.mubr.f32.mxu1 %v2829_v41  ;;  %v2680_v41 = vmax.f32 %v2278_v59, 0.0  ;;  %v2262_v20 = vadd.f32 %v8118_v58, %v9726_v15  ;;  %v2838_v27 = vld [vmem:[%s9293_s3 + $0x3a0] sm:$0xff]  ;;  %v3463_v58 = vadd.f32 %v9727_v33, %v3212_v62 }
 0x351   : > { %v8274_v4 = vadd.f32 %v3709_v13, %v3453_v6  ;;  %4268 = vmatprep.subr.mxu1 %v2683_v36  ;;  %v2679_v6 = vmax.f32 %v2274_v5, 0.0  ;;  %v2260_v13 = vadd.f32 %v8107_v28, %v9726_v15  ;;  %v9728_v5 = vld [vmem:[#allocation6_spill] sm:$0xff]  ;;  %v2849_v28 = vld [vmem:[%s9293_s3 + $0x3f8] sm:$0xff]  ;;  %v3217_v14 = vpop.permute.xlu0 %3216  ;;  %v3465_v15 = vadd.f32 %v7628_v2, %v3212_v62  ;;  %v2848_v2 = vld [vmem:[%s9293_s3 + $0x3f0] sm:$0xff] }
 0x352   : > { %v8281_v39 = vpop.f32.mrf.mxu0  ;;  %4269 = vmatpush1.msra.mxu1 %v2682_v7  ;;  %v3713_v0 = vpop.f32.mrf.mxu1  ;;  %v2254_v30 = vadd.f32 %v8091_v43, %v9728_v5  ;;  %v9732_v62 = vld [vmem:[#allocation53_spill] sm:$0xff] }
 0x353   : > { %v8286_v36 = vadd.f32 %v3713_v0, %v3457_v46  ;;  %4130 = vmatmul.mubr.f32.gmra.mxu1 %v2828_v38  ;;  %4270 = vmatprep.subr.mxu1 %v2681_v61  ;;  %v2256_v46 = vadd.f32 %v8102_v50, %v9728_v5  ;;  %v2677_v38 = vmax.f32 %v2268_v48, 0.0  ;;  %v9730_v50 = vld [vmem:[#allocation51_spill] sm:$0xff]  ;;  %v2674_v43 = vmax.f32 %v2260_v13, 0.0 }
 0x354   : > { %v8290_v59 = vpop.f32.mrf.mxu0  ;;  %4271 = vmatpush1.msra.mxu1 %v2680_v41  ;;  %v3715_v7 = vpop.f32.mrf.mxu1  ;;  %4135 = vmatprep.mubr.f32.mxu1 %v2839_v23  ;;  %v2676_v23 = vmax.f32 %v2266_v56, 0.0  ;;  %v2250_v48 = vadd.f32 %v8082_v47, %v9730_v50  ;;  %v3469_v47 = vadd.f32 %v7643_v55, %v3217_v14  ;;  %v2242_v13 = vadd.f32 %v8043_v25, %v9732_v62 }
 0x355   : > { %v8298_v61 = vadd.f32 %v3715_v7, %v3459_v16  ;;  %4272 = vmatprep.subr.mxu1 %v2679_v6  ;;  %v2675_v16 = vmax.f32 %v2262_v20, 0.0  ;;  %v2248_v7 = vadd.f32 %v8067_v29, %v9730_v50  ;;  %v2244_v20 = vadd.f32 %v8058_v37, %v9732_v62  ;;  %v2859_v29 = vld [vmem:[%s9293_s3 + $0x448] sm:$0xff]  ;;  %v3222_v55 = vpop.permute.xlu1 %3221  ;;  %v9734_v37 = vld [vmem:[#allocation56_spill] sm:$0xff] }
 0x356   : > { %v8305_v41 = vpop.f32.mrf.mxu0  ;;  %4273 = vmatpush1.msra.mxu1 %v2678_v40  ;;  %v3719_v0 = vpop.f32.mrf.mxu1  ;;  %v9738_v62 = vld [vmem:[#allocation11_spill] sm:$0xff] }
 0x357   : > { %9729 = vst [vmem:[#allocation3_spill] sm:$0xff] %v8298_v61  ;;  %v8310_v6 = vadd.f32 %v3719_v0, %v3463_v58  ;;  %4136 = vmatmul.mubr.f32.gmra.mxu1 %v2838_v27  ;;  %4274 = vmatprep.subr.mxu1 %v2677_v38  ;;  %v2673_v27 = vmax.f32 %v2256_v46, 0.0  ;;  %v2672_v58 = vmax.f32 %v2254_v30, 0.0  ;;  %v2238_v46 = vadd.f32 %v8034_v17, %v9734_v37 }
 0x358   : > { %v8314_v56 = vpop.f32.mrf.mxu0  ;;  %4275 = vmatpush1.msra.mxu1 %v2676_v23  ;;  %v3721_v40 = vpop.f32.mrf.mxu1  ;;  %4141 = vmatprep.mubr.f32.mxu1 %v2849_v28  ;;  %v3471_v28 = vadd.f32 %v7654_v11, %v3217_v14  ;;  %v2671_v23 = vmax.f32 %v2250_v48, 0.0  ;;  %v2670_v25 = vmax.f32 %v2248_v7, 0.0  ;;  %v2858_v11 = vld [vmem:[%s9293_s3 + $0x440] sm:$0xff]  ;;  %v3475_v17 = vadd.f32 %v7684_v1, %v3222_v55 }
 0x359   : > { %9731 = vst [vmem:[#allocation4_spill] sm:$0xff] %v8310_v6  ;;  %v8322_v33 = vadd.f32 %v3721_v40, %v3465_v15  ;;  %4276 = vmatprep.subr.mxu1 %v2675_v16  ;;  %v2236_v15 = vadd.f32 %v8019_v22, %v9734_v37  ;;  %v9736_v14 = vld [vmem:[#allocation58_spill] sm:$0xff]  ;;  %v2669_v16 = vmax.f32 %v2244_v20, 0.0  ;;  %v2869_v22 = vld [vmem:[%s9293_s3 + $0x498] sm:$0xff]  ;;  %v2668_v40 = vmax.f32 %v2242_v13, 0.0  ;;  %v3227_v1 = vpop.permute.xlu0 %3226  ;;  %v9777_v6 = vld [vmem:[#allocation32_spill] sm:$0xff] }
 0x35a   : > { %v8329_v5 = vpop.f32.mrf.mxu0  ;;  %4277 = vmatpush1.msra.mxu1 %v2674_v43  ;;  %v3725_v38 = vpop.f32.mrf.mxu1  ;;  %v2232_v48 = vadd.f32 %v8010_v9, %v9736_v14  ;;  %v2230_v7 = vadd.f32 %v7995_v10, %v9736_v14  ;;  %v9739_v9 = vld [vmem:[#allocation61_spill] sm:$0xff] }
 0x35b   : > { %9733 = vst [vmem:[#allocation5_spill] sm:$0xff] %v8322_v33  ;;  %v8334_v0 = vadd.f32 %v3725_v38, %v3469_v47  ;;  %4142 = vmatmul.mubr.f32.gmra.mxu1 %v2848_v2  ;;  %4278 = vmatprep.subr.mxu1 %v2673_v27  ;;  %v3477_v27 = vadd.f32 %v9738_v62, %v3222_v55  ;;  %v2666_v10 = vmax.f32 %v2236_v15, 0.0  ;;  %v2868_v55 = vld [vmem:[%s9293_s3 + $0x490] sm:$0xff]  ;;  %v9741_v37 = vld [vmem:[#allocation13_spill] sm:$0xff] }
 0x35c   : > { %v8338_v30 = vpop.f32.mrf.mxu0  ;;  %4279 = vmatpush1.msra.mxu1 %v2672_v58  ;;  %v3727_v50 = vpop.f32.mrf.mxu1  ;;  %4147 = vmatprep.mubr.f32.mxu1 %v2859_v29  ;;  %v2226_v20 = vadd.f32 %v7986_v21, %v9739_v9  ;;  %v2667_v29 = vmax.f32 %v2238_v46, 0.0  ;;  %v2224_v38 = vadd.f32 %v7971_v32, %v9739_v9  ;;  %v3481_v21 = vadd.f32 %v9741_v37, %v3227_v1  ;;  %v9742_v46 = vld [vmem:[#allocation63_spill] sm:$0xff] }
 0x35d   : > { %9735 = vst [vmem:[#allocation7_spill] sm:$0xff] %v8334_v0  ;;  %v8346_v43 = vadd.f32 %v3727_v50, %v3471_v28  ;;  %4280 = vmatprep.subr.mxu1 %v2671_v23  ;;  %v2220_v23 = vadd.f32 %v7962_v44, %v9742_v46  ;;  %v2879_v32 = vld [vmem:[%s9293_s3 + $0x4e8] sm:$0xff]  ;;  %v2218_v15 = vadd.f32 %v7947_v3, %v9742_v46  ;;  %v9745_v44 = vld [vmem:[#allocation66_spill] sm:$0xff] }
 0x35e   : > { %v8353_v2 = vpop.f32.mrf.mxu0  ;;  %4281 = vmatpush1.msra.mxu1 %v2670_v25  ;;  %v3731_v47 = vpop.f32.mrf.mxu1  ;;  %v2665_v25 = vmax.f32 %v2232_v48, 0.0  ;;  %v2214_v48 = vadd.f32 %v7939_v34, %v9745_v44  ;;  %v2662_v3 = vmax.f32 %v2224_v38, 0.0  ;;  %v9750_v46 = vld [vmem:[#allocation90_spill] sm:$0xff] }
 0x35f   : > { %9737 = vst [vmem:[#allocation8_spill] sm:$0xff] %v8346_v43  ;;  %v8358_v58 = vadd.f32 %v3731_v47, %v3475_v17  ;;  %4148 = vmatmul.mubr.f32.gmra.mxu1 %v2858_v11  ;;  %4282 = vmatprep.subr.mxu1 %v2669_v16  ;;  %v2664_v11 = vmax.f32 %v2230_v7, 0.0  ;;  %v3232_v16 = vpop.permute.xlu1 %3231  ;;  %v2663_v47 = vmax.f32 %v2226_v20, 0.0  ;;  %v2661_v20 = vmax.f32 %v2220_v23, 0.0 }
 0x360   : > { %v8362_v13 = vpop.f32.mrf.mxu0  ;;  %4283 = vmatpush1.msra.mxu1 %v2668_v40  ;;  %v3733_v28 = vpop.f32.mrf.mxu1  ;;  %4153 = vmatprep.mubr.f32.mxu1 %v2869_v22  ;;  %v9744_v22 = vld [vmem:[#allocation86_spill] sm:$0xff]  ;;  %v2660_v38 = vmax.f32 %v2218_v15, 0.0  ;;  %v2888_v15 = vld [vmem:[%s9293_s3 + $0x530] sm:$0xff] }
 0x361   : > { %9740 = vst [vmem:[#allocation52_spill] sm:$0xff] %v8358_v58  ;;  %v8370_v50 = vadd.f32 %v3733_v28, %v3477_v27  ;;  %4284 = vmatprep.subr.mxu1 %v2667_v29  ;;  %v3483_v40 = vadd.f32 %v9744_v22, %v3227_v1  ;;  %v9747_v27 = vld [vmem:[#allocation14_spill] sm:$0xff] }
 0x362   : > { %v8377_v17 = vpop.f32.mrf.mxu0  ;;  %4285 = vmatpush1.msra.mxu1 %v2666_v10  ;;  %v3737_v14 = vpop.f32.mrf.mxu1  ;;  %v2212_v9 = vadd.f32 %v9747_v27, %v9745_v44  ;;  %v2878_v1 = vld [vmem:[%s9293_s3 + $0x4e0] sm:$0xff]  ;;  %v9748_v10 = vld [vmem:[#allocation88_spill] sm:$0xff] }
 0x363   : > { %9743 = vst [vmem:[#allocation54_spill] sm:$0xff] %v8370_v50  ;;  %v8382_v62 = vadd.f32 %v3737_v14, %v3481_v21  ;;  %4154 = vmatmul.mubr.f32.gmra.mxu1 %v2868_v55  ;;  %4286 = vmatprep.subr.mxu1 %v2665_v25  ;;  %v3487_v34 = vadd.f32 %v9748_v10, %v3232_v16  ;;  %v2889_v55 = vld [vmem:[%s9293_s3 + $0x538] sm:$0xff] }
 0x364   : > { %v8386_v7 = vpop.f32.mrf.mxu0  ;;  %4287 = vmatpush1.msra.mxu1 %v2664_v11  ;;  %v3739_v29 = vpop.f32.mrf.mxu1  ;;  %4159 = vmatprep.mubr.f32.mxu1 %v2879_v32  ;;  %v3489_v25 = vadd.f32 %v9750_v46, %v3232_v16  ;;  %v2659_v32 = vmax.f32 %v2214_v48, 0.0  ;;  %v2658_v23 = vmax.f32 %v2212_v9, 0.0  ;;  %v2899_v16 = vld [vmem:[%s9293_s3 + $0x588] sm:$0xff]  ;;  %v2898_v9 = vld [vmem:[%s9293_s3 + $0x580] sm:$0xff] }
 0x365   : > { %9746 = vst [vmem:[#allocation55_spill] sm:$0xff] %v8382_v62  ;;  %v8392_v28 = vadd.f32 %v3739_v29, %v3483_v40  ;;  %4288 = vmatprep.subr.mxu1 %v2663_v47  ;;  %v9769_v62 = vld [vmem:[#allocation27_spill] sm:$0xff] }
 0x366   : > { %v8397_v37 = vpop.f32.mrf.mxu0  ;;  %4289 = vmatpush1.msra.mxu1 %v2662_v3  ;;  %v3743_v21 = vpop.f32.mrf.mxu1  ;;  %v2909_v3 = vld [vmem:[%s9293_s3 + $0x5d8] sm:$0xff] }
 0x367   : > { %9749 = vst [vmem:[#allocation57_spill] sm:$0xff] %v8392_v28  ;;  %v8400_v11 = vadd.f32 %v3743_v21, %v3487_v34  ;;  %4160 = vmatmul.mubr.f32.gmra.mxu1 %v2878_v1  ;;  %4290 = vmatprep.subr.mxu1 %v2661_v20  ;;  %v2908_v20 = vld [vmem:[%s9293_s3 + $0x5d0] sm:$0xff] }
 0x368   : > { %v8402_v14 = vpop.f32.mrf.mxu0  ;;  %4291 = vmatpush1.msra.mxu1 %v2660_v38  ;;  %v3745_v22 = vpop.f32.mrf.mxu1  ;;  %4165 = vmatprep.mubr.f32.mxu1 %v2889_v55  ;;  %v2919_v55 = vld [vmem:[%s9293_s3 + $0x628] sm:$0xff] }
 0x369   : > { %9751 = vst [vmem:[#allocation59_spill] sm:$0xff] %v8400_v11  ;;  %v8407_v40 = vadd.f32 %v3745_v22, %v3489_v25  ;;  %4292 = vmatprep.subr.mxu1 %v2659_v32  ;;  %v2918_v32 = vld [vmem:[%s9293_s3 + $0x620] sm:$0xff]  ;;  %v9765_v11 = vld [vmem:[#allocation24_spill] sm:$0xff] }
 0x36a   : > { %v8412_v44 = vpop.f32.mrf.mxu0  ;;  %4293 = vmatpush1.msra.mxu1 %v2658_v23  ;;  %v8414_v48 = vpop.f32.mrf.mxu1  ;;  %v2929_v23 = vld [vmem:[%s9293_s3 + $0x678] sm:$0xff] }
 0x36b   : > { %9752 = vst [vmem:[#allocation60_spill] sm:$0xff] %v8407_v40  ;;  %9753 = vst [vmem:[#allocation62_spill] sm:$0xff] %v8414_v48  ;;  %4166 = vmatmul.mubr.f32.gmra.mxu1 %v2888_v15 }
 0x36c   : > { %v8416_v47 = vpop.f32.mrf.mxu0  ;;  %v8418_v27 = vpop.f32.mrf.mxu1  ;;  %4171 = vmatprep.mubr.f32.mxu1 %v2899_v16 }
 0x36d   : > { %9754 = vst [vmem:[#allocation64_spill] sm:$0xff] %v8418_v27  ;;  %v2949_v27 = vld [vmem:[%s9293_s3 + $0x718] sm:$0xff] }
 0x36e   : > { %v8426_v29 = vpop.f32.mrf.mxu0  ;;  %v8428_v1 = vpop.f32.mrf.mxu1 }
 0x36f   : > { %9755 = vst [vmem:[#allocation65_spill] sm:$0xff] %v8428_v1  ;;  %4172 = vmatmul.mubr.f32.gmra.mxu1 %v2898_v9 }
 0x370   : > { %v8430_v10 = vpop.f32.mrf.mxu0  ;;  %v8432_v34 = vpop.f32.mrf.mxu1  ;;  %4177 = vmatprep.mubr.f32.mxu1 %v2909_v3  ;;  %v2928_v3 = vld [vmem:[%s9293_s3 + $0x670] sm:$0xff] }
 0x371   : > { %9756 = vst [vmem:[#allocation67_spill] sm:$0xff] %v8432_v34 }
 0x372   : > { %v8440_v38 = vpop.f32.mrf.mxu0  ;;  %v8442_v21 = vpop.f32.mrf.mxu1 }
 0x373   : > { %9757 = vst [vmem:[#allocation69_spill] sm:$0xff] %v8442_v21  ;;  %4178 = vmatmul.mubr.f32.gmra.mxu1 %v2908_v20  ;;  %v2939_v20 = vld [vmem:[%s9293_s3 + $0x6c8] sm:$0xff]  ;;  %v9761_v21 = vld [vmem:[#allocation104_spill] sm:$0xff] }
 0x374   : > { %v8444_v46 = vpop.f32.mrf.mxu0  ;;  %v8446_v25 = vpop.f32.mrf.mxu1  ;;  %4183 = vmatprep.mubr.f32.mxu1 %v2919_v55 }
 0x375   : > { %9758 = vst [vmem:[#allocation70_spill] sm:$0xff] %v8446_v25 }
 0x376   : > { %v8454_v22 = vpop.f32.mrf.mxu0  ;;  %v8456_v15 = vpop.f32.mrf.mxu1 }
 0x377   : > { %9759 = vst [vmem:[#allocation42_spill] sm:$0xff] %v8456_v15  ;;  %4184 = vmatmul.mubr.f32.gmra.mxu1 %v2918_v32 }
 0x378   : > { %v2379_v16 = vpop.f32.mrf.mxu0  ;;  %v8458_v9 = vpop.f32.mrf.mxu1  ;;  %4189 = vmatprep.mubr.f32.mxu1 %v2929_v23  ;;  %v2938_v23 = vld [vmem:[%s9293_s3 + $0x6c0] sm:$0xff] }
 0x379   : > { %9760 = vst [vmem:[#allocation43_spill] sm:$0xff] %v8458_v9  ;;  %v9763_v9 = vld [vmem:[#allocation22_spill] sm:$0xff] }
 0x37a   : > { %v2381_v55 = vpop.f32.mrf.mxu0  ;;  %v3838_v25 = vpop.f32.mrf.mxu1 }
 0x37b   : > { %v8467_v34 = vadd.f32 %v3838_v25, %v9761_v21  ;;  %4190 = vmatmul.mubr.f32.gmra.mxu1 %v2928_v3 }
 0x37c   : > { %v2385_v15 = vpop.f32.mrf.mxu0  ;;  %v3840_v32 = vpop.f32.mrf.mxu1  ;;  %4195 = vmatprep.mubr.f32.mxu1 %v2939_v20  ;;  %v2948_v20 = vld [vmem:[%s9293_s3 + $0x710] sm:$0xff] }
 0x37d   : > { %9762 = vst [vmem:[#allocation72_spill] sm:$0xff] %v8467_v34  ;;  %v8473_v1 = vadd.f32 %v3840_v32, %v9763_v9  ;;  %v9767_v34 = vld [vmem:[#allocation25_spill] sm:$0xff]  ;;  %v2959_v32 = vld [vmem:[%s9293_s3 + $0x768] sm:$0xff] }
 0x37e   : > { %v2387_v48 = vpop.f32.mrf.mxu0  ;;  %v3844_v40 = vpop.f32.mrf.mxu1 }
 0x37f   : > { %9764 = vst [vmem:[#allocation44_spill] sm:$0xff] %v8473_v1  ;;  %v8479_v21 = vadd.f32 %v3844_v40, %v9765_v11  ;;  %4196 = vmatmul.mubr.f32.gmra.mxu1 %v2938_v23 }
 0x380   : > { %v2391_v25 = vpop.f32.mrf.mxu0  ;;  %v3846_v3 = vpop.f32.mrf.mxu1  ;;  %4201 = vmatprep.mubr.f32.mxu1 %v2949_v27  ;;  %v2958_v27 = vld [vmem:[%s9293_s3 + $0x760] sm:$0xff] }
 0x381   : > { %9766 = vst [vmem:[#allocation45_spill] sm:$0xff] %v8479_v21  ;;  %v8485_v9 = vadd.f32 %v3846_v3, %v9767_v34  ;;  %v9771_v21 = vld [vmem:[#allocation29_spill] sm:$0xff] }
 0x382   : > { %v2393_v1 = vpop.f32.mrf.mxu0  ;;  %v3850_v28 = vpop.f32.mrf.mxu1  ;;  %v2969_v3 = vld [vmem:[%s9293_s3 + $0x7b8] sm:$0xff] }
 0x383   : > { %9768 = vst [vmem:[#allocation74_spill] sm:$0xff] %v8485_v9  ;;  %v8491_v11 = vadd.f32 %v3850_v28, %v9769_v62  ;;  %4202 = vmatmul.mubr.f32.gmra.mxu1 %v2948_v20  ;;  %v9773_v9 = vld [vmem:[#allocation68_spill] sm:$0xff]  ;;  %v9774_v28 = vld [vmem:[#allocation71_spill] sm:$0xff] }
 0x384   : > { %v2397_v40 = vpop.f32.mrf.mxu0  ;;  %v3852_v23 = vpop.f32.mrf.mxu1  ;;  %4207 = vmatprep.mubr.f32.mxu1 %v2959_v32  ;;  %v2394_v20 = vadd.f32 %v2393_v1, %v9774_v28  ;;  %v9775_v32 = vld [vmem:[#allocation30_spill] sm:$0xff]  ;;  %v2392_v0 = vadd.f32 %v2391_v25, %v9774_v28  ;;  %v9779_v28 = vld [vmem:[#allocation15_spill] sm:$0xff] }
 0x385   : > { %9770 = vst [vmem:[#allocation46_spill] sm:$0xff] %v8491_v11  ;;  %v8497_v34 = vadd.f32 %v3852_v23, %v9771_v21  ;;  %v2398_v50 = vadd.f32 %v2397_v40, %v9773_v9  ;;  %v2968_v23 = vld [vmem:[%s9293_s3 + $0x7b0] sm:$0xff] }
 0x386   : > { %v2399_v58 = vpop.f32.mrf.mxu0  ;;  %v3856_v62 = vpop.f32.mrf.mxu1 }
 0x387   : > { %9772 = vst [vmem:[#allocation75_spill] sm:$0xff] %v8497_v34  ;;  %v2400_v11 = vadd.f32 %v2399_v58, %v9773_v9  ;;  %v8506_v43 = vadd.f32 %v3856_v62, %v9775_v32  ;;  %4208 = vmatmul.mubr.f32.gmra.mxu1 %v2958_v27  ;;  %v9776_v34 = vld [vmem:[#allocation73_spill] sm:$0xff]  ;;  %v2979_v58 = vld [vmem:[%s9293_s3 + $0x808] sm:$0xff]  ;;  %v2720_v9 = vmax.f32 %v2398_v50, 0.0  ;;  %v9778_v27 = vld [vmem:[#allocation76_spill] sm:$0xff]  ;;  %v2719_v62 = vmax.f32 %v2394_v20, 0.0 }
 0x388   : > { %v3858_v21 = vpop.f32.mrf.mxu1  ;;  %4213 = vmatprep.mubr.f32.mxu1 %v2969_v3  ;;  %v2388_v40 = vadd.f32 %v2387_v48, %v9776_v34  ;;  %v2386_v1 = vadd.f32 %v2385_v15, %v9776_v34  ;;  %v2382_v3 = vadd.f32 %v2381_v55, %v9778_v27  ;;  %v2380_v48 = vadd.f32 %v2379_v16, %v9778_v27  ;;  %v2978_v15 = vld [vmem:[%s9293_s3 + $0x800] sm:$0xff] }
 0x389   : > { %v2721_v33 = vmax.f32 %v2400_v11, 0.0  ;;  %v8514_v61 = vadd.f32 %v3858_v21, %v9777_v6  ;;  %v2718_v6 = vmax.f32 %v2392_v0, 0.0  ;;  %v9780_v50 = vld [vmem:[#allocation78_spill] sm:$0xff]  ;;  %v9781_v21 = vld [vmem:[#allocation81_spill] sm:$0xff] }
 0x38a   : > { %v3862_v25 = vpop.f32.mrf.mxu1  ;;  %v2376_v34 = vadd.f32 %v8454_v22, %v9780_v50  ;;  %v2717_v55 = vmax.f32 %v2388_v40, 0.0  ;;  %v2374_v0 = vadd.f32 %v8444_v46, %v9780_v50  ;;  %v2716_v16 = vmax.f32 %v2386_v1, 0.0  ;;  %v2988_v46 = vld [vmem:[%s9293_s3 + $0x850] sm:$0xff]  ;;  %v9782_v1 = vld [vmem:[#allocation82_spill] sm:$0xff] }
 0x38b   : > { %v8522_v32 = vadd.f32 %v3862_v25, %v9779_v28  ;;  %4214 = vmatmul.mubr.f32.gmra.mxu1 %v2968_v23  ;;  %4294 = vmatprep.subr.mxu1 %v2721_v33  ;;  %v2989_v33 = vld [vmem:[%s9293_s3 + $0x858] sm:$0xff]  ;;  %v2370_v23 = vadd.f32 %v8440_v38, %v9781_v21  ;;  %v2714_v22 = vmax.f32 %v2380_v48, 0.0  ;;  %v2364_v38 = vadd.f32 %v8426_v29, %v9782_v1  ;;  %v9783_v28 = vld [vmem:[#allocation83_spill] sm:$0xff] }
 0x38c   : > { %4295 = vmatpush2.msra.mxu1 %v2720_v9  ;;  %v3864_v11 = vpop.f32.mrf.mxu1  ;;  %4219 = vmatprep.mubr.f32.mxu1 %v2979_v58  ;;  %v2715_v58 = vmax.f32 %v2382_v3, 0.0  ;;  %v2713_v25 = vmax.f32 %v2376_v34, 0.0  ;;  %v2712_v3 = vmax.f32 %v2374_v0, 0.0  ;;  %v2358_v48 = vadd.f32 %v8412_v44, %v9783_v28 }
 0x38d   : > { %v8531_v20 = vadd.f32 %v3864_v11, %v7941_v51  ;;  %4296 = vmatprep.subr.mxu1 %v2719_v62  ;;  %v2368_v51 = vadd.f32 %v8430_v10, %v9781_v21  ;;  %v2999_v10 = vld [vmem:[%s9293_s3 + $0x8a8] sm:$0xff]  ;;  %v2356_v11 = vadd.f32 %v8402_v14, %v9783_v28  ;;  %v2709_v34 = vmax.f32 %v2364_v38, 0.0  ;;  %v3009_v14 = vld [vmem:[%s9293_s3 + $0x8f8] sm:$0xff] }
 0x38e   : > { %4297 = vmatpush2.msra.mxu1 %v2718_v6  ;;  %v2711_v6 = vmax.f32 %v2370_v23, 0.0  ;;  %v2707_v23 = vmax.f32 %v2358_v48, 0.0 }
 0x38f   : > { %v3868_v9 = vpop.f32.mrf.mxu1  ;;  %4220 = vmatmul.mubr.f32.gmra.mxu1 %v2978_v15  ;;  %4298 = vmatprep.subr.mxu1 %v2717_v55  ;;  %v2710_v15 = vmax.f32 %v2368_v51, 0.0 }
 0x390   : > { %v8543_v40 = vadd.f32 %v3868_v9, %v7949_v63  ;;  %4299 = vmatpush2.msra.mxu1 %v2716_v16  ;;  %4225 = vmatprep.mubr.f32.mxu1 %v2989_v33  ;;  %v2362_v63 = vadd.f32 %v8416_v47, %v9782_v1  ;;  %v9784_v47 = vld [vmem:[#allocation9_spill] sm:$0xff]  ;;  %v9785_v16 = vld [vmem:[#allocation10_spill] sm:$0xff]  ;;  %v2706_v9 = vmax.f32 %v2356_v11, 0.0 }
 0x391   : > { %v3870_v27 = vpop.f32.mrf.mxu1  ;;  %4300 = vmatprep.subr.mxu1 %v2715_v58  ;;  %v2352_v44 = vadd.f32 %v8397_v37, %v9784_v47  ;;  %v2346_v21 = vadd.f32 %v8377_v17, %v9785_v16  ;;  %v2344_v58 = vadd.f32 %v8362_v13, %v9785_v16  ;;  %v3019_v13 = vld [vmem:[%s9293_s3 + $0x948] sm:$0xff]  ;;  %v9791_v16 = vld [vmem:[#allocation34_spill] sm:$0xff] }
 0x392   : > { %v8556_v62 = vadd.f32 %v3870_v27, %v7964_v52  ;;  %4301 = vmatpush2.msra.mxu1 %v2714_v22  ;;  %v2998_v52 = vld [vmem:[%s9293_s3 + $0x8a0] sm:$0xff]  ;;  %v2708_v33 = vmax.f32 %v2362_v63, 0.0 }
 0x393   : > { %v3874_v29 = vpop.f32.mrf.mxu1  ;;  %4226 = vmatmul.mubr.f32.gmra.mxu1 %v2988_v46  ;;  %4302 = vmatprep.subr.mxu1 %v2713_v25  ;;  %v2705_v22 = vmax.f32 %v2352_v44, 0.0  ;;  %v9787_v25 = vld [vmem:[#allocation84_spill] sm:$0xff] }
 0x394   : > { %v8563_v50 = vadd.f32 %v3874_v29, %v7973_v60  ;;  %4303 = vmatpush2.msra.mxu1 %v2712_v3  ;;  %4231 = vmatprep.mubr.f32.mxu1 %v2999_v10  ;;  %v2350_v60 = vadd.f32 %v8386_v7, %v9784_v47  ;;  %v9786_v7 = vld [vmem:[#allocation12_spill] sm:$0xff]  ;;  %v2334_v27 = vadd.f32 %v8329_v5, %v9787_v25  ;;  %v2703_v10 = vmax.f32 %v2346_v21, 0.0 }
 0x395   : > { %v3876_v55 = vpop.f32.mrf.mxu1  ;;  %4304 = vmatprep.subr.mxu1 %v2711_v6  ;;  %v2340_v17 = vadd.f32 %v8353_v2, %v9786_v7  ;;  %v2332_v63 = vadd.f32 %v8314_v56, %v9787_v25  ;;  %v2702_v3 = vmax.f32 %v2344_v58, 0.0  ;;  %v3029_v56 = vld [vmem:[%s9293_s3 + $0x998] sm:$0xff] }
 0x396   : > { %v8576_v0 = vadd.f32 %v3876_v55, %v7988_v8  ;;  %4305 = vmatpush2.msra.mxu1 %v2710_v15  ;;  %v3008_v8 = vld [vmem:[%s9293_s3 + $0x8f0] sm:$0xff]  ;;  %v2704_v1 = vmax.f32 %v2350_v60, 0.0  ;;  %v9789_v15 = vld [vmem:[#allocation87_spill] sm:$0xff]  ;;  %v2699_v47 = vmax.f32 %v2334_v27, 0.0 }
 0x397   : > { %v3880_v37 = vpop.f32.mrf.mxu1  ;;  %4232 = vmatmul.mubr.f32.gmra.mxu1 %v2998_v52  ;;  %4306 = vmatprep.subr.mxu1 %v2709_v34  ;;  %v2701_v48 = vmax.f32 %v2340_v17, 0.0  ;;  %v2322_v52 = vadd.f32 %v8281_v39, %v9789_v15  ;;  %v2320_v44 = vadd.f32 %v8266_v54, %v9789_v15  ;;  %v2698_v34 = vmax.f32 %v2332_v63, 0.0  ;;  %v3039_v54 = vld [vmem:[%s9293_s3 + $0x9e8] sm:$0xff]  ;;  %v2730_v63 = vld [vmem:[%s9293_s3 + $0x40] sm:$0xff] }
 0x398   : > { %v8583_v51 = vadd.f32 %v3880_v37, %v7997_v49  ;;  %4307 = vmatpush2.msra.mxu1 %v2708_v33  ;;  %4237 = vmatprep.mubr.f32.mxu1 %v3009_v14  ;;  %v2338_v49 = vadd.f32 %v8338_v30, %v9786_v7  ;;  %v9788_v30 = vld [vmem:[#allocation85_spill] sm:$0xff]  ;;  %v9793_v7 = vld [vmem:[#allocation16_spill] sm:$0xff]  ;;  %v2751_v15 = vld [vmem:[%s9293_s3 + $0xe8] sm:$0xff] }
 0x399   : > { %v3882_v46 = vpop.f32.mrf.mxu1  ;;  %4308 = vmatprep.subr.mxu1 %v2707_v23  ;;  %v2328_v5 = vadd.f32 %v8305_v41, %v9788_v30  ;;  %v9792_v23 = vld [vmem:[#allocation91_spill] sm:$0xff]  ;;  %v2695_v58 = vmax.f32 %v2322_v52, 0.0 }
 0x39a   : > { %v8596_v38 = vadd.f32 %v3882_v46, %v8012_v26  ;;  %4309 = vmatpush2.msra.mxu1 %v2706_v9  ;;  %v3018_v26 = vld [vmem:[%s9293_s3 + $0x940] sm:$0xff]  ;;  %v2700_v29 = vmax.f32 %v2338_v49, 0.0  ;;  %v2310_v37 = vadd.f32 %v8237_v24, %v9792_v23  ;;  %v2308_v9 = vadd.f32 %v8225_v57, %v9792_v23  ;;  %v2731_v24 = vld [vmem:[%s9293_s3 + $0x48] sm:$0xff] }
 0x39b   : > { %v3886_v2 = vpop.f32.mrf.mxu1  ;;  %4238 = vmatmul.mubr.f32.gmra.mxu1 %v3008_v8  ;;  %4310 = vmatprep.subr.mxu1 %v2705_v22  ;;  %v2697_v14 = vmax.f32 %v2328_v5, 0.0  ;;  %v2694_v8 = vmax.f32 %v2320_v44, 0.0  ;;  %v9794_v49 = vld [vmem:[#allocation35_spill] sm:$0xff] }
 0x39c   : > { %v8603_v28 = vadd.f32 %v3886_v2, %v8021_v12  ;;  %4311 = vmatpush2.msra.mxu1 %v2704_v1  ;;  %4243 = vmatprep.mubr.f32.mxu1 %v3019_v13  ;;  %v2326_v12 = vadd.f32 %v8290_v59, %v9788_v30  ;;  %v9790_v59 = vld [vmem:[#allocation89_spill] sm:$0xff]  ;;  %v2691_v1 = vmax.f32 %v2310_v37, 0.0  ;;  %v2690_v27 = vmax.f32 %v2308_v9, 0.0  ;;  %v9798_v52 = vld [vmem:[#allocation39_spill] sm:$0xff] }
 0x39d   : > { %v3888_v6 = vpop.f32.mrf.mxu1  ;;  %4312 = vmatprep.subr.mxu1 %v2703_v10  ;;  %v2316_v39 = vadd.f32 %v8257_v18, %v9790_v59  ;;  %v9795_v10 = vld [vmem:[#allocation17_spill] sm:$0xff]  ;;  %v9799_v44 = vld [vmem:[#allocation19_spill] sm:$0xff] }
 0x39e   : > { %v8616_v11 = vadd.f32 %v3888_v6, %v8036_v31  ;;  %4313 = vmatpush2.msra.mxu1 %v2702_v3  ;;  %v3028_v31 = vld [vmem:[%s9293_s3 + $0x990] sm:$0xff]  ;;  %v2696_v33 = vmax.f32 %v2326_v12, 0.0  ;;  %v9796_v30 = vld [vmem:[#allocation37_spill] sm:$0xff]  ;;  %v9797_v6 = vld [vmem:[#allocation18_spill] sm:$0xff] }
 0x39f   : > { %v3892_v41 = vpop.f32.mrf.mxu1  ;;  %4244 = vmatmul.mubr.f32.gmra.mxu1 %v3018_v26  ;;  %4314 = vmatprep.subr.mxu1 %v2701_v48  ;;  %v2693_v22 = vmax.f32 %v2316_v39, 0.0  ;;  %v2741_v26 = vld [vmem:[%s9293_s3 + $0x98] sm:$0xff]  ;;  %v2740_v12 = vld [vmem:[%s9293_s3 + $0x90] sm:$0xff]  ;;  %v2771_v37 = vld [vmem:[%s9293_s3 + $0x188] sm:$0xff] }
 0x3a0   : > { %v8623_v55 = vadd.f32 %v3892_v41, %v8045_v19  ;;  %4315 = vmatpush2.msra.mxu1 %v2700_v29  ;;  %4249 = vmatprep.mubr.f32.mxu1 %v3029_v56  ;;  %v2314_v19 = vadd.f32 %v8244_v45, %v9790_v59  ;;  %v3038_v45 = vld [vmem:[%s9293_s3 + $0x9e0] sm:$0xff]  ;;  %v2761_v39 = vld [vmem:[%s9293_s3 + $0x138] sm:$0xff] }
 0x3a1   : > { %v3894_v60 = vpop.f32.mrf.mxu1  ;;  %4316 = vmatprep.subr.mxu1 %v2699_v47 }
 0x3a2   : > { %v8636_v21 = vadd.f32 %v3894_v60, %v9791_v16  ;;  %4317 = vmatpush2.msra.mxu1 %v2698_v34  ;;  %v2692_v13 = vmax.f32 %v2314_v19, 0.0  ;;  %v9801_v19 = vld [vmem:[#allocation20_spill] sm:$0xff] }
 0x3a3   : > { %v3898_v18 = vpop.f32.mrf.mxu1  ;;  %4250 = vmatmul.mubr.f32.gmra.mxu1 %v3028_v31  ;;  %4318 = vmatprep.subr.mxu1 %v2697_v14  ;;  %v2750_v31 = vld [vmem:[%s9293_s3 + $0xe0] sm:$0xff]  ;;  %v9800_v14 = vld [vmem:[#allocation40_spill] sm:$0xff] }
 0x3a4   : > { %v8643_v17 = vadd.f32 %v3898_v18, %v9793_v7  ;;  %4319 = vmatpush2.msra.mxu1 %v2696_v33  ;;  %4255 = vmatprep.mubr.f32.mxu1 %v3039_v54  ;;  %v2760_v16 = vld [vmem:[%s9293_s3 + $0x130] sm:$0xff] }
 0x3a5   : > { %v3900_v46 = vpop.f32.mrf.mxu1  ;;  %4320 = vmatprep.subr.mxu1 %v2695_v58  ;;  %v9802_v58 = vld [vmem:[#allocation21_spill] sm:$0xff] }
 0x3a6   : > { %v8652_v57 = vadd.f32 %v3900_v46, %v9794_v49  ;;  %4321 = vmatpush2.msra.mxu1 %v2694_v8  ;;  %v9803_v8 = vld [vmem:[#allocation23_spill] sm:$0xff]  ;;  %v2781_v46 = vld [vmem:[%s9293_s3 + $0x1d8] sm:$0xff] }
 0x3a7   : > { %v3904_v25 = vpop.f32.mrf.mxu1  ;;  %4256 = vmatmul.mubr.f32.gmra.mxu1 %v3038_v45  ;;  %4322 = vmatprep.subr.mxu1 %v2693_v22  ;;  %v2770_v45 = vld [vmem:[%s9293_s3 + $0x180] sm:$0xff] }
 0x3a8   : > { %v8655_v2 = vadd.f32 %v3904_v25, %v9795_v10  ;;  %4323 = vmatpush2.msra.mxu1 %v2692_v13  ;;  %4326 = vmatprep.mubr.f32.mxu1 %v2731_v24  ;;  %v9804_v24 = vld [vmem:[#allocation26_spill] sm:$0xff] }
 0x3a9   : > { %v3906_v3 = vpop.f32.mrf.mxu1  ;;  %4324 = vmatprep.subr.mxu1 %v2691_v1  ;;  %v9805_v1 = vld [vmem:[#allocation28_spill] sm:$0xff] }
 0x3aa   : > { %v8664_v5 = vadd.f32 %v3906_v3, %v9796_v30  ;;  %4325 = vmatpush2.msra.mxu1 %v2690_v27  ;;  %v2780_v27 = vld [vmem:[%s9293_s3 + $0x1d0] sm:$0xff]  ;;  %v9806_v3 = vld [vmem:[#allocation31_spill] sm:$0xff] }
 0x3ab   : > { %v3910_v48 = vpop.f32.mrf.mxu1  ;;  %4327 = vmatmul.mubr.f32.vlgmr.msra.gmra.mxu1 %v2730_v63  ;;  %v2791_v63 = vld [vmem:[%s9293_s3 + $0x228] sm:$0xff] }
 0x3ac   : > { %v8667_v56 = vadd.f32 %v3910_v48, %v9797_v6  ;;  %4332 = vmatprep.mubr.f32.mxu1 %v2741_v26  ;;  %v9807_v48 = vld [vmem:[#allocation33_spill] sm:$0xff] }
 0x3ad   : > { %v3912_v29 = vpop.f32.mrf.mxu1 }
 0x3ae   : > { %v8676_v47 = vadd.f32 %v3912_v29, %v9798_v52  ;;  %v9808_v52 = vld [vmem:[#allocation36_spill] sm:$0xff] }
 0x3af   : > { %v3916_v41 = vpop.f32.mrf.mxu1  ;;  %4333 = vmatmul.mubr.f32.gmra.mxu1 %v2740_v12  ;;  %v2790_v12 = vld [vmem:[%s9293_s3 + $0x220] sm:$0xff] }
 0x3b0   : > { %v8679_v34 = vadd.f32 %v3916_v41, %v9799_v44  ;;  %4338 = vmatprep.mubr.f32.mxu1 %v2751_v15  ;;  %v2801_v15 = vld [vmem:[%s9293_s3 + $0x278] sm:$0xff] }
 0x3b1   : > { %v3918_v59 = vpop.f32.mrf.mxu1 }
 0x3b2   : > { %v8688_v60 = vadd.f32 %v3918_v59, %v9800_v14 }
 0x3b3   : > { %v3922_v54 = vpop.f32.mrf.mxu1  ;;  %4339 = vmatmul.mubr.f32.gmra.mxu1 %v2750_v31  ;;  %v9809_v31 = vld [vmem:[#allocation38_spill] sm:$0xff] }
 0x3b4   : > { %v8691_v33 = vadd.f32 %v3922_v54, %v9801_v19  ;;  %4344 = vmatprep.mubr.f32.mxu1 %v2761_v39  ;;  %v2800_v39 = vld [vmem:[%s9293_s3 + $0x270] sm:$0xff]  ;;  %v2811_v54 = vld [vmem:[%s9293_s3 + $0x2c8] sm:$0xff] }
 0x3b5   : > { %v3924_v23 = vpop.f32.mrf.mxu1  ;;  %v9810_v19 = vld [vmem:[#allocation47_spill] sm:$0xff] }
 0x3b6   : > { %v8700_v18 = vadd.f32 %v3924_v23, %v9802_v58 }
 0x3b7   : > { %v3928_v9 = vpop.f32.mrf.mxu1  ;;  %4345 = vmatmul.mubr.f32.gmra.mxu1 %v2760_v16 }
 0x3b8   : > { %v8703_v7 = vadd.f32 %v3928_v9, %v9803_v8  ;;  %4350 = vmatprep.mubr.f32.mxu1 %v2771_v37  ;;  %v9811_v37 = vld [vmem:[#allocation41_spill] sm:$0xff]  ;;  %v2810_v9 = vld [vmem:[%s9293_s3 + $0x2c0] sm:$0xff] }
 0x3b9   : > { %v3930_v22 = vpop.f32.mrf.mxu1 }
 0x3ba   : > { %v8712_v13 = vadd.f32 %v3930_v22, %v9804_v24 }
 0x3bb   : > { %v3934_v49 = vpop.f32.mrf.mxu1  ;;  %4351 = vmatmul.mubr.f32.gmra.mxu1 %v2770_v45  ;;  %v2821_v45 = vld [vmem:[%s9293_s3 + $0x318] sm:$0xff] }
 0x3bc   : > { %v8715_v25 = vadd.f32 %v3934_v49, %v9805_v1  ;;  %4356 = vmatprep.mubr.f32.mxu1 %v2781_v46  ;;  %v2820_v49 = vld [vmem:[%s9293_s3 + $0x310] sm:$0xff] }
 0x3bd   : > { %v3936_v10 = vpop.f32.mrf.mxu1 }
 0x3be   : > { %v8724_v26 = vadd.f32 %v3936_v10, %v9806_v3  ;;  %v9812_v10 = vld [vmem:[#allocation49_spill] sm:$0xff] }
 0x3bf   : > { %v3940_v30 = vpop.f32.mrf.mxu1  ;;  %4357 = vmatmul.mubr.f32.gmra.mxu1 %v2780_v27  ;;  %v2831_v27 = vld [vmem:[%s9293_s3 + $0x368] sm:$0xff] }
 0x3c0   : > { %v8727_v6 = vadd.f32 %v3940_v30, %v9807_v48  ;;  %4362 = vmatprep.mubr.f32.mxu1 %v2791_v63  ;;  %v3300_v30 = vpop.f32.mrf.mxu0 }
 0x3c1   : > { %v3942_v29 = vpop.f32.mrf.mxu1 }
 0x3c2   : > { %v8736_v41 = vadd.f32 %v3942_v29, %v9808_v52 }
 0x3c3   : > { %v3946_v44 = vpop.f32.mrf.mxu1  ;;  %4363 = vmatmul.mubr.f32.gmra.mxu1 %v2790_v12  ;;  %v2841_v12 = vld [vmem:[%s9293_s3 + $0x3b8] sm:$0xff] }
 0x3c4   : > { %v8739_v59 = vadd.f32 %v3946_v44, %v9809_v31  ;;  %4368 = vmatprep.mubr.f32.mxu1 %v2801_v15  ;;  %v3302_v44 = vpop.f32.mrf.mxu0 }
 0x3c5   : > { %v3948_v14 = vpop.f32.mrf.mxu1 }
 0x3c6   : > { %v8748_v16 = vadd.f32 %v3948_v14, %v9810_v19  ;;  %v9813_v14 = vld [vmem:[#allocation3_spill] sm:$0xff]  ;;  %v9815_v19 = vld [vmem:[#allocation4_spill] sm:$0xff] }
 0x3c7   : > { %v3952_v23 = vpop.f32.mrf.mxu1  ;;  %4369 = vmatmul.mubr.f32.gmra.mxu1 %v2800_v39  ;;  %v2851_v39 = vld [vmem:[%s9293_s3 + $0x408] sm:$0xff] }
 0x3c8   : > { %v8751_v58 = vadd.f32 %v3952_v23, %v9811_v37  ;;  %4374 = vmatprep.mubr.f32.mxu1 %v2811_v54  ;;  %v3306_v37 = vpop.f32.mrf.mxu0 }
 0x3c9   : > { %v3954_v8 = vpop.f32.mrf.mxu1 }
 0x3ca   : > { %v8760_v22 = vadd.f32 %v3954_v8, %v8219_v35  ;;  %v2861_v8 = vld [vmem:[%s9293_s3 + $0x458] sm:$0xff] }
 0x3cb   : > { %v3958_v46 = vpop.f32.mrf.mxu1  ;;  %4375 = vmatmul.mubr.f32.gmra.mxu1 %v2810_v9 }
 0x3cc   : > { %v8763_v24 = vadd.f32 %v3958_v46, %v8227_v42  ;;  %4380 = vmatprep.mubr.f32.mxu1 %v2821_v45  ;;  %v2830_v42 = vld [vmem:[%s9293_s3 + $0x360] sm:$0xff]  ;;  %v9817_v45 = vld [vmem:[#allocation5_spill] sm:$0xff] }
 0x3cd   : > { %v3960_v1 = vpop.f32.mrf.mxu1 }
 0x3ce   : > { %v8772_v63 = vadd.f32 %v3960_v1, %v9812_v10  ;;  %v9819_v1 = vld [vmem:[#allocation7_spill] sm:$0xff]  ;;  %v2860_v10 = vld [vmem:[%s9293_s3 + $0x450] sm:$0xff] }
 0x3cf   : > { %v3964_v35 = vpop.f32.mrf.mxu1  ;;  %4381 = vmatmul.mubr.f32.gmra.mxu1 %v2820_v49 }
 0x3d0   : > { %v8775_v3 = vadd.f32 %v3964_v35, %v8262_v53  ;;  %4386 = vmatprep.mubr.f32.mxu1 %v2831_v27  ;;  %v2840_v53 = vld [vmem:[%s9293_s3 + $0x3b0] sm:$0xff]  ;;  %v3308_v35 = vpop.f32.mrf.mxu0 }
 0x3d1   : > { %v3966_v48 = vpop.f32.mrf.mxu1 }
 0x3d2   : > { %v8784_v29 = vadd.f32 %v3966_v48, %v8274_v4  ;;  %v2871_v48 = vld [vmem:[%s9293_s3 + $0x4a8] sm:$0xff] }
 0x3d3   : > { %v3970_v15 = vpop.f32.mrf.mxu1  ;;  %4387 = vmatmul.mubr.f32.gmra.mxu1 %v2830_v42 }
 0x3d4   : > { %v8787_v52 = vadd.f32 %v3970_v15, %v8286_v36  ;;  %4392 = vmatprep.mubr.f32.mxu1 %v2841_v12  ;;  %v2850_v36 = vld [vmem:[%s9293_s3 + $0x400] sm:$0xff]  ;;  %v9821_v12 = vld [vmem:[#allocation8_spill] sm:$0xff] }
 0x3d5   : > { %v3972_v31 = vpop.f32.mrf.mxu1 }
 0x3d6   : > { %v8796_v54 = vadd.f32 %v3972_v31, %v9813_v14  ;;  %v9823_v31 = vld [vmem:[#allocation52_spill] sm:$0xff]  ;;  %v2870_v14 = vld [vmem:[%s9293_s3 + $0x4a0] sm:$0xff] }
 0x3d7   : > { %v3976_v4 = vpop.f32.mrf.mxu1  ;;  %4393 = vmatmul.mubr.f32.gmra.mxu1 %v2840_v53 }
 0x3d8   : > { %9814 = vst [vmem:[#allocation48_spill] sm:$0xff] %v8796_v54  ;;  %v8799_v23 = vadd.f32 %v3976_v4, %v9815_v19  ;;  %4398 = vmatprep.mubr.f32.mxu1 %v2851_v39  ;;  %v3312_v4 = vpop.f32.mrf.mxu0 }
 0x3d9   : > { %v3978_v9 = vpop.f32.mrf.mxu1 }
 0x3da   : > { %9816 = vst [vmem:[#allocation77_spill] sm:$0xff] %v8799_v23  ;;  %v8808_v46 = vadd.f32 %v3978_v9, %v9817_v45  ;;  %v9825_v9 = vld [vmem:[#allocation93_spill] sm:$0xff]  ;;  %v9826_v45 = vld [vmem:[#allocation54_spill] sm:$0xff]  ;;  %v9843_v23 = vld [vmem:[#allocation64_spill] sm:$0xff] }
 0x3db   : > { %v3982_v49 = vpop.f32.mrf.mxu1  ;;  %4399 = vmatmul.mubr.f32.gmra.mxu1 %v2850_v36  ;;  %v2881_v36 = vld [vmem:[%s9293_s3 + $0x4f8] sm:$0xff] }
 0x3dc   : > { %9818 = vst [vmem:[#allocation2_spill] sm:$0xff] %v8808_v46  ;;  %v8811_v27 = vadd.f32 %v3982_v49, %v9819_v1  ;;  %4404 = vmatprep.mubr.f32.mxu1 %v2861_v8  ;;  %v3301_v8 = vadd.f32 %v3300_v30, %v9825_v9  ;;  %v2891_v30 = vld [vmem:[%s9293_s3 + $0x548] sm:$0xff] }
 0x3dd   : > { %v3984_v42 = vpop.f32.mrf.mxu1 }
 0x3de   : > { %9820 = vst [vmem:[#allocation79_spill] sm:$0xff] %v8811_v27  ;;  %v8820_v15 = vadd.f32 %v3984_v42, %v9821_v12  ;;  %v9828_v42 = vld [vmem:[#allocation55_spill] sm:$0xff]  ;;  %v2880_v12 = vld [vmem:[%s9293_s3 + $0x4f0] sm:$0xff]  ;;  %v2890_v27 = vld [vmem:[%s9293_s3 + $0x540] sm:$0xff] }
 0x3df   : > { %v3988_v53 = vpop.f32.mrf.mxu1  ;;  %4405 = vmatmul.mubr.f32.gmra.mxu1 %v2860_v10  ;;  %v3303_v10 = vadd.f32 %v3302_v44, %v9825_v9 }
 0x3e0   : > { %9822 = vst [vmem:[#allocation50_spill] sm:$0xff] %v8820_v15  ;;  %v8823_v39 = vadd.f32 %v3988_v53, %v9823_v31  ;;  %4410 = vmatprep.mubr.f32.mxu1 %v2871_v48  ;;  %v3314_v53 = vpop.f32.mrf.mxu0 }
 0x3e1   : > { %v3990_v19 = vpop.f32.mrf.mxu1 }
 0x3e2   : > { %9824 = vst [vmem:[#allocation80_spill] sm:$0xff] %v8823_v39  ;;  %v8833_v49 = vadd.f32 %v3990_v19, %v9826_v45  ;;  %v9830_v19 = vld [vmem:[#allocation92_spill] sm:$0xff]  ;;  %v9832_v39 = vld [vmem:[#allocation57_spill] sm:$0xff] }
 0x3e3   : > { %v3994_v1 = vpop.f32.mrf.mxu1  ;;  %4411 = vmatmul.mubr.f32.gmra.mxu1 %v2870_v14  ;;  %v3558_v45 = vadd.f32 %v9830_v19, %v3301_v8  ;;  %v3318_v8 = vpop.f32.mrf.mxu0 }
 0x3e4   : > { %9827 = vst [vmem:[#allocation6_spill] sm:$0xff] %v8833_v49  ;;  %v8837_v48 = vadd.f32 %v3994_v1, %v9828_v42  ;;  %4416 = vmatprep.mubr.f32.mxu1 %v2881_v36  ;;  %v9831_v49 = vld [vmem:[#allocation96_spill] sm:$0xff]  ;;  %v9834_v36 = vld [vmem:[#allocation94_spill] sm:$0xff] }
 0x3e5   : > { %v3996_v31 = vpop.f32.mrf.mxu1  ;;  %v3307_v14 = vadd.f32 %v3306_v37, %v9831_v49  ;;  %v3560_v1 = vadd.f32 %v9834_v36, %v3303_v10  ;;  %v3309_v42 = vadd.f32 %v3308_v35, %v9831_v49  ;;  %v2901_v37 = vld [vmem:[%s9293_s3 + $0x598] sm:$0xff]  ;;  %v9839_v36 = vld [vmem:[#allocation60_spill] sm:$0xff]  ;;  %v9840_v49 = vld [vmem:[#allocation62_spill] sm:$0xff] }
 0x3e6   : > { %9829 = vst [vmem:[#allocation51_spill] sm:$0xff] %v8837_v48  ;;  %v8848_v44 = vadd.f32 %v3996_v31, %v9832_v39  ;;  %v9835_v48 = vld [vmem:[#allocation59_spill] sm:$0xff]  ;;  %v9838_v31 = vld [vmem:[#allocation98_spill] sm:$0xff] }
 0x3e7   : > { %v4000_v9 = vpop.f32.mrf.mxu1  ;;  %4417 = vmatmul.mubr.f32.gmra.mxu1 %v2880_v12  ;;  %v9837_v39 = vld [vmem:[#allocation95_spill] sm:$0xff]  ;;  %v3313_v10 = vadd.f32 %v3312_v4, %v9838_v31  ;;  %v3817_v54 = vadd.f32 %v9843_v23, %v3560_v1  ;;  %v2900_v4 = vld [vmem:[%s9293_s3 + $0x590] sm:$0xff] }
 0x3e8   : > { %9833 = vst [vmem:[#allocation53_spill] sm:$0xff] %v8848_v44  ;;  %v8853_v15 = vadd.f32 %v4000_v9, %v9835_v48  ;;  %4422 = vmatprep.mubr.f32.mxu1 %v2891_v30  ;;  %v3564_v12 = vadd.f32 %v9837_v39, %v3307_v14  ;;  %v3815_v48 = vadd.f32 %v9840_v49, %v3558_v45  ;;  %v9841_v9 = vld [vmem:[#allocation97_spill] sm:$0xff]  ;;  %v3320_v14 = vpop.f32.mrf.mxu0  ;;  %v2911_v45 = vld [vmem:[%s9293_s3 + $0x5e8] sm:$0xff]  ;;  %v9847_v1 = vld [vmem:[#allocation100_spill] sm:$0xff] }
 0x3e9   : > { %v4002_v19 = vpop.f32.mrf.mxu1  ;;  %v3315_v44 = vadd.f32 %v3314_v53, %v9838_v31  ;;  %v9846_v31 = vld [vmem:[#allocation65_spill] sm:$0xff] }
 0x3ea   : > { %9836 = vst [vmem:[#allocation56_spill] sm:$0xff] %v8853_v15  ;;  %v8864_v35 = vadd.f32 %v4002_v19, %v9839_v36  ;;  %v3566_v15 = vadd.f32 %v9841_v9, %v3309_v42  ;;  %v9845_v42 = vld [vmem:[#allocation101_spill] sm:$0xff]  ;;  %v3821_v49 = vadd.f32 %v9846_v31, %v3564_v12  ;;  %v9848_v9 = vld [vmem:[#allocation67_spill] sm:$0xff]  ;;  %v9849_v12 = vld [vmem:[#allocation102_spill] sm:$0xff] }
 0x3eb   : > { %v4071_v30 = vpop.f32.mrf.mxu1  ;;  %4423 = vmatmul.mubr.f32.gmra.mxu1 %v2890_v27  ;;  %v9844_v27 = vld [vmem:[#allocation99_spill] sm:$0xff]  ;;  %v3319_v36 = vadd.f32 %v3318_v8, %v9845_v42  ;;  %v9852_v31 = vld [vmem:[#allocation70_spill] sm:$0xff] }
 0x3ec   : > { %v8869_v46 = vadd.f32 %v4071_v30, %v3815_v48  ;;  %4428 = vmatprep.mubr.f32.mxu1 %v2901_v37  ;;  %v3570_v39 = vadd.f32 %v9844_v27, %v3313_v10  ;;  %v3572_v37 = vadd.f32 %v9847_v1, %v3315_v44  ;;  %v3321_v48 = vadd.f32 %v3320_v14, %v9845_v42  ;;  %v2910_v10 = vld [vmem:[%s9293_s3 + $0x5e0] sm:$0xff]  ;;  %v9850_v44 = vld [vmem:[#allocation69_spill] sm:$0xff]  ;;  %v9851_v42 = vld [vmem:[#allocation103_spill] sm:$0xff] }
 0x3ed   : > { %v4073_v19 = vpop.f32.mrf.mxu1 }
 0x3ee   : > { %9842 = vst [vmem:[#allocation58_spill] sm:$0xff] %v8869_v46  ;;  %v8880_v53 = vadd.f32 %v4073_v19, %v3817_v54  ;;  %v3823_v46 = vadd.f32 %v9848_v9, %v3566_v15  ;;  %v2921_v54 = vld [vmem:[%s9293_s3 + $0x638] sm:$0xff]  ;;  %v3827_v14 = vadd.f32 %v9850_v44, %v3570_v39  ;;  %v3578_v15 = vadd.f32 %v9851_v42, %v3321_v48  ;;  %v9853_v39 = vld [vmem:[#allocation42_spill] sm:$0xff] }
 0x3ef   : > { %v4077_v23 = vpop.f32.mrf.mxu1  ;;  %4429 = vmatmul.mubr.f32.gmra.mxu1 %v2900_v4  ;;  %v3576_v4 = vadd.f32 %v9849_v12, %v3319_v36  ;;  %v2941_v44 = vld [vmem:[%s9293_s3 + $0x6d8] sm:$0xff] }
 0x3f0   : > { %v8885_v30 = vadd.f32 %v4077_v23, %v3821_v49  ;;  %4434 = vmatprep.mubr.f32.mxu1 %v2911_v45  ;;  %v3829_v49 = vadd.f32 %v9852_v31, %v3572_v37  ;;  %v2920_v23 = vld [vmem:[%s9293_s3 + $0x630] sm:$0xff] }
 0x3f1   : > { %v4079_v8 = vpop.f32.mrf.mxu1  ;;  %v3833_v9 = vadd.f32 %v9853_v39, %v3576_v4  ;;  %v9855_v4 = vld [vmem:[#allocation72_spill] sm:$0xff]  ;;  %v9857_v39 = vld [vmem:[#allocation45_spill] sm:$0xff] }
 0x3f2   : > { %v8895_v19 = vadd.f32 %v4079_v8, %v3823_v46  ;;  %v2931_v46 = vld [vmem:[%s9293_s3 + $0x688] sm:$0xff] }
 0x3f3   : > { %v4083_v27 = vpop.f32.mrf.mxu1  ;;  %4435 = vmatmul.mubr.f32.gmra.mxu1 %v2910_v10  ;;  %v9854_v8 = vld [vmem:[#allocation43_spill] sm:$0xff] }
 0x3f4   : > { %v8899_v45 = vadd.f32 %v4083_v27, %v3827_v14  ;;  %4440 = vmatprep.mubr.f32.mxu1 %v2921_v54  ;;  %v3835_v37 = vadd.f32 %v9854_v8, %v3578_v15  ;;  %v2930_v54 = vld [vmem:[%s9293_s3 + $0x680] sm:$0xff]  ;;  %v2940_v15 = vld [vmem:[%s9293_s3 + $0x6d0] sm:$0xff] }
 0x3f5   : > { %v4085_v1 = vpop.f32.mrf.mxu1 }
 0x3f6   : > { %v8908_v36 = vadd.f32 %v4085_v1, %v3829_v49  ;;  %v2951_v49 = vld [vmem:[%s9293_s3 + $0x728] sm:$0xff] }
 0x3f7   : > { %v4089_v10 = vpop.f32.mrf.mxu1  ;;  %4441 = vmatmul.mubr.f32.gmra.mxu1 %v2920_v23  ;;  %v9856_v23 = vld [vmem:[#allocation44_spill] sm:$0xff] }
 0x3f8   : > { %v8911_v48 = vadd.f32 %v4089_v10, %v3833_v9  ;;  %4446 = vmatprep.mubr.f32.mxu1 %v2931_v46  ;;  %v2950_v10 = vld [vmem:[%s9293_s3 + $0x720] sm:$0xff] }
 0x3f9   : > { %v4091_v12 = vpop.f32.mrf.mxu1 }
 0x3fa   : > { %v8920_v14 = vadd.f32 %v4091_v12, %v3835_v37  ;;  %v2961_v37 = vld [vmem:[%s9293_s3 + $0x778] sm:$0xff] }
 0x3fb   : > { %v4095_v27 = vpop.f32.mrf.mxu1  ;;  %4447 = vmatmul.mubr.f32.gmra.mxu1 %v2930_v54  ;;  %v9858_v54 = vld [vmem:[#allocation74_spill] sm:$0xff] }
 0x3fc   : > { %v8923_v42 = vadd.f32 %v4095_v27, %v9855_v4  ;;  %4452 = vmatprep.mubr.f32.mxu1 %v2941_v44  ;;  %v9859_v27 = vld [vmem:[#allocation46_spill] sm:$0xff] }
 0x3fd   : > { %v4097_v31 = vpop.f32.mrf.mxu1 }
 0x3fe   : > { %v8932_v1 = vadd.f32 %v4097_v31, %v9856_v23  ;;  %v9860_v23 = vld [vmem:[#allocation75_spill] sm:$0xff] }
 0x3ff   : > { %v4101_v46 = vpop.f32.mrf.mxu1  ;;  %4453 = vmatmul.mubr.f32.gmra.mxu1 %v2940_v15  ;;  %v2960_v15 = vld [vmem:[%s9293_s3 + $0x770] sm:$0xff] }
 0x400   : > { %v8935_v9 = vadd.f32 %v4101_v46, %v9857_v39  ;;  %4458 = vmatprep.mubr.f32.mxu1 %v2951_v49  ;;  %v2971_v49 = vld [vmem:[%s9293_s3 + $0x7c8] sm:$0xff] }
 0x401   : > { %v4103_v8 = vpop.f32.mrf.mxu1 }
 0x402   : > { %v8944_v12 = vadd.f32 %v4103_v8, %v9858_v54  ;;  %v2970_v8 = vld [vmem:[%s9293_s3 + $0x7c0] sm:$0xff]  ;;  %v2981_v54 = vld [vmem:[%s9293_s3 + $0x818] sm:$0xff] }
 0x403   : > { %v4107_v44 = vpop.f32.mrf.mxu1  ;;  %4459 = vmatmul.mubr.f32.gmra.mxu1 %v2950_v10 }
 0x404   : > { %v8947_v4 = vadd.f32 %v4107_v44, %v9859_v27  ;;  %4464 = vmatprep.mubr.f32.mxu1 %v2961_v37 }
 0x405   : > { %v4109_v31 = vpop.f32.mrf.mxu1 }
 0x406   : > { %v8956_v46 = vadd.f32 %v4109_v31, %v9860_v23 }
 0x407   : > { %v4113_v39 = vpop.f32.mrf.mxu1  ;;  %4465 = vmatmul.mubr.f32.gmra.mxu1 %v2960_v15 }
 0x408   : > { %v8959_v10 = vadd.f32 %v4113_v39, %v8506_v43  ;;  %4470 = vmatprep.mubr.f32.mxu1 %v2971_v49  ;;  %v2980_v43 = vld [vmem:[%s9293_s3 + $0x810] sm:$0xff]  ;;  %v2991_v49 = vld [vmem:[%s9293_s3 + $0x868] sm:$0xff] }
 0x409   : > { %v4115_v37 = vpop.f32.mrf.mxu1 }
 0x40a   : > { %v8968_v44 = vadd.f32 %v4115_v37, %v8514_v61  ;;  %v3001_v37 = vld [vmem:[%s9293_s3 + $0x8b8] sm:$0xff] }
 0x40b   : > { %v4119_v27 = vpop.f32.mrf.mxu1  ;;  %4471 = vmatmul.mubr.f32.gmra.mxu1 %v2970_v8 }
 0x40c   : > { %v8971_v15 = vadd.f32 %v4119_v27, %v8522_v32  ;;  %4476 = vmatprep.mubr.f32.mxu1 %v2981_v54  ;;  %v2990_v32 = vld [vmem:[%s9293_s3 + $0x860] sm:$0xff] }
 0x40d   : > { %v4121_v31 = vpop.f32.mrf.mxu1 }
 0x40e   : > { %v8980_v23 = vadd.f32 %v4121_v31, %v8531_v20  ;;  %v3011_v31 = vld [vmem:[%s9293_s3 + $0x908] sm:$0xff] }
 0x40f   : > { %v4125_v61 = vpop.f32.mrf.mxu1  ;;  %4477 = vmatmul.mubr.f32.gmra.mxu1 %v2980_v43 }
 0x410   : > { %v8983_v39 = vadd.f32 %v4125_v61, %v8543_v40  ;;  %4482 = vmatprep.mubr.f32.mxu1 %v2991_v49  ;;  %v3000_v40 = vld [vmem:[%s9293_s3 + $0x8b0] sm:$0xff] }
 0x411   : > { %v4127_v8 = vpop.f32.mrf.mxu1 }
 0x412   : > { %v8992_v54 = vadd.f32 %v4127_v8, %v8556_v62  ;;  %v3021_v8 = vld [vmem:[%s9293_s3 + $0x958] sm:$0xff] }
 0x413   : > { %v4131_v20 = vpop.f32.mrf.mxu1  ;;  %4483 = vmatmul.mubr.f32.gmra.mxu1 %v2990_v32 }
 0x414   : > { %v8995_v27 = vadd.f32 %v4131_v20, %v8563_v50  ;;  %4488 = vmatprep.mubr.f32.mxu1 %v3001_v37  ;;  %v3010_v50 = vld [vmem:[%s9293_s3 + $0x900] sm:$0xff] }
 0x415   : > { %v4133_v43 = vpop.f32.mrf.mxu1 }
 0x416   : > { %v9004_v49 = vadd.f32 %v4133_v43, %v8576_v0  ;;  %v3031_v43 = vld [vmem:[%s9293_s3 + $0x9a8] sm:$0xff] }
 0x417   : > { %v4137_v62 = vpop.f32.mrf.mxu1  ;;  %4489 = vmatmul.mubr.f32.gmra.mxu1 %v3000_v40 }
 0x418   : > { %v9007_v61 = vadd.f32 %v4137_v62, %v8583_v51  ;;  %4494 = vmatprep.mubr.f32.mxu1 %v3011_v31  ;;  %v3020_v51 = vld [vmem:[%s9293_s3 + $0x950] sm:$0xff] }
 0x419   : > { %v4139_v32 = vpop.f32.mrf.mxu1 }
 0x41a   : > { %v9016_v37 = vadd.f32 %v4139_v32, %v8596_v38  ;;  %v3041_v32 = vld [vmem:[%s9293_s3 + $0x9f8] sm:$0xff] }
 0x41b   : > { %v4143_v0 = vpop.f32.mrf.mxu1  ;;  %4495 = vmatmul.mubr.f32.gmra.mxu1 %v3010_v50 }
 0x41c   : > { %v9019_v20 = vadd.f32 %v4143_v0, %v8603_v28  ;;  %4500 = vmatprep.mubr.f32.mxu1 %v3021_v8  ;;  %v3030_v28 = vld [vmem:[%s9293_s3 + $0x9a0] sm:$0xff] }
 0x41d   : > { %v4145_v40 = vpop.f32.mrf.mxu1 }
 0x41e   : > { %v9028_v31 = vadd.f32 %v4145_v40, %v8616_v11 }
 0x41f   : > { %v4149_v38 = vpop.f32.mrf.mxu1  ;;  %4501 = vmatmul.mubr.f32.gmra.mxu1 %v3020_v51 }
 0x420   : > { %v9031_v62 = vadd.f32 %v4149_v38, %v8623_v55  ;;  %4506 = vmatprep.mubr.f32.mxu1 %v3031_v43  ;;  %v3040_v55 = vld [vmem:[%s9293_s3 + $0x9f0] sm:$0xff] }
 0x421   : > { %v4151_v50 = vpop.f32.mrf.mxu1 }
 0x422   : > { %v9040_v8 = vadd.f32 %v4151_v50, %v8636_v21 }
 0x423   : > { %v4155_v11 = vpop.f32.mrf.mxu1  ;;  %4507 = vmatmul.mubr.f32.gmra.mxu1 %v3030_v28 }
 0x424   : > { %v9043_v0 = vadd.f32 %v4155_v11, %v8643_v17  ;;  %4512 = vmatprep.mubr.f32.mxu1 %v3041_v32 }
 0x425   : > { %v4157_v51 = vpop.f32.mrf.mxu1 }
 0x426   : > { %9861 = vst [vmem:[#allocation11_spill] sm:$0xff] %v9043_v0  ;;  %v9049_v40 = vadd.f32 %v4157_v51, %v8652_v57 }
 0x427   : > { %v4161_v43 = vpop.f32.mrf.mxu1  ;;  %4513 = vmatmul.mubr.f32.gmra.mxu1 %v3040_v55 }
 0x428   : > { %v9052_v38 = vadd.f32 %v4161_v43, %v8655_v2 }
 0x429   : > { %v4163_v21 = vpop.f32.mrf.mxu1 }
 0x42a   : > { %v9055_v28 = vadd.f32 %v4163_v21, %v8664_v5 }
 0x42b   : > { %v4167_v17 = vpop.f32.mrf.mxu1 }
 0x42c   : > { %v9058_v50 = vadd.f32 %v4167_v17, %v8667_v56 }
 0x42d   : > { %v4169_v32 = vpop.f32.mrf.mxu1 }
 0x42e   : > { %v9061_v11 = vadd.f32 %v4169_v32, %v8676_v47 }
 0x42f   : > { %v4173_v0 = vpop.f32.mrf.mxu1 }
 0x430   : > { %v9064_v57 = vadd.f32 %v4173_v0, %v8679_v34 }
 0x431   : > { %v4175_v55 = vpop.f32.mrf.mxu1 }
 0x432   : > { %v9067_v2 = vadd.f32 %v4175_v55, %v8688_v60 }
 0x433   : > { %v4179_v51 = vpop.f32.mrf.mxu1 }
 0x434   : > { %v9070_v5 = vadd.f32 %v4179_v51, %v8691_v33 }
 0x435   : > { %v4181_v43 = vpop.f32.mrf.mxu1 }
 0x436   : > { %v9073_v56 = vadd.f32 %v4181_v43, %v8700_v18 }
 0x437   : > { %v4185_v21 = vpop.f32.mrf.mxu1 }
 0x438   : > { %v9076_v47 = vadd.f32 %v4185_v21, %v8703_v7 }
 0x439   : > { %v4187_v17 = vpop.f32.mrf.mxu1 }
 0x43a   : > { %v9079_v34 = vadd.f32 %v4187_v17, %v8712_v13 }
 0x43b   : > { %v4191_v0 = vpop.f32.mrf.mxu1 }
 0x43c   : > { %v9082_v60 = vadd.f32 %v4191_v0, %v8715_v25 }
 0x43d   : > { %v4193_v32 = vpop.f32.mrf.mxu1 }
 0x43e   : > { %v9085_v33 = vadd.f32 %v4193_v32, %v8724_v26 }
 0x43f   : > { %v4197_v55 = vpop.f32.mrf.mxu1 }
 0x440   : > { %v9088_v18 = vadd.f32 %v4197_v55, %v8727_v6 }
 0x441   : > { %v4199_v51 = vpop.f32.mrf.mxu1 }
 0x442   : > { %v9091_v7 = vadd.f32 %v4199_v51, %v8736_v41 }
 0x443   : > { %v4203_v43 = vpop.f32.mrf.mxu1 }
 0x444   : > { %v9094_v13 = vadd.f32 %v4203_v43, %v8739_v59 }
 0x445   : > { %v4205_v21 = vpop.f32.mrf.mxu1 }
 0x446   : > { %v9097_v25 = vadd.f32 %v4205_v21, %v8748_v16 }
 0x447   : > { %v4209_v17 = vpop.f32.mrf.mxu1 }
 0x448   : > { %v9100_v26 = vadd.f32 %v4209_v17, %v8751_v58 }
 0x449   : > { %v4211_v0 = vpop.f32.mrf.mxu1 }
 0x44a   : > { %v9103_v6 = vadd.f32 %v4211_v0, %v8760_v22  ;;  %v9867_v0 = vld [vmem:[#allocation48_spill] sm:$0xff] }
 0x44b   : > { %v4215_v32 = vpop.f32.mrf.mxu1 }
 0x44c   : > { %v9106_v41 = vadd.f32 %v4215_v32, %v8763_v24 }
 0x44d   : > { %v4217_v55 = vpop.f32.mrf.mxu1 }
 0x44e   : > { %9862 = vst [vmem:[#allocation61_spill] sm:$0xff] %v9106_v41  ;;  %v9109_v59 = vadd.f32 %v4217_v55, %v8772_v63  ;;  %v9869_v41 = vld [vmem:[#allocation77_spill] sm:$0xff] }
 0x44f   : > { %v4221_v51 = vpop.f32.mrf.mxu1 }
 0x450   : > { %9863 = vst [vmem:[#allocation13_spill] sm:$0xff] %v9109_v59  ;;  %v9112_v16 = vadd.f32 %v4221_v51, %v8775_v3  ;;  %v9871_v59 = vld [vmem:[#allocation2_spill] sm:$0xff] }
 0x451   : > { %v4223_v43 = vpop.f32.mrf.mxu1 }
 0x452   : > { %9864 = vst [vmem:[#allocation63_spill] sm:$0xff] %v9112_v16  ;;  %v9115_v58 = vadd.f32 %v4223_v43, %v8784_v29  ;;  %v9873_v16 = vld [vmem:[#allocation79_spill] sm:$0xff] }
 0x453   : > { %v4227_v21 = vpop.f32.mrf.mxu1 }
 0x454   : > { %9865 = vst [vmem:[#allocation86_spill] sm:$0xff] %v9115_v58  ;;  %v9118_v22 = vadd.f32 %v4227_v21, %v8787_v52  ;;  %v9875_v52 = vld [vmem:[#allocation50_spill] sm:$0xff]  ;;  %v9879_v58 = vld [vmem:[#allocation53_spill] sm:$0xff] }
 0x455   : > { %v4229_v17 = vpop.f32.mrf.mxu1 }
 0x456   : > { %9866 = vst [vmem:[#allocation66_spill] sm:$0xff] %v9118_v22  ;;  %v9121_v24 = vadd.f32 %v4229_v17, %v9867_v0  ;;  %v9876_v17 = vld [vmem:[#allocation80_spill] sm:$0xff] }
 0x457   : > { %v4233_v32 = vpop.f32.mrf.mxu1 }
 0x458   : > { %9868 = vst [vmem:[#allocation14_spill] sm:$0xff] %v9121_v24  ;;  %v9124_v63 = vadd.f32 %v4233_v32, %v9869_v41  ;;  %v9877_v41 = vld [vmem:[#allocation6_spill] sm:$0xff] }
 0x459   : > { %v4235_v55 = vpop.f32.mrf.mxu1 }
 0x45a   : > { %9870 = vst [vmem:[#allocation88_spill] sm:$0xff] %v9124_v63  ;;  %v9127_v3 = vadd.f32 %v4235_v55, %v9871_v59  ;;  %v9878_v59 = vld [vmem:[#allocation51_spill] sm:$0xff] }
 0x45b   : > { %v4239_v51 = vpop.f32.mrf.mxu1 }
 0x45c   : > { %9872 = vst [vmem:[#allocation90_spill] sm:$0xff] %v9127_v3  ;;  %v9130_v29 = vadd.f32 %v4239_v51, %v9873_v16 }
 0x45d   : > { %v4241_v43 = vpop.f32.mrf.mxu1 }
 0x45e   : > { %9874 = vst [vmem:[#allocation104_spill] sm:$0xff] %v9130_v29  ;;  %v9133_v21 = vadd.f32 %v4241_v43, %v9875_v52  ;;  %v9880_v29 = vld [vmem:[#allocation56_spill] sm:$0xff] }
 0x45f   : > { %v4245_v22 = vpop.f32.mrf.mxu1 }
 0x460   : > { %v9136_v0 = vadd.f32 %v4245_v22, %v9876_v17 }
 0x461   : > { %v4247_v24 = vpop.f32.mrf.mxu1 }
 0x462   : > { %v9139_v32 = vadd.f32 %v4247_v24, %v9877_v41  ;;  %v9883_v24 = vld [vmem:[#allocation58_spill] sm:$0xff] }
 0x463   : > { %v4251_v63 = vpop.f32.mrf.mxu1 }
 0x464   : > { %v9142_v55 = vadd.f32 %v4251_v63, %v9878_v59 }
 0x465   : > { %v4253_v3 = vpop.f32.mrf.mxu1 }
 0x466   : > { %v9145_v16 = vadd.f32 %v4253_v3, %v9879_v58 }
 0x467   : > { %v4257_v51 = vpop.f32.mrf.mxu1 }
 0x468   : > { %v9148_v43 = vadd.f32 %v4257_v51, %v9880_v29 }
 0x469   : > { %v4259_v52 = vpop.f32.mrf.mxu1 }
 0x46a   : > { %9881 = vst [vmem:[#allocation22_spill] sm:$0xff] %v9148_v43  ;;  %v9151_v22 = vadd.f32 %v4259_v52, %v8864_v35 }
 0x46b   : > { %v4328_v17 = vpop.f32.mrf.mxu1 }
 0x46c   : > { %9882 = vst [vmem:[#allocation24_spill] sm:$0xff] %v9151_v22  ;;  %v4329_v41 = vadd.f32 %v4328_v17, %v9883_v24 }
 0x46d   : > { %v4330_v58 = vpop.f32.mrf.mxu1 }
 0x46e   : > { %v4519_v63 = vmax.f32 %v4329_v41, 0.0  ;;  %v4331_v3 = vadd.f32 %v4330_v58, %v8880_v53 }
 0x46f   : > { %v4334_v29 = vpop.f32.mrf.mxu1 }
 0x470   : > { %4583 = vst [vmem:[%s9158_s13] sm:$0xff] %v4519_v63  ;;  %v4520_v35 = vmax.f32 %v4331_v3, 0.0  ;;  %v4335_v59 = vadd.f32 %v4334_v29, %v8885_v30 }
 0x471   : > { %v4336_v51 = vpop.f32.mrf.mxu1 }
 0x472   : > { %4584 = vst [vmem:[%s9158_s13 + $0x8] sm:$0xff] %v4520_v35  ;;  %v4521_v52 = vmax.f32 %v4335_v59, 0.0  ;;  %v4337_v17 = vadd.f32 %v4336_v51, %v8895_v19 }
 0x473   : > { %v4340_v24 = vpop.f32.mrf.mxu1 }
 0x474   : > { %4585 = vst [vmem:[%s9158_s13 + $0x10] sm:$0xff] %v4521_v52  ;;  %v4522_v22 = vmax.f32 %v4337_v17, 0.0  ;;  %v4341_v41 = vadd.f32 %v4340_v24, %v8899_v45 }
 0x475   : > { %v4342_v43 = vpop.f32.mrf.mxu1 }
 0x476   : > { %4586 = vst [vmem:[%s9158_s13 + $0x18] sm:$0xff] %v4522_v22  ;;  %v4523_v53 = vmax.f32 %v4341_v41, 0.0  ;;  %v4343_v58 = vadd.f32 %v4342_v43, %v8908_v36 }
 0x477   : > { %v4346_v63 = vpop.f32.mrf.mxu1 }
 0x478   : > { %4587 = vst [vmem:[%s9158_s13 + $0x20] sm:$0xff] %v4523_v53  ;;  %v4524_v30 = vmax.f32 %v4343_v58, 0.0  ;;  %v4347_v3 = vadd.f32 %v4346_v63, %v8911_v48 }
 0x479   : > { %v4348_v29 = vpop.f32.mrf.mxu1 }
 0x47a   : > { %4588 = vst [vmem:[%s9158_s13 + $0x28] sm:$0xff] %v4524_v30  ;;  %v4525_v19 = vmax.f32 %v4347_v3, 0.0  ;;  %v4349_v35 = vadd.f32 %v4348_v29, %v8920_v14 }
 0x47b   : > { %v4352_v59 = vpop.f32.mrf.mxu1 }
 0x47c   : > { %4589 = vst [vmem:[%s9158_s13 + $0x30] sm:$0xff] %v4525_v19  ;;  %v4526_v45 = vmax.f32 %v4349_v35, 0.0  ;;  %v4353_v22 = vadd.f32 %v4352_v59, %v8923_v42 }
 0x47d   : > { %v4354_v51 = vpop.f32.mrf.mxu1 }
 0x47e   : > { %4590 = vst [vmem:[%s9158_s13 + $0x38] sm:$0xff] %v4526_v45  ;;  %v4527_v36 = vmax.f32 %v4353_v22, 0.0  ;;  %v4355_v43 = vadd.f32 %v4354_v51, %v8932_v1 }
 0x47f   : > { %v4358_v52 = vpop.f32.mrf.mxu1 }
 0x480   : > { %4591 = vst [vmem:[%s9158_s13 + $0x40] sm:$0xff] %v4527_v36  ;;  %v4528_v48 = vmax.f32 %v4355_v43, 0.0  ;;  %v4359_v17 = vadd.f32 %v4358_v52, %v8935_v9 }
 0x481   : > { %v4360_v24 = vpop.f32.mrf.mxu1 }
 0x482   : > { %4592 = vst [vmem:[%s9158_s13 + $0x48] sm:$0xff] %v4528_v48  ;;  %v4529_v14 = vmax.f32 %v4359_v17, 0.0  ;;  %v4361_v41 = vadd.f32 %v4360_v24, %v8944_v12 }
 0x483   : > { %v4364_v53 = vpop.f32.mrf.mxu1 }
 0x484   : > { %4593 = vst [vmem:[%s9158_s13 + $0x50] sm:$0xff] %v4529_v14  ;;  %v4530_v42 = vmax.f32 %v4361_v41, 0.0  ;;  %v4365_v58 = vadd.f32 %v4364_v53, %v8947_v4 }
 0x485   : > { %v4366_v63 = vpop.f32.mrf.mxu1 }
 0x486   : > { %4594 = vst [vmem:[%s9158_s13 + $0x58] sm:$0xff] %v4530_v42  ;;  %v4531_v1 = vmax.f32 %v4365_v58, 0.0  ;;  %v4367_v30 = vadd.f32 %v4366_v63, %v8956_v46 }
 0x487   : > { %v4370_v3 = vpop.f32.mrf.mxu1 }
 0x488   : > { %4595 = vst [vmem:[%s9158_s13 + $0x60] sm:$0xff] %v4531_v1  ;;  %v4532_v9 = vmax.f32 %v4367_v30, 0.0  ;;  %v4371_v29 = vadd.f32 %v4370_v3, %v8959_v10 }
 0x489   : > { %v4372_v19 = vpop.f32.mrf.mxu1 }
 0x48a   : > { %4596 = vst [vmem:[%s9158_s13 + $0x68] sm:$0xff] %v4532_v9  ;;  %v4533_v12 = vmax.f32 %v4371_v29, 0.0  ;;  %v4373_v35 = vadd.f32 %v4372_v19, %v8968_v44 }
 0x48b   : > { %v4376_v59 = vpop.f32.mrf.mxu1 }
 0x48c   : > { %4597 = vst [vmem:[%s9158_s13 + $0x70] sm:$0xff] %v4533_v12  ;;  %v4534_v4 = vmax.f32 %v4373_v35, 0.0  ;;  %v4377_v45 = vadd.f32 %v4376_v59, %v8971_v15 }
 0x48d   : > { %v4378_v22 = vpop.f32.mrf.mxu1 }
 0x48e   : > { %4598 = vst [vmem:[%s9158_s13 + $0x78] sm:$0xff] %v4534_v4  ;;  %v4535_v46 = vmax.f32 %v4377_v45, 0.0  ;;  %v4379_v51 = vadd.f32 %v4378_v22, %v8980_v23  ;;  %v9884_v4 = vld [vmem:[#allocation11_spill] sm:$0xff] }
 0x48f   : > { %v4382_v36 = vpop.f32.mrf.mxu1 }
 0x490   : > { %4599 = vst [vmem:[%s9158_s13 + $0x80] sm:$0xff] %v4535_v46  ;;  %v4536_v10 = vmax.f32 %v4379_v51, 0.0  ;;  %v4383_v43 = vadd.f32 %v4382_v36, %v8983_v39 }
 0x491   : > { %v4384_v52 = vpop.f32.mrf.mxu1 }
 0x492   : > { %4600 = vst [vmem:[%s9158_s13 + $0x88] sm:$0xff] %v4536_v10  ;;  %v4537_v44 = vmax.f32 %v4383_v43, 0.0  ;;  %v4385_v48 = vadd.f32 %v4384_v52, %v8992_v54 }
 0x493   : > { %v4388_v17 = vpop.f32.mrf.mxu1 }
 0x494   : > { %4601 = vst [vmem:[%s9158_s13 + $0x90] sm:$0xff] %v4537_v44  ;;  %v4538_v15 = vmax.f32 %v4385_v48, 0.0  ;;  %v4389_v24 = vadd.f32 %v4388_v17, %v8995_v27 }
 0x495   : > { %v4390_v14 = vpop.f32.mrf.mxu1 }
 0x496   : > { %4602 = vst [vmem:[%s9158_s13 + $0x98] sm:$0xff] %v4538_v15  ;;  %v4539_v23 = vmax.f32 %v4389_v24, 0.0  ;;  %v4391_v41 = vadd.f32 %v4390_v14, %v9004_v49 }
 0x497   : > { %v4394_v53 = vpop.f32.mrf.mxu1 }
 0x498   : > { %4603 = vst [vmem:[%s9158_s13 + $0xa0] sm:$0xff] %v4539_v23  ;;  %v4540_v39 = vmax.f32 %v4391_v41, 0.0  ;;  %v4395_v42 = vadd.f32 %v4394_v53, %v9007_v61 }
 0x499   : > { %v4396_v58 = vpop.f32.mrf.mxu1 }
 0x49a   : > { %4604 = vst [vmem:[%s9158_s13 + $0xa8] sm:$0xff] %v4540_v39  ;;  %v4541_v54 = vmax.f32 %v4395_v42, 0.0  ;;  %v4397_v63 = vadd.f32 %v4396_v58, %v9016_v37 }
 0x49b   : > { %v4400_v1 = vpop.f32.mrf.mxu1 }
 0x49c   : > { %4605 = vst [vmem:[%s9158_s13 + $0xb0] sm:$0xff] %v4541_v54  ;;  %v4542_v27 = vmax.f32 %v4397_v63, 0.0  ;;  %v4401_v30 = vadd.f32 %v4400_v1, %v9019_v20 }
 0x49d   : > { %v4402_v3 = vpop.f32.mrf.mxu1 }
 0x49e   : > { %4606 = vst [vmem:[%s9158_s13 + $0xb8] sm:$0xff] %v4542_v27  ;;  %v4543_v49 = vmax.f32 %v4401_v30, 0.0  ;;  %v4403_v9 = vadd.f32 %v4402_v3, %v9028_v31 }
 0x49f   : > { %v4406_v29 = vpop.f32.mrf.mxu1 }
 0x4a0   : > { %4607 = vst [vmem:[%s9158_s13 + $0xc0] sm:$0xff] %v4543_v49  ;;  %v4544_v61 = vmax.f32 %v4403_v9, 0.0  ;;  %v4407_v19 = vadd.f32 %v4406_v29, %v9031_v62 }
 0x4a1   : > { %v4408_v12 = vpop.f32.mrf.mxu1 }
 0x4a2   : > { %4608 = vst [vmem:[%s9158_s13 + $0xc8] sm:$0xff] %v4544_v61  ;;  %v4545_v37 = vmax.f32 %v4407_v19, 0.0  ;;  %v4409_v35 = vadd.f32 %v4408_v12, %v9040_v8 }
 0x4a3   : > { %v4412_v59 = vpop.f32.mrf.mxu1 }
 0x4a4   : > { %4609 = vst [vmem:[%s9158_s13 + $0xd0] sm:$0xff] %v4545_v37  ;;  %v4546_v20 = vmax.f32 %v4409_v35, 0.0  ;;  %v4413_v45 = vadd.f32 %v4412_v59, %v9884_v4 }
 0x4a5   : > { %v4414_v22 = vpop.f32.mrf.mxu1 }
 0x4a6   : > { %4610 = vst [vmem:[%s9158_s13 + $0xd8] sm:$0xff] %v4546_v20  ;;  %v4547_v31 = vmax.f32 %v4413_v45, 0.0  ;;  %v4415_v46 = vadd.f32 %v4414_v22, %v9049_v40 }
 0x4a7   : > { %v4418_v51 = vpop.f32.mrf.mxu1 }
 0x4a8   : > { %4611 = vst [vmem:[%s9158_s13 + $0xe0] sm:$0xff] %v4547_v31  ;;  %v4548_v62 = vmax.f32 %v4415_v46, 0.0  ;;  %v4419_v36 = vadd.f32 %v4418_v51, %v9052_v38  ;;  %v9885_v51 = vld [vmem:[#allocation61_spill] sm:$0xff] }
 0x4a9   : > { %v4420_v10 = vpop.f32.mrf.mxu1 }
 0x4aa   : > { %4612 = vst [vmem:[%s9158_s13 + $0xe8] sm:$0xff] %v4548_v62  ;;  %v4549_v8 = vmax.f32 %v4419_v36, 0.0  ;;  %v4421_v43 = vadd.f32 %v4420_v10, %v9055_v28  ;;  %v9886_v10 = vld [vmem:[#allocation13_spill] sm:$0xff] }
 0x4ab   : > { %v4424_v52 = vpop.f32.mrf.mxu1 }
 0x4ac   : > { %4613 = vst [vmem:[%s9158_s13 + $0xf0] sm:$0xff] %v4549_v8  ;;  %v4550_v44 = vmax.f32 %v4421_v43, 0.0  ;;  %v4425_v48 = vadd.f32 %v4424_v52, %v9058_v50  ;;  %v9887_v52 = vld [vmem:[#allocation63_spill] sm:$0xff] }
 0x4ad   : > { %v4426_v17 = vpop.f32.mrf.mxu1 }
 0x4ae   : > { %4614 = vst [vmem:[%s9158_s13 + $0xf8] sm:$0xff] %v4550_v44  ;;  %v4551_v40 = vmax.f32 %v4425_v48, 0.0  ;;  %v4427_v15 = vadd.f32 %v4426_v17, %v9061_v11  ;;  %v9888_v17 = vld [vmem:[#allocation86_spill] sm:$0xff] }
 0x4af   : > { %v4430_v24 = vpop.f32.mrf.mxu1 }
 0x4b0   : > { %4615 = vst [vmem:[%s9158_s13 + $0x100] sm:$0xff] %v4551_v40  ;;  %v4552_v38 = vmax.f32 %v4427_v15, 0.0  ;;  %v4431_v14 = vadd.f32 %v4430_v24, %v9064_v57 }
 0x4b1   : > { %v4432_v23 = vpop.f32.mrf.mxu1 }
 0x4b2   : > { %4616 = vst [vmem:[%s9158_s13 + $0x108] sm:$0xff] %v4552_v38  ;;  %v4553_v28 = vmax.f32 %v4431_v14, 0.0  ;;  %v4433_v41 = vadd.f32 %v4432_v23, %v9067_v2  ;;  %v9889_v38 = vld [vmem:[#allocation66_spill] sm:$0xff] }
 0x4b3   : > { %v4436_v53 = vpop.f32.mrf.mxu1 }
 0x4b4   : > { %4617 = vst [vmem:[%s9158_s13 + $0x110] sm:$0xff] %v4553_v28  ;;  %v4554_v50 = vmax.f32 %v4433_v41, 0.0  ;;  %v4437_v39 = vadd.f32 %v4436_v53, %v9070_v5  ;;  %v9890_v41 = vld [vmem:[#allocation14_spill] sm:$0xff] }
 0x4b5   : > { %v4438_v42 = vpop.f32.mrf.mxu1 }
 0x4b6   : > { %4618 = vst [vmem:[%s9158_s13 + $0x118] sm:$0xff] %v4554_v50  ;;  %v4555_v11 = vmax.f32 %v4437_v39, 0.0  ;;  %v4439_v58 = vadd.f32 %v4438_v42, %v9073_v56  ;;  %v9891_v42 = vld [vmem:[#allocation88_spill] sm:$0xff] }
 0x4b7   : > { %v4442_v54 = vpop.f32.mrf.mxu1 }
 0x4b8   : > { %4619 = vst [vmem:[%s9158_s13 + $0x120] sm:$0xff] %v4555_v11  ;;  %v4556_v57 = vmax.f32 %v4439_v58, 0.0  ;;  %v4443_v63 = vadd.f32 %v4442_v54, %v9076_v47 }
 0x4b9   : > { %v4444_v1 = vpop.f32.mrf.mxu1 }
 0x4ba   : > { %4620 = vst [vmem:[%s9158_s13 + $0x128] sm:$0xff] %v4556_v57  ;;  %v4557_v2 = vmax.f32 %v4443_v63, 0.0  ;;  %v4445_v27 = vadd.f32 %v4444_v1, %v9079_v34  ;;  %v9892_v57 = vld [vmem:[#allocation90_spill] sm:$0xff] }
 0x4bb   : > { %v4448_v30 = vpop.f32.mrf.mxu1 }
 0x4bc   : > { %4621 = vst [vmem:[%s9158_s13 + $0x130] sm:$0xff] %v4557_v2  ;;  %v4558_v5 = vmax.f32 %v4445_v27, 0.0  ;;  %v4449_v3 = vadd.f32 %v4448_v30, %v9082_v60  ;;  %v9893_v27 = vld [vmem:[#allocation104_spill] sm:$0xff] }
 0x4bd   : > { %v4450_v49 = vpop.f32.mrf.mxu1 }
 0x4be   : > { %4622 = vst [vmem:[%s9158_s13 + $0x138] sm:$0xff] %v4558_v5  ;;  %v4559_v56 = vmax.f32 %v4449_v3, 0.0  ;;  %v4451_v9 = vadd.f32 %v4450_v49, %v9085_v33 }
 0x4bf   : > { %v4454_v29 = vpop.f32.mrf.mxu1 }
 0x4c0   : > { %4623 = vst [vmem:[%s9158_s13 + $0x140] sm:$0xff] %v4559_v56  ;;  %v4560_v47 = vmax.f32 %v4451_v9, 0.0  ;;  %v4455_v61 = vadd.f32 %v4454_v29, %v9088_v18 }
 0x4c1   : > { %v4456_v19 = vpop.f32.mrf.mxu1 }
 0x4c2   : > { %4624 = vst [vmem:[%s9158_s13 + $0x148] sm:$0xff] %v4560_v47  ;;  %v4561_v34 = vmax.f32 %v4455_v61, 0.0  ;;  %v4457_v12 = vadd.f32 %v4456_v19, %v9091_v7 }
 0x4c3   : > { %v4460_v37 = vpop.f32.mrf.mxu1 }
 0x4c4   : > { %4625 = vst [vmem:[%s9158_s13 + $0x150] sm:$0xff] %v4561_v34  ;;  %v4562_v60 = vmax.f32 %v4457_v12, 0.0  ;;  %v4461_v35 = vadd.f32 %v4460_v37, %v9094_v13 }
 0x4c5   : > { %v4462_v59 = vpop.f32.mrf.mxu1 }
 0x4c6   : > { %4626 = vst [vmem:[%s9158_s13 + $0x158] sm:$0xff] %v4562_v60  ;;  %v4563_v33 = vmax.f32 %v4461_v35, 0.0  ;;  %v4463_v20 = vadd.f32 %v4462_v59, %v9097_v25 }
 0x4c7   : > { %v4466_v4 = vpop.f32.mrf.mxu1 }
 0x4c8   : > { %4627 = vst [vmem:[%s9158_s13 + $0x160] sm:$0xff] %v4563_v33  ;;  %v4564_v18 = vmax.f32 %v4463_v20, 0.0  ;;  %v4467_v45 = vadd.f32 %v4466_v4, %v9100_v26  ;;  %v9894_v33 = vld [vmem:[#allocation22_spill] sm:$0xff] }
 0x4c9   : > { %v4468_v22 = vpop.f32.mrf.mxu1 }
 0x4ca   : > { %4628 = vst [vmem:[%s9158_s13 + $0x168] sm:$0xff] %v4564_v18  ;;  %v4565_v7 = vmax.f32 %v4467_v45, 0.0  ;;  %v4469_v31 = vadd.f32 %v4468_v22, %v9103_v6  ;;  %v9895_v18 = vld [vmem:[#allocation24_spill] sm:$0xff] }
 0x4cb   : > { %v4472_v46 = vpop.f32.mrf.mxu1 }
 0x4cc   : > { %4629 = vst [vmem:[%s9158_s13 + $0x170] sm:$0xff] %v4565_v7  ;;  %v4566_v13 = vmax.f32 %v4469_v31, 0.0  ;;  %v4473_v62 = vadd.f32 %v4472_v46, %v9885_v51 }
 0x4cd   : > { %v4474_v36 = vpop.f32.mrf.mxu1 }
 0x4ce   : > { %4630 = vst [vmem:[%s9158_s13 + $0x178] sm:$0xff] %v4566_v13  ;;  %v4567_v25 = vmax.f32 %v4473_v62, 0.0  ;;  %v4475_v8 = vadd.f32 %v4474_v36, %v9886_v10 }
 0x4cf   : > { %v4478_v43 = vpop.f32.mrf.mxu1 }
 0x4d0   : > { %4631 = vst [vmem:[%s9158_s13 + $0x180] sm:$0xff] %v4567_v25  ;;  %v4568_v26 = vmax.f32 %v4475_v8, 0.0  ;;  %v4479_v44 = vadd.f32 %v4478_v43, %v9887_v52 }
 0x4d1   : > { %v4480_v48 = vpop.f32.mrf.mxu1 }
 0x4d2   : > { %4632 = vst [vmem:[%s9158_s13 + $0x188] sm:$0xff] %v4568_v26  ;;  %v4569_v6 = vmax.f32 %v4479_v44, 0.0  ;;  %v4481_v40 = vadd.f32 %v4480_v48, %v9888_v17 }
 0x4d3   : > { %v4484_v15 = vpop.f32.mrf.mxu1 }
 0x4d4   : > { %4633 = vst [vmem:[%s9158_s13 + $0x190] sm:$0xff] %v4569_v6  ;;  %v4570_v24 = vmax.f32 %v4481_v40, 0.0  ;;  %v4485_v14 = vadd.f32 %v4484_v15, %v9889_v38 }
 0x4d5   : > { %v4486_v23 = vpop.f32.mrf.mxu1 }
 0x4d6   : > { %4634 = vst [vmem:[%s9158_s13 + $0x198] sm:$0xff] %v4570_v24  ;;  %v4571_v28 = vmax.f32 %v4485_v14, 0.0  ;;  %v4487_v53 = vadd.f32 %v4486_v23, %v9890_v41 }
 0x4d7   : > { %v4490_v50 = vpop.f32.mrf.mxu1 }
 0x4d8   : > { %4635 = vst [vmem:[%s9158_s13 + $0x1a0] sm:$0xff] %v4571_v28  ;;  %v4572_v39 = vmax.f32 %v4487_v53, 0.0  ;;  %v4491_v11 = vadd.f32 %v4490_v50, %v9891_v42 }
 0x4d9   : > { %v4492_v58 = vpop.f32.mrf.mxu1 }
 0x4da   : > { %4636 = vst [vmem:[%s9158_s13 + $0x1a8] sm:$0xff] %v4572_v39  ;;  %v4573_v54 = vmax.f32 %v4491_v11, 0.0  ;;  %v4493_v63 = vadd.f32 %v4492_v58, %v9892_v57 }
 0x4db   : > { %v4496_v1 = vpop.f32.mrf.mxu1 }
 0x4dc   : > { %4637 = vst [vmem:[%s9158_s13 + $0x1b0] sm:$0xff] %v4573_v54  ;;  %v4574_v2 = vmax.f32 %v4493_v63, 0.0  ;;  %v4497_v30 = vadd.f32 %v4496_v1, %v9893_v27 }
 0x4dd   : > { %v4498_v5 = vpop.f32.mrf.mxu1 }
 0x4de   : > { %4638 = vst [vmem:[%s9158_s13 + $0x1b8] sm:$0xff] %v4574_v2  ;;  %v4575_v3 = vmax.f32 %v4497_v30, 0.0  ;;  %v4499_v49 = vadd.f32 %v4498_v5, %v9133_v21 }
 0x4df   : > { %v4502_v56 = vpop.f32.mrf.mxu1 }
 0x4e0   : > { %4639 = vst [vmem:[%s9158_s13 + $0x1c0] sm:$0xff] %v4575_v3  ;;  %v4576_v9 = vmax.f32 %v4499_v49, 0.0  ;;  %v4503_v29 = vadd.f32 %v4502_v56, %v9136_v0 }
 0x4e1   : > { %v4504_v47 = vpop.f32.mrf.mxu1 }
 0x4e2   : > { %4640 = vst [vmem:[%s9158_s13 + $0x1c8] sm:$0xff] %v4576_v9  ;;  %v4577_v61 = vmax.f32 %v4503_v29, 0.0  ;;  %v4505_v19 = vadd.f32 %v4504_v47, %v9139_v32 }
 0x4e3   : > { %v4508_v34 = vpop.f32.mrf.mxu1 }
 0x4e4   : > { %4641 = vst [vmem:[%s9158_s13 + $0x1d0] sm:$0xff] %v4577_v61  ;;  %v4578_v12 = vmax.f32 %v4505_v19, 0.0  ;;  %v4509_v37 = vadd.f32 %v4508_v34, %v9142_v55 }
 0x4e5   : > { %v4510_v21 = vpop.f32.mrf.mxu1 }
 0x4e6   : > { %4642 = vst [vmem:[%s9158_s13 + $0x1d8] sm:$0xff] %v4578_v12  ;;  %v4579_v60 = vmax.f32 %v4509_v37, 0.0  ;;  %v4511_v35 = vadd.f32 %v4510_v21, %v9145_v16 }
 0x4e7   : > { %v4514_v59 = vpop.f32.mrf.mxu1 }
 0x4e8   : > { %4643 = vst [vmem:[%s9158_s13 + $0x1e0] sm:$0xff] %v4579_v60  ;;  %v4580_v0 = vmax.f32 %v4511_v35, 0.0  ;;  %v4515_v20 = vadd.f32 %v4514_v59, %v9894_v33 }
 0x4e9   : > { %v4516_v4 = vpop.f32.mrf.mxu1 }
 0x4ea   : > { %4644 = vst [vmem:[%s9158_s13 + $0x1e8] sm:$0xff] %v4580_v0  ;;  %v4581_v32 = vmax.f32 %v4515_v20, 0.0  ;;  %v4517_v45 = vadd.f32 %v4516_v4, %v9895_v18 }
 0x4ec   : > { %4645 = vst [vmem:[%s9158_s13 + $0x1f0] sm:$0xff] %v4581_v32  ;;  %v4582_v22 = vmax.f32 %v4517_v45, 0.0 }
 0x4ee   : > { %4646 = vst [vmem:[%s9158_s13 + $0x1f8] sm:$0xff] %v4582_v22 }
 0x4ef PF: > { %s15_s18 = sadd.s32 1, %s4797_s18  }
 0x4f0   : > { %p12_p4 = scmp.ge.s32.totalorder %s15_s18, 4  }
 0x4f2   :  { %14 = sbr.rel (!%p12_p4) target bundleno = 1 (0x1), region = 70 }

</bundles_post_ra>
